<compile_context>
chip_gen: v5e
topology: v5e:2x2
jax: 0.10.0
libtpu: 0.0.40
codegen_flags: <defaults>
</compile_context>

<pallas_src>
import functools

import jax
import jax.numpy as jnp
import numpy as np
from jax.experimental import pallas as pl
from jax.experimental.pallas import tpu as pltpu


def _round_up(n, m):
    return ((n + m - 1) // m) * m


# ---------------------------------------------------------------------------
# Fused forward kernel (whole model, TB examples per grid step)
# ---------------------------------------------------------------------------

def _eegstnn_fused_kernel(x_ref, wpk_ref, colb_ref, rowb_ref, o_ref, *,
                          cfg, tb, n_in, length):
    f32, bf16 = jnp.float32, jnp.bfloat16
    C, L, K = n_in, length, cfg["ksize"]

    # -- packed-parameter accessors (all indices / sizes are static Python ints) --
    def wp(page, r, c):                       # bf16 weight sub-block (r, c)
        return wpk_ref[page, :r, :c]

    def cbias(idx, n):                        # (n, 1) f32, broadcasts along columns
        return colb_ref[:n, idx:idx + 1]

    def rbias(idx, n):                        # (1, n) f32, broadcasts along rows
        return rowb_ref[idx:idx + 1, :n]

    # -- MXU matmuls: bf16 operands, f32 accumulation --
    def lmul(page, r, c, x):                  # W(r, c) @ x
        return jnp.dot(wp(page, r, c), x.astype(bf16), preferred_element_type=f32)

    def rmul(x, page, r, c):                  # x @ W(r, c)
        return jnp.dot(x.astype(bf16), wp(page, r, c), preferred_element_type=f32)

    relu = lambda v: jnp.maximum(v, 0.0)

    def sigmoid(v):                           # numerically-stable sigmoid (f32, EUP exp)
        z = jnp.exp(-jnp.abs(v))
        return jnp.where(v >= 0.0, 1.0 / (1.0 + z), z / (1.0 + z))

    def maxpool2x2(h, size):                  # nn.MaxPool2d(2,2) via host-built 0/1 selectors
        sel = cfg["pool"][size]
        half = size // 2
        cmax = jnp.maximum(rmul(h, sel["ce"], size, half),
                           rmul(h, sel["co"], size, half))
        return jnp.maximum(lmul(sel["re"], half, size, cmax),
                           lmul(sel["ro"], half, size, cmax))

    outs = []
    for b in range(tb):                       # static unroll over the batch tile
        x = x_ref[b]                          # (C, L) f32

        # ---- Temporal_Unit: chain of Temporal_modules ------------------------
        y = x
        for i, t in enumerate(cfg["temporal"]):
            d = 2 ** i
            pad = (K - 1) * d
            # causal dilated Conv1d + Chomp1d as ONE (C, K*C) x (K*C, L) contraction
            yp = jnp.concatenate([jnp.zeros((C, pad), f32), y], axis=1)
            taps = jnp.concatenate([yp[:, k * d:k * d + L] for k in range(K)], axis=0)
            y1 = relu(lmul(t["conv_w"], C, K * C, taps) + cbias(t["conv_b"], C))
            # Spatial_Block (dropout == identity at inference)
            h = relu(lmul(t["a_w"], 128, C, y) + cbias(t["a_b"], 128))        # (128, L)
            h = relu(rmul(h, t["b_wT"], L, 128) + rbias(t["b_b"], 128))       # (128, 128)
            h = relu(lmul(t["c_w"], C, 128, h) + cbias(t["c_b"], C))          # (C, 128)
            y2 = relu(rmul(h, t["d_wT"], 128, L) + rbias(t["d_b"], L))        # (C, L)
            y = relu(y + y1 + y2)                                             # residual

        # ---- head: Linear(C, 1) on y[:, -1]  (y never leaves VMEM) ----------
        hd = cfg["head"]
        ylast = y[:, L - 1:L]                                                 # (C, 1)
        logit1 = (jnp.sum(cbias(hd["lin_w"], C) * ylast, axis=0, keepdims=True)
                  + rbias(hd["lin_b"], 1))                                    # (1, 1)

        # ---- Spatial_Unit on the original x ----------------------------------
        s = cfg["spatial_unit"]
        h = relu(lmul(s["a_w"], 128, C, x) + cbias(s["a_b"], 128))            # (128, L)
        h = relu(lmul(s["b_w"], 128, 128, h) + cbias(s["b_b"], 128))          # (128, L)
        h = relu(rmul(h, s["c_wT"], L, 128) + rbias(s["c_b"], 128))           # (128, 128)
        h = relu(rmul(h, s["d_wT"], 128, 128) + rbias(s["d_b"], 128))         # (128, 128)
        h = maxpool2x2(h, 128)                                                # (64, 64)
        h = relu(lmul(s["e_w"], 64, 64, h) + cbias(s["e_b"], 64))             # (64, 64)
        h = relu(lmul(s["f_w"], 32, 64, h) + cbias(s["f_b"], 32))             # (32, 64)
        h = relu(rmul(h, s["g_wT"], 64, 64) + rbias(s["g_b"], 64))            # (32, 64)
        h = relu(rmul(h, s["h_wT"], 64, 32) + rbias(s["h_b"], 32))            # (32, 32)
        h = maxpool2x2(h, 32)                                                 # (16, 16)
        h = relu(lmul(s["i_w"], 16, 16, h) + cbias(s["i_b"], 16))             # (16, 16)
        h = relu(lmul(s["j_w"], 4, 16, h) + cbias(s["j_b"], 4))               # (4, 16)
        h = relu(rmul(h, s["k_wT"], 16, 16) + rbias(s["k_b"], 16))            # (4, 16)
        h = relu(rmul(h, s["l_wT"], 16, 4) + rbias(s["l_b"], 4))              # (4, 4)
        # fc(view(-1, 16)): weight pre-reshaped row-major to (4, 4) -> mul + reduce
        fcw = wp(s["fc_w44"], 4, 4).astype(f32)
        logit2 = jnp.sum(jnp.sum(h * fcw, axis=1, keepdims=True), axis=0, keepdims=True)
        logit2 = relu(logit2 + rbias(s["fc_b"], 1))                           # (1, 1)

        outs.append(sigmoid(logit1 + logit2))                                 # (1, 1)

    o_ref[...] = jnp.concatenate(outs, axis=1).astype(o_ref.dtype)            # (1, TB)


def eegstnn_forward(x, arrays, cfg, *, tb=None):
    """EEGSTNNModel forward: sigmoid(linear(TemporalUnit(x)[:, :, -1]) + SpatialUnit(x))."""
    B, C, L = x.shape
    if tb is None:
        tb = max(1, min(8, pl.cdiv(B, 2)))    # keep >= 2 grid steps when B > 1 (v7x: 2 TCs)
    g = pl.cdiv(B, tb)
    bp = g * tb
    x = x.astype(jnp.float32)
    if bp != B:                               # pad batch up to a whole tile
        x = jnp.concatenate([x, jnp.zeros((bp - B, C, L), jnp.float32)], axis=0)

    wpk, colb, rowb = arrays["wpk"], arrays["colb"], arrays["rowb"]
    kernel = functools.partial(_eegstnn_fused_kernel, cfg=cfg, tb=tb, n_in=C, length=L)
    out = pl.pallas_call(
        kernel,
        grid=(g,),
        in_specs=[
            pl.BlockSpec((tb, C, L), lambda i: (i, 0, 0)),            # per-step batch tile
            pl.BlockSpec(wpk.shape, lambda i: (0, 0, 0)),             # VMEM-resident weight pages
            pl.BlockSpec(colb.shape, lambda i: (0, 0)),               # per-channel biases (columns)
            pl.BlockSpec(rowb.shape, lambda i: (0, 0)),               # per-feature biases (rows)
        ],
        out_specs=pl.BlockSpec((None, 1, tb), lambda i: (i, 0, 0)),   # lane-packed outputs
        out_shape=jax.ShapeDtypeStruct((g, 1, tb), jnp.float32),
        compiler_params=pltpu.CompilerParams(dimension_semantics=("parallel",)),
    )(x, wpk, colb, rowb)
    return out.reshape(bp, 1)[:B]


# ---------------------------------------------------------------------------
# Parameters: PyTorch-layout init + one-time host-side packing
# ---------------------------------------------------------------------------

def init_torch_params(key, input_channel, input_length, num_channels,
                      kernel_size=3, scale=0.15):
    """Random parameters in PyTorch layouts (Linear / k=1 Conv1d: (out, in);
    dilated Conv1d: (out, in, K)).  weight_norm treated as identity (fused weights)."""
    C, L, K = input_channel, input_length, kernel_size
    keys = iter(jax.random.split(key, 128))

    def w(shape):
        return scale * jax.random.normal(next(keys), shape, jnp.float32)

    def b(n):
        return scale * jax.random.normal(next(keys), (n,), jnp.float32)

    def spatial_block(cin):
        return dict(a_w=w((128, cin)), a_b=b(128),     # Conv1d(cin, 128, 1)
                    b_w=w((128, L)), b_b=b(128),       # Linear(L, 128)
                    c_w=w((cin, 128)), c_b=b(cin),     # Conv1d(128, cin, 1)
                    d_w=w((L, 128)), d_b=b(L))         # Linear(128, L)

    temporal = []
    for i, out_ch in enumerate(num_channels):
        in_ch = C if i == 0 else num_channels[i - 1]
        temporal.append(dict(conv_w=w((out_ch, in_ch, K)), conv_b=b(out_ch),
                             spatial=spatial_block(in_ch)))

    spatial_unit = dict(
        a_w=w((128, C)), a_b=b(128),   b_w=w((128, 128)), b_b=b(128),
        c_w=w((128, L)), c_b=b(128),   d_w=w((128, 128)), d_b=b(128),
        e_w=w((64, 64)), e_b=b(64),    f_w=w((32, 64)), f_b=b(32),
        g_w=w((64, 64)), g_b=b(64),    h_w=w((32, 64)), h_b=b(32),
        i_w=w((16, 16)), i_b=b(16),    j_w=w((4, 16)), j_b=b(4),
        k_w=w((16, 16)), k_b=b(16),    l_w=w((4, 16)), l_b=b(4),
        fc_w=w((1, 16)), fc_b=b(1))

    return dict(temporal=temporal, spatial_unit=spatial_unit,
                lin_w=w((1, num_channels[-1])), lin_b=b(1))


def prepare_params(p):
    """One-time host-side packing of all weights / biases / pool selectors into three
    TPU-friendly operands:
      wpk  : (n_pages, PR, PC) bfloat16  -- every matrix zero-padded into a "page"
      colb : (CH, n_col)       float32   -- per-output-channel biases (+ head weight col)
      rowb : (n_row, RW)       float32   -- per-output-feature biases (+ scalars)
    plus a static config of page / column / row indices.  All transposes / reshapes
    are hoisted here; nothing is rearranged per forward."""
    pages, col_vecs, row_vecs = [], [], []

    def add_page(w):
        pages.append(np.asarray(w, np.float32))
        return len(pages) - 1

    def add_col(v):
        col_vecs.append(np.asarray(v, np.float32).reshape(-1))
        return len(col_vecs) - 1

    def add_row(v):
        row_vecs.append(np.asarray(v, np.float32).reshape(-1))
        return len(row_vecs) - 1

    K = int(p["temporal"][0]["conv_w"].shape[2])

    temporal_cfg = []
    for t in p["temporal"]:
        cw = np.asarray(t["conv_w"], np.float32)           # (Cout, Cin, K) PyTorch layout
        cout, cin, _ = cw.shape
        # packed so that column index k*Cin + c multiplies tap_k row c (see kernel)
        cw_packed = cw.transpose(0, 2, 1).reshape(cout, K * cin)
        sb = t["spatial"]
        temporal_cfg.append(dict(
            conv_w=add_page(cw_packed), conv_b=add_col(t["conv_b"]),
            a_w=add_page(sb["a_w"]), a_b=add_col(sb["a_b"]),
            b_wT=add_page(np.asarray(sb["b_w"]).T), b_b=add_row(sb["b_b"]),
            c_w=add_page(sb["c_w"]), c_b=add_col(sb["c_b"]),
            d_wT=add_page(np.asarray(sb["d_w"]).T), d_b=add_row(sb["d_b"])))

    su = p["spatial_unit"]
    su_cfg = dict(
        a_w=add_page(su["a_w"]), a_b=add_col(su["a_b"]),
        b_w=add_page(su["b_w"]), b_b=add_col(su["b_b"]),
        c_wT=add_page(np.asarray(su["c_w"]).T), c_b=add_row(su["c_b"]),
        d_wT=add_page(np.asarray(su["d_w"]).T), d_b=add_row(su["d_b"]),
        e_w=add_page(su["e_w"]), e_b=add_col(su["e_b"]),
        f_w=add_page(su["f_w"]), f_b=add_col(su["f_b"]),
        g_wT=add_page(np.asarray(su["g_w"]).T), g_b=add_row(su["g_b"]),
        h_wT=add_page(np.asarray(su["h_w"]).T), h_b=add_row(su["h_b"]),
        i_w=add_page(su["i_w"]), i_b=add_col(su["i_b"]),
        j_w=add_page(su["j_w"]), j_b=add_col(su["j_b"]),
        k_wT=add_page(np.asarray(su["k_w"]).T), k_b=add_row(su["k_b"]),
        l_wT=add_page(np.asarray(su["l_w"]).T), l_b=add_row(su["l_b"]),
        # fc(view(-1, 16)): the (4,4) [channel, length] tile flattens row-major
        fc_w44=add_page(np.asarray(su["fc_w"], np.float32).reshape(4, 4)),
        fc_b=add_row(su["fc_b"]))

    head_cfg = dict(lin_w=add_col(np.asarray(p["lin_w"], np.float32).reshape(-1)),
                    lin_b=add_row(p["lin_b"]))

    # host-built 0/1 MaxPool2d(2,2) selectors (hoisted out of the kernel)
    pool_cfg = {}
    for size in (128, 32):
        half = size // 2
        rr = np.arange(size)[:, None]
        ce = (rr == 2 * np.arange(half)[None, :]).astype(np.float32)       # even columns
        co = (rr == 2 * np.arange(half)[None, :] + 1).astype(np.float32)   # odd columns
        pool_cfg[size] = dict(ce=add_page(ce), co=add_page(co),
                              re=add_page(ce.T), ro=add_page(co.T))

    # --- pack pages (bf16) and bias vectors (f32) into dense arrays ----------
    pr = max(8, _round_up(max(w.shape[0] for w in pages), 8))
    pc = max(128, _round_up(max(w.shape[1] for w in pages), 128))
    wpk = np.zeros((len(pages), pr, pc), np.float32)
    for i, w in enumerate(pages):
        wpk[i, :w.shape[0], :w.shape[1]] = w

    ch = max(8, _round_up(max(v.shape[0] for v in col_vecs), 8))
    colb = np.zeros((ch, len(col_vecs)), np.float32)
    for i, v in enumerate(col_vecs):
        colb[:v.shape[0], i] = v

    rw = max(128, _round_up(max(v.shape[0] for v in row_vecs), 128))
    rowb = np.zeros((len(row_vecs), rw), np.float32)
    for i, v in enumerate(row_vecs):
        rowb[i, :v.shape[0]] = v

    arrays = dict(wpk=jnp.asarray(wpk).astype(jnp.bfloat16),
                  colb=jnp.asarray(colb), rowb=jnp.asarray(rowb))
    cfg = dict(ksize=K, temporal=temporal_cfg, spatial_unit=su_cfg,
               head=head_cfg, pool=pool_cfg)
    return arrays, cfg


# ---------------------------------------------------------------------------
# Pure-JAX f32 reference (mirrors the PyTorch module), used for self-checking
# ---------------------------------------------------------------------------

def eegstnn_forward_ref(x, p):
    relu = lambda v: jnp.maximum(v, 0.0)

    def conv1x1(w, b, h):                       # torch Conv1d(k=1): w (out, in)
        return jnp.einsum("oi,bil->bol", w, h) + b[None, :, None]

    def linear(w, b, h):                        # torch Linear: w (out, in), last dim
        return jnp.einsum("...i,oi->...o", h, w) + b

    def causal_conv(w, b, h, d):                # Conv1d(K, dil=d, pad=(K-1)d) + Chomp1d
        K, L = w.shape[2], h.shape[2]
        pad = (K - 1) * d
        hp = jnp.pad(h, ((0, 0), (0, 0), (pad, 0)))
        out = sum(jnp.einsum("oi,bil->bol", w[:, :, k], hp[:, :, k * d:k * d + L])
                  for k in range(K))
        return out + b[None, :, None]

    def maxpool2x2(h):
        B, H, W = h.shape
        return h.reshape(B, H // 2, 2, W // 2, 2).max(axis=(2, 4))

    y = x
    for i, t in enumerate(p["temporal"]):
        d = 2 ** i
        y1 = relu(causal_conv(t["conv_w"], t["conv_b"], y, d))
        sb = t["spatial"]
        h = relu(conv1x1(sb["a_w"], sb["a_b"], y))
        h = relu(linear(sb["b_w"], sb["b_b"], h))
        h = relu(conv1x1(sb["c_w"], sb["c_b"], h))
        y2 = relu(linear(sb["d_w"], sb["d_b"], h))
        y = relu(y + y1 + y2)
    logit1 = y[:, :, -1] @ p["lin_w"].T + p["lin_b"]

    su = p["spatial_unit"]
    h = relu(conv1x1(su["a_w"], su["a_b"], x))
    h = relu(conv1x1(su["b_w"], su["b_b"], h))
    h = relu(linear(su["c_w"], su["c_b"], h))
    h = relu(linear(su["d_w"], su["d_b"], h))
    h = maxpool2x2(h)
    h = relu(conv1x1(su["e_w"], su["e_b"], h))
    h = relu(conv1x1(su["f_w"], su["f_b"], h))
    h = relu(linear(su["g_w"], su["g_b"], h))
    h = relu(linear(su["h_w"], su["h_b"], h))
    h = maxpool2x2(h)
    h = relu(conv1x1(su["i_w"], su["i_b"], h))
    h = relu(conv1x1(su["j_w"], su["j_b"], h))
    h = relu(linear(su["k_w"], su["k_b"], h))
    h = relu(linear(su["l_w"], su["l_b"], h))
    logit2 = relu(h.reshape(h.shape[0], -1) @ su["fc_w"].T + su["fc_b"])
    return jax.nn.sigmoid(logit1 + logit2)


if __name__ == "__main__":
    # Small config consistent with EEGSTNNModel(input_channel, input_length, num_channels, 3)
    B, C, L = 8, 8, 16
    num_channels = [C, C]          # residual add requires out_ch == in_ch

    torch_params = init_torch_params(jax.random.PRNGKey(42), C, L, num_channels)
    arrays, cfg = prepare_params(torch_params)          # one-time layout prep (hoisted)

    x = jax.random.normal(jax.random.PRNGKey(0), (B, C, L), jnp.float32)

    fwd = jax.jit(lambda xx, aa: eegstnn_forward(xx, aa, cfg, tb=4))  # grid=(2,), TB=4
    out = jax.block_until_ready(fwd(x, arrays))

    assert out.shape == (B, 1), out.shape
    assert bool(jnp.all(jnp.isfinite(out)))
    assert bool(jnp.all((out > 0.0) & (out < 1.0)))      # sigmoid output

    # self-check vs. the pure-JAX f32 reference (kernel uses bf16 MXU operands)
    ref = eegstnn_forward_ref(x, torch_params)
    max_err = float(jnp.max(jnp.abs(out - ref)))
    assert max_err < 2e-2, f"max abs err vs reference: {max_err}"

    print("KERNEL_OK")
</pallas_src>

<mosaic_0001>
module attributes {stable_mosaic.version = 11 : i64} {
  func.func @_eegstnn_fused_kernel(%arg0: i32, %arg1: memref<4x8x16xf32, #tpu.memory_space<vmem>>, %arg2: memref<31x128x128xbf16, #tpu.memory_space<vmem>>, %arg3: memref<128x13xf32, #tpu.memory_space<vmem>>, %arg4: memref<12x128xf32, #tpu.memory_space<vmem>>, %arg5: memref<1x1x4xf32, #tpu.memory_space<vmem>>) attributes {dimension_semantics = [#tpu.dimension_semantics<parallel>], iteration_bounds = array<i64: 2>, scalar_prefetch = 0 : i64, scratch_operands = 0 : i64, tpu.core_type = #tpu.core_type<tc>, window_params = [{transform_indices = @transform_0, window_bounds = array<i64: 4, 8, 16>}, {pipeline_mode = #tpu.pipeline_mode<synchronous>, transform_indices = @transform_1, window_bounds = array<i64: 31, 128, 128>}, {pipeline_mode = #tpu.pipeline_mode<synchronous>, transform_indices = @transform_2, window_bounds = array<i64: 128, 13>}, {pipeline_mode = #tpu.pipeline_mode<synchronous>, transform_indices = @transform_3, window_bounds = array<i64: 12, 128>}, {transform_indices = @transform_4, window_bounds = array<i64: 1, 1, 4>}]} {
    %c0 = arith.constant 0 : index
    %c0_0 = arith.constant 0 : index
    %c0_1 = arith.constant 0 : index
    %0 = vector.load %arg1[%c0, %c0_0, %c0_1] : memref<4x8x16xf32, #tpu.memory_space<vmem>>, vector<1x8x16xf32>
    %1 = vector.shape_cast %0 : vector<1x8x16xf32> to vector<8x16xf32>
    %cst = arith.constant 0.000000e+00 : f32
    %2 = vector.broadcast %cst : f32 to vector<8x2xf32>
    %3 = tpu.concatenate %2, %1 in 1 : vector<8x2xf32>, vector<8x16xf32> -> vector<8x18xf32>
    %4 = vector.extract_strided_slice %3 {offsets = [0, 0], sizes = [8, 16], strides = [1, 1]} : vector<8x18xf32> to vector<8x16xf32>
    %5 = vector.extract_strided_slice %3 {offsets = [0, 1], sizes = [8, 16], strides = [1, 1]} : vector<8x18xf32> to vector<8x16xf32>
    %6 = vector.extract_strided_slice %3 {offsets = [0, 2], sizes = [8, 16], strides = [1, 1]} : vector<8x18xf32> to vector<8x16xf32>
    %7 = tpu.concatenate %4, %5, %6 in 0 : vector<8x16xf32>, vector<8x16xf32>, vector<8x16xf32> -> vector<24x16xf32>
    %c0_2 = arith.constant 0 : index
    %c0_3 = arith.constant 0 : index
    %c0_4 = arith.constant 0 : index
    %8 = vector.load %arg2[%c0_2, %c0_3, %c0_4] : memref<31x128x128xbf16, #tpu.memory_space<vmem>>, vector<1x8x24xbf16>
    %9 = vector.shape_cast %8 : vector<1x8x24xbf16> to vector<8x24xbf16>
    %10 = arith.truncf %7 : vector<24x16xf32> to vector<24x16xbf16>
    %cst_5 = arith.constant dense<0.000000e+00> : vector<8x16xf32>
    %11 = tpu.matmul %9, %10, %cst_5 {dimension_numbers = #tpu.dot_dimension_numbers<[1], [0], [0], [1], [0, 0, 1, 1], [], []>} : vector<8x24xbf16>, vector<24x16xbf16>, vector<8x16xf32> -> vector<8x16xf32>
    %c0_6 = arith.constant 0 : index
    %c0_7 = arith.constant 0 : index
    %12 = vector.load %arg3[%c0_6, %c0_7] : memref<128x13xf32, #tpu.memory_space<vmem>>, vector<8x1xf32>
    %13 = vector.broadcast %12 : vector<8x1xf32> to vector<8x16xf32>
    %14 = arith.addf %11, %13 : vector<8x16xf32>
    %cst_8 = arith.constant 0.000000e+00 : f32
    %15 = vector.broadcast %cst_8 : f32 to vector<8x16xf32>
    %16 = arith.maximumf %14, %15 : vector<8x16xf32>
    %c1 = arith.constant 1 : index
    %c0_9 = arith.constant 0 : index
    %c0_10 = arith.constant 0 : index
    %17 = vector.load %arg2[%c1, %c0_9, %c0_10] : memref<31x128x128xbf16, #tpu.memory_space<vmem>>, vector<1x128x8xbf16>
    %18 = vector.shape_cast %17 : vector<1x128x8xbf16> to vector<128x8xbf16>
    %19 = arith.truncf %1 : vector<8x16xf32> to vector<8x16xbf16>
    %cst_11 = arith.constant dense<0.000000e+00> : vector<128x16xf32>
    %20 = tpu.matmul %18, %19, %cst_11 {dimension_numbers = #tpu.dot_dimension_numbers<[1], [0], [0], [1], [0, 0, 1, 1], [], []>} : vector<128x8xbf16>, vector<8x16xbf16>, vector<128x16xf32> -> vector<128x16xf32>
    %c0_12 = arith.constant 0 : index
    %c1_13 = arith.constant 1 : index
    %21 = vector.load %arg3[%c0_12, %c1_13] : memref<128x13xf32, #tpu.memory_space<vmem>>, vector<128x1xf32>
    %22 = vector.broadcast %21 : vector<128x1xf32> to vector<128x16xf32>
    %23 = arith.addf %20, %22 : vector<128x16xf32>
    %cst_14 = arith.constant 0.000000e+00 : f32
    %24 = vector.broadcast %cst_14 : f32 to vector<128x16xf32>
    %25 = arith.maximumf %23, %24 : vector<128x16xf32>
    %26 = arith.truncf %25 : vector<128x16xf32> to vector<128x16xbf16>
    %c2 = arith.constant 2 : index
    %c0_15 = arith.constant 0 : index
    %c0_16 = arith.constant 0 : index
    %27 = vector.load %arg2[%c2, %c0_15, %c0_16] : memref<31x128x128xbf16, #tpu.memory_space<vmem>>, vector<1x16x128xbf16>
    %28 = vector.shape_cast %27 : vector<1x16x128xbf16> to vector<16x128xbf16>
    %cst_17 = arith.constant dense<0.000000e+00> : vector<128x128xf32>
    %29 = tpu.matmul %26, %28, %cst_17 {dimension_numbers = #tpu.dot_dimension_numbers<[1], [0], [0], [1], [0, 0, 1, 1], [], []>} : vector<128x16xbf16>, vector<16x128xbf16>, vector<128x128xf32> -> vector<128x128xf32>
    %c0_18 = arith.constant 0 : index
    %c0_19 = arith.constant 0 : index
    %30 = vector.load %arg4[%c0_18, %c0_19] : memref<12x128xf32, #tpu.memory_space<vmem>>, vector<1x128xf32>
    %31 = vector.broadcast %30 : vector<1x128xf32> to vector<128x128xf32>
    %32 = arith.addf %29, %31 : vector<128x128xf32>
    %cst_20 = arith.constant 0.000000e+00 : f32
    %33 = vector.broadcast %cst_20 : f32 to vector<128x128xf32>
    %34 = arith.maximumf %32, %33 : vector<128x128xf32>
    %c3 = arith.constant 3 : index
    %c0_21 = arith.constant 0 : index
    %c0_22 = arith.constant 0 : index
    %35 = vector.load %arg2[%c3, %c0_21, %c0_22] : memref<31x128x128xbf16, #tpu.memory_space<vmem>>, vector<1x8x128xbf16>
    %36 = vector.shape_cast %35 : vector<1x8x128xbf16> to vector<8x128xbf16>
    %37 = arith.truncf %34 : vector<128x128xf32> to vector<128x128xbf16>
    %cst_23 = arith.constant dense<0.000000e+00> : vector<8x128xf32>
    %38 = tpu.matmul %36, %37, %cst_23 {dimension_numbers = #tpu.dot_dimension_numbers<[1], [0], [0], [1], [0, 0, 1, 1], [], []>} : vector<8x128xbf16>, vector<128x128xbf16>, vector<8x128xf32> -> vector<8x128xf32>
    %c0_24 = arith.constant 0 : index
    %c2_25 = arith.constant 2 : index
    %39 = vector.load %arg3[%c0_24, %c2_25] : memref<128x13xf32, #tpu.memory_space<vmem>>, vector<8x1xf32>
    %40 = vector.broadcast %39 : vector<8x1xf32> to vector<8x128xf32>
    %41 = arith.addf %38, %40 : vector<8x128xf32>
    %cst_26 = arith.constant 0.000000e+00 : f32
    %42 = vector.broadcast %cst_26 : f32 to vector<8x128xf32>
    %43 = arith.maximumf %41, %42 : vector<8x128xf32>
    %44 = arith.truncf %43 : vector<8x128xf32> to vector<8x128xbf16>
    %c4 = arith.constant 4 : index
    %c0_27 = arith.constant 0 : index
    %c0_28 = arith.constant 0 : index
    %45 = vector.load %arg2[%c4, %c0_27, %c0_28] : memref<31x128x128xbf16, #tpu.memory_space<vmem>>, vector<1x128x16xbf16>
    %46 = vector.shape_cast %45 : vector<1x128x16xbf16> to vector<128x16xbf16>
    %cst_29 = arith.constant dense<0.000000e+00> : vector<8x16xf32>
    %47 = tpu.matmul %44, %46, %cst_29 {dimension_numbers = #tpu.dot_dimension_numbers<[1], [0], [0], [1], [0, 0, 1, 1], [], []>} : vector<8x128xbf16>, vector<128x16xbf16>, vector<8x16xf32> -> vector<8x16xf32>
    %c1_30 = arith.constant 1 : index
    %c0_31 = arith.constant 0 : index
    %48 = vector.load %arg4[%c1_30, %c0_31] : memref<12x128xf32, #tpu.memory_space<vmem>>, vector<1x16xf32>
    %49 = vector.broadcast %48 : vector<1x16xf32> to vector<8x16xf32>
    %50 = arith.addf %47, %49 : vector<8x16xf32>
    %cst_32 = arith.constant 0.000000e+00 : f32
    %51 = vector.broadcast %cst_32 : f32 to vector<8x16xf32>
    %52 = arith.maximumf %50, %51 : vector<8x16xf32>
    %53 = arith.addf %1, %16 : vector<8x16xf32>
    %54 = arith.addf %53, %52 : vector<8x16xf32>
    %cst_33 = arith.constant 0.000000e+00 : f32
    %55 = vector.broadcast %cst_33 : f32 to vector<8x16xf32>
    %56 = arith.maximumf %54, %55 : vector<8x16xf32>
    %cst_34 = arith.constant 0.000000e+00 : f32
    %57 = vector.broadcast %cst_34 : f32 to vector<8x4xf32>
    %58 = tpu.concatenate %57, %56 in 1 : vector<8x4xf32>, vector<8x16xf32> -> vector<8x20xf32>
    %59 = vector.extract_strided_slice %58 {offsets = [0, 0], sizes = [8, 16], strides = [1, 1]} : vector<8x20xf32> to vector<8x16xf32>
    %60 = vector.extract_strided_slice %58 {offsets = [0, 2], sizes = [8, 16], strides = [1, 1]} : vector<8x20xf32> to vector<8x16xf32>
    %61 = vector.extract_strided_slice %58 {offsets = [0, 4], sizes = [8, 16], strides = [1, 1]} : vector<8x20xf32> to vector<8x16xf32>
    %62 = tpu.concatenate %59, %60, %61 in 0 : vector<8x16xf32>, vector<8x16xf32>, vector<8x16xf32> -> vector<24x16xf32>
    %c5 = arith.constant 5 : index
    %c0_35 = arith.constant 0 : index
    %c0_36 = arith.constant 0 : index
    %63 = vector.load %arg2[%c5, %c0_35, %c0_36] : memref<31x128x128xbf16, #tpu.memory_space<vmem>>, vector<1x8x24xbf16>
    %64 = vector.shape_cast %63 : vector<1x8x24xbf16> to vector<8x24xbf16>
    %65 = arith.truncf %62 : vector<24x16xf32> to vector<24x16xbf16>
    %cst_37 = arith.constant dense<0.000000e+00> : vector<8x16xf32>
    %66 = tpu.matmul %64, %65, %cst_37 {dimension_numbers = #tpu.dot_dimension_numbers<[1], [0], [0], [1], [0, 0, 1, 1], [], []>} : vector<8x24xbf16>, vector<24x16xbf16>, vector<8x16xf32> -> vector<8x16xf32>
    %c0_38 = arith.constant 0 : index
    %c3_39 = arith.constant 3 : index
    %67 = vector.load %arg3[%c0_38, %c3_39] : memref<128x13xf32, #tpu.memory_space<vmem>>, vector<8x1xf32>
    %68 = vector.broadcast %67 : vector<8x1xf32> to vector<8x16xf32>
    %69 = arith.addf %66, %68 : vector<8x16xf32>
    %cst_40 = arith.constant 0.000000e+00 : f32
    %70 = vector.broadcast %cst_40 : f32 to vector<8x16xf32>
    %71 = arith.maximumf %69, %70 : vector<8x16xf32>
    %c6 = arith.constant 6 : index
    %c0_41 = arith.constant 0 : index
    %c0_42 = arith.constant 0 : index
    %72 = vector.load %arg2[%c6, %c0_41, %c0_42] : memref<31x128x128xbf16, #tpu.memory_space<vmem>>, vector<1x128x8xbf16>
    %73 = vector.shape_cast %72 : vector<1x128x8xbf16> to vector<128x8xbf16>
    %74 = arith.truncf %56 : vector<8x16xf32> to vector<8x16xbf16>
    %cst_43 = arith.constant dense<0.000000e+00> : vector<128x16xf32>
    %75 = tpu.matmul %73, %74, %cst_43 {dimension_numbers = #tpu.dot_dimension_numbers<[1], [0], [0], [1], [0, 0, 1, 1], [], []>} : vector<128x8xbf16>, vector<8x16xbf16>, vector<128x16xf32> -> vector<128x16xf32>
    %c0_44 = arith.constant 0 : index
    %c4_45 = arith.constant 4 : index
    %76 = vector.load %arg3[%c0_44, %c4_45] : memref<128x13xf32, #tpu.memory_space<vmem>>, vector<128x1xf32>
    %77 = vector.broadcast %76 : vector<128x1xf32> to vector<128x16xf32>
    %78 = arith.addf %75, %77 : vector<128x16xf32>
    %cst_46 = arith.constant 0.000000e+00 : f32
    %79 = vector.broadcast %cst_46 : f32 to vector<128x16xf32>
    %80 = arith.maximumf %78, %79 : vector<128x16xf32>
    %81 = arith.truncf %80 : vector<128x16xf32> to vector<128x16xbf16>
    %c7 = arith.constant 7 : index
    %c0_47 = arith.constant 0 : index
    %c0_48 = arith.constant 0 : index
    %82 = vector.load %arg2[%c7, %c0_47, %c0_48] : memref<31x128x128xbf16, #tpu.memory_space<vmem>>, vector<1x16x128xbf16>
    %83 = vector.shape_cast %82 : vector<1x16x128xbf16> to vector<16x128xbf16>
    %cst_49 = arith.constant dense<0.000000e+00> : vector<128x128xf32>
    %84 = tpu.matmul %81, %83, %cst_49 {dimension_numbers = #tpu.dot_dimension_numbers<[1], [0], [0], [1], [0, 0, 1, 1], [], []>} : vector<128x16xbf16>, vector<16x128xbf16>, vector<128x128xf32> -> vector<128x128xf32>
    %c2_50 = arith.constant 2 : index
    %c0_51 = arith.constant 0 : index
    %85 = vector.load %arg4[%c2_50, %c0_51] : memref<12x128xf32, #tpu.memory_space<vmem>>, vector<1x128xf32>
    %86 = vector.broadcast %85 : vector<1x128xf32> to vector<128x128xf32>
    %87 = arith.addf %84, %86 : vector<128x128xf32>
    %cst_52 = arith.constant 0.000000e+00 : f32
    %88 = vector.broadcast %cst_52 : f32 to vector<128x128xf32>
    %89 = arith.maximumf %87, %88 : vector<128x128xf32>
    %c8 = arith.constant 8 : index
    %c0_53 = arith.constant 0 : index
    %c0_54 = arith.constant 0 : index
    %90 = vector.load %arg2[%c8, %c0_53, %c0_54] : memref<31x128x128xbf16, #tpu.memory_space<vmem>>, vector<1x8x128xbf16>
    %91 = vector.shape_cast %90 : vector<1x8x128xbf16> to vector<8x128xbf16>
    %92 = arith.truncf %89 : vector<128x128xf32> to vector<128x128xbf16>
    %cst_55 = arith.constant dense<0.000000e+00> : vector<8x128xf32>
    %93 = tpu.matmul %91, %92, %cst_55 {dimension_numbers = #tpu.dot_dimension_numbers<[1], [0], [0], [1], [0, 0, 1, 1], [], []>} : vector<8x128xbf16>, vector<128x128xbf16>, vector<8x128xf32> -> vector<8x128xf32>
    %c0_56 = arith.constant 0 : index
    %c5_57 = arith.constant 5 : index
    %94 = vector.load %arg3[%c0_56, %c5_57] : memref<128x13xf32, #tpu.memory_space<vmem>>, vector<8x1xf32>
    %95 = vector.broadcast %94 : vector<8x1xf32> to vector<8x128xf32>
    %96 = arith.addf %93, %95 : vector<8x128xf32>
    %cst_58 = arith.constant 0.000000e+00 : f32
    %97 = vector.broadcast %cst_58 : f32 to vector<8x128xf32>
    %98 = arith.maximumf %96, %97 : vector<8x128xf32>
    %99 = arith.truncf %98 : vector<8x128xf32> to vector<8x128xbf16>
    %c9 = arith.constant 9 : index
    %c0_59 = arith.constant 0 : index
    %c0_60 = arith.constant 0 : index
    %100 = vector.load %arg2[%c9, %c0_59, %c0_60] : memref<31x128x128xbf16, #tpu.memory_space<vmem>>, vector<1x128x16xbf16>
    %101 = vector.shape_cast %100 : vector<1x128x16xbf16> to vector<128x16xbf16>
    %cst_61 = arith.constant dense<0.000000e+00> : vector<8x16xf32>
    %102 = tpu.matmul %99, %101, %cst_61 {dimension_numbers = #tpu.dot_dimension_numbers<[1], [0], [0], [1], [0, 0, 1, 1], [], []>} : vector<8x128xbf16>, vector<128x16xbf16>, vector<8x16xf32> -> vector<8x16xf32>
    %c3_62 = arith.constant 3 : index
    %c0_63 = arith.constant 0 : index
    %103 = vector.load %arg4[%c3_62, %c0_63] : memref<12x128xf32, #tpu.memory_space<vmem>>, vector<1x16xf32>
    %104 = vector.broadcast %103 : vector<1x16xf32> to vector<8x16xf32>
    %105 = arith.addf %102, %104 : vector<8x16xf32>
    %cst_64 = arith.constant 0.000000e+00 : f32
    %106 = vector.broadcast %cst_64 : f32 to vector<8x16xf32>
    %107 = arith.maximumf %105, %106 : vector<8x16xf32>
    %108 = arith.addf %56, %71 : vector<8x16xf32>
    %109 = arith.addf %108, %107 : vector<8x16xf32>
    %cst_65 = arith.constant 0.000000e+00 : f32
    %110 = vector.broadcast %cst_65 : f32 to vector<8x16xf32>
    %111 = arith.maximumf %109, %110 : vector<8x16xf32>
    %112 = vector.extract_strided_slice %111 {offsets = [0, 15], sizes = [8, 1], strides = [1, 1]} : vector<8x16xf32> to vector<8x1xf32>
    %c0_66 = arith.constant 0 : index
    %c12 = arith.constant 12 : index
    %113 = vector.load %arg3[%c0_66, %c12] : memref<128x13xf32, #tpu.memory_space<vmem>>, vector<8x1xf32>
    %114 = arith.mulf %113, %112 : vector<8x1xf32>
    %cst_67 = arith.constant dense<0.000000e+00> : vector<1xf32>
    %115 = vector.multi_reduction <add>, %114, %cst_67 [0] : vector<8x1xf32> to vector<1xf32>
    %116 = vector.shape_cast %115 : vector<1xf32> to vector<1x1xf32>
    %c11 = arith.constant 11 : index
    %c0_68 = arith.constant 0 : index
    %117 = vector.load %arg4[%c11, %c0_68] : memref<12x128xf32, #tpu.memory_space<vmem>>, vector<1x1xf32>
    %118 = arith.addf %116, %117 : vector<1x1xf32>
    %c10 = arith.constant 10 : index
    %c0_69 = arith.constant 0 : index
    %c0_70 = arith.constant 0 : index
    %119 = vector.load %arg2[%c10, %c0_69, %c0_70] : memref<31x128x128xbf16, #tpu.memory_space<vmem>>, vector<1x128x8xbf16>
    %120 = vector.shape_cast %119 : vector<1x128x8xbf16> to vector<128x8xbf16>
    %121 = arith.truncf %1 : vector<8x16xf32> to vector<8x16xbf16>
    %cst_71 = arith.constant dense<0.000000e+00> : vector<128x16xf32>
    %122 = tpu.matmul %120, %121, %cst_71 {dimension_numbers = #tpu.dot_dimension_numbers<[1], [0], [0], [1], [0, 0, 1, 1], [], []>} : vector<128x8xbf16>, vector<8x16xbf16>, vector<128x16xf32> -> vector<128x16xf32>
    %c0_72 = arith.constant 0 : index
    %c6_73 = arith.constant 6 : index
    %123 = vector.load %arg3[%c0_72, %c6_73] : memref<128x13xf32, #tpu.memory_space<vmem>>, vector<128x1xf32>
    %124 = vector.broadcast %123 : vector<128x1xf32> to vector<128x16xf32>
    %125 = arith.addf %122, %124 : vector<128x16xf32>
    %cst_74 = arith.constant 0.000000e+00 : f32
    %126 = vector.broadcast %cst_74 : f32 to vector<128x16xf32>
    %127 = arith.maximumf %125, %126 : vector<128x16xf32>
    %c11_75 = arith.constant 11 : index
    %c0_76 = arith.constant 0 : index
    %c0_77 = arith.constant 0 : index
    %128 = vector.load %arg2[%c11_75, %c0_76, %c0_77] : memref<31x128x128xbf16, #tpu.memory_space<vmem>>, vector<1x128x128xbf16>
    %129 = vector.shape_cast %128 : vector<1x128x128xbf16> to vector<128x128xbf16>
    %130 = arith.truncf %127 : vector<128x16xf32> to vector<128x16xbf16>
    %cst_78 = arith.constant dense<0.000000e+00> : vector<128x16xf32>
    %131 = tpu.matmul %129, %130, %cst_78 {dimension_numbers = #tpu.dot_dimension_numbers<[1], [0], [0], [1], [0, 0, 1, 1], [], []>} : vector<128x128xbf16>, vector<128x16xbf16>, vector<128x16xf32> -> vector<128x16xf32>
    %c0_79 = arith.constant 0 : index
    %c7_80 = arith.constant 7 : index
    %132 = vector.load %arg3[%c0_79, %c7_80] : memref<128x13xf32, #tpu.memory_space<vmem>>, vector<128x1xf32>
    %133 = vector.broadcast %132 : vector<128x1xf32> to vector<128x16xf32>
    %134 = arith.addf %131, %133 : vector<128x16xf32>
    %cst_81 = arith.constant 0.000000e+00 : f32
    %135 = vector.broadcast %cst_81 : f32 to vector<128x16xf32>
    %136 = arith.maximumf %134, %135 : vector<128x16xf32>
    %137 = arith.truncf %136 : vector<128x16xf32> to vector<128x16xbf16>
    %c12_82 = arith.constant 12 : index
    %c0_83 = arith.constant 0 : index
    %c0_84 = arith.constant 0 : index
    %138 = vector.load %arg2[%c12_82, %c0_83, %c0_84] : memref<31x128x128xbf16, #tpu.memory_space<vmem>>, vector<1x16x128xbf16>
    %139 = vector.shape_cast %138 : vector<1x16x128xbf16> to vector<16x128xbf16>
    %cst_85 = arith.constant dense<0.000000e+00> : vector<128x128xf32>
    %140 = tpu.matmul %137, %139, %cst_85 {dimension_numbers = #tpu.dot_dimension_numbers<[1], [0], [0], [1], [0, 0, 1, 1], [], []>} : vector<128x16xbf16>, vector<16x128xbf16>, vector<128x128xf32> -> vector<128x128xf32>
    %c4_86 = arith.constant 4 : index
    %c0_87 = arith.constant 0 : index
    %141 = vector.load %arg4[%c4_86, %c0_87] : memref<12x128xf32, #tpu.memory_space<vmem>>, vector<1x128xf32>
    %142 = vector.broadcast %141 : vector<1x128xf32> to vector<128x128xf32>
    %143 = arith.addf %140, %142 : vector<128x128xf32>
    %cst_88 = arith.constant 0.000000e+00 : f32
    %144 = vector.broadcast %cst_88 : f32 to vector<128x128xf32>
    %145 = arith.maximumf %143, %144 : vector<128x128xf32>
    %146 = arith.truncf %145 : vector<128x128xf32> to vector<128x128xbf16>
    %c13 = arith.constant 13 : index
    %c0_89 = arith.constant 0 : index
    %c0_90 = arith.constant 0 : index
    %147 = vector.load %arg2[%c13, %c0_89, %c0_90] : memref<31x128x128xbf16, #tpu.memory_space<vmem>>, vector<1x128x128xbf16>
    %148 = vector.shape_cast %147 : vector<1x128x128xbf16> to vector<128x128xbf16>
    %cst_91 = arith.constant dense<0.000000e+00> : vector<128x128xf32>
    %149 = tpu.matmul %146, %148, %cst_91 {dimension_numbers = #tpu.dot_dimension_numbers<[1], [0], [0], [1], [0, 0, 1, 1], [], []>} : vector<128x128xbf16>, vector<128x128xbf16>, vector<128x128xf32> -> vector<128x128xf32>
    %c5_92 = arith.constant 5 : index
    %c0_93 = arith.constant 0 : index
    %150 = vector.load %arg4[%c5_92, %c0_93] : memref<12x128xf32, #tpu.memory_space<vmem>>, vector<1x128xf32>
    %151 = vector.broadcast %150 : vector<1x128xf32> to vector<128x128xf32>
    %152 = arith.addf %149, %151 : vector<128x128xf32>
    %cst_94 = arith.constant 0.000000e+00 : f32
    %153 = vector.broadcast %cst_94 : f32 to vector<128x128xf32>
    %154 = arith.maximumf %152, %153 : vector<128x128xf32>
    %155 = arith.truncf %154 : vector<128x128xf32> to vector<128x128xbf16>
    %c23 = arith.constant 23 : index
    %c0_95 = arith.constant 0 : index
    %c0_96 = arith.constant 0 : index
    %156 = vector.load %arg2[%c23, %c0_95, %c0_96] : memref<31x128x128xbf16, #tpu.memory_space<vmem>>, vector<1x128x64xbf16>
    %157 = vector.shape_cast %156 : vector<1x128x64xbf16> to vector<128x64xbf16>
    %cst_97 = arith.constant dense<0.000000e+00> : vector<128x64xf32>
    %158 = tpu.matmul %155, %157, %cst_97 {dimension_numbers = #tpu.dot_dimension_numbers<[1], [0], [0], [1], [0, 0, 1, 1], [], []>} : vector<128x128xbf16>, vector<128x64xbf16>, vector<128x64xf32> -> vector<128x64xf32>
    %159 = arith.truncf %154 : vector<128x128xf32> to vector<128x128xbf16>
    %c24 = arith.constant 24 : index
    %c0_98 = arith.constant 0 : index
    %c0_99 = arith.constant 0 : index
    %160 = vector.load %arg2[%c24, %c0_98, %c0_99] : memref<31x128x128xbf16, #tpu.memory_space<vmem>>, vector<1x128x64xbf16>
    %161 = vector.shape_cast %160 : vector<1x128x64xbf16> to vector<128x64xbf16>
    %cst_100 = arith.constant dense<0.000000e+00> : vector<128x64xf32>
    %162 = tpu.matmul %159, %161, %cst_100 {dimension_numbers = #tpu.dot_dimension_numbers<[1], [0], [0], [1], [0, 0, 1, 1], [], []>} : vector<128x128xbf16>, vector<128x64xbf16>, vector<128x64xf32> -> vector<128x64xf32>
    %163 = arith.maximumf %158, %162 : vector<128x64xf32>
    %c25 = arith.constant 25 : index
    %c0_101 = arith.constant 0 : index
    %c0_102 = arith.constant 0 : index
    %164 = vector.load %arg2[%c25, %c0_101, %c0_102] : memref<31x128x128xbf16, #tpu.memory_space<vmem>>, vector<1x64x128xbf16>
    %165 = vector.shape_cast %164 : vector<1x64x128xbf16> to vector<64x128xbf16>
    %166 = arith.truncf %163 : vector<128x64xf32> to vector<128x64xbf16>
    %cst_103 = arith.constant dense<0.000000e+00> : vector<64x64xf32>
    %167 = tpu.matmul %165, %166, %cst_103 {dimension_numbers = #tpu.dot_dimension_numbers<[1], [0], [0], [1], [0, 0, 1, 1], [], []>} : vector<64x128xbf16>, vector<128x64xbf16>, vector<64x64xf32> -> vector<64x64xf32>
    %c26 = arith.constant 26 : index
    %c0_104 = arith.constant 0 : index
    %c0_105 = arith.constant 0 : index
    %168 = vector.load %arg2[%c26, %c0_104, %c0_105] : memref<31x128x128xbf16, #tpu.memory_space<vmem>>, vector<1x64x128xbf16>
    %169 = vector.shape_cast %168 : vector<1x64x128xbf16> to vector<64x128xbf16>
    %170 = arith.truncf %163 : vector<128x64xf32> to vector<128x64xbf16>
    %cst_106 = arith.constant dense<0.000000e+00> : vector<64x64xf32>
    %171 = tpu.matmul %169, %170, %cst_106 {dimension_numbers = #tpu.dot_dimension_numbers<[1], [0], [0], [1], [0, 0, 1, 1], [], []>} : vector<64x128xbf16>, vector<128x64xbf16>, vector<64x64xf32> -> vector<64x64xf32>
    %172 = arith.maximumf %167, %171 : vector<64x64xf32>
    %c14 = arith.constant 14 : index
    %c0_107 = arith.constant 0 : index
    %c0_108 = arith.constant 0 : index
    %173 = vector.load %arg2[%c14, %c0_107, %c0_108] : memref<31x128x128xbf16, #tpu.memory_space<vmem>>, vector<1x64x64xbf16>
    %174 = vector.shape_cast %173 : vector<1x64x64xbf16> to vector<64x64xbf16>
    %175 = arith.truncf %172 : vector<64x64xf32> to vector<64x64xbf16>
    %cst_109 = arith.constant dense<0.000000e+00> : vector<64x64xf32>
    %176 = tpu.matmul %174, %175, %cst_109 {dimension_numbers = #tpu.dot_dimension_numbers<[1], [0], [0], [1], [0, 0, 1, 1], [], []>} : vector<64x64xbf16>, vector<64x64xbf16>, vector<64x64xf32> -> vector<64x64xf32>
    %c0_110 = arith.constant 0 : index
    %c8_111 = arith.constant 8 : index
    %177 = vector.load %arg3[%c0_110, %c8_111] : memref<128x13xf32, #tpu.memory_space<vmem>>, vector<64x1xf32>
    %178 = vector.broadcast %177 : vector<64x1xf32> to vector<64x64xf32>
    %179 = arith.addf %176, %178 : vector<64x64xf32>
    %cst_112 = arith.constant 0.000000e+00 : f32
    %180 = vector.broadcast %cst_112 : f32 to vector<64x64xf32>
    %181 = arith.maximumf %179, %180 : vector<64x64xf32>
    %c15 = arith.constant 15 : index
    %c0_113 = arith.constant 0 : index
    %c0_114 = arith.constant 0 : index
    %182 = vector.load %arg2[%c15, %c0_113, %c0_114] : memref<31x128x128xbf16, #tpu.memory_space<vmem>>, vector<1x32x64xbf16>
    %183 = vector.shape_cast %182 : vector<1x32x64xbf16> to vector<32x64xbf16>
    %184 = arith.truncf %181 : vector<64x64xf32> to vector<64x64xbf16>
    %cst_115 = arith.constant dense<0.000000e+00> : vector<32x64xf32>
    %185 = tpu.matmul %183, %184, %cst_115 {dimension_numbers = #tpu.dot_dimension_numbers<[1], [0], [0], [1], [0, 0, 1, 1], [], []>} : vector<32x64xbf16>, vector<64x64xbf16>, vector<32x64xf32> -> vector<32x64xf32>
    %c0_116 = arith.constant 0 : index
    %c9_117 = arith.constant 9 : index
    %186 = vector.load %arg3[%c0_116, %c9_117] : memref<128x13xf32, #tpu.memory_space<vmem>>, vector<32x1xf32>
    %187 = vector.broadcast %186 : vector<32x1xf32> to vector<32x64xf32>
    %188 = arith.addf %185, %187 : vector<32x64xf32>
    %cst_118 = arith.constant 0.000000e+00 : f32
    %189 = vector.broadcast %cst_118 : f32 to vector<32x64xf32>
    %190 = arith.maximumf %188, %189 : vector<32x64xf32>
    %191 = arith.truncf %190 : vector<32x64xf32> to vector<32x64xbf16>
    %c16 = arith.constant 16 : index
    %c0_119 = arith.constant 0 : index
    %c0_120 = arith.constant 0 : index
    %192 = vector.load %arg2[%c16, %c0_119, %c0_120] : memref<31x128x128xbf16, #tpu.memory_space<vmem>>, vector<1x64x64xbf16>
    %193 = vector.shape_cast %192 : vector<1x64x64xbf16> to vector<64x64xbf16>
    %cst_121 = arith.constant dense<0.000000e+00> : vector<32x64xf32>
    %194 = tpu.matmul %191, %193, %cst_121 {dimension_numbers = #tpu.dot_dimension_numbers<[1], [0], [0], [1], [0, 0, 1, 1], [], []>} : vector<32x64xbf16>, vector<64x64xbf16>, vector<32x64xf32> -> vector<32x64xf32>
    %c6_122 = arith.constant 6 : index
    %c0_123 = arith.constant 0 : index
    %195 = vector.load %arg4[%c6_122, %c0_123] : memref<12x128xf32, #tpu.memory_space<vmem>>, vector<1x64xf32>
    %196 = vector.broadcast %195 : vector<1x64xf32> to vector<32x64xf32>
    %197 = arith.addf %194, %196 : vector<32x64xf32>
    %cst_124 = arith.constant 0.000000e+00 : f32
    %198 = vector.broadcast %cst_124 : f32 to vector<32x64xf32>
    %199 = arith.maximumf %197, %198 : vector<32x64xf32>
    %200 = arith.truncf %199 : vector<32x64xf32> to vector<32x64xbf16>
    %c17 = arith.constant 17 : index
    %c0_125 = arith.constant 0 : index
    %c0_126 = arith.constant 0 : index
    %201 = vector.load %arg2[%c17, %c0_125, %c0_126] : memref<31x128x128xbf16, #tpu.memory_space<vmem>>, vector<1x64x32xbf16>
    %202 = vector.shape_cast %201 : vector<1x64x32xbf16> to vector<64x32xbf16>
    %cst_127 = arith.constant dense<0.000000e+00> : vector<32x32xf32>
    %203 = tpu.matmul %200, %202, %cst_127 {dimension_numbers = #tpu.dot_dimension_numbers<[1], [0], [0], [1], [0, 0, 1, 1], [], []>} : vector<32x64xbf16>, vector<64x32xbf16>, vector<32x32xf32> -> vector<32x32xf32>
    %c7_128 = arith.constant 7 : index
    %c0_129 = arith.constant 0 : index
    %204 = vector.load %arg4[%c7_128, %c0_129] : memref<12x128xf32, #tpu.memory_space<vmem>>, vector<1x32xf32>
    %205 = vector.broadcast %204 : vector<1x32xf32> to vector<32x32xf32>
    %206 = arith.addf %203, %205 : vector<32x32xf32>
    %cst_130 = arith.constant 0.000000e+00 : f32
    %207 = vector.broadcast %cst_130 : f32 to vector<32x32xf32>
    %208 = arith.maximumf %206, %207 : vector<32x32xf32>
    %209 = arith.truncf %208 : vector<32x32xf32> to vector<32x32xbf16>
    %c27 = arith.constant 27 : index
    %c0_131 = arith.constant 0 : index
    %c0_132 = arith.constant 0 : index
    %210 = vector.load %arg2[%c27, %c0_131, %c0_132] : memref<31x128x128xbf16, #tpu.memory_space<vmem>>, vector<1x32x16xbf16>
    %211 = vector.shape_cast %210 : vector<1x32x16xbf16> to vector<32x16xbf16>
    %cst_133 = arith.constant dense<0.000000e+00> : vector<32x16xf32>
    %212 = tpu.matmul %209, %211, %cst_133 {dimension_numbers = #tpu.dot_dimension_numbers<[1], [0], [0], [1], [0, 0, 1, 1], [], []>} : vector<32x32xbf16>, vector<32x16xbf16>, vector<32x16xf32> -> vector<32x16xf32>
    %213 = arith.truncf %208 : vector<32x32xf32> to vector<32x32xbf16>
    %c28 = arith.constant 28 : index
    %c0_134 = arith.constant 0 : index
    %c0_135 = arith.constant 0 : index
    %214 = vector.load %arg2[%c28, %c0_134, %c0_135] : memref<31x128x128xbf16, #tpu.memory_space<vmem>>, vector<1x32x16xbf16>
    %215 = vector.shape_cast %214 : vector<1x32x16xbf16> to vector<32x16xbf16>
    %cst_136 = arith.constant dense<0.000000e+00> : vector<32x16xf32>
    %216 = tpu.matmul %213, %215, %cst_136 {dimension_numbers = #tpu.dot_dimension_numbers<[1], [0], [0], [1], [0, 0, 1, 1], [], []>} : vector<32x32xbf16>, vector<32x16xbf16>, vector<32x16xf32> -> vector<32x16xf32>
    %217 = arith.maximumf %212, %216 : vector<32x16xf32>
    %c29 = arith.constant 29 : index
    %c0_137 = arith.constant 0 : index
    %c0_138 = arith.constant 0 : index
    %218 = vector.load %arg2[%c29, %c0_137, %c0_138] : memref<31x128x128xbf16, #tpu.memory_space<vmem>>, vector<1x16x32xbf16>
    %219 = vector.shape_cast %218 : vector<1x16x32xbf16> to vector<16x32xbf16>
    %220 = arith.truncf %217 : vector<32x16xf32> to vector<32x16xbf16>
    %cst_139 = arith.constant dense<0.000000e+00> : vector<16x16xf32>
    %221 = tpu.matmul %219, %220, %cst_139 {dimension_numbers = #tpu.dot_dimension_numbers<[1], [0], [0], [1], [0, 0, 1, 1], [], []>} : vector<16x32xbf16>, vector<32x16xbf16>, vector<16x16xf32> -> vector<16x16xf32>
    %c30 = arith.constant 30 : index
    %c0_140 = arith.constant 0 : index
    %c0_141 = arith.constant 0 : index
    %222 = vector.load %arg2[%c30, %c0_140, %c0_141] : memref<31x128x128xbf16, #tpu.memory_space<vmem>>, vector<1x16x32xbf16>
    %223 = vector.shape_cast %222 : vector<1x16x32xbf16> to vector<16x32xbf16>
    %224 = arith.truncf %217 : vector<32x16xf32> to vector<32x16xbf16>
    %cst_142 = arith.constant dense<0.000000e+00> : vector<16x16xf32>
    %225 = tpu.matmul %223, %224, %cst_142 {dimension_numbers = #tpu.dot_dimension_numbers<[1], [0], [0], [1], [0, 0, 1, 1], [], []>} : vector<16x32xbf16>, vector<32x16xbf16>, vector<16x16xf32> -> vector<16x16xf32>
    %226 = arith.maximumf %221, %225 : vector<16x16xf32>
    %c18 = arith.constant 18 : index
    %c0_143 = arith.constant 0 : index
    %c0_144 = arith.constant 0 : index
    %227 = vector.load %arg2[%c18, %c0_143, %c0_144] : memref<31x128x128xbf16, #tpu.memory_space<vmem>>, vector<1x16x16xbf16>
    %228 = vector.shape_cast %227 : vector<1x16x16xbf16> to vector<16x16xbf16>
    %229 = arith.truncf %226 : vector<16x16xf32> to vector<16x16xbf16>
    %cst_145 = arith.constant dense<0.000000e+00> : vector<16x16xf32>
    %230 = tpu.matmul %228, %229, %cst_145 {dimension_numbers = #tpu.dot_dimension_numbers<[1], [0], [0], [1], [0, 0, 1, 1], [], []>} : vector<16x16xbf16>, vector<16x16xbf16>, vector<16x16xf32> -> vector<16x16xf32>
    %c0_146 = arith.constant 0 : index
    %c10_147 = arith.constant 10 : index
    %231 = vector.load %arg3[%c0_146, %c10_147] : memref<128x13xf32, #tpu.memory_space<vmem>>, vector<16x1xf32>
    %232 = vector.broadcast %231 : vector<16x1xf32> to vector<16x16xf32>
    %233 = arith.addf %230, %232 : vector<16x16xf32>
    %cst_148 = arith.constant 0.000000e+00 : f32
    %234 = vector.broadcast %cst_148 : f32 to vector<16x16xf32>
    %235 = arith.maximumf %233, %234 : vector<16x16xf32>
    %c19 = arith.constant 19 : index
    %c0_149 = arith.constant 0 : index
    %c0_150 = arith.constant 0 : index
    %236 = vector.load %arg2[%c19, %c0_149, %c0_150] : memref<31x128x128xbf16, #tpu.memory_space<vmem>>, vector<1x4x16xbf16>
    %237 = vector.shape_cast %236 : vector<1x4x16xbf16> to vector<4x16xbf16>
    %238 = arith.truncf %235 : vector<16x16xf32> to vector<16x16xbf16>
    %cst_151 = arith.constant dense<0.000000e+00> : vector<4x16xf32>
    %239 = tpu.matmul %237, %238, %cst_151 {dimension_numbers = #tpu.dot_dimension_numbers<[1], [0], [0], [1], [0, 0, 1, 1], [], []>} : vector<4x16xbf16>, vector<16x16xbf16>, vector<4x16xf32> -> vector<4x16xf32>
    %c0_152 = arith.constant 0 : index
    %c11_153 = arith.constant 11 : index
    %240 = vector.load %arg3[%c0_152, %c11_153] : memref<128x13xf32, #tpu.memory_space<vmem>>, vector<4x1xf32>
    %241 = vector.broadcast %240 : vector<4x1xf32> to vector<4x16xf32>
    %242 = arith.addf %239, %241 : vector<4x16xf32>
    %cst_154 = arith.constant 0.000000e+00 : f32
    %243 = vector.broadcast %cst_154 : f32 to vector<4x16xf32>
    %244 = arith.maximumf %242, %243 : vector<4x16xf32>
    %245 = arith.truncf %244 : vector<4x16xf32> to vector<4x16xbf16>
    %c20 = arith.constant 20 : index
    %c0_155 = arith.constant 0 : index
    %c0_156 = arith.constant 0 : index
    %246 = vector.load %arg2[%c20, %c0_155, %c0_156] : memref<31x128x128xbf16, #tpu.memory_space<vmem>>, vector<1x16x16xbf16>
    %247 = vector.shape_cast %246 : vector<1x16x16xbf16> to vector<16x16xbf16>
    %cst_157 = arith.constant dense<0.000000e+00> : vector<4x16xf32>
    %248 = tpu.matmul %245, %247, %cst_157 {dimension_numbers = #tpu.dot_dimension_numbers<[1], [0], [0], [1], [0, 0, 1, 1], [], []>} : vector<4x16xbf16>, vector<16x16xbf16>, vector<4x16xf32> -> vector<4x16xf32>
    %c8_158 = arith.constant 8 : index
    %c0_159 = arith.constant 0 : index
    %249 = vector.load %arg4[%c8_158, %c0_159] : memref<12x128xf32, #tpu.memory_space<vmem>>, vector<1x16xf32>
    %250 = vector.broadcast %249 : vector<1x16xf32> to vector<4x16xf32>
    %251 = arith.addf %248, %250 : vector<4x16xf32>
    %cst_160 = arith.constant 0.000000e+00 : f32
    %252 = vector.broadcast %cst_160 : f32 to vector<4x16xf32>
    %253 = arith.maximumf %251, %252 : vector<4x16xf32>
    %254 = arith.truncf %253 : vector<4x16xf32> to vector<4x16xbf16>
    %c21 = arith.constant 21 : index
    %c0_161 = arith.constant 0 : index
    %c0_162 = arith.constant 0 : index
    %255 = vector.load %arg2[%c21, %c0_161, %c0_162] : memref<31x128x128xbf16, #tpu.memory_space<vmem>>, vector<1x16x4xbf16>
    %256 = vector.shape_cast %255 : vector<1x16x4xbf16> to vector<16x4xbf16>
    %cst_163 = arith.constant dense<0.000000e+00> : vector<4x4xf32>
    %257 = tpu.matmul %254, %256, %cst_163 {dimension_numbers = #tpu.dot_dimension_numbers<[1], [0], [0], [1], [0, 0, 1, 1], [], []>} : vector<4x16xbf16>, vector<16x4xbf16>, vector<4x4xf32> -> vector<4x4xf32>
    %c9_164 = arith.constant 9 : index
    %c0_165 = arith.constant 0 : index
    %258 = vector.load %arg4[%c9_164, %c0_165] : memref<12x128xf32, #tpu.memory_space<vmem>>, vector<1x4xf32>
    %259 = vector.broadcast %258 : vector<1x4xf32> to vector<4x4xf32>
    %260 = arith.addf %257, %259 : vector<4x4xf32>
    %cst_166 = arith.constant 0.000000e+00 : f32
    %261 = vector.broadcast %cst_166 : f32 to vector<4x4xf32>
    %262 = arith.maximumf %260, %261 : vector<4x4xf32>
    %c22 = arith.constant 22 : index
    %c0_167 = arith.constant 0 : index
    %c0_168 = arith.constant 0 : index
    %263 = vector.load %arg2[%c22, %c0_167, %c0_168] : memref<31x128x128xbf16, #tpu.memory_space<vmem>>, vector<1x4x4xbf16>
    %264 = vector.shape_cast %263 : vector<1x4x4xbf16> to vector<4x4xbf16>
    %265 = arith.extf %264 : vector<4x4xbf16> to vector<4x4xf32>
    %266 = arith.mulf %262, %265 : vector<4x4xf32>
    %cst_169 = arith.constant dense<0.000000e+00> : vector<4xf32>
    %267 = vector.multi_reduction <add>, %266, %cst_169 [1] : vector<4x4xf32> to vector<4xf32>
    %268 = vector.shape_cast %267 : vector<4xf32> to vector<4x1xf32>
    %cst_170 = arith.constant dense<0.000000e+00> : vector<1xf32>
    %269 = vector.multi_reduction <add>, %268, %cst_170 [0] : vector<4x1xf32> to vector<1xf32>
    %270 = vector.shape_cast %269 : vector<1xf32> to vector<1x1xf32>
    %c10_171 = arith.constant 10 : index
    %c0_172 = arith.constant 0 : index
    %271 = vector.load %arg4[%c10_171, %c0_172] : memref<12x128xf32, #tpu.memory_space<vmem>>, vector<1x1xf32>
    %272 = arith.addf %270, %271 : vector<1x1xf32>
    %cst_173 = arith.constant 0.000000e+00 : f32
    %273 = vector.broadcast %cst_173 : f32 to vector<1x1xf32>
    %274 = arith.maximumf %272, %273 : vector<1x1xf32>
    %275 = arith.addf %118, %274 : vector<1x1xf32>
    %276 = math.absf %275 : vector<1x1xf32>
    %cst_174 = arith.constant 0.000000e+00 : f32
    %277 = vector.broadcast %cst_174 : f32 to vector<1x1xf32>
    %278 = arith.subf %277, %276 : vector<1x1xf32>
    %279 = math.exp %278 : vector<1x1xf32>
    %cst_175 = arith.constant 0.000000e+00 : f32
    %280 = vector.broadcast %cst_175 : f32 to vector<1x1xf32>
    %281 = arith.cmpf oge, %275, %280 : vector<1x1xf32>
    %cst_176 = arith.constant 1.000000e+00 : f32
    %282 = vector.broadcast %cst_176 : f32 to vector<1x1xf32>
    %283 = arith.addf %282, %279 : vector<1x1xf32>
    %cst_177 = arith.constant 1.000000e+00 : f32
    %284 = vector.broadcast %cst_177 : f32 to vector<1x1xf32>
    %285 = arith.divf %284, %283 : vector<1x1xf32>
    %cst_178 = arith.constant 1.000000e+00 : f32
    %286 = vector.broadcast %cst_178 : f32 to vector<1x1xf32>
    %287 = arith.addf %286, %279 : vector<1x1xf32>
    %288 = arith.divf %279, %287 : vector<1x1xf32>
    %289 = arith.select %281, %285, %288 : vector<1x1xi1>, vector<1x1xf32>
    %c1_179 = arith.constant 1 : index
    %c0_180 = arith.constant 0 : index
    %c0_181 = arith.constant 0 : index
    %290 = vector.load %arg1[%c1_179, %c0_180, %c0_181] : memref<4x8x16xf32, #tpu.memory_space<vmem>>, vector<1x8x16xf32>
    %291 = vector.shape_cast %290 : vector<1x8x16xf32> to vector<8x16xf32>
    %cst_182 = arith.constant 0.000000e+00 : f32
    %292 = vector.broadcast %cst_182 : f32 to vector<8x2xf32>
    %293 = tpu.concatenate %292, %291 in 1 : vector<8x2xf32>, vector<8x16xf32> -> vector<8x18xf32>
    %294 = vector.extract_strided_slice %293 {offsets = [0, 0], sizes = [8, 16], strides = [1, 1]} : vector<8x18xf32> to vector<8x16xf32>
    %295 = vector.extract_strided_slice %293 {offsets = [0, 1], sizes = [8, 16], strides = [1, 1]} : vector<8x18xf32> to vector<8x16xf32>
    %296 = vector.extract_strided_slice %293 {offsets = [0, 2], sizes = [8, 16], strides = [1, 1]} : vector<8x18xf32> to vector<8x16xf32>
    %297 = tpu.concatenate %294, %295, %296 in 0 : vector<8x16xf32>, vector<8x16xf32>, vector<8x16xf32> -> vector<24x16xf32>
    %c0_183 = arith.constant 0 : index
    %c0_184 = arith.constant 0 : index
    %c0_185 = arith.constant 0 : index
    %298 = vector.load %arg2[%c0_183, %c0_184, %c0_185] : memref<31x128x128xbf16, #tpu.memory_space<vmem>>, vector<1x8x24xbf16>
    %299 = vector.shape_cast %298 : vector<1x8x24xbf16> to vector<8x24xbf16>
    %300 = arith.truncf %297 : vector<24x16xf32> to vector<24x16xbf16>
    %cst_186 = arith.constant dense<0.000000e+00> : vector<8x16xf32>
    %301 = tpu.matmul %299, %300, %cst_186 {dimension_numbers = #tpu.dot_dimension_numbers<[1], [0], [0], [1], [0, 0, 1, 1], [], []>} : vector<8x24xbf16>, vector<24x16xbf16>, vector<8x16xf32> -> vector<8x16xf32>
    %c0_187 = arith.constant 0 : index
    %c0_188 = arith.constant 0 : index
    %302 = vector.load %arg3[%c0_187, %c0_188] : memref<128x13xf32, #tpu.memory_space<vmem>>, vector<8x1xf32>
    %303 = vector.broadcast %302 : vector<8x1xf32> to vector<8x16xf32>
    %304 = arith.addf %301, %303 : vector<8x16xf32>
    %cst_189 = arith.constant 0.000000e+00 : f32
    %305 = vector.broadcast %cst_189 : f32 to vector<8x16xf32>
    %306 = arith.maximumf %304, %305 : vector<8x16xf32>
    %c1_190 = arith.constant 1 : index
    %c0_191 = arith.constant 0 : index
    %c0_192 = arith.constant 0 : index
    %307 = vector.load %arg2[%c1_190, %c0_191, %c0_192] : memref<31x128x128xbf16, #tpu.memory_space<vmem>>, vector<1x128x8xbf16>
    %308 = vector.shape_cast %307 : vector<1x128x8xbf16> to vector<128x8xbf16>
    %309 = arith.truncf %291 : vector<8x16xf32> to vector<8x16xbf16>
    %cst_193 = arith.constant dense<0.000000e+00> : vector<128x16xf32>
    %310 = tpu.matmul %308, %309, %cst_193 {dimension_numbers = #tpu.dot_dimension_numbers<[1], [0], [0], [1], [0, 0, 1, 1], [], []>} : vector<128x8xbf16>, vector<8x16xbf16>, vector<128x16xf32> -> vector<128x16xf32>
    %c0_194 = arith.constant 0 : index
    %c1_195 = arith.constant 1 : index
    %311 = vector.load %arg3[%c0_194, %c1_195] : memref<128x13xf32, #tpu.memory_space<vmem>>, vector<128x1xf32>
    %312 = vector.broadcast %311 : vector<128x1xf32> to vector<128x16xf32>
    %313 = arith.addf %310, %312 : vector<128x16xf32>
    %cst_196 = arith.constant 0.000000e+00 : f32
    %314 = vector.broadcast %cst_196 : f32 to vector<128x16xf32>
    %315 = arith.maximumf %313, %314 : vector<128x16xf32>
    %316 = arith.truncf %315 : vector<128x16xf32> to vector<128x16xbf16>
    %c2_197 = arith.constant 2 : index
    %c0_198 = arith.constant 0 : index
    %c0_199 = arith.constant 0 : index
    %317 = vector.load %arg2[%c2_197, %c0_198, %c0_199] : memref<31x128x128xbf16, #tpu.memory_space<vmem>>, vector<1x16x128xbf16>
    %318 = vector.shape_cast %317 : vector<1x16x128xbf16> to vector<16x128xbf16>
    %cst_200 = arith.constant dense<0.000000e+00> : vector<128x128xf32>
    %319 = tpu.matmul %316, %318, %cst_200 {dimension_numbers = #tpu.dot_dimension_numbers<[1], [0], [0], [1], [0, 0, 1, 1], [], []>} : vector<128x16xbf16>, vector<16x128xbf16>, vector<128x128xf32> -> vector<128x128xf32>
    %c0_201 = arith.constant 0 : index
    %c0_202 = arith.constant 0 : index
    %320 = vector.load %arg4[%c0_201, %c0_202] : memref<12x128xf32, #tpu.memory_space<vmem>>, vector<1x128xf32>
    %321 = vector.broadcast %320 : vector<1x128xf32> to vector<128x128xf32>
    %322 = arith.addf %319, %321 : vector<128x128xf32>
    %cst_203 = arith.constant 0.000000e+00 : f32
    %323 = vector.broadcast %cst_203 : f32 to vector<128x128xf32>
    %324 = arith.maximumf %322, %323 : vector<128x128xf32>
    %c3_204 = arith.constant 3 : index
    %c0_205 = arith.constant 0 : index
    %c0_206 = arith.constant 0 : index
    %325 = vector.load %arg2[%c3_204, %c0_205, %c0_206] : memref<31x128x128xbf16, #tpu.memory_space<vmem>>, vector<1x8x128xbf16>
    %326 = vector.shape_cast %325 : vector<1x8x128xbf16> to vector<8x128xbf16>
    %327 = arith.truncf %324 : vector<128x128xf32> to vector<128x128xbf16>
    %cst_207 = arith.constant dense<0.000000e+00> : vector<8x128xf32>
    %328 = tpu.matmul %326, %327, %cst_207 {dimension_numbers = #tpu.dot_dimension_numbers<[1], [0], [0], [1], [0, 0, 1, 1], [], []>} : vector<8x128xbf16>, vector<128x128xbf16>, vector<8x128xf32> -> vector<8x128xf32>
    %c0_208 = arith.constant 0 : index
    %c2_209 = arith.constant 2 : index
    %329 = vector.load %arg3[%c0_208, %c2_209] : memref<128x13xf32, #tpu.memory_space<vmem>>, vector<8x1xf32>
    %330 = vector.broadcast %329 : vector<8x1xf32> to vector<8x128xf32>
    %331 = arith.addf %328, %330 : vector<8x128xf32>
    %cst_210 = arith.constant 0.000000e+00 : f32
    %332 = vector.broadcast %cst_210 : f32 to vector<8x128xf32>
    %333 = arith.maximumf %331, %332 : vector<8x128xf32>
    %334 = arith.truncf %333 : vector<8x128xf32> to vector<8x128xbf16>
    %c4_211 = arith.constant 4 : index
    %c0_212 = arith.constant 0 : index
    %c0_213 = arith.constant 0 : index
    %335 = vector.load %arg2[%c4_211, %c0_212, %c0_213] : memref<31x128x128xbf16, #tpu.memory_space<vmem>>, vector<1x128x16xbf16>
    %336 = vector.shape_cast %335 : vector<1x128x16xbf16> to vector<128x16xbf16>
    %cst_214 = arith.constant dense<0.000000e+00> : vector<8x16xf32>
    %337 = tpu.matmul %334, %336, %cst_214 {dimension_numbers = #tpu.dot_dimension_numbers<[1], [0], [0], [1], [0, 0, 1, 1], [], []>} : vector<8x128xbf16>, vector<128x16xbf16>, vector<8x16xf32> -> vector<8x16xf32>
    %c1_215 = arith.constant 1 : index
    %c0_216 = arith.constant 0 : index
    %338 = vector.load %arg4[%c1_215, %c0_216] : memref<12x128xf32, #tpu.memory_space<vmem>>, vector<1x16xf32>
    %339 = vector.broadcast %338 : vector<1x16xf32> to vector<8x16xf32>
    %340 = arith.addf %337, %339 : vector<8x16xf32>
    %cst_217 = arith.constant 0.000000e+00 : f32
    %341 = vector.broadcast %cst_217 : f32 to vector<8x16xf32>
    %342 = arith.maximumf %340, %341 : vector<8x16xf32>
    %343 = arith.addf %291, %306 : vector<8x16xf32>
    %344 = arith.addf %343, %342 : vector<8x16xf32>
    %cst_218 = arith.constant 0.000000e+00 : f32
    %345 = vector.broadcast %cst_218 : f32 to vector<8x16xf32>
    %346 = arith.maximumf %344, %345 : vector<8x16xf32>
    %cst_219 = arith.constant 0.000000e+00 : f32
    %347 = vector.broadcast %cst_219 : f32 to vector<8x4xf32>
    %348 = tpu.concatenate %347, %346 in 1 : vector<8x4xf32>, vector<8x16xf32> -> vector<8x20xf32>
    %349 = vector.extract_strided_slice %348 {offsets = [0, 0], sizes = [8, 16], strides = [1, 1]} : vector<8x20xf32> to vector<8x16xf32>
    %350 = vector.extract_strided_slice %348 {offsets = [0, 2], sizes = [8, 16], strides = [1, 1]} : vector<8x20xf32> to vector<8x16xf32>
    %351 = vector.extract_strided_slice %348 {offsets = [0, 4], sizes = [8, 16], strides = [1, 1]} : vector<8x20xf32> to vector<8x16xf32>
    %352 = tpu.concatenate %349, %350, %351 in 0 : vector<8x16xf32>, vector<8x16xf32>, vector<8x16xf32> -> vector<24x16xf32>
    %c5_220 = arith.constant 5 : index
    %c0_221 = arith.constant 0 : index
    %c0_222 = arith.constant 0 : index
    %353 = vector.load %arg2[%c5_220, %c0_221, %c0_222] : memref<31x128x128xbf16, #tpu.memory_space<vmem>>, vector<1x8x24xbf16>
    %354 = vector.shape_cast %353 : vector<1x8x24xbf16> to vector<8x24xbf16>
    %355 = arith.truncf %352 : vector<24x16xf32> to vector<24x16xbf16>
    %cst_223 = arith.constant dense<0.000000e+00> : vector<8x16xf32>
    %356 = tpu.matmul %354, %355, %cst_223 {dimension_numbers = #tpu.dot_dimension_numbers<[1], [0], [0], [1], [0, 0, 1, 1], [], []>} : vector<8x24xbf16>, vector<24x16xbf16>, vector<8x16xf32> -> vector<8x16xf32>
    %c0_224 = arith.constant 0 : index
    %c3_225 = arith.constant 3 : index
    %357 = vector.load %arg3[%c0_224, %c3_225] : memref<128x13xf32, #tpu.memory_space<vmem>>, vector<8x1xf32>
    %358 = vector.broadcast %357 : vector<8x1xf32> to vector<8x16xf32>
    %359 = arith.addf %356, %358 : vector<8x16xf32>
    %cst_226 = arith.constant 0.000000e+00 : f32
    %360 = vector.broadcast %cst_226 : f32 to vector<8x16xf32>
    %361 = arith.maximumf %359, %360 : vector<8x16xf32>
    %c6_227 = arith.constant 6 : index
    %c0_228 = arith.constant 0 : index
    %c0_229 = arith.constant 0 : index
    %362 = vector.load %arg2[%c6_227, %c0_228, %c0_229] : memref<31x128x128xbf16, #tpu.memory_space<vmem>>, vector<1x128x8xbf16>
    %363 = vector.shape_cast %362 : vector<1x128x8xbf16> to vector<128x8xbf16>
    %364 = arith.truncf %346 : vector<8x16xf32> to vector<8x16xbf16>
    %cst_230 = arith.constant dense<0.000000e+00> : vector<128x16xf32>
    %365 = tpu.matmul %363, %364, %cst_230 {dimension_numbers = #tpu.dot_dimension_numbers<[1], [0], [0], [1], [0, 0, 1, 1], [], []>} : vector<128x8xbf16>, vector<8x16xbf16>, vector<128x16xf32> -> vector<128x16xf32>
    %c0_231 = arith.constant 0 : index
    %c4_232 = arith.constant 4 : index
    %366 = vector.load %arg3[%c0_231, %c4_232] : memref<128x13xf32, #tpu.memory_space<vmem>>, vector<128x1xf32>
    %367 = vector.broadcast %366 : vector<128x1xf32> to vector<128x16xf32>
    %368 = arith.addf %365, %367 : vector<128x16xf32>
    %cst_233 = arith.constant 0.000000e+00 : f32
    %369 = vector.broadcast %cst_233 : f32 to vector<128x16xf32>
    %370 = arith.maximumf %368, %369 : vector<128x16xf32>
    %371 = arith.truncf %370 : vector<128x16xf32> to vector<128x16xbf16>
    %c7_234 = arith.constant 7 : index
    %c0_235 = arith.constant 0 : index
    %c0_236 = arith.constant 0 : index
    %372 = vector.load %arg2[%c7_234, %c0_235, %c0_236] : memref<31x128x128xbf16, #tpu.memory_space<vmem>>, vector<1x16x128xbf16>
    %373 = vector.shape_cast %372 : vector<1x16x128xbf16> to vector<16x128xbf16>
    %cst_237 = arith.constant dense<0.000000e+00> : vector<128x128xf32>
    %374 = tpu.matmul %371, %373, %cst_237 {dimension_numbers = #tpu.dot_dimension_numbers<[1], [0], [0], [1], [0, 0, 1, 1], [], []>} : vector<128x16xbf16>, vector<16x128xbf16>, vector<128x128xf32> -> vector<128x128xf32>
    %c2_238 = arith.constant 2 : index
    %c0_239 = arith.constant 0 : index
    %375 = vector.load %arg4[%c2_238, %c0_239] : memref<12x128xf32, #tpu.memory_space<vmem>>, vector<1x128xf32>
    %376 = vector.broadcast %375 : vector<1x128xf32> to vector<128x128xf32>
    %377 = arith.addf %374, %376 : vector<128x128xf32>
    %cst_240 = arith.constant 0.000000e+00 : f32
    %378 = vector.broadcast %cst_240 : f32 to vector<128x128xf32>
    %379 = arith.maximumf %377, %378 : vector<128x128xf32>
    %c8_241 = arith.constant 8 : index
    %c0_242 = arith.constant 0 : index
    %c0_243 = arith.constant 0 : index
    %380 = vector.load %arg2[%c8_241, %c0_242, %c0_243] : memref<31x128x128xbf16, #tpu.memory_space<vmem>>, vector<1x8x128xbf16>
    %381 = vector.shape_cast %380 : vector<1x8x128xbf16> to vector<8x128xbf16>
    %382 = arith.truncf %379 : vector<128x128xf32> to vector<128x128xbf16>
    %cst_244 = arith.constant dense<0.000000e+00> : vector<8x128xf32>
    %383 = tpu.matmul %381, %382, %cst_244 {dimension_numbers = #tpu.dot_dimension_numbers<[1], [0], [0], [1], [0, 0, 1, 1], [], []>} : vector<8x128xbf16>, vector<128x128xbf16>, vector<8x128xf32> -> vector<8x128xf32>
    %c0_245 = arith.constant 0 : index
    %c5_246 = arith.constant 5 : index
    %384 = vector.load %arg3[%c0_245, %c5_246] : memref<128x13xf32, #tpu.memory_space<vmem>>, vector<8x1xf32>
    %385 = vector.broadcast %384 : vector<8x1xf32> to vector<8x128xf32>
    %386 = arith.addf %383, %385 : vector<8x128xf32>
    %cst_247 = arith.constant 0.000000e+00 : f32
    %387 = vector.broadcast %cst_247 : f32 to vector<8x128xf32>
    %388 = arith.maximumf %386, %387 : vector<8x128xf32>
    %389 = arith.truncf %388 : vector<8x128xf32> to vector<8x128xbf16>
    %c9_248 = arith.constant 9 : index
    %c0_249 = arith.constant 0 : index
    %c0_250 = arith.constant 0 : index
    %390 = vector.load %arg2[%c9_248, %c0_249, %c0_250] : memref<31x128x128xbf16, #tpu.memory_space<vmem>>, vector<1x128x16xbf16>
    %391 = vector.shape_cast %390 : vector<1x128x16xbf16> to vector<128x16xbf16>
    %cst_251 = arith.constant dense<0.000000e+00> : vector<8x16xf32>
    %392 = tpu.matmul %389, %391, %cst_251 {dimension_numbers = #tpu.dot_dimension_numbers<[1], [0], [0], [1], [0, 0, 1, 1], [], []>} : vector<8x128xbf16>, vector<128x16xbf16>, vector<8x16xf32> -> vector<8x16xf32>
    %c3_252 = arith.constant 3 : index
    %c0_253 = arith.constant 0 : index
    %393 = vector.load %arg4[%c3_252, %c0_253] : memref<12x128xf32, #tpu.memory_space<vmem>>, vector<1x16xf32>
    %394 = vector.broadcast %393 : vector<1x16xf32> to vector<8x16xf32>
    %395 = arith.addf %392, %394 : vector<8x16xf32>
    %cst_254 = arith.constant 0.000000e+00 : f32
    %396 = vector.broadcast %cst_254 : f32 to vector<8x16xf32>
    %397 = arith.maximumf %395, %396 : vector<8x16xf32>
    %398 = arith.addf %346, %361 : vector<8x16xf32>
    %399 = arith.addf %398, %397 : vector<8x16xf32>
    %cst_255 = arith.constant 0.000000e+00 : f32
    %400 = vector.broadcast %cst_255 : f32 to vector<8x16xf32>
    %401 = arith.maximumf %399, %400 : vector<8x16xf32>
    %402 = vector.extract_strided_slice %401 {offsets = [0, 15], sizes = [8, 1], strides = [1, 1]} : vector<8x16xf32> to vector<8x1xf32>
    %c0_256 = arith.constant 0 : index
    %c12_257 = arith.constant 12 : index
    %403 = vector.load %arg3[%c0_256, %c12_257] : memref<128x13xf32, #tpu.memory_space<vmem>>, vector<8x1xf32>
    %404 = arith.mulf %403, %402 : vector<8x1xf32>
    %cst_258 = arith.constant dense<0.000000e+00> : vector<1xf32>
    %405 = vector.multi_reduction <add>, %404, %cst_258 [0] : vector<8x1xf32> to vector<1xf32>
    %406 = vector.shape_cast %405 : vector<1xf32> to vector<1x1xf32>
    %c11_259 = arith.constant 11 : index
    %c0_260 = arith.constant 0 : index
    %407 = vector.load %arg4[%c11_259, %c0_260] : memref<12x128xf32, #tpu.memory_space<vmem>>, vector<1x1xf32>
    %408 = arith.addf %406, %407 : vector<1x1xf32>
    %c10_261 = arith.constant 10 : index
    %c0_262 = arith.constant 0 : index
    %c0_263 = arith.constant 0 : index
    %409 = vector.load %arg2[%c10_261, %c0_262, %c0_263] : memref<31x128x128xbf16, #tpu.memory_space<vmem>>, vector<1x128x8xbf16>
    %410 = vector.shape_cast %409 : vector<1x128x8xbf16> to vector<128x8xbf16>
    %411 = arith.truncf %291 : vector<8x16xf32> to vector<8x16xbf16>
    %cst_264 = arith.constant dense<0.000000e+00> : vector<128x16xf32>
    %412 = tpu.matmul %410, %411, %cst_264 {dimension_numbers = #tpu.dot_dimension_numbers<[1], [0], [0], [1], [0, 0, 1, 1], [], []>} : vector<128x8xbf16>, vector<8x16xbf16>, vector<128x16xf32> -> vector<128x16xf32>
    %c0_265 = arith.constant 0 : index
    %c6_266 = arith.constant 6 : index
    %413 = vector.load %arg3[%c0_265, %c6_266] : memref<128x13xf32, #tpu.memory_space<vmem>>, vector<128x1xf32>
    %414 = vector.broadcast %413 : vector<128x1xf32> to vector<128x16xf32>
    %415 = arith.addf %412, %414 : vector<128x16xf32>
    %cst_267 = arith.constant 0.000000e+00 : f32
    %416 = vector.broadcast %cst_267 : f32 to vector<128x16xf32>
    %417 = arith.maximumf %415, %416 : vector<128x16xf32>
    %c11_268 = arith.constant 11 : index
    %c0_269 = arith.constant 0 : index
    %c0_270 = arith.constant 0 : index
    %418 = vector.load %arg2[%c11_268, %c0_269, %c0_270] : memref<31x128x128xbf16, #tpu.memory_space<vmem>>, vector<1x128x128xbf16>
    %419 = vector.shape_cast %418 : vector<1x128x128xbf16> to vector<128x128xbf16>
    %420 = arith.truncf %417 : vector<128x16xf32> to vector<128x16xbf16>
    %cst_271 = arith.constant dense<0.000000e+00> : vector<128x16xf32>
    %421 = tpu.matmul %419, %420, %cst_271 {dimension_numbers = #tpu.dot_dimension_numbers<[1], [0], [0], [1], [0, 0, 1, 1], [], []>} : vector<128x128xbf16>, vector<128x16xbf16>, vector<128x16xf32> -> vector<128x16xf32>
    %c0_272 = arith.constant 0 : index
    %c7_273 = arith.constant 7 : index
    %422 = vector.load %arg3[%c0_272, %c7_273] : memref<128x13xf32, #tpu.memory_space<vmem>>, vector<128x1xf32>
    %423 = vector.broadcast %422 : vector<128x1xf32> to vector<128x16xf32>
    %424 = arith.addf %421, %423 : vector<128x16xf32>
    %cst_274 = arith.constant 0.000000e+00 : f32
    %425 = vector.broadcast %cst_274 : f32 to vector<128x16xf32>
    %426 = arith.maximumf %424, %425 : vector<128x16xf32>
    %427 = arith.truncf %426 : vector<128x16xf32> to vector<128x16xbf16>
    %c12_275 = arith.constant 12 : index
    %c0_276 = arith.constant 0 : index
    %c0_277 = arith.constant 0 : index
    %428 = vector.load %arg2[%c12_275, %c0_276, %c0_277] : memref<31x128x128xbf16, #tpu.memory_space<vmem>>, vector<1x16x128xbf16>
    %429 = vector.shape_cast %428 : vector<1x16x128xbf16> to vector<16x128xbf16>
    %cst_278 = arith.constant dense<0.000000e+00> : vector<128x128xf32>
    %430 = tpu.matmul %427, %429, %cst_278 {dimension_numbers = #tpu.dot_dimension_numbers<[1], [0], [0], [1], [0, 0, 1, 1], [], []>} : vector<128x16xbf16>, vector<16x128xbf16>, vector<128x128xf32> -> vector<128x128xf32>
    %c4_279 = arith.constant 4 : index
    %c0_280 = arith.constant 0 : index
    %431 = vector.load %arg4[%c4_279, %c0_280] : memref<12x128xf32, #tpu.memory_space<vmem>>, vector<1x128xf32>
    %432 = vector.broadcast %431 : vector<1x128xf32> to vector<128x128xf32>
    %433 = arith.addf %430, %432 : vector<128x128xf32>
    %cst_281 = arith.constant 0.000000e+00 : f32
    %434 = vector.broadcast %cst_281 : f32 to vector<128x128xf32>
    %435 = arith.maximumf %433, %434 : vector<128x128xf32>
    %436 = arith.truncf %435 : vector<128x128xf32> to vector<128x128xbf16>
    %c13_282 = arith.constant 13 : index
    %c0_283 = arith.constant 0 : index
    %c0_284 = arith.constant 0 : index
    %437 = vector.load %arg2[%c13_282, %c0_283, %c0_284] : memref<31x128x128xbf16, #tpu.memory_space<vmem>>, vector<1x128x128xbf16>
    %438 = vector.shape_cast %437 : vector<1x128x128xbf16> to vector<128x128xbf16>
    %cst_285 = arith.constant dense<0.000000e+00> : vector<128x128xf32>
    %439 = tpu.matmul %436, %438, %cst_285 {dimension_numbers = #tpu.dot_dimension_numbers<[1], [0], [0], [1], [0, 0, 1, 1], [], []>} : vector<128x128xbf16>, vector<128x128xbf16>, vector<128x128xf32> -> vector<128x128xf32>
    %c5_286 = arith.constant 5 : index
    %c0_287 = arith.constant 0 : index
    %440 = vector.load %arg4[%c5_286, %c0_287] : memref<12x128xf32, #tpu.memory_space<vmem>>, vector<1x128xf32>
    %441 = vector.broadcast %440 : vector<1x128xf32> to vector<128x128xf32>
    %442 = arith.addf %439, %441 : vector<128x128xf32>
    %cst_288 = arith.constant 0.000000e+00 : f32
    %443 = vector.broadcast %cst_288 : f32 to vector<128x128xf32>
    %444 = arith.maximumf %442, %443 : vector<128x128xf32>
    %445 = arith.truncf %444 : vector<128x128xf32> to vector<128x128xbf16>
    %c23_289 = arith.constant 23 : index
    %c0_290 = arith.constant 0 : index
    %c0_291 = arith.constant 0 : index
    %446 = vector.load %arg2[%c23_289, %c0_290, %c0_291] : memref<31x128x128xbf16, #tpu.memory_space<vmem>>, vector<1x128x64xbf16>
    %447 = vector.shape_cast %446 : vector<1x128x64xbf16> to vector<128x64xbf16>
    %cst_292 = arith.constant dense<0.000000e+00> : vector<128x64xf32>
    %448 = tpu.matmul %445, %447, %cst_292 {dimension_numbers = #tpu.dot_dimension_numbers<[1], [0], [0], [1], [0, 0, 1, 1], [], []>} : vector<128x128xbf16>, vector<128x64xbf16>, vector<128x64xf32> -> vector<128x64xf32>
    %449 = arith.truncf %444 : vector<128x128xf32> to vector<128x128xbf16>
    %c24_293 = arith.constant 24 : index
    %c0_294 = arith.constant 0 : index
    %c0_295 = arith.constant 0 : index
    %450 = vector.load %arg2[%c24_293, %c0_294, %c0_295] : memref<31x128x128xbf16, #tpu.memory_space<vmem>>, vector<1x128x64xbf16>
    %451 = vector.shape_cast %450 : vector<1x128x64xbf16> to vector<128x64xbf16>
    %cst_296 = arith.constant dense<0.000000e+00> : vector<128x64xf32>
    %452 = tpu.matmul %449, %451, %cst_296 {dimension_numbers = #tpu.dot_dimension_numbers<[1], [0], [0], [1], [0, 0, 1, 1], [], []>} : vector<128x128xbf16>, vector<128x64xbf16>, vector<128x64xf32> -> vector<128x64xf32>
    %453 = arith.maximumf %448, %452 : vector<128x64xf32>
    %c25_297 = arith.constant 25 : index
    %c0_298 = arith.constant 0 : index
    %c0_299 = arith.constant 0 : index
    %454 = vector.load %arg2[%c25_297, %c0_298, %c0_299] : memref<31x128x128xbf16, #tpu.memory_space<vmem>>, vector<1x64x128xbf16>
    %455 = vector.shape_cast %454 : vector<1x64x128xbf16> to vector<64x128xbf16>
    %456 = arith.truncf %453 : vector<128x64xf32> to vector<128x64xbf16>
    %cst_300 = arith.constant dense<0.000000e+00> : vector<64x64xf32>
    %457 = tpu.matmul %455, %456, %cst_300 {dimension_numbers = #tpu.dot_dimension_numbers<[1], [0], [0], [1], [0, 0, 1, 1], [], []>} : vector<64x128xbf16>, vector<128x64xbf16>, vector<64x64xf32> -> vector<64x64xf32>
    %c26_301 = arith.constant 26 : index
    %c0_302 = arith.constant 0 : index
    %c0_303 = arith.constant 0 : index
    %458 = vector.load %arg2[%c26_301, %c0_302, %c0_303] : memref<31x128x128xbf16, #tpu.memory_space<vmem>>, vector<1x64x128xbf16>
    %459 = vector.shape_cast %458 : vector<1x64x128xbf16> to vector<64x128xbf16>
    %460 = arith.truncf %453 : vector<128x64xf32> to vector<128x64xbf16>
    %cst_304 = arith.constant dense<0.000000e+00> : vector<64x64xf32>
    %461 = tpu.matmul %459, %460, %cst_304 {dimension_numbers = #tpu.dot_dimension_numbers<[1], [0], [0], [1], [0, 0, 1, 1], [], []>} : vector<64x128xbf16>, vector<128x64xbf16>, vector<64x64xf32> -> vector<64x64xf32>
    %462 = arith.maximumf %457, %461 : vector<64x64xf32>
    %c14_305 = arith.constant 14 : index
    %c0_306 = arith.constant 0 : index
    %c0_307 = arith.constant 0 : index
    %463 = vector.load %arg2[%c14_305, %c0_306, %c0_307] : memref<31x128x128xbf16, #tpu.memory_space<vmem>>, vector<1x64x64xbf16>
    %464 = vector.shape_cast %463 : vector<1x64x64xbf16> to vector<64x64xbf16>
    %465 = arith.truncf %462 : vector<64x64xf32> to vector<64x64xbf16>
    %cst_308 = arith.constant dense<0.000000e+00> : vector<64x64xf32>
    %466 = tpu.matmul %464, %465, %cst_308 {dimension_numbers = #tpu.dot_dimension_numbers<[1], [0], [0], [1], [0, 0, 1, 1], [], []>} : vector<64x64xbf16>, vector<64x64xbf16>, vector<64x64xf32> -> vector<64x64xf32>
    %c0_309 = arith.constant 0 : index
    %c8_310 = arith.constant 8 : index
    %467 = vector.load %arg3[%c0_309, %c8_310] : memref<128x13xf32, #tpu.memory_space<vmem>>, vector<64x1xf32>
    %468 = vector.broadcast %467 : vector<64x1xf32> to vector<64x64xf32>
    %469 = arith.addf %466, %468 : vector<64x64xf32>
    %cst_311 = arith.constant 0.000000e+00 : f32
    %470 = vector.broadcast %cst_311 : f32 to vector<64x64xf32>
    %471 = arith.maximumf %469, %470 : vector<64x64xf32>
    %c15_312 = arith.constant 15 : index
    %c0_313 = arith.constant 0 : index
    %c0_314 = arith.constant 0 : index
    %472 = vector.load %arg2[%c15_312, %c0_313, %c0_314] : memref<31x128x128xbf16, #tpu.memory_space<vmem>>, vector<1x32x64xbf16>
    %473 = vector.shape_cast %472 : vector<1x32x64xbf16> to vector<32x64xbf16>
    %474 = arith.truncf %471 : vector<64x64xf32> to vector<64x64xbf16>
    %cst_315 = arith.constant dense<0.000000e+00> : vector<32x64xf32>
    %475 = tpu.matmul %473, %474, %cst_315 {dimension_numbers = #tpu.dot_dimension_numbers<[1], [0], [0], [1], [0, 0, 1, 1], [], []>} : vector<32x64xbf16>, vector<64x64xbf16>, vector<32x64xf32> -> vector<32x64xf32>
    %c0_316 = arith.constant 0 : index
    %c9_317 = arith.constant 9 : index
    %476 = vector.load %arg3[%c0_316, %c9_317] : memref<128x13xf32, #tpu.memory_space<vmem>>, vector<32x1xf32>
    %477 = vector.broadcast %476 : vector<32x1xf32> to vector<32x64xf32>
    %478 = arith.addf %475, %477 : vector<32x64xf32>
    %cst_318 = arith.constant 0.000000e+00 : f32
    %479 = vector.broadcast %cst_318 : f32 to vector<32x64xf32>
    %480 = arith.maximumf %478, %479 : vector<32x64xf32>
    %481 = arith.truncf %480 : vector<32x64xf32> to vector<32x64xbf16>
    %c16_319 = arith.constant 16 : index
    %c0_320 = arith.constant 0 : index
    %c0_321 = arith.constant 0 : index
    %482 = vector.load %arg2[%c16_319, %c0_320, %c0_321] : memref<31x128x128xbf16, #tpu.memory_space<vmem>>, vector<1x64x64xbf16>
    %483 = vector.shape_cast %482 : vector<1x64x64xbf16> to vector<64x64xbf16>
    %cst_322 = arith.constant dense<0.000000e+00> : vector<32x64xf32>
    %484 = tpu.matmul %481, %483, %cst_322 {dimension_numbers = #tpu.dot_dimension_numbers<[1], [0], [0], [1], [0, 0, 1, 1], [], []>} : vector<32x64xbf16>, vector<64x64xbf16>, vector<32x64xf32> -> vector<32x64xf32>
    %c6_323 = arith.constant 6 : index
    %c0_324 = arith.constant 0 : index
    %485 = vector.load %arg4[%c6_323, %c0_324] : memref<12x128xf32, #tpu.memory_space<vmem>>, vector<1x64xf32>
    %486 = vector.broadcast %485 : vector<1x64xf32> to vector<32x64xf32>
    %487 = arith.addf %484, %486 : vector<32x64xf32>
    %cst_325 = arith.constant 0.000000e+00 : f32
    %488 = vector.broadcast %cst_325 : f32 to vector<32x64xf32>
    %489 = arith.maximumf %487, %488 : vector<32x64xf32>
    %490 = arith.truncf %489 : vector<32x64xf32> to vector<32x64xbf16>
    %c17_326 = arith.constant 17 : index
    %c0_327 = arith.constant 0 : index
    %c0_328 = arith.constant 0 : index
    %491 = vector.load %arg2[%c17_326, %c0_327, %c0_328] : memref<31x128x128xbf16, #tpu.memory_space<vmem>>, vector<1x64x32xbf16>
    %492 = vector.shape_cast %491 : vector<1x64x32xbf16> to vector<64x32xbf16>
    %cst_329 = arith.constant dense<0.000000e+00> : vector<32x32xf32>
    %493 = tpu.matmul %490, %492, %cst_329 {dimension_numbers = #tpu.dot_dimension_numbers<[1], [0], [0], [1], [0, 0, 1, 1], [], []>} : vector<32x64xbf16>, vector<64x32xbf16>, vector<32x32xf32> -> vector<32x32xf32>
    %c7_330 = arith.constant 7 : index
    %c0_331 = arith.constant 0 : index
    %494 = vector.load %arg4[%c7_330, %c0_331] : memref<12x128xf32, #tpu.memory_space<vmem>>, vector<1x32xf32>
    %495 = vector.broadcast %494 : vector<1x32xf32> to vector<32x32xf32>
    %496 = arith.addf %493, %495 : vector<32x32xf32>
    %cst_332 = arith.constant 0.000000e+00 : f32
    %497 = vector.broadcast %cst_332 : f32 to vector<32x32xf32>
    %498 = arith.maximumf %496, %497 : vector<32x32xf32>
    %499 = arith.truncf %498 : vector<32x32xf32> to vector<32x32xbf16>
    %c27_333 = arith.constant 27 : index
    %c0_334 = arith.constant 0 : index
    %c0_335 = arith.constant 0 : index
    %500 = vector.load %arg2[%c27_333, %c0_334, %c0_335] : memref<31x128x128xbf16, #tpu.memory_space<vmem>>, vector<1x32x16xbf16>
    %501 = vector.shape_cast %500 : vector<1x32x16xbf16> to vector<32x16xbf16>
    %cst_336 = arith.constant dense<0.000000e+00> : vector<32x16xf32>
    %502 = tpu.matmul %499, %501, %cst_336 {dimension_numbers = #tpu.dot_dimension_numbers<[1], [0], [0], [1], [0, 0, 1, 1], [], []>} : vector<32x32xbf16>, vector<32x16xbf16>, vector<32x16xf32> -> vector<32x16xf32>
    %503 = arith.truncf %498 : vector<32x32xf32> to vector<32x32xbf16>
    %c28_337 = arith.constant 28 : index
    %c0_338 = arith.constant 0 : index
    %c0_339 = arith.constant 0 : index
    %504 = vector.load %arg2[%c28_337, %c0_338, %c0_339] : memref<31x128x128xbf16, #tpu.memory_space<vmem>>, vector<1x32x16xbf16>
    %505 = vector.shape_cast %504 : vector<1x32x16xbf16> to vector<32x16xbf16>
    %cst_340 = arith.constant dense<0.000000e+00> : vector<32x16xf32>
    %506 = tpu.matmul %503, %505, %cst_340 {dimension_numbers = #tpu.dot_dimension_numbers<[1], [0], [0], [1], [0, 0, 1, 1], [], []>} : vector<32x32xbf16>, vector<32x16xbf16>, vector<32x16xf32> -> vector<32x16xf32>
    %507 = arith.maximumf %502, %506 : vector<32x16xf32>
    %c29_341 = arith.constant 29 : index
    %c0_342 = arith.constant 0 : index
    %c0_343 = arith.constant 0 : index
    %508 = vector.load %arg2[%c29_341, %c0_342, %c0_343] : memref<31x128x128xbf16, #tpu.memory_space<vmem>>, vector<1x16x32xbf16>
    %509 = vector.shape_cast %508 : vector<1x16x32xbf16> to vector<16x32xbf16>
    %510 = arith.truncf %507 : vector<32x16xf32> to vector<32x16xbf16>
    %cst_344 = arith.constant dense<0.000000e+00> : vector<16x16xf32>
    %511 = tpu.matmul %509, %510, %cst_344 {dimension_numbers = #tpu.dot_dimension_numbers<[1], [0], [0], [1], [0, 0, 1, 1], [], []>} : vector<16x32xbf16>, vector<32x16xbf16>, vector<16x16xf32> -> vector<16x16xf32>
    %c30_345 = arith.constant 30 : index
    %c0_346 = arith.constant 0 : index
    %c0_347 = arith.constant 0 : index
    %512 = vector.load %arg2[%c30_345, %c0_346, %c0_347] : memref<31x128x128xbf16, #tpu.memory_space<vmem>>, vector<1x16x32xbf16>
    %513 = vector.shape_cast %512 : vector<1x16x32xbf16> to vector<16x32xbf16>
    %514 = arith.truncf %507 : vector<32x16xf32> to vector<32x16xbf16>
    %cst_348 = arith.constant dense<0.000000e+00> : vector<16x16xf32>
    %515 = tpu.matmul %513, %514, %cst_348 {dimension_numbers = #tpu.dot_dimension_numbers<[1], [0], [0], [1], [0, 0, 1, 1], [], []>} : vector<16x32xbf16>, vector<32x16xbf16>, vector<16x16xf32> -> vector<16x16xf32>
    %516 = arith.maximumf %511, %515 : vector<16x16xf32>
    %c18_349 = arith.constant 18 : index
    %c0_350 = arith.constant 0 : index
    %c0_351 = arith.constant 0 : index
    %517 = vector.load %arg2[%c18_349, %c0_350, %c0_351] : memref<31x128x128xbf16, #tpu.memory_space<vmem>>, vector<1x16x16xbf16>
    %518 = vector.shape_cast %517 : vector<1x16x16xbf16> to vector<16x16xbf16>
    %519 = arith.truncf %516 : vector<16x16xf32> to vector<16x16xbf16>
    %cst_352 = arith.constant dense<0.000000e+00> : vector<16x16xf32>
    %520 = tpu.matmul %518, %519, %cst_352 {dimension_numbers = #tpu.dot_dimension_numbers<[1], [0], [0], [1], [0, 0, 1, 1], [], []>} : vector<16x16xbf16>, vector<16x16xbf16>, vector<16x16xf32> -> vector<16x16xf32>
    %c0_353 = arith.constant 0 : index
    %c10_354 = arith.constant 10 : index
    %521 = vector.load %arg3[%c0_353, %c10_354] : memref<128x13xf32, #tpu.memory_space<vmem>>, vector<16x1xf32>
    %522 = vector.broadcast %521 : vector<16x1xf32> to vector<16x16xf32>
    %523 = arith.addf %520, %522 : vector<16x16xf32>
    %cst_355 = arith.constant 0.000000e+00 : f32
    %524 = vector.broadcast %cst_355 : f32 to vector<16x16xf32>
    %525 = arith.maximumf %523, %524 : vector<16x16xf32>
    %c19_356 = arith.constant 19 : index
    %c0_357 = arith.constant 0 : index
    %c0_358 = arith.constant 0 : index
    %526 = vector.load %arg2[%c19_356, %c0_357, %c0_358] : memref<31x128x128xbf16, #tpu.memory_space<vmem>>, vector<1x4x16xbf16>
    %527 = vector.shape_cast %526 : vector<1x4x16xbf16> to vector<4x16xbf16>
    %528 = arith.truncf %525 : vector<16x16xf32> to vector<16x16xbf16>
    %cst_359 = arith.constant dense<0.000000e+00> : vector<4x16xf32>
    %529 = tpu.matmul %527, %528, %cst_359 {dimension_numbers = #tpu.dot_dimension_numbers<[1], [0], [0], [1], [0, 0, 1, 1], [], []>} : vector<4x16xbf16>, vector<16x16xbf16>, vector<4x16xf32> -> vector<4x16xf32>
    %c0_360 = arith.constant 0 : index
    %c11_361 = arith.constant 11 : index
    %530 = vector.load %arg3[%c0_360, %c11_361] : memref<128x13xf32, #tpu.memory_space<vmem>>, vector<4x1xf32>
    %531 = vector.broadcast %530 : vector<4x1xf32> to vector<4x16xf32>
    %532 = arith.addf %529, %531 : vector<4x16xf32>
    %cst_362 = arith.constant 0.000000e+00 : f32
    %533 = vector.broadcast %cst_362 : f32 to vector<4x16xf32>
    %534 = arith.maximumf %532, %533 : vector<4x16xf32>
    %535 = arith.truncf %534 : vector<4x16xf32> to vector<4x16xbf16>
    %c20_363 = arith.constant 20 : index
    %c0_364 = arith.constant 0 : index
    %c0_365 = arith.constant 0 : index
    %536 = vector.load %arg2[%c20_363, %c0_364, %c0_365] : memref<31x128x128xbf16, #tpu.memory_space<vmem>>, vector<1x16x16xbf16>
    %537 = vector.shape_cast %536 : vector<1x16x16xbf16> to vector<16x16xbf16>
    %cst_366 = arith.constant dense<0.000000e+00> : vector<4x16xf32>
    %538 = tpu.matmul %535, %537, %cst_366 {dimension_numbers = #tpu.dot_dimension_numbers<[1], [0], [0], [1], [0, 0, 1, 1], [], []>} : vector<4x16xbf16>, vector<16x16xbf16>, vector<4x16xf32> -> vector<4x16xf32>
    %c8_367 = arith.constant 8 : index
    %c0_368 = arith.constant 0 : index
    %539 = vector.load %arg4[%c8_367, %c0_368] : memref<12x128xf32, #tpu.memory_space<vmem>>, vector<1x16xf32>
    %540 = vector.broadcast %539 : vector<1x16xf32> to vector<4x16xf32>
    %541 = arith.addf %538, %540 : vector<4x16xf32>
    %cst_369 = arith.constant 0.000000e+00 : f32
    %542 = vector.broadcast %cst_369 : f32 to vector<4x16xf32>
    %543 = arith.maximumf %541, %542 : vector<4x16xf32>
    %544 = arith.truncf %543 : vector<4x16xf32> to vector<4x16xbf16>
    %c21_370 = arith.constant 21 : index
    %c0_371 = arith.constant 0 : index
    %c0_372 = arith.constant 0 : index
    %545 = vector.load %arg2[%c21_370, %c0_371, %c0_372] : memref<31x128x128xbf16, #tpu.memory_space<vmem>>, vector<1x16x4xbf16>
    %546 = vector.shape_cast %545 : vector<1x16x4xbf16> to vector<16x4xbf16>
    %cst_373 = arith.constant dense<0.000000e+00> : vector<4x4xf32>
    %547 = tpu.matmul %544, %546, %cst_373 {dimension_numbers = #tpu.dot_dimension_numbers<[1], [0], [0], [1], [0, 0, 1, 1], [], []>} : vector<4x16xbf16>, vector<16x4xbf16>, vector<4x4xf32> -> vector<4x4xf32>
    %c9_374 = arith.constant 9 : index
    %c0_375 = arith.constant 0 : index
    %548 = vector.load %arg4[%c9_374, %c0_375] : memref<12x128xf32, #tpu.memory_space<vmem>>, vector<1x4xf32>
    %549 = vector.broadcast %548 : vector<1x4xf32> to vector<4x4xf32>
    %550 = arith.addf %547, %549 : vector<4x4xf32>
    %cst_376 = arith.constant 0.000000e+00 : f32
    %551 = vector.broadcast %cst_376 : f32 to vector<4x4xf32>
    %552 = arith.maximumf %550, %551 : vector<4x4xf32>
    %c22_377 = arith.constant 22 : index
    %c0_378 = arith.constant 0 : index
    %c0_379 = arith.constant 0 : index
    %553 = vector.load %arg2[%c22_377, %c0_378, %c0_379] : memref<31x128x128xbf16, #tpu.memory_space<vmem>>, vector<1x4x4xbf16>
    %554 = vector.shape_cast %553 : vector<1x4x4xbf16> to vector<4x4xbf16>
    %555 = arith.extf %554 : vector<4x4xbf16> to vector<4x4xf32>
    %556 = arith.mulf %552, %555 : vector<4x4xf32>
    %cst_380 = arith.constant dense<0.000000e+00> : vector<4xf32>
    %557 = vector.multi_reduction <add>, %556, %cst_380 [1] : vector<4x4xf32> to vector<4xf32>
    %558 = vector.shape_cast %557 : vector<4xf32> to vector<4x1xf32>
    %cst_381 = arith.constant dense<0.000000e+00> : vector<1xf32>
    %559 = vector.multi_reduction <add>, %558, %cst_381 [0] : vector<4x1xf32> to vector<1xf32>
    %560 = vector.shape_cast %559 : vector<1xf32> to vector<1x1xf32>
    %c10_382 = arith.constant 10 : index
    %c0_383 = arith.constant 0 : index
    %561 = vector.load %arg4[%c10_382, %c0_383] : memref<12x128xf32, #tpu.memory_space<vmem>>, vector<1x1xf32>
    %562 = arith.addf %560, %561 : vector<1x1xf32>
    %cst_384 = arith.constant 0.000000e+00 : f32
    %563 = vector.broadcast %cst_384 : f32 to vector<1x1xf32>
    %564 = arith.maximumf %562, %563 : vector<1x1xf32>
    %565 = arith.addf %408, %564 : vector<1x1xf32>
    %566 = math.absf %565 : vector<1x1xf32>
    %cst_385 = arith.constant 0.000000e+00 : f32
    %567 = vector.broadcast %cst_385 : f32 to vector<1x1xf32>
    %568 = arith.subf %567, %566 : vector<1x1xf32>
    %569 = math.exp %568 : vector<1x1xf32>
    %cst_386 = arith.constant 0.000000e+00 : f32
    %570 = vector.broadcast %cst_386 : f32 to vector<1x1xf32>
    %571 = arith.cmpf oge, %565, %570 : vector<1x1xf32>
    %cst_387 = arith.constant 1.000000e+00 : f32
    %572 = vector.broadcast %cst_387 : f32 to vector<1x1xf32>
    %573 = arith.addf %572, %569 : vector<1x1xf32>
    %cst_388 = arith.constant 1.000000e+00 : f32
    %574 = vector.broadcast %cst_388 : f32 to vector<1x1xf32>
    %575 = arith.divf %574, %573 : vector<1x1xf32>
    %cst_389 = arith.constant 1.000000e+00 : f32
    %576 = vector.broadcast %cst_389 : f32 to vector<1x1xf32>
    %577 = arith.addf %576, %569 : vector<1x1xf32>
    %578 = arith.divf %569, %577 : vector<1x1xf32>
    %579 = arith.select %571, %575, %578 : vector<1x1xi1>, vector<1x1xf32>
    %c2_390 = arith.constant 2 : index
    %c0_391 = arith.constant 0 : index
    %c0_392 = arith.constant 0 : index
    %580 = vector.load %arg1[%c2_390, %c0_391, %c0_392] : memref<4x8x16xf32, #tpu.memory_space<vmem>>, vector<1x8x16xf32>
    %581 = vector.shape_cast %580 : vector<1x8x16xf32> to vector<8x16xf32>
    %cst_393 = arith.constant 0.000000e+00 : f32
    %582 = vector.broadcast %cst_393 : f32 to vector<8x2xf32>
    %583 = tpu.concatenate %582, %581 in 1 : vector<8x2xf32>, vector<8x16xf32> -> vector<8x18xf32>
    %584 = vector.extract_strided_slice %583 {offsets = [0, 0], sizes = [8, 16], strides = [1, 1]} : vector<8x18xf32> to vector<8x16xf32>
    %585 = vector.extract_strided_slice %583 {offsets = [0, 1], sizes = [8, 16], strides = [1, 1]} : vector<8x18xf32> to vector<8x16xf32>
    %586 = vector.extract_strided_slice %583 {offsets = [0, 2], sizes = [8, 16], strides = [1, 1]} : vector<8x18xf32> to vector<8x16xf32>
    %587 = tpu.concatenate %584, %585, %586 in 0 : vector<8x16xf32>, vector<8x16xf32>, vector<8x16xf32> -> vector<24x16xf32>
    %c0_394 = arith.constant 0 : index
    %c0_395 = arith.constant 0 : index
    %c0_396 = arith.constant 0 : index
    %588 = vector.load %arg2[%c0_394, %c0_395, %c0_396] : memref<31x128x128xbf16, #tpu.memory_space<vmem>>, vector<1x8x24xbf16>
    %589 = vector.shape_cast %588 : vector<1x8x24xbf16> to vector<8x24xbf16>
    %590 = arith.truncf %587 : vector<24x16xf32> to vector<24x16xbf16>
    %cst_397 = arith.constant dense<0.000000e+00> : vector<8x16xf32>
    %591 = tpu.matmul %589, %590, %cst_397 {dimension_numbers = #tpu.dot_dimension_numbers<[1], [0], [0], [1], [0, 0, 1, 1], [], []>} : vector<8x24xbf16>, vector<24x16xbf16>, vector<8x16xf32> -> vector<8x16xf32>
    %c0_398 = arith.constant 0 : index
    %c0_399 = arith.constant 0 : index
    %592 = vector.load %arg3[%c0_398, %c0_399] : memref<128x13xf32, #tpu.memory_space<vmem>>, vector<8x1xf32>
    %593 = vector.broadcast %592 : vector<8x1xf32> to vector<8x16xf32>
    %594 = arith.addf %591, %593 : vector<8x16xf32>
    %cst_400 = arith.constant 0.000000e+00 : f32
    %595 = vector.broadcast %cst_400 : f32 to vector<8x16xf32>
    %596 = arith.maximumf %594, %595 : vector<8x16xf32>
    %c1_401 = arith.constant 1 : index
    %c0_402 = arith.constant 0 : index
    %c0_403 = arith.constant 0 : index
    %597 = vector.load %arg2[%c1_401, %c0_402, %c0_403] : memref<31x128x128xbf16, #tpu.memory_space<vmem>>, vector<1x128x8xbf16>
    %598 = vector.shape_cast %597 : vector<1x128x8xbf16> to vector<128x8xbf16>
    %599 = arith.truncf %581 : vector<8x16xf32> to vector<8x16xbf16>
    %cst_404 = arith.constant dense<0.000000e+00> : vector<128x16xf32>
    %600 = tpu.matmul %598, %599, %cst_404 {dimension_numbers = #tpu.dot_dimension_numbers<[1], [0], [0], [1], [0, 0, 1, 1], [], []>} : vector<128x8xbf16>, vector<8x16xbf16>, vector<128x16xf32> -> vector<128x16xf32>
    %c0_405 = arith.constant 0 : index
    %c1_406 = arith.constant 1 : index
    %601 = vector.load %arg3[%c0_405, %c1_406] : memref<128x13xf32, #tpu.memory_space<vmem>>, vector<128x1xf32>
    %602 = vector.broadcast %601 : vector<128x1xf32> to vector<128x16xf32>
    %603 = arith.addf %600, %602 : vector<128x16xf32>
    %cst_407 = arith.constant 0.000000e+00 : f32
    %604 = vector.broadcast %cst_407 : f32 to vector<128x16xf32>
    %605 = arith.maximumf %603, %604 : vector<128x16xf32>
    %606 = arith.truncf %605 : vector<128x16xf32> to vector<128x16xbf16>
    %c2_408 = arith.constant 2 : index
    %c0_409 = arith.constant 0 : index
    %c0_410 = arith.constant 0 : index
    %607 = vector.load %arg2[%c2_408, %c0_409, %c0_410] : memref<31x128x128xbf16, #tpu.memory_space<vmem>>, vector<1x16x128xbf16>
    %608 = vector.shape_cast %607 : vector<1x16x128xbf16> to vector<16x128xbf16>
    %cst_411 = arith.constant dense<0.000000e+00> : vector<128x128xf32>
    %609 = tpu.matmul %606, %608, %cst_411 {dimension_numbers = #tpu.dot_dimension_numbers<[1], [0], [0], [1], [0, 0, 1, 1], [], []>} : vector<128x16xbf16>, vector<16x128xbf16>, vector<128x128xf32> -> vector<128x128xf32>
    %c0_412 = arith.constant 0 : index
    %c0_413 = arith.constant 0 : index
    %610 = vector.load %arg4[%c0_412, %c0_413] : memref<12x128xf32, #tpu.memory_space<vmem>>, vector<1x128xf32>
    %611 = vector.broadcast %610 : vector<1x128xf32> to vector<128x128xf32>
    %612 = arith.addf %609, %611 : vector<128x128xf32>
    %cst_414 = arith.constant 0.000000e+00 : f32
    %613 = vector.broadcast %cst_414 : f32 to vector<128x128xf32>
    %614 = arith.maximumf %612, %613 : vector<128x128xf32>
    %c3_415 = arith.constant 3 : index
    %c0_416 = arith.constant 0 : index
    %c0_417 = arith.constant 0 : index
    %615 = vector.load %arg2[%c3_415, %c0_416, %c0_417] : memref<31x128x128xbf16, #tpu.memory_space<vmem>>, vector<1x8x128xbf16>
    %616 = vector.shape_cast %615 : vector<1x8x128xbf16> to vector<8x128xbf16>
    %617 = arith.truncf %614 : vector<128x128xf32> to vector<128x128xbf16>
    %cst_418 = arith.constant dense<0.000000e+00> : vector<8x128xf32>
    %618 = tpu.matmul %616, %617, %cst_418 {dimension_numbers = #tpu.dot_dimension_numbers<[1], [0], [0], [1], [0, 0, 1, 1], [], []>} : vector<8x128xbf16>, vector<128x128xbf16>, vector<8x128xf32> -> vector<8x128xf32>
    %c0_419 = arith.constant 0 : index
    %c2_420 = arith.constant 2 : index
    %619 = vector.load %arg3[%c0_419, %c2_420] : memref<128x13xf32, #tpu.memory_space<vmem>>, vector<8x1xf32>
    %620 = vector.broadcast %619 : vector<8x1xf32> to vector<8x128xf32>
    %621 = arith.addf %618, %620 : vector<8x128xf32>
    %cst_421 = arith.constant 0.000000e+00 : f32
    %622 = vector.broadcast %cst_421 : f32 to vector<8x128xf32>
    %623 = arith.maximumf %621, %622 : vector<8x128xf32>
    %624 = arith.truncf %623 : vector<8x128xf32> to vector<8x128xbf16>
    %c4_422 = arith.constant 4 : index
    %c0_423 = arith.constant 0 : index
    %c0_424 = arith.constant 0 : index
    %625 = vector.load %arg2[%c4_422, %c0_423, %c0_424] : memref<31x128x128xbf16, #tpu.memory_space<vmem>>, vector<1x128x16xbf16>
    %626 = vector.shape_cast %625 : vector<1x128x16xbf16> to vector<128x16xbf16>
    %cst_425 = arith.constant dense<0.000000e+00> : vector<8x16xf32>
    %627 = tpu.matmul %624, %626, %cst_425 {dimension_numbers = #tpu.dot_dimension_numbers<[1], [0], [0], [1], [0, 0, 1, 1], [], []>} : vector<8x128xbf16>, vector<128x16xbf16>, vector<8x16xf32> -> vector<8x16xf32>
    %c1_426 = arith.constant 1 : index
    %c0_427 = arith.constant 0 : index
    %628 = vector.load %arg4[%c1_426, %c0_427] : memref<12x128xf32, #tpu.memory_space<vmem>>, vector<1x16xf32>
    %629 = vector.broadcast %628 : vector<1x16xf32> to vector<8x16xf32>
    %630 = arith.addf %627, %629 : vector<8x16xf32>
    %cst_428 = arith.constant 0.000000e+00 : f32
    %631 = vector.broadcast %cst_428 : f32 to vector<8x16xf32>
    %632 = arith.maximumf %630, %631 : vector<8x16xf32>
    %633 = arith.addf %581, %596 : vector<8x16xf32>
    %634 = arith.addf %633, %632 : vector<8x16xf32>
    %cst_429 = arith.constant 0.000000e+00 : f32
    %635 = vector.broadcast %cst_429 : f32 to vector<8x16xf32>
    %636 = arith.maximumf %634, %635 : vector<8x16xf32>
    %cst_430 = arith.constant 0.000000e+00 : f32
    %637 = vector.broadcast %cst_430 : f32 to vector<8x4xf32>
    %638 = tpu.concatenate %637, %636 in 1 : vector<8x4xf32>, vector<8x16xf32> -> vector<8x20xf32>
    %639 = vector.extract_strided_slice %638 {offsets = [0, 0], sizes = [8, 16], strides = [1, 1]} : vector<8x20xf32> to vector<8x16xf32>
    %640 = vector.extract_strided_slice %638 {offsets = [0, 2], sizes = [8, 16], strides = [1, 1]} : vector<8x20xf32> to vector<8x16xf32>
    %641 = vector.extract_strided_slice %638 {offsets = [0, 4], sizes = [8, 16], strides = [1, 1]} : vector<8x20xf32> to vector<8x16xf32>
    %642 = tpu.concatenate %639, %640, %641 in 0 : vector<8x16xf32>, vector<8x16xf32>, vector<8x16xf32> -> vector<24x16xf32>
    %c5_431 = arith.constant 5 : index
    %c0_432 = arith.constant 0 : index
    %c0_433 = arith.constant 0 : index
    %643 = vector.load %arg2[%c5_431, %c0_432, %c0_433] : memref<31x128x128xbf16, #tpu.memory_space<vmem>>, vector<1x8x24xbf16>
    %644 = vector.shape_cast %643 : vector<1x8x24xbf16> to vector<8x24xbf16>
    %645 = arith.truncf %642 : vector<24x16xf32> to vector<24x16xbf16>
    %cst_434 = arith.constant dense<0.000000e+00> : vector<8x16xf32>
    %646 = tpu.matmul %644, %645, %cst_434 {dimension_numbers = #tpu.dot_dimension_numbers<[1], [0], [0], [1], [0, 0, 1, 1], [], []>} : vector<8x24xbf16>, vector<24x16xbf16>, vector<8x16xf32> -> vector<8x16xf32>
    %c0_435 = arith.constant 0 : index
    %c3_436 = arith.constant 3 : index
    %647 = vector.load %arg3[%c0_435, %c3_436] : memref<128x13xf32, #tpu.memory_space<vmem>>, vector<8x1xf32>
    %648 = vector.broadcast %647 : vector<8x1xf32> to vector<8x16xf32>
    %649 = arith.addf %646, %648 : vector<8x16xf32>
    %cst_437 = arith.constant 0.000000e+00 : f32
    %650 = vector.broadcast %cst_437 : f32 to vector<8x16xf32>
    %651 = arith.maximumf %649, %650 : vector<8x16xf32>
    %c6_438 = arith.constant 6 : index
    %c0_439 = arith.constant 0 : index
    %c0_440 = arith.constant 0 : index
    %652 = vector.load %arg2[%c6_438, %c0_439, %c0_440] : memref<31x128x128xbf16, #tpu.memory_space<vmem>>, vector<1x128x8xbf16>
    %653 = vector.shape_cast %652 : vector<1x128x8xbf16> to vector<128x8xbf16>
    %654 = arith.truncf %636 : vector<8x16xf32> to vector<8x16xbf16>
    %cst_441 = arith.constant dense<0.000000e+00> : vector<128x16xf32>
    %655 = tpu.matmul %653, %654, %cst_441 {dimension_numbers = #tpu.dot_dimension_numbers<[1], [0], [0], [1], [0, 0, 1, 1], [], []>} : vector<128x8xbf16>, vector<8x16xbf16>, vector<128x16xf32> -> vector<128x16xf32>
    %c0_442 = arith.constant 0 : index
    %c4_443 = arith.constant 4 : index
    %656 = vector.load %arg3[%c0_442, %c4_443] : memref<128x13xf32, #tpu.memory_space<vmem>>, vector<128x1xf32>
    %657 = vector.broadcast %656 : vector<128x1xf32> to vector<128x16xf32>
    %658 = arith.addf %655, %657 : vector<128x16xf32>
    %cst_444 = arith.constant 0.000000e+00 : f32
    %659 = vector.broadcast %cst_444 : f32 to vector<128x16xf32>
    %660 = arith.maximumf %658, %659 : vector<128x16xf32>
    %661 = arith.truncf %660 : vector<128x16xf32> to vector<128x16xbf16>
    %c7_445 = arith.constant 7 : index
    %c0_446 = arith.constant 0 : index
    %c0_447 = arith.constant 0 : index
    %662 = vector.load %arg2[%c7_445, %c0_446, %c0_447] : memref<31x128x128xbf16, #tpu.memory_space<vmem>>, vector<1x16x128xbf16>
    %663 = vector.shape_cast %662 : vector<1x16x128xbf16> to vector<16x128xbf16>
    %cst_448 = arith.constant dense<0.000000e+00> : vector<128x128xf32>
    %664 = tpu.matmul %661, %663, %cst_448 {dimension_numbers = #tpu.dot_dimension_numbers<[1], [0], [0], [1], [0, 0, 1, 1], [], []>} : vector<128x16xbf16>, vector<16x128xbf16>, vector<128x128xf32> -> vector<128x128xf32>
    %c2_449 = arith.constant 2 : index
    %c0_450 = arith.constant 0 : index
    %665 = vector.load %arg4[%c2_449, %c0_450] : memref<12x128xf32, #tpu.memory_space<vmem>>, vector<1x128xf32>
    %666 = vector.broadcast %665 : vector<1x128xf32> to vector<128x128xf32>
    %667 = arith.addf %664, %666 : vector<128x128xf32>
    %cst_451 = arith.constant 0.000000e+00 : f32
    %668 = vector.broadcast %cst_451 : f32 to vector<128x128xf32>
    %669 = arith.maximumf %667, %668 : vector<128x128xf32>
    %c8_452 = arith.constant 8 : index
    %c0_453 = arith.constant 0 : index
    %c0_454 = arith.constant 0 : index
    %670 = vector.load %arg2[%c8_452, %c0_453, %c0_454] : memref<31x128x128xbf16, #tpu.memory_space<vmem>>, vector<1x8x128xbf16>
    %671 = vector.shape_cast %670 : vector<1x8x128xbf16> to vector<8x128xbf16>
    %672 = arith.truncf %669 : vector<128x128xf32> to vector<128x128xbf16>
    %cst_455 = arith.constant dense<0.000000e+00> : vector<8x128xf32>
    %673 = tpu.matmul %671, %672, %cst_455 {dimension_numbers = #tpu.dot_dimension_numbers<[1], [0], [0], [1], [0, 0, 1, 1], [], []>} : vector<8x128xbf16>, vector<128x128xbf16>, vector<8x128xf32> -> vector<8x128xf32>
    %c0_456 = arith.constant 0 : index
    %c5_457 = arith.constant 5 : index
    %674 = vector.load %arg3[%c0_456, %c5_457] : memref<128x13xf32, #tpu.memory_space<vmem>>, vector<8x1xf32>
    %675 = vector.broadcast %674 : vector<8x1xf32> to vector<8x128xf32>
    %676 = arith.addf %673, %675 : vector<8x128xf32>
    %cst_458 = arith.constant 0.000000e+00 : f32
    %677 = vector.broadcast %cst_458 : f32 to vector<8x128xf32>
    %678 = arith.maximumf %676, %677 : vector<8x128xf32>
    %679 = arith.truncf %678 : vector<8x128xf32> to vector<8x128xbf16>
    %c9_459 = arith.constant 9 : index
    %c0_460 = arith.constant 0 : index
    %c0_461 = arith.constant 0 : index
    %680 = vector.load %arg2[%c9_459, %c0_460, %c0_461] : memref<31x128x128xbf16, #tpu.memory_space<vmem>>, vector<1x128x16xbf16>
    %681 = vector.shape_cast %680 : vector<1x128x16xbf16> to vector<128x16xbf16>
    %cst_462 = arith.constant dense<0.000000e+00> : vector<8x16xf32>
    %682 = tpu.matmul %679, %681, %cst_462 {dimension_numbers = #tpu.dot_dimension_numbers<[1], [0], [0], [1], [0, 0, 1, 1], [], []>} : vector<8x128xbf16>, vector<128x16xbf16>, vector<8x16xf32> -> vector<8x16xf32>
    %c3_463 = arith.constant 3 : index
    %c0_464 = arith.constant 0 : index
    %683 = vector.load %arg4[%c3_463, %c0_464] : memref<12x128xf32, #tpu.memory_space<vmem>>, vector<1x16xf32>
    %684 = vector.broadcast %683 : vector<1x16xf32> to vector<8x16xf32>
    %685 = arith.addf %682, %684 : vector<8x16xf32>
    %cst_465 = arith.constant 0.000000e+00 : f32
    %686 = vector.broadcast %cst_465 : f32 to vector<8x16xf32>
    %687 = arith.maximumf %685, %686 : vector<8x16xf32>
    %688 = arith.addf %636, %651 : vector<8x16xf32>
    %689 = arith.addf %688, %687 : vector<8x16xf32>
    %cst_466 = arith.constant 0.000000e+00 : f32
    %690 = vector.broadcast %cst_466 : f32 to vector<8x16xf32>
    %691 = arith.maximumf %689, %690 : vector<8x16xf32>
    %692 = vector.extract_strided_slice %691 {offsets = [0, 15], sizes = [8, 1], strides = [1, 1]} : vector<8x16xf32> to vector<8x1xf32>
    %c0_467 = arith.constant 0 : index
    %c12_468 = arith.constant 12 : index
    %693 = vector.load %arg3[%c0_467, %c12_468] : memref<128x13xf32, #tpu.memory_space<vmem>>, vector<8x1xf32>
    %694 = arith.mulf %693, %692 : vector<8x1xf32>
    %cst_469 = arith.constant dense<0.000000e+00> : vector<1xf32>
    %695 = vector.multi_reduction <add>, %694, %cst_469 [0] : vector<8x1xf32> to vector<1xf32>
    %696 = vector.shape_cast %695 : vector<1xf32> to vector<1x1xf32>
    %c11_470 = arith.constant 11 : index
    %c0_471 = arith.constant 0 : index
    %697 = vector.load %arg4[%c11_470, %c0_471] : memref<12x128xf32, #tpu.memory_space<vmem>>, vector<1x1xf32>
    %698 = arith.addf %696, %697 : vector<1x1xf32>
    %c10_472 = arith.constant 10 : index
    %c0_473 = arith.constant 0 : index
    %c0_474 = arith.constant 0 : index
    %699 = vector.load %arg2[%c10_472, %c0_473, %c0_474] : memref<31x128x128xbf16, #tpu.memory_space<vmem>>, vector<1x128x8xbf16>
    %700 = vector.shape_cast %699 : vector<1x128x8xbf16> to vector<128x8xbf16>
    %701 = arith.truncf %581 : vector<8x16xf32> to vector<8x16xbf16>
    %cst_475 = arith.constant dense<0.000000e+00> : vector<128x16xf32>
    %702 = tpu.matmul %700, %701, %cst_475 {dimension_numbers = #tpu.dot_dimension_numbers<[1], [0], [0], [1], [0, 0, 1, 1], [], []>} : vector<128x8xbf16>, vector<8x16xbf16>, vector<128x16xf32> -> vector<128x16xf32>
    %c0_476 = arith.constant 0 : index
    %c6_477 = arith.constant 6 : index
    %703 = vector.load %arg3[%c0_476, %c6_477] : memref<128x13xf32, #tpu.memory_space<vmem>>, vector<128x1xf32>
    %704 = vector.broadcast %703 : vector<128x1xf32> to vector<128x16xf32>
    %705 = arith.addf %702, %704 : vector<128x16xf32>
    %cst_478 = arith.constant 0.000000e+00 : f32
    %706 = vector.broadcast %cst_478 : f32 to vector<128x16xf32>
    %707 = arith.maximumf %705, %706 : vector<128x16xf32>
    %c11_479 = arith.constant 11 : index
    %c0_480 = arith.constant 0 : index
    %c0_481 = arith.constant 0 : index
    %708 = vector.load %arg2[%c11_479, %c0_480, %c0_481] : memref<31x128x128xbf16, #tpu.memory_space<vmem>>, vector<1x128x128xbf16>
    %709 = vector.shape_cast %708 : vector<1x128x128xbf16> to vector<128x128xbf16>
    %710 = arith.truncf %707 : vector<128x16xf32> to vector<128x16xbf16>
    %cst_482 = arith.constant dense<0.000000e+00> : vector<128x16xf32>
    %711 = tpu.matmul %709, %710, %cst_482 {dimension_numbers = #tpu.dot_dimension_numbers<[1], [0], [0], [1], [0, 0, 1, 1], [], []>} : vector<128x128xbf16>, vector<128x16xbf16>, vector<128x16xf32> -> vector<128x16xf32>
    %c0_483 = arith.constant 0 : index
    %c7_484 = arith.constant 7 : index
    %712 = vector.load %arg3[%c0_483, %c7_484] : memref<128x13xf32, #tpu.memory_space<vmem>>, vector<128x1xf32>
    %713 = vector.broadcast %712 : vector<128x1xf32> to vector<128x16xf32>
    %714 = arith.addf %711, %713 : vector<128x16xf32>
    %cst_485 = arith.constant 0.000000e+00 : f32
    %715 = vector.broadcast %cst_485 : f32 to vector<128x16xf32>
    %716 = arith.maximumf %714, %715 : vector<128x16xf32>
    %717 = arith.truncf %716 : vector<128x16xf32> to vector<128x16xbf16>
    %c12_486 = arith.constant 12 : index
    %c0_487 = arith.constant 0 : index
    %c0_488 = arith.constant 0 : index
    %718 = vector.load %arg2[%c12_486, %c0_487, %c0_488] : memref<31x128x128xbf16, #tpu.memory_space<vmem>>, vector<1x16x128xbf16>
    %719 = vector.shape_cast %718 : vector<1x16x128xbf16> to vector<16x128xbf16>
    %cst_489 = arith.constant dense<0.000000e+00> : vector<128x128xf32>
    %720 = tpu.matmul %717, %719, %cst_489 {dimension_numbers = #tpu.dot_dimension_numbers<[1], [0], [0], [1], [0, 0, 1, 1], [], []>} : vector<128x16xbf16>, vector<16x128xbf16>, vector<128x128xf32> -> vector<128x128xf32>
    %c4_490 = arith.constant 4 : index
    %c0_491 = arith.constant 0 : index
    %721 = vector.load %arg4[%c4_490, %c0_491] : memref<12x128xf32, #tpu.memory_space<vmem>>, vector<1x128xf32>
    %722 = vector.broadcast %721 : vector<1x128xf32> to vector<128x128xf32>
    %723 = arith.addf %720, %722 : vector<128x128xf32>
    %cst_492 = arith.constant 0.000000e+00 : f32
    %724 = vector.broadcast %cst_492 : f32 to vector<128x128xf32>
    %725 = arith.maximumf %723, %724 : vector<128x128xf32>
    %726 = arith.truncf %725 : vector<128x128xf32> to vector<128x128xbf16>
    %c13_493 = arith.constant 13 : index
    %c0_494 = arith.constant 0 : index
    %c0_495 = arith.constant 0 : index
    %727 = vector.load %arg2[%c13_493, %c0_494, %c0_495] : memref<31x128x128xbf16, #tpu.memory_space<vmem>>, vector<1x128x128xbf16>
    %728 = vector.shape_cast %727 : vector<1x128x128xbf16> to vector<128x128xbf16>
    %cst_496 = arith.constant dense<0.000000e+00> : vector<128x128xf32>
    %729 = tpu.matmul %726, %728, %cst_496 {dimension_numbers = #tpu.dot_dimension_numbers<[1], [0], [0], [1], [0, 0, 1, 1], [], []>} : vector<128x128xbf16>, vector<128x128xbf16>, vector<128x128xf32> -> vector<128x128xf32>
    %c5_497 = arith.constant 5 : index
    %c0_498 = arith.constant 0 : index
    %730 = vector.load %arg4[%c5_497, %c0_498] : memref<12x128xf32, #tpu.memory_space<vmem>>, vector<1x128xf32>
    %731 = vector.broadcast %730 : vector<1x128xf32> to vector<128x128xf32>
    %732 = arith.addf %729, %731 : vector<128x128xf32>
    %cst_499 = arith.constant 0.000000e+00 : f32
    %733 = vector.broadcast %cst_499 : f32 to vector<128x128xf32>
    %734 = arith.maximumf %732, %733 : vector<128x128xf32>
    %735 = arith.truncf %734 : vector<128x128xf32> to vector<128x128xbf16>
    %c23_500 = arith.constant 23 : index
    %c0_501 = arith.constant 0 : index
    %c0_502 = arith.constant 0 : index
    %736 = vector.load %arg2[%c23_500, %c0_501, %c0_502] : memref<31x128x128xbf16, #tpu.memory_space<vmem>>, vector<1x128x64xbf16>
    %737 = vector.shape_cast %736 : vector<1x128x64xbf16> to vector<128x64xbf16>
    %cst_503 = arith.constant dense<0.000000e+00> : vector<128x64xf32>
    %738 = tpu.matmul %735, %737, %cst_503 {dimension_numbers = #tpu.dot_dimension_numbers<[1], [0], [0], [1], [0, 0, 1, 1], [], []>} : vector<128x128xbf16>, vector<128x64xbf16>, vector<128x64xf32> -> vector<128x64xf32>
    %739 = arith.truncf %734 : vector<128x128xf32> to vector<128x128xbf16>
    %c24_504 = arith.constant 24 : index
    %c0_505 = arith.constant 0 : index
    %c0_506 = arith.constant 0 : index
    %740 = vector.load %arg2[%c24_504, %c0_505, %c0_506] : memref<31x128x128xbf16, #tpu.memory_space<vmem>>, vector<1x128x64xbf16>
    %741 = vector.shape_cast %740 : vector<1x128x64xbf16> to vector<128x64xbf16>
    %cst_507 = arith.constant dense<0.000000e+00> : vector<128x64xf32>
    %742 = tpu.matmul %739, %741, %cst_507 {dimension_numbers = #tpu.dot_dimension_numbers<[1], [0], [0], [1], [0, 0, 1, 1], [], []>} : vector<128x128xbf16>, vector<128x64xbf16>, vector<128x64xf32> -> vector<128x64xf32>
    %743 = arith.maximumf %738, %742 : vector<128x64xf32>
    %c25_508 = arith.constant 25 : index
    %c0_509 = arith.constant 0 : index
    %c0_510 = arith.constant 0 : index
    %744 = vector.load %arg2[%c25_508, %c0_509, %c0_510] : memref<31x128x128xbf16, #tpu.memory_space<vmem>>, vector<1x64x128xbf16>
    %745 = vector.shape_cast %744 : vector<1x64x128xbf16> to vector<64x128xbf16>
    %746 = arith.truncf %743 : vector<128x64xf32> to vector<128x64xbf16>
    %cst_511 = arith.constant dense<0.000000e+00> : vector<64x64xf32>
    %747 = tpu.matmul %745, %746, %cst_511 {dimension_numbers = #tpu.dot_dimension_numbers<[1], [0], [0], [1], [0, 0, 1, 1], [], []>} : vector<64x128xbf16>, vector<128x64xbf16>, vector<64x64xf32> -> vector<64x64xf32>
    %c26_512 = arith.constant 26 : index
    %c0_513 = arith.constant 0 : index
    %c0_514 = arith.constant 0 : index
    %748 = vector.load %arg2[%c26_512, %c0_513, %c0_514] : memref<31x128x128xbf16, #tpu.memory_space<vmem>>, vector<1x64x128xbf16>
    %749 = vector.shape_cast %748 : vector<1x64x128xbf16> to vector<64x128xbf16>
    %750 = arith.truncf %743 : vector<128x64xf32> to vector<128x64xbf16>
    %cst_515 = arith.constant dense<0.000000e+00> : vector<64x64xf32>
    %751 = tpu.matmul %749, %750, %cst_515 {dimension_numbers = #tpu.dot_dimension_numbers<[1], [0], [0], [1], [0, 0, 1, 1], [], []>} : vector<64x128xbf16>, vector<128x64xbf16>, vector<64x64xf32> -> vector<64x64xf32>
    %752 = arith.maximumf %747, %751 : vector<64x64xf32>
    %c14_516 = arith.constant 14 : index
    %c0_517 = arith.constant 0 : index
    %c0_518 = arith.constant 0 : index
    %753 = vector.load %arg2[%c14_516, %c0_517, %c0_518] : memref<31x128x128xbf16, #tpu.memory_space<vmem>>, vector<1x64x64xbf16>
    %754 = vector.shape_cast %753 : vector<1x64x64xbf16> to vector<64x64xbf16>
    %755 = arith.truncf %752 : vector<64x64xf32> to vector<64x64xbf16>
    %cst_519 = arith.constant dense<0.000000e+00> : vector<64x64xf32>
    %756 = tpu.matmul %754, %755, %cst_519 {dimension_numbers = #tpu.dot_dimension_numbers<[1], [0], [0], [1], [0, 0, 1, 1], [], []>} : vector<64x64xbf16>, vector<64x64xbf16>, vector<64x64xf32> -> vector<64x64xf32>
    %c0_520 = arith.constant 0 : index
    %c8_521 = arith.constant 8 : index
    %757 = vector.load %arg3[%c0_520, %c8_521] : memref<128x13xf32, #tpu.memory_space<vmem>>, vector<64x1xf32>
    %758 = vector.broadcast %757 : vector<64x1xf32> to vector<64x64xf32>
    %759 = arith.addf %756, %758 : vector<64x64xf32>
    %cst_522 = arith.constant 0.000000e+00 : f32
    %760 = vector.broadcast %cst_522 : f32 to vector<64x64xf32>
    %761 = arith.maximumf %759, %760 : vector<64x64xf32>
    %c15_523 = arith.constant 15 : index
    %c0_524 = arith.constant 0 : index
    %c0_525 = arith.constant 0 : index
    %762 = vector.load %arg2[%c15_523, %c0_524, %c0_525] : memref<31x128x128xbf16, #tpu.memory_space<vmem>>, vector<1x32x64xbf16>
    %763 = vector.shape_cast %762 : vector<1x32x64xbf16> to vector<32x64xbf16>
    %764 = arith.truncf %761 : vector<64x64xf32> to vector<64x64xbf16>
    %cst_526 = arith.constant dense<0.000000e+00> : vector<32x64xf32>
    %765 = tpu.matmul %763, %764, %cst_526 {dimension_numbers = #tpu.dot_dimension_numbers<[1], [0], [0], [1], [0, 0, 1, 1], [], []>} : vector<32x64xbf16>, vector<64x64xbf16>, vector<32x64xf32> -> vector<32x64xf32>
    %c0_527 = arith.constant 0 : index
    %c9_528 = arith.constant 9 : index
    %766 = vector.load %arg3[%c0_527, %c9_528] : memref<128x13xf32, #tpu.memory_space<vmem>>, vector<32x1xf32>
    %767 = vector.broadcast %766 : vector<32x1xf32> to vector<32x64xf32>
    %768 = arith.addf %765, %767 : vector<32x64xf32>
    %cst_529 = arith.constant 0.000000e+00 : f32
    %769 = vector.broadcast %cst_529 : f32 to vector<32x64xf32>
    %770 = arith.maximumf %768, %769 : vector<32x64xf32>
    %771 = arith.truncf %770 : vector<32x64xf32> to vector<32x64xbf16>
    %c16_530 = arith.constant 16 : index
    %c0_531 = arith.constant 0 : index
    %c0_532 = arith.constant 0 : index
    %772 = vector.load %arg2[%c16_530, %c0_531, %c0_532] : memref<31x128x128xbf16, #tpu.memory_space<vmem>>, vector<1x64x64xbf16>
    %773 = vector.shape_cast %772 : vector<1x64x64xbf16> to vector<64x64xbf16>
    %cst_533 = arith.constant dense<0.000000e+00> : vector<32x64xf32>
    %774 = tpu.matmul %771, %773, %cst_533 {dimension_numbers = #tpu.dot_dimension_numbers<[1], [0], [0], [1], [0, 0, 1, 1], [], []>} : vector<32x64xbf16>, vector<64x64xbf16>, vector<32x64xf32> -> vector<32x64xf32>
    %c6_534 = arith.constant 6 : index
    %c0_535 = arith.constant 0 : index
    %775 = vector.load %arg4[%c6_534, %c0_535] : memref<12x128xf32, #tpu.memory_space<vmem>>, vector<1x64xf32>
    %776 = vector.broadcast %775 : vector<1x64xf32> to vector<32x64xf32>
    %777 = arith.addf %774, %776 : vector<32x64xf32>
    %cst_536 = arith.constant 0.000000e+00 : f32
    %778 = vector.broadcast %cst_536 : f32 to vector<32x64xf32>
    %779 = arith.maximumf %777, %778 : vector<32x64xf32>
    %780 = arith.truncf %779 : vector<32x64xf32> to vector<32x64xbf16>
    %c17_537 = arith.constant 17 : index
    %c0_538 = arith.constant 0 : index
    %c0_539 = arith.constant 0 : index
    %781 = vector.load %arg2[%c17_537, %c0_538, %c0_539] : memref<31x128x128xbf16, #tpu.memory_space<vmem>>, vector<1x64x32xbf16>
    %782 = vector.shape_cast %781 : vector<1x64x32xbf16> to vector<64x32xbf16>
    %cst_540 = arith.constant dense<0.000000e+00> : vector<32x32xf32>
    %783 = tpu.matmul %780, %782, %cst_540 {dimension_numbers = #tpu.dot_dimension_numbers<[1], [0], [0], [1], [0, 0, 1, 1], [], []>} : vector<32x64xbf16>, vector<64x32xbf16>, vector<32x32xf32> -> vector<32x32xf32>
    %c7_541 = arith.constant 7 : index
    %c0_542 = arith.constant 0 : index
    %784 = vector.load %arg4[%c7_541, %c0_542] : memref<12x128xf32, #tpu.memory_space<vmem>>, vector<1x32xf32>
    %785 = vector.broadcast %784 : vector<1x32xf32> to vector<32x32xf32>
    %786 = arith.addf %783, %785 : vector<32x32xf32>
    %cst_543 = arith.constant 0.000000e+00 : f32
    %787 = vector.broadcast %cst_543 : f32 to vector<32x32xf32>
    %788 = arith.maximumf %786, %787 : vector<32x32xf32>
    %789 = arith.truncf %788 : vector<32x32xf32> to vector<32x32xbf16>
    %c27_544 = arith.constant 27 : index
    %c0_545 = arith.constant 0 : index
    %c0_546 = arith.constant 0 : index
    %790 = vector.load %arg2[%c27_544, %c0_545, %c0_546] : memref<31x128x128xbf16, #tpu.memory_space<vmem>>, vector<1x32x16xbf16>
    %791 = vector.shape_cast %790 : vector<1x32x16xbf16> to vector<32x16xbf16>
    %cst_547 = arith.constant dense<0.000000e+00> : vector<32x16xf32>
    %792 = tpu.matmul %789, %791, %cst_547 {dimension_numbers = #tpu.dot_dimension_numbers<[1], [0], [0], [1], [0, 0, 1, 1], [], []>} : vector<32x32xbf16>, vector<32x16xbf16>, vector<32x16xf32> -> vector<32x16xf32>
    %793 = arith.truncf %788 : vector<32x32xf32> to vector<32x32xbf16>
    %c28_548 = arith.constant 28 : index
    %c0_549 = arith.constant 0 : index
    %c0_550 = arith.constant 0 : index
    %794 = vector.load %arg2[%c28_548, %c0_549, %c0_550] : memref<31x128x128xbf16, #tpu.memory_space<vmem>>, vector<1x32x16xbf16>
    %795 = vector.shape_cast %794 : vector<1x32x16xbf16> to vector<32x16xbf16>
    %cst_551 = arith.constant dense<0.000000e+00> : vector<32x16xf32>
    %796 = tpu.matmul %793, %795, %cst_551 {dimension_numbers = #tpu.dot_dimension_numbers<[1], [0], [0], [1], [0, 0, 1, 1], [], []>} : vector<32x32xbf16>, vector<32x16xbf16>, vector<32x16xf32> -> vector<32x16xf32>
    %797 = arith.maximumf %792, %796 : vector<32x16xf32>
    %c29_552 = arith.constant 29 : index
    %c0_553 = arith.constant 0 : index
    %c0_554 = arith.constant 0 : index
    %798 = vector.load %arg2[%c29_552, %c0_553, %c0_554] : memref<31x128x128xbf16, #tpu.memory_space<vmem>>, vector<1x16x32xbf16>
    %799 = vector.shape_cast %798 : vector<1x16x32xbf16> to vector<16x32xbf16>
    %800 = arith.truncf %797 : vector<32x16xf32> to vector<32x16xbf16>
    %cst_555 = arith.constant dense<0.000000e+00> : vector<16x16xf32>
    %801 = tpu.matmul %799, %800, %cst_555 {dimension_numbers = #tpu.dot_dimension_numbers<[1], [0], [0], [1], [0, 0, 1, 1], [], []>} : vector<16x32xbf16>, vector<32x16xbf16>, vector<16x16xf32> -> vector<16x16xf32>
    %c30_556 = arith.constant 30 : index
    %c0_557 = arith.constant 0 : index
    %c0_558 = arith.constant 0 : index
    %802 = vector.load %arg2[%c30_556, %c0_557, %c0_558] : memref<31x128x128xbf16, #tpu.memory_space<vmem>>, vector<1x16x32xbf16>
    %803 = vector.shape_cast %802 : vector<1x16x32xbf16> to vector<16x32xbf16>
    %804 = arith.truncf %797 : vector<32x16xf32> to vector<32x16xbf16>
    %cst_559 = arith.constant dense<0.000000e+00> : vector<16x16xf32>
    %805 = tpu.matmul %803, %804, %cst_559 {dimension_numbers = #tpu.dot_dimension_numbers<[1], [0], [0], [1], [0, 0, 1, 1], [], []>} : vector<16x32xbf16>, vector<32x16xbf16>, vector<16x16xf32> -> vector<16x16xf32>
    %806 = arith.maximumf %801, %805 : vector<16x16xf32>
    %c18_560 = arith.constant 18 : index
    %c0_561 = arith.constant 0 : index
    %c0_562 = arith.constant 0 : index
    %807 = vector.load %arg2[%c18_560, %c0_561, %c0_562] : memref<31x128x128xbf16, #tpu.memory_space<vmem>>, vector<1x16x16xbf16>
    %808 = vector.shape_cast %807 : vector<1x16x16xbf16> to vector<16x16xbf16>
    %809 = arith.truncf %806 : vector<16x16xf32> to vector<16x16xbf16>
    %cst_563 = arith.constant dense<0.000000e+00> : vector<16x16xf32>
    %810 = tpu.matmul %808, %809, %cst_563 {dimension_numbers = #tpu.dot_dimension_numbers<[1], [0], [0], [1], [0, 0, 1, 1], [], []>} : vector<16x16xbf16>, vector<16x16xbf16>, vector<16x16xf32> -> vector<16x16xf32>
    %c0_564 = arith.constant 0 : index
    %c10_565 = arith.constant 10 : index
    %811 = vector.load %arg3[%c0_564, %c10_565] : memref<128x13xf32, #tpu.memory_space<vmem>>, vector<16x1xf32>
    %812 = vector.broadcast %811 : vector<16x1xf32> to vector<16x16xf32>
    %813 = arith.addf %810, %812 : vector<16x16xf32>
    %cst_566 = arith.constant 0.000000e+00 : f32
    %814 = vector.broadcast %cst_566 : f32 to vector<16x16xf32>
    %815 = arith.maximumf %813, %814 : vector<16x16xf32>
    %c19_567 = arith.constant 19 : index
    %c0_568 = arith.constant 0 : index
    %c0_569 = arith.constant 0 : index
    %816 = vector.load %arg2[%c19_567, %c0_568, %c0_569] : memref<31x128x128xbf16, #tpu.memory_space<vmem>>, vector<1x4x16xbf16>
    %817 = vector.shape_cast %816 : vector<1x4x16xbf16> to vector<4x16xbf16>
    %818 = arith.truncf %815 : vector<16x16xf32> to vector<16x16xbf16>
    %cst_570 = arith.constant dense<0.000000e+00> : vector<4x16xf32>
    %819 = tpu.matmul %817, %818, %cst_570 {dimension_numbers = #tpu.dot_dimension_numbers<[1], [0], [0], [1], [0, 0, 1, 1], [], []>} : vector<4x16xbf16>, vector<16x16xbf16>, vector<4x16xf32> -> vector<4x16xf32>
    %c0_571 = arith.constant 0 : index
    %c11_572 = arith.constant 11 : index
    %820 = vector.load %arg3[%c0_571, %c11_572] : memref<128x13xf32, #tpu.memory_space<vmem>>, vector<4x1xf32>
    %821 = vector.broadcast %820 : vector<4x1xf32> to vector<4x16xf32>
    %822 = arith.addf %819, %821 : vector<4x16xf32>
    %cst_573 = arith.constant 0.000000e+00 : f32
    %823 = vector.broadcast %cst_573 : f32 to vector<4x16xf32>
    %824 = arith.maximumf %822, %823 : vector<4x16xf32>
    %825 = arith.truncf %824 : vector<4x16xf32> to vector<4x16xbf16>
    %c20_574 = arith.constant 20 : index
    %c0_575 = arith.constant 0 : index
    %c0_576 = arith.constant 0 : index
    %826 = vector.load %arg2[%c20_574, %c0_575, %c0_576] : memref<31x128x128xbf16, #tpu.memory_space<vmem>>, vector<1x16x16xbf16>
    %827 = vector.shape_cast %826 : vector<1x16x16xbf16> to vector<16x16xbf16>
    %cst_577 = arith.constant dense<0.000000e+00> : vector<4x16xf32>
    %828 = tpu.matmul %825, %827, %cst_577 {dimension_numbers = #tpu.dot_dimension_numbers<[1], [0], [0], [1], [0, 0, 1, 1], [], []>} : vector<4x16xbf16>, vector<16x16xbf16>, vector<4x16xf32> -> vector<4x16xf32>
    %c8_578 = arith.constant 8 : index
    %c0_579 = arith.constant 0 : index
    %829 = vector.load %arg4[%c8_578, %c0_579] : memref<12x128xf32, #tpu.memory_space<vmem>>, vector<1x16xf32>
    %830 = vector.broadcast %829 : vector<1x16xf32> to vector<4x16xf32>
    %831 = arith.addf %828, %830 : vector<4x16xf32>
    %cst_580 = arith.constant 0.000000e+00 : f32
    %832 = vector.broadcast %cst_580 : f32 to vector<4x16xf32>
    %833 = arith.maximumf %831, %832 : vector<4x16xf32>
    %834 = arith.truncf %833 : vector<4x16xf32> to vector<4x16xbf16>
    %c21_581 = arith.constant 21 : index
    %c0_582 = arith.constant 0 : index
    %c0_583 = arith.constant 0 : index
    %835 = vector.load %arg2[%c21_581, %c0_582, %c0_583] : memref<31x128x128xbf16, #tpu.memory_space<vmem>>, vector<1x16x4xbf16>
    %836 = vector.shape_cast %835 : vector<1x16x4xbf16> to vector<16x4xbf16>
    %cst_584 = arith.constant dense<0.000000e+00> : vector<4x4xf32>
    %837 = tpu.matmul %834, %836, %cst_584 {dimension_numbers = #tpu.dot_dimension_numbers<[1], [0], [0], [1], [0, 0, 1, 1], [], []>} : vector<4x16xbf16>, vector<16x4xbf16>, vector<4x4xf32> -> vector<4x4xf32>
    %c9_585 = arith.constant 9 : index
    %c0_586 = arith.constant 0 : index
    %838 = vector.load %arg4[%c9_585, %c0_586] : memref<12x128xf32, #tpu.memory_space<vmem>>, vector<1x4xf32>
    %839 = vector.broadcast %838 : vector<1x4xf32> to vector<4x4xf32>
    %840 = arith.addf %837, %839 : vector<4x4xf32>
    %cst_587 = arith.constant 0.000000e+00 : f32
    %841 = vector.broadcast %cst_587 : f32 to vector<4x4xf32>
    %842 = arith.maximumf %840, %841 : vector<4x4xf32>
    %c22_588 = arith.constant 22 : index
    %c0_589 = arith.constant 0 : index
    %c0_590 = arith.constant 0 : index
    %843 = vector.load %arg2[%c22_588, %c0_589, %c0_590] : memref<31x128x128xbf16, #tpu.memory_space<vmem>>, vector<1x4x4xbf16>
    %844 = vector.shape_cast %843 : vector<1x4x4xbf16> to vector<4x4xbf16>
    %845 = arith.extf %844 : vector<4x4xbf16> to vector<4x4xf32>
    %846 = arith.mulf %842, %845 : vector<4x4xf32>
    %cst_591 = arith.constant dense<0.000000e+00> : vector<4xf32>
    %847 = vector.multi_reduction <add>, %846, %cst_591 [1] : vector<4x4xf32> to vector<4xf32>
    %848 = vector.shape_cast %847 : vector<4xf32> to vector<4x1xf32>
    %cst_592 = arith.constant dense<0.000000e+00> : vector<1xf32>
    %849 = vector.multi_reduction <add>, %848, %cst_592 [0] : vector<4x1xf32> to vector<1xf32>
    %850 = vector.shape_cast %849 : vector<1xf32> to vector<1x1xf32>
    %c10_593 = arith.constant 10 : index
    %c0_594 = arith.constant 0 : index
    %851 = vector.load %arg4[%c10_593, %c0_594] : memref<12x128xf32, #tpu.memory_space<vmem>>, vector<1x1xf32>
    %852 = arith.addf %850, %851 : vector<1x1xf32>
    %cst_595 = arith.constant 0.000000e+00 : f32
    %853 = vector.broadcast %cst_595 : f32 to vector<1x1xf32>
    %854 = arith.maximumf %852, %853 : vector<1x1xf32>
    %855 = arith.addf %698, %854 : vector<1x1xf32>
    %856 = math.absf %855 : vector<1x1xf32>
    %cst_596 = arith.constant 0.000000e+00 : f32
    %857 = vector.broadcast %cst_596 : f32 to vector<1x1xf32>
    %858 = arith.subf %857, %856 : vector<1x1xf32>
    %859 = math.exp %858 : vector<1x1xf32>
    %cst_597 = arith.constant 0.000000e+00 : f32
    %860 = vector.broadcast %cst_597 : f32 to vector<1x1xf32>
    %861 = arith.cmpf oge, %855, %860 : vector<1x1xf32>
    %cst_598 = arith.constant 1.000000e+00 : f32
    %862 = vector.broadcast %cst_598 : f32 to vector<1x1xf32>
    %863 = arith.addf %862, %859 : vector<1x1xf32>
    %cst_599 = arith.constant 1.000000e+00 : f32
    %864 = vector.broadcast %cst_599 : f32 to vector<1x1xf32>
    %865 = arith.divf %864, %863 : vector<1x1xf32>
    %cst_600 = arith.constant 1.000000e+00 : f32
    %866 = vector.broadcast %cst_600 : f32 to vector<1x1xf32>
    %867 = arith.addf %866, %859 : vector<1x1xf32>
    %868 = arith.divf %859, %867 : vector<1x1xf32>
    %869 = arith.select %861, %865, %868 : vector<1x1xi1>, vector<1x1xf32>
    %c3_601 = arith.constant 3 : index
    %c0_602 = arith.constant 0 : index
    %c0_603 = arith.constant 0 : index
    %870 = vector.load %arg1[%c3_601, %c0_602, %c0_603] : memref<4x8x16xf32, #tpu.memory_space<vmem>>, vector<1x8x16xf32>
    %871 = vector.shape_cast %870 : vector<1x8x16xf32> to vector<8x16xf32>
    %cst_604 = arith.constant 0.000000e+00 : f32
    %872 = vector.broadcast %cst_604 : f32 to vector<8x2xf32>
    %873 = tpu.concatenate %872, %871 in 1 : vector<8x2xf32>, vector<8x16xf32> -> vector<8x18xf32>
    %874 = vector.extract_strided_slice %873 {offsets = [0, 0], sizes = [8, 16], strides = [1, 1]} : vector<8x18xf32> to vector<8x16xf32>
    %875 = vector.extract_strided_slice %873 {offsets = [0, 1], sizes = [8, 16], strides = [1, 1]} : vector<8x18xf32> to vector<8x16xf32>
    %876 = vector.extract_strided_slice %873 {offsets = [0, 2], sizes = [8, 16], strides = [1, 1]} : vector<8x18xf32> to vector<8x16xf32>
    %877 = tpu.concatenate %874, %875, %876 in 0 : vector<8x16xf32>, vector<8x16xf32>, vector<8x16xf32> -> vector<24x16xf32>
    %c0_605 = arith.constant 0 : index
    %c0_606 = arith.constant 0 : index
    %c0_607 = arith.constant 0 : index
    %878 = vector.load %arg2[%c0_605, %c0_606, %c0_607] : memref<31x128x128xbf16, #tpu.memory_space<vmem>>, vector<1x8x24xbf16>
    %879 = vector.shape_cast %878 : vector<1x8x24xbf16> to vector<8x24xbf16>
    %880 = arith.truncf %877 : vector<24x16xf32> to vector<24x16xbf16>
    %cst_608 = arith.constant dense<0.000000e+00> : vector<8x16xf32>
    %881 = tpu.matmul %879, %880, %cst_608 {dimension_numbers = #tpu.dot_dimension_numbers<[1], [0], [0], [1], [0, 0, 1, 1], [], []>} : vector<8x24xbf16>, vector<24x16xbf16>, vector<8x16xf32> -> vector<8x16xf32>
    %c0_609 = arith.constant 0 : index
    %c0_610 = arith.constant 0 : index
    %882 = vector.load %arg3[%c0_609, %c0_610] : memref<128x13xf32, #tpu.memory_space<vmem>>, vector<8x1xf32>
    %883 = vector.broadcast %882 : vector<8x1xf32> to vector<8x16xf32>
    %884 = arith.addf %881, %883 : vector<8x16xf32>
    %cst_611 = arith.constant 0.000000e+00 : f32
    %885 = vector.broadcast %cst_611 : f32 to vector<8x16xf32>
    %886 = arith.maximumf %884, %885 : vector<8x16xf32>
    %c1_612 = arith.constant 1 : index
    %c0_613 = arith.constant 0 : index
    %c0_614 = arith.constant 0 : index
    %887 = vector.load %arg2[%c1_612, %c0_613, %c0_614] : memref<31x128x128xbf16, #tpu.memory_space<vmem>>, vector<1x128x8xbf16>
    %888 = vector.shape_cast %887 : vector<1x128x8xbf16> to vector<128x8xbf16>
    %889 = arith.truncf %871 : vector<8x16xf32> to vector<8x16xbf16>
    %cst_615 = arith.constant dense<0.000000e+00> : vector<128x16xf32>
    %890 = tpu.matmul %888, %889, %cst_615 {dimension_numbers = #tpu.dot_dimension_numbers<[1], [0], [0], [1], [0, 0, 1, 1], [], []>} : vector<128x8xbf16>, vector<8x16xbf16>, vector<128x16xf32> -> vector<128x16xf32>
    %c0_616 = arith.constant 0 : index
    %c1_617 = arith.constant 1 : index
    %891 = vector.load %arg3[%c0_616, %c1_617] : memref<128x13xf32, #tpu.memory_space<vmem>>, vector<128x1xf32>
    %892 = vector.broadcast %891 : vector<128x1xf32> to vector<128x16xf32>
    %893 = arith.addf %890, %892 : vector<128x16xf32>
    %cst_618 = arith.constant 0.000000e+00 : f32
    %894 = vector.broadcast %cst_618 : f32 to vector<128x16xf32>
    %895 = arith.maximumf %893, %894 : vector<128x16xf32>
    %896 = arith.truncf %895 : vector<128x16xf32> to vector<128x16xbf16>
    %c2_619 = arith.constant 2 : index
    %c0_620 = arith.constant 0 : index
    %c0_621 = arith.constant 0 : index
    %897 = vector.load %arg2[%c2_619, %c0_620, %c0_621] : memref<31x128x128xbf16, #tpu.memory_space<vmem>>, vector<1x16x128xbf16>
    %898 = vector.shape_cast %897 : vector<1x16x128xbf16> to vector<16x128xbf16>
    %cst_622 = arith.constant dense<0.000000e+00> : vector<128x128xf32>
    %899 = tpu.matmul %896, %898, %cst_622 {dimension_numbers = #tpu.dot_dimension_numbers<[1], [0], [0], [1], [0, 0, 1, 1], [], []>} : vector<128x16xbf16>, vector<16x128xbf16>, vector<128x128xf32> -> vector<128x128xf32>
    %c0_623 = arith.constant 0 : index
    %c0_624 = arith.constant 0 : index
    %900 = vector.load %arg4[%c0_623, %c0_624] : memref<12x128xf32, #tpu.memory_space<vmem>>, vector<1x128xf32>
    %901 = vector.broadcast %900 : vector<1x128xf32> to vector<128x128xf32>
    %902 = arith.addf %899, %901 : vector<128x128xf32>
    %cst_625 = arith.constant 0.000000e+00 : f32
    %903 = vector.broadcast %cst_625 : f32 to vector<128x128xf32>
    %904 = arith.maximumf %902, %903 : vector<128x128xf32>
    %c3_626 = arith.constant 3 : index
    %c0_627 = arith.constant 0 : index
    %c0_628 = arith.constant 0 : index
    %905 = vector.load %arg2[%c3_626, %c0_627, %c0_628] : memref<31x128x128xbf16, #tpu.memory_space<vmem>>, vector<1x8x128xbf16>
    %906 = vector.shape_cast %905 : vector<1x8x128xbf16> to vector<8x128xbf16>
    %907 = arith.truncf %904 : vector<128x128xf32> to vector<128x128xbf16>
    %cst_629 = arith.constant dense<0.000000e+00> : vector<8x128xf32>
    %908 = tpu.matmul %906, %907, %cst_629 {dimension_numbers = #tpu.dot_dimension_numbers<[1], [0], [0], [1], [0, 0, 1, 1], [], []>} : vector<8x128xbf16>, vector<128x128xbf16>, vector<8x128xf32> -> vector<8x128xf32>
    %c0_630 = arith.constant 0 : index
    %c2_631 = arith.constant 2 : index
    %909 = vector.load %arg3[%c0_630, %c2_631] : memref<128x13xf32, #tpu.memory_space<vmem>>, vector<8x1xf32>
    %910 = vector.broadcast %909 : vector<8x1xf32> to vector<8x128xf32>
    %911 = arith.addf %908, %910 : vector<8x128xf32>
    %cst_632 = arith.constant 0.000000e+00 : f32
    %912 = vector.broadcast %cst_632 : f32 to vector<8x128xf32>
    %913 = arith.maximumf %911, %912 : vector<8x128xf32>
    %914 = arith.truncf %913 : vector<8x128xf32> to vector<8x128xbf16>
    %c4_633 = arith.constant 4 : index
    %c0_634 = arith.constant 0 : index
    %c0_635 = arith.constant 0 : index
    %915 = vector.load %arg2[%c4_633, %c0_634, %c0_635] : memref<31x128x128xbf16, #tpu.memory_space<vmem>>, vector<1x128x16xbf16>
    %916 = vector.shape_cast %915 : vector<1x128x16xbf16> to vector<128x16xbf16>
    %cst_636 = arith.constant dense<0.000000e+00> : vector<8x16xf32>
    %917 = tpu.matmul %914, %916, %cst_636 {dimension_numbers = #tpu.dot_dimension_numbers<[1], [0], [0], [1], [0, 0, 1, 1], [], []>} : vector<8x128xbf16>, vector<128x16xbf16>, vector<8x16xf32> -> vector<8x16xf32>
    %c1_637 = arith.constant 1 : index
    %c0_638 = arith.constant 0 : index
    %918 = vector.load %arg4[%c1_637, %c0_638] : memref<12x128xf32, #tpu.memory_space<vmem>>, vector<1x16xf32>
    %919 = vector.broadcast %918 : vector<1x16xf32> to vector<8x16xf32>
    %920 = arith.addf %917, %919 : vector<8x16xf32>
    %cst_639 = arith.constant 0.000000e+00 : f32
    %921 = vector.broadcast %cst_639 : f32 to vector<8x16xf32>
    %922 = arith.maximumf %920, %921 : vector<8x16xf32>
    %923 = arith.addf %871, %886 : vector<8x16xf32>
    %924 = arith.addf %923, %922 : vector<8x16xf32>
    %cst_640 = arith.constant 0.000000e+00 : f32
    %925 = vector.broadcast %cst_640 : f32 to vector<8x16xf32>
    %926 = arith.maximumf %924, %925 : vector<8x16xf32>
    %cst_641 = arith.constant 0.000000e+00 : f32
    %927 = vector.broadcast %cst_641 : f32 to vector<8x4xf32>
    %928 = tpu.concatenate %927, %926 in 1 : vector<8x4xf32>, vector<8x16xf32> -> vector<8x20xf32>
    %929 = vector.extract_strided_slice %928 {offsets = [0, 0], sizes = [8, 16], strides = [1, 1]} : vector<8x20xf32> to vector<8x16xf32>
    %930 = vector.extract_strided_slice %928 {offsets = [0, 2], sizes = [8, 16], strides = [1, 1]} : vector<8x20xf32> to vector<8x16xf32>
    %931 = vector.extract_strided_slice %928 {offsets = [0, 4], sizes = [8, 16], strides = [1, 1]} : vector<8x20xf32> to vector<8x16xf32>
    %932 = tpu.concatenate %929, %930, %931 in 0 : vector<8x16xf32>, vector<8x16xf32>, vector<8x16xf32> -> vector<24x16xf32>
    %c5_642 = arith.constant 5 : index
    %c0_643 = arith.constant 0 : index
    %c0_644 = arith.constant 0 : index
    %933 = vector.load %arg2[%c5_642, %c0_643, %c0_644] : memref<31x128x128xbf16, #tpu.memory_space<vmem>>, vector<1x8x24xbf16>
    %934 = vector.shape_cast %933 : vector<1x8x24xbf16> to vector<8x24xbf16>
    %935 = arith.truncf %932 : vector<24x16xf32> to vector<24x16xbf16>
    %cst_645 = arith.constant dense<0.000000e+00> : vector<8x16xf32>
    %936 = tpu.matmul %934, %935, %cst_645 {dimension_numbers = #tpu.dot_dimension_numbers<[1], [0], [0], [1], [0, 0, 1, 1], [], []>} : vector<8x24xbf16>, vector<24x16xbf16>, vector<8x16xf32> -> vector<8x16xf32>
    %c0_646 = arith.constant 0 : index
    %c3_647 = arith.constant 3 : index
    %937 = vector.load %arg3[%c0_646, %c3_647] : memref<128x13xf32, #tpu.memory_space<vmem>>, vector<8x1xf32>
    %938 = vector.broadcast %937 : vector<8x1xf32> to vector<8x16xf32>
    %939 = arith.addf %936, %938 : vector<8x16xf32>
    %cst_648 = arith.constant 0.000000e+00 : f32
    %940 = vector.broadcast %cst_648 : f32 to vector<8x16xf32>
    %941 = arith.maximumf %939, %940 : vector<8x16xf32>
    %c6_649 = arith.constant 6 : index
    %c0_650 = arith.constant 0 : index
    %c0_651 = arith.constant 0 : index
    %942 = vector.load %arg2[%c6_649, %c0_650, %c0_651] : memref<31x128x128xbf16, #tpu.memory_space<vmem>>, vector<1x128x8xbf16>
    %943 = vector.shape_cast %942 : vector<1x128x8xbf16> to vector<128x8xbf16>
    %944 = arith.truncf %926 : vector<8x16xf32> to vector<8x16xbf16>
    %cst_652 = arith.constant dense<0.000000e+00> : vector<128x16xf32>
    %945 = tpu.matmul %943, %944, %cst_652 {dimension_numbers = #tpu.dot_dimension_numbers<[1], [0], [0], [1], [0, 0, 1, 1], [], []>} : vector<128x8xbf16>, vector<8x16xbf16>, vector<128x16xf32> -> vector<128x16xf32>
    %c0_653 = arith.constant 0 : index
    %c4_654 = arith.constant 4 : index
    %946 = vector.load %arg3[%c0_653, %c4_654] : memref<128x13xf32, #tpu.memory_space<vmem>>, vector<128x1xf32>
    %947 = vector.broadcast %946 : vector<128x1xf32> to vector<128x16xf32>
    %948 = arith.addf %945, %947 : vector<128x16xf32>
    %cst_655 = arith.constant 0.000000e+00 : f32
    %949 = vector.broadcast %cst_655 : f32 to vector<128x16xf32>
    %950 = arith.maximumf %948, %949 : vector<128x16xf32>
    %951 = arith.truncf %950 : vector<128x16xf32> to vector<128x16xbf16>
    %c7_656 = arith.constant 7 : index
    %c0_657 = arith.constant 0 : index
    %c0_658 = arith.constant 0 : index
    %952 = vector.load %arg2[%c7_656, %c0_657, %c0_658] : memref<31x128x128xbf16, #tpu.memory_space<vmem>>, vector<1x16x128xbf16>
    %953 = vector.shape_cast %952 : vector<1x16x128xbf16> to vector<16x128xbf16>
    %cst_659 = arith.constant dense<0.000000e+00> : vector<128x128xf32>
    %954 = tpu.matmul %951, %953, %cst_659 {dimension_numbers = #tpu.dot_dimension_numbers<[1], [0], [0], [1], [0, 0, 1, 1], [], []>} : vector<128x16xbf16>, vector<16x128xbf16>, vector<128x128xf32> -> vector<128x128xf32>
    %c2_660 = arith.constant 2 : index
    %c0_661 = arith.constant 0 : index
    %955 = vector.load %arg4[%c2_660, %c0_661] : memref<12x128xf32, #tpu.memory_space<vmem>>, vector<1x128xf32>
    %956 = vector.broadcast %955 : vector<1x128xf32> to vector<128x128xf32>
    %957 = arith.addf %954, %956 : vector<128x128xf32>
    %cst_662 = arith.constant 0.000000e+00 : f32
    %958 = vector.broadcast %cst_662 : f32 to vector<128x128xf32>
    %959 = arith.maximumf %957, %958 : vector<128x128xf32>
    %c8_663 = arith.constant 8 : index
    %c0_664 = arith.constant 0 : index
    %c0_665 = arith.constant 0 : index
    %960 = vector.load %arg2[%c8_663, %c0_664, %c0_665] : memref<31x128x128xbf16, #tpu.memory_space<vmem>>, vector<1x8x128xbf16>
    %961 = vector.shape_cast %960 : vector<1x8x128xbf16> to vector<8x128xbf16>
    %962 = arith.truncf %959 : vector<128x128xf32> to vector<128x128xbf16>
    %cst_666 = arith.constant dense<0.000000e+00> : vector<8x128xf32>
    %963 = tpu.matmul %961, %962, %cst_666 {dimension_numbers = #tpu.dot_dimension_numbers<[1], [0], [0], [1], [0, 0, 1, 1], [], []>} : vector<8x128xbf16>, vector<128x128xbf16>, vector<8x128xf32> -> vector<8x128xf32>
    %c0_667 = arith.constant 0 : index
    %c5_668 = arith.constant 5 : index
    %964 = vector.load %arg3[%c0_667, %c5_668] : memref<128x13xf32, #tpu.memory_space<vmem>>, vector<8x1xf32>
    %965 = vector.broadcast %964 : vector<8x1xf32> to vector<8x128xf32>
    %966 = arith.addf %963, %965 : vector<8x128xf32>
    %cst_669 = arith.constant 0.000000e+00 : f32
    %967 = vector.broadcast %cst_669 : f32 to vector<8x128xf32>
    %968 = arith.maximumf %966, %967 : vector<8x128xf32>
    %969 = arith.truncf %968 : vector<8x128xf32> to vector<8x128xbf16>
    %c9_670 = arith.constant 9 : index
    %c0_671 = arith.constant 0 : index
    %c0_672 = arith.constant 0 : index
    %970 = vector.load %arg2[%c9_670, %c0_671, %c0_672] : memref<31x128x128xbf16, #tpu.memory_space<vmem>>, vector<1x128x16xbf16>
    %971 = vector.shape_cast %970 : vector<1x128x16xbf16> to vector<128x16xbf16>
    %cst_673 = arith.constant dense<0.000000e+00> : vector<8x16xf32>
    %972 = tpu.matmul %969, %971, %cst_673 {dimension_numbers = #tpu.dot_dimension_numbers<[1], [0], [0], [1], [0, 0, 1, 1], [], []>} : vector<8x128xbf16>, vector<128x16xbf16>, vector<8x16xf32> -> vector<8x16xf32>
    %c3_674 = arith.constant 3 : index
    %c0_675 = arith.constant 0 : index
    %973 = vector.load %arg4[%c3_674, %c0_675] : memref<12x128xf32, #tpu.memory_space<vmem>>, vector<1x16xf32>
    %974 = vector.broadcast %973 : vector<1x16xf32> to vector<8x16xf32>
    %975 = arith.addf %972, %974 : vector<8x16xf32>
    %cst_676 = arith.constant 0.000000e+00 : f32
    %976 = vector.broadcast %cst_676 : f32 to vector<8x16xf32>
    %977 = arith.maximumf %975, %976 : vector<8x16xf32>
    %978 = arith.addf %926, %941 : vector<8x16xf32>
    %979 = arith.addf %978, %977 : vector<8x16xf32>
    %cst_677 = arith.constant 0.000000e+00 : f32
    %980 = vector.broadcast %cst_677 : f32 to vector<8x16xf32>
    %981 = arith.maximumf %979, %980 : vector<8x16xf32>
    %982 = vector.extract_strided_slice %981 {offsets = [0, 15], sizes = [8, 1], strides = [1, 1]} : vector<8x16xf32> to vector<8x1xf32>
    %c0_678 = arith.constant 0 : index
    %c12_679 = arith.constant 12 : index
    %983 = vector.load %arg3[%c0_678, %c12_679] : memref<128x13xf32, #tpu.memory_space<vmem>>, vector<8x1xf32>
    %984 = arith.mulf %983, %982 : vector<8x1xf32>
    %cst_680 = arith.constant dense<0.000000e+00> : vector<1xf32>
    %985 = vector.multi_reduction <add>, %984, %cst_680 [0] : vector<8x1xf32> to vector<1xf32>
    %986 = vector.shape_cast %985 : vector<1xf32> to vector<1x1xf32>
    %c11_681 = arith.constant 11 : index
    %c0_682 = arith.constant 0 : index
    %987 = vector.load %arg4[%c11_681, %c0_682] : memref<12x128xf32, #tpu.memory_space<vmem>>, vector<1x1xf32>
    %988 = arith.addf %986, %987 : vector<1x1xf32>
    %c10_683 = arith.constant 10 : index
    %c0_684 = arith.constant 0 : index
    %c0_685 = arith.constant 0 : index
    %989 = vector.load %arg2[%c10_683, %c0_684, %c0_685] : memref<31x128x128xbf16, #tpu.memory_space<vmem>>, vector<1x128x8xbf16>
    %990 = vector.shape_cast %989 : vector<1x128x8xbf16> to vector<128x8xbf16>
    %991 = arith.truncf %871 : vector<8x16xf32> to vector<8x16xbf16>
    %cst_686 = arith.constant dense<0.000000e+00> : vector<128x16xf32>
    %992 = tpu.matmul %990, %991, %cst_686 {dimension_numbers = #tpu.dot_dimension_numbers<[1], [0], [0], [1], [0, 0, 1, 1], [], []>} : vector<128x8xbf16>, vector<8x16xbf16>, vector<128x16xf32> -> vector<128x16xf32>
    %c0_687 = arith.constant 0 : index
    %c6_688 = arith.constant 6 : index
    %993 = vector.load %arg3[%c0_687, %c6_688] : memref<128x13xf32, #tpu.memory_space<vmem>>, vector<128x1xf32>
    %994 = vector.broadcast %993 : vector<128x1xf32> to vector<128x16xf32>
    %995 = arith.addf %992, %994 : vector<128x16xf32>
    %cst_689 = arith.constant 0.000000e+00 : f32
    %996 = vector.broadcast %cst_689 : f32 to vector<128x16xf32>
    %997 = arith.maximumf %995, %996 : vector<128x16xf32>
    %c11_690 = arith.constant 11 : index
    %c0_691 = arith.constant 0 : index
    %c0_692 = arith.constant 0 : index
    %998 = vector.load %arg2[%c11_690, %c0_691, %c0_692] : memref<31x128x128xbf16, #tpu.memory_space<vmem>>, vector<1x128x128xbf16>
    %999 = vector.shape_cast %998 : vector<1x128x128xbf16> to vector<128x128xbf16>
    %1000 = arith.truncf %997 : vector<128x16xf32> to vector<128x16xbf16>
    %cst_693 = arith.constant dense<0.000000e+00> : vector<128x16xf32>
    %1001 = tpu.matmul %999, %1000, %cst_693 {dimension_numbers = #tpu.dot_dimension_numbers<[1], [0], [0], [1], [0, 0, 1, 1], [], []>} : vector<128x128xbf16>, vector<128x16xbf16>, vector<128x16xf32> -> vector<128x16xf32>
    %c0_694 = arith.constant 0 : index
    %c7_695 = arith.constant 7 : index
    %1002 = vector.load %arg3[%c0_694, %c7_695] : memref<128x13xf32, #tpu.memory_space<vmem>>, vector<128x1xf32>
    %1003 = vector.broadcast %1002 : vector<128x1xf32> to vector<128x16xf32>
    %1004 = arith.addf %1001, %1003 : vector<128x16xf32>
    %cst_696 = arith.constant 0.000000e+00 : f32
    %1005 = vector.broadcast %cst_696 : f32 to vector<128x16xf32>
    %1006 = arith.maximumf %1004, %1005 : vector<128x16xf32>
    %1007 = arith.truncf %1006 : vector<128x16xf32> to vector<128x16xbf16>
    %c12_697 = arith.constant 12 : index
    %c0_698 = arith.constant 0 : index
    %c0_699 = arith.constant 0 : index
    %1008 = vector.load %arg2[%c12_697, %c0_698, %c0_699] : memref<31x128x128xbf16, #tpu.memory_space<vmem>>, vector<1x16x128xbf16>
    %1009 = vector.shape_cast %1008 : vector<1x16x128xbf16> to vector<16x128xbf16>
    %cst_700 = arith.constant dense<0.000000e+00> : vector<128x128xf32>
    %1010 = tpu.matmul %1007, %1009, %cst_700 {dimension_numbers = #tpu.dot_dimension_numbers<[1], [0], [0], [1], [0, 0, 1, 1], [], []>} : vector<128x16xbf16>, vector<16x128xbf16>, vector<128x128xf32> -> vector<128x128xf32>
    %c4_701 = arith.constant 4 : index
    %c0_702 = arith.constant 0 : index
    %1011 = vector.load %arg4[%c4_701, %c0_702] : memref<12x128xf32, #tpu.memory_space<vmem>>, vector<1x128xf32>
    %1012 = vector.broadcast %1011 : vector<1x128xf32> to vector<128x128xf32>
    %1013 = arith.addf %1010, %1012 : vector<128x128xf32>
    %cst_703 = arith.constant 0.000000e+00 : f32
    %1014 = vector.broadcast %cst_703 : f32 to vector<128x128xf32>
    %1015 = arith.maximumf %1013, %1014 : vector<128x128xf32>
    %1016 = arith.truncf %1015 : vector<128x128xf32> to vector<128x128xbf16>
    %c13_704 = arith.constant 13 : index
    %c0_705 = arith.constant 0 : index
    %c0_706 = arith.constant 0 : index
    %1017 = vector.load %arg2[%c13_704, %c0_705, %c0_706] : memref<31x128x128xbf16, #tpu.memory_space<vmem>>, vector<1x128x128xbf16>
    %1018 = vector.shape_cast %1017 : vector<1x128x128xbf16> to vector<128x128xbf16>
    %cst_707 = arith.constant dense<0.000000e+00> : vector<128x128xf32>
    %1019 = tpu.matmul %1016, %1018, %cst_707 {dimension_numbers = #tpu.dot_dimension_numbers<[1], [0], [0], [1], [0, 0, 1, 1], [], []>} : vector<128x128xbf16>, vector<128x128xbf16>, vector<128x128xf32> -> vector<128x128xf32>
    %c5_708 = arith.constant 5 : index
    %c0_709 = arith.constant 0 : index
    %1020 = vector.load %arg4[%c5_708, %c0_709] : memref<12x128xf32, #tpu.memory_space<vmem>>, vector<1x128xf32>
    %1021 = vector.broadcast %1020 : vector<1x128xf32> to vector<128x128xf32>
    %1022 = arith.addf %1019, %1021 : vector<128x128xf32>
    %cst_710 = arith.constant 0.000000e+00 : f32
    %1023 = vector.broadcast %cst_710 : f32 to vector<128x128xf32>
    %1024 = arith.maximumf %1022, %1023 : vector<128x128xf32>
    %1025 = arith.truncf %1024 : vector<128x128xf32> to vector<128x128xbf16>
    %c23_711 = arith.constant 23 : index
    %c0_712 = arith.constant 0 : index
    %c0_713 = arith.constant 0 : index
    %1026 = vector.load %arg2[%c23_711, %c0_712, %c0_713] : memref<31x128x128xbf16, #tpu.memory_space<vmem>>, vector<1x128x64xbf16>
    %1027 = vector.shape_cast %1026 : vector<1x128x64xbf16> to vector<128x64xbf16>
    %cst_714 = arith.constant dense<0.000000e+00> : vector<128x64xf32>
    %1028 = tpu.matmul %1025, %1027, %cst_714 {dimension_numbers = #tpu.dot_dimension_numbers<[1], [0], [0], [1], [0, 0, 1, 1], [], []>} : vector<128x128xbf16>, vector<128x64xbf16>, vector<128x64xf32> -> vector<128x64xf32>
    %1029 = arith.truncf %1024 : vector<128x128xf32> to vector<128x128xbf16>
    %c24_715 = arith.constant 24 : index
    %c0_716 = arith.constant 0 : index
    %c0_717 = arith.constant 0 : index
    %1030 = vector.load %arg2[%c24_715, %c0_716, %c0_717] : memref<31x128x128xbf16, #tpu.memory_space<vmem>>, vector<1x128x64xbf16>
    %1031 = vector.shape_cast %1030 : vector<1x128x64xbf16> to vector<128x64xbf16>
    %cst_718 = arith.constant dense<0.000000e+00> : vector<128x64xf32>
    %1032 = tpu.matmul %1029, %1031, %cst_718 {dimension_numbers = #tpu.dot_dimension_numbers<[1], [0], [0], [1], [0, 0, 1, 1], [], []>} : vector<128x128xbf16>, vector<128x64xbf16>, vector<128x64xf32> -> vector<128x64xf32>
    %1033 = arith.maximumf %1028, %1032 : vector<128x64xf32>
    %c25_719 = arith.constant 25 : index
    %c0_720 = arith.constant 0 : index
    %c0_721 = arith.constant 0 : index
    %1034 = vector.load %arg2[%c25_719, %c0_720, %c0_721] : memref<31x128x128xbf16, #tpu.memory_space<vmem>>, vector<1x64x128xbf16>
    %1035 = vector.shape_cast %1034 : vector<1x64x128xbf16> to vector<64x128xbf16>
    %1036 = arith.truncf %1033 : vector<128x64xf32> to vector<128x64xbf16>
    %cst_722 = arith.constant dense<0.000000e+00> : vector<64x64xf32>
    %1037 = tpu.matmul %1035, %1036, %cst_722 {dimension_numbers = #tpu.dot_dimension_numbers<[1], [0], [0], [1], [0, 0, 1, 1], [], []>} : vector<64x128xbf16>, vector<128x64xbf16>, vector<64x64xf32> -> vector<64x64xf32>
    %c26_723 = arith.constant 26 : index
    %c0_724 = arith.constant 0 : index
    %c0_725 = arith.constant 0 : index
    %1038 = vector.load %arg2[%c26_723, %c0_724, %c0_725] : memref<31x128x128xbf16, #tpu.memory_space<vmem>>, vector<1x64x128xbf16>
    %1039 = vector.shape_cast %1038 : vector<1x64x128xbf16> to vector<64x128xbf16>
    %1040 = arith.truncf %1033 : vector<128x64xf32> to vector<128x64xbf16>
    %cst_726 = arith.constant dense<0.000000e+00> : vector<64x64xf32>
    %1041 = tpu.matmul %1039, %1040, %cst_726 {dimension_numbers = #tpu.dot_dimension_numbers<[1], [0], [0], [1], [0, 0, 1, 1], [], []>} : vector<64x128xbf16>, vector<128x64xbf16>, vector<64x64xf32> -> vector<64x64xf32>
    %1042 = arith.maximumf %1037, %1041 : vector<64x64xf32>
    %c14_727 = arith.constant 14 : index
    %c0_728 = arith.constant 0 : index
    %c0_729 = arith.constant 0 : index
    %1043 = vector.load %arg2[%c14_727, %c0_728, %c0_729] : memref<31x128x128xbf16, #tpu.memory_space<vmem>>, vector<1x64x64xbf16>
    %1044 = vector.shape_cast %1043 : vector<1x64x64xbf16> to vector<64x64xbf16>
    %1045 = arith.truncf %1042 : vector<64x64xf32> to vector<64x64xbf16>
    %cst_730 = arith.constant dense<0.000000e+00> : vector<64x64xf32>
    %1046 = tpu.matmul %1044, %1045, %cst_730 {dimension_numbers = #tpu.dot_dimension_numbers<[1], [0], [0], [1], [0, 0, 1, 1], [], []>} : vector<64x64xbf16>, vector<64x64xbf16>, vector<64x64xf32> -> vector<64x64xf32>
    %c0_731 = arith.constant 0 : index
    %c8_732 = arith.constant 8 : index
    %1047 = vector.load %arg3[%c0_731, %c8_732] : memref<128x13xf32, #tpu.memory_space<vmem>>, vector<64x1xf32>
    %1048 = vector.broadcast %1047 : vector<64x1xf32> to vector<64x64xf32>
    %1049 = arith.addf %1046, %1048 : vector<64x64xf32>
    %cst_733 = arith.constant 0.000000e+00 : f32
    %1050 = vector.broadcast %cst_733 : f32 to vector<64x64xf32>
    %1051 = arith.maximumf %1049, %1050 : vector<64x64xf32>
    %c15_734 = arith.constant 15 : index
    %c0_735 = arith.constant 0 : index
    %c0_736 = arith.constant 0 : index
    %1052 = vector.load %arg2[%c15_734, %c0_735, %c0_736] : memref<31x128x128xbf16, #tpu.memory_space<vmem>>, vector<1x32x64xbf16>
    %1053 = vector.shape_cast %1052 : vector<1x32x64xbf16> to vector<32x64xbf16>
    %1054 = arith.truncf %1051 : vector<64x64xf32> to vector<64x64xbf16>
    %cst_737 = arith.constant dense<0.000000e+00> : vector<32x64xf32>
    %1055 = tpu.matmul %1053, %1054, %cst_737 {dimension_numbers = #tpu.dot_dimension_numbers<[1], [0], [0], [1], [0, 0, 1, 1], [], []>} : vector<32x64xbf16>, vector<64x64xbf16>, vector<32x64xf32> -> vector<32x64xf32>
    %c0_738 = arith.constant 0 : index
    %c9_739 = arith.constant 9 : index
    %1056 = vector.load %arg3[%c0_738, %c9_739] : memref<128x13xf32, #tpu.memory_space<vmem>>, vector<32x1xf32>
    %1057 = vector.broadcast %1056 : vector<32x1xf32> to vector<32x64xf32>
    %1058 = arith.addf %1055, %1057 : vector<32x64xf32>
    %cst_740 = arith.constant 0.000000e+00 : f32
    %1059 = vector.broadcast %cst_740 : f32 to vector<32x64xf32>
    %1060 = arith.maximumf %1058, %1059 : vector<32x64xf32>
    %1061 = arith.truncf %1060 : vector<32x64xf32> to vector<32x64xbf16>
    %c16_741 = arith.constant 16 : index
    %c0_742 = arith.constant 0 : index
    %c0_743 = arith.constant 0 : index
    %1062 = vector.load %arg2[%c16_741, %c0_742, %c0_743] : memref<31x128x128xbf16, #tpu.memory_space<vmem>>, vector<1x64x64xbf16>
    %1063 = vector.shape_cast %1062 : vector<1x64x64xbf16> to vector<64x64xbf16>
    %cst_744 = arith.constant dense<0.000000e+00> : vector<32x64xf32>
    %1064 = tpu.matmul %1061, %1063, %cst_744 {dimension_numbers = #tpu.dot_dimension_numbers<[1], [0], [0], [1], [0, 0, 1, 1], [], []>} : vector<32x64xbf16>, vector<64x64xbf16>, vector<32x64xf32> -> vector<32x64xf32>
    %c6_745 = arith.constant 6 : index
    %c0_746 = arith.constant 0 : index
    %1065 = vector.load %arg4[%c6_745, %c0_746] : memref<12x128xf32, #tpu.memory_space<vmem>>, vector<1x64xf32>
    %1066 = vector.broadcast %1065 : vector<1x64xf32> to vector<32x64xf32>
    %1067 = arith.addf %1064, %1066 : vector<32x64xf32>
    %cst_747 = arith.constant 0.000000e+00 : f32
    %1068 = vector.broadcast %cst_747 : f32 to vector<32x64xf32>
    %1069 = arith.maximumf %1067, %1068 : vector<32x64xf32>
    %1070 = arith.truncf %1069 : vector<32x64xf32> to vector<32x64xbf16>
    %c17_748 = arith.constant 17 : index
    %c0_749 = arith.constant 0 : index
    %c0_750 = arith.constant 0 : index
    %1071 = vector.load %arg2[%c17_748, %c0_749, %c0_750] : memref<31x128x128xbf16, #tpu.memory_space<vmem>>, vector<1x64x32xbf16>
    %1072 = vector.shape_cast %1071 : vector<1x64x32xbf16> to vector<64x32xbf16>
    %cst_751 = arith.constant dense<0.000000e+00> : vector<32x32xf32>
    %1073 = tpu.matmul %1070, %1072, %cst_751 {dimension_numbers = #tpu.dot_dimension_numbers<[1], [0], [0], [1], [0, 0, 1, 1], [], []>} : vector<32x64xbf16>, vector<64x32xbf16>, vector<32x32xf32> -> vector<32x32xf32>
    %c7_752 = arith.constant 7 : index
    %c0_753 = arith.constant 0 : index
    %1074 = vector.load %arg4[%c7_752, %c0_753] : memref<12x128xf32, #tpu.memory_space<vmem>>, vector<1x32xf32>
    %1075 = vector.broadcast %1074 : vector<1x32xf32> to vector<32x32xf32>
    %1076 = arith.addf %1073, %1075 : vector<32x32xf32>
    %cst_754 = arith.constant 0.000000e+00 : f32
    %1077 = vector.broadcast %cst_754 : f32 to vector<32x32xf32>
    %1078 = arith.maximumf %1076, %1077 : vector<32x32xf32>
    %1079 = arith.truncf %1078 : vector<32x32xf32> to vector<32x32xbf16>
    %c27_755 = arith.constant 27 : index
    %c0_756 = arith.constant 0 : index
    %c0_757 = arith.constant 0 : index
    %1080 = vector.load %arg2[%c27_755, %c0_756, %c0_757] : memref<31x128x128xbf16, #tpu.memory_space<vmem>>, vector<1x32x16xbf16>
    %1081 = vector.shape_cast %1080 : vector<1x32x16xbf16> to vector<32x16xbf16>
    %cst_758 = arith.constant dense<0.000000e+00> : vector<32x16xf32>
    %1082 = tpu.matmul %1079, %1081, %cst_758 {dimension_numbers = #tpu.dot_dimension_numbers<[1], [0], [0], [1], [0, 0, 1, 1], [], []>} : vector<32x32xbf16>, vector<32x16xbf16>, vector<32x16xf32> -> vector<32x16xf32>
    %1083 = arith.truncf %1078 : vector<32x32xf32> to vector<32x32xbf16>
    %c28_759 = arith.constant 28 : index
    %c0_760 = arith.constant 0 : index
    %c0_761 = arith.constant 0 : index
    %1084 = vector.load %arg2[%c28_759, %c0_760, %c0_761] : memref<31x128x128xbf16, #tpu.memory_space<vmem>>, vector<1x32x16xbf16>
    %1085 = vector.shape_cast %1084 : vector<1x32x16xbf16> to vector<32x16xbf16>
    %cst_762 = arith.constant dense<0.000000e+00> : vector<32x16xf32>
    %1086 = tpu.matmul %1083, %1085, %cst_762 {dimension_numbers = #tpu.dot_dimension_numbers<[1], [0], [0], [1], [0, 0, 1, 1], [], []>} : vector<32x32xbf16>, vector<32x16xbf16>, vector<32x16xf32> -> vector<32x16xf32>
    %1087 = arith.maximumf %1082, %1086 : vector<32x16xf32>
    %c29_763 = arith.constant 29 : index
    %c0_764 = arith.constant 0 : index
    %c0_765 = arith.constant 0 : index
    %1088 = vector.load %arg2[%c29_763, %c0_764, %c0_765] : memref<31x128x128xbf16, #tpu.memory_space<vmem>>, vector<1x16x32xbf16>
    %1089 = vector.shape_cast %1088 : vector<1x16x32xbf16> to vector<16x32xbf16>
    %1090 = arith.truncf %1087 : vector<32x16xf32> to vector<32x16xbf16>
    %cst_766 = arith.constant dense<0.000000e+00> : vector<16x16xf32>
    %1091 = tpu.matmul %1089, %1090, %cst_766 {dimension_numbers = #tpu.dot_dimension_numbers<[1], [0], [0], [1], [0, 0, 1, 1], [], []>} : vector<16x32xbf16>, vector<32x16xbf16>, vector<16x16xf32> -> vector<16x16xf32>
    %c30_767 = arith.constant 30 : index
    %c0_768 = arith.constant 0 : index
    %c0_769 = arith.constant 0 : index
    %1092 = vector.load %arg2[%c30_767, %c0_768, %c0_769] : memref<31x128x128xbf16, #tpu.memory_space<vmem>>, vector<1x16x32xbf16>
    %1093 = vector.shape_cast %1092 : vector<1x16x32xbf16> to vector<16x32xbf16>
    %1094 = arith.truncf %1087 : vector<32x16xf32> to vector<32x16xbf16>
    %cst_770 = arith.constant dense<0.000000e+00> : vector<16x16xf32>
    %1095 = tpu.matmul %1093, %1094, %cst_770 {dimension_numbers = #tpu.dot_dimension_numbers<[1], [0], [0], [1], [0, 0, 1, 1], [], []>} : vector<16x32xbf16>, vector<32x16xbf16>, vector<16x16xf32> -> vector<16x16xf32>
    %1096 = arith.maximumf %1091, %1095 : vector<16x16xf32>
    %c18_771 = arith.constant 18 : index
    %c0_772 = arith.constant 0 : index
    %c0_773 = arith.constant 0 : index
    %1097 = vector.load %arg2[%c18_771, %c0_772, %c0_773] : memref<31x128x128xbf16, #tpu.memory_space<vmem>>, vector<1x16x16xbf16>
    %1098 = vector.shape_cast %1097 : vector<1x16x16xbf16> to vector<16x16xbf16>
    %1099 = arith.truncf %1096 : vector<16x16xf32> to vector<16x16xbf16>
    %cst_774 = arith.constant dense<0.000000e+00> : vector<16x16xf32>
    %1100 = tpu.matmul %1098, %1099, %cst_774 {dimension_numbers = #tpu.dot_dimension_numbers<[1], [0], [0], [1], [0, 0, 1, 1], [], []>} : vector<16x16xbf16>, vector<16x16xbf16>, vector<16x16xf32> -> vector<16x16xf32>
    %c0_775 = arith.constant 0 : index
    %c10_776 = arith.constant 10 : index
    %1101 = vector.load %arg3[%c0_775, %c10_776] : memref<128x13xf32, #tpu.memory_space<vmem>>, vector<16x1xf32>
    %1102 = vector.broadcast %1101 : vector<16x1xf32> to vector<16x16xf32>
    %1103 = arith.addf %1100, %1102 : vector<16x16xf32>
    %cst_777 = arith.constant 0.000000e+00 : f32
    %1104 = vector.broadcast %cst_777 : f32 to vector<16x16xf32>
    %1105 = arith.maximumf %1103, %1104 : vector<16x16xf32>
    %c19_778 = arith.constant 19 : index
    %c0_779 = arith.constant 0 : index
    %c0_780 = arith.constant 0 : index
    %1106 = vector.load %arg2[%c19_778, %c0_779, %c0_780] : memref<31x128x128xbf16, #tpu.memory_space<vmem>>, vector<1x4x16xbf16>
    %1107 = vector.shape_cast %1106 : vector<1x4x16xbf16> to vector<4x16xbf16>
    %1108 = arith.truncf %1105 : vector<16x16xf32> to vector<16x16xbf16>
    %cst_781 = arith.constant dense<0.000000e+00> : vector<4x16xf32>
    %1109 = tpu.matmul %1107, %1108, %cst_781 {dimension_numbers = #tpu.dot_dimension_numbers<[1], [0], [0], [1], [0, 0, 1, 1], [], []>} : vector<4x16xbf16>, vector<16x16xbf16>, vector<4x16xf32> -> vector<4x16xf32>
    %c0_782 = arith.constant 0 : index
    %c11_783 = arith.constant 11 : index
    %1110 = vector.load %arg3[%c0_782, %c11_783] : memref<128x13xf32, #tpu.memory_space<vmem>>, vector<4x1xf32>
    %1111 = vector.broadcast %1110 : vector<4x1xf32> to vector<4x16xf32>
    %1112 = arith.addf %1109, %1111 : vector<4x16xf32>
    %cst_784 = arith.constant 0.000000e+00 : f32
    %1113 = vector.broadcast %cst_784 : f32 to vector<4x16xf32>
    %1114 = arith.maximumf %1112, %1113 : vector<4x16xf32>
    %1115 = arith.truncf %1114 : vector<4x16xf32> to vector<4x16xbf16>
    %c20_785 = arith.constant 20 : index
    %c0_786 = arith.constant 0 : index
    %c0_787 = arith.constant 0 : index
    %1116 = vector.load %arg2[%c20_785, %c0_786, %c0_787] : memref<31x128x128xbf16, #tpu.memory_space<vmem>>, vector<1x16x16xbf16>
    %1117 = vector.shape_cast %1116 : vector<1x16x16xbf16> to vector<16x16xbf16>
    %cst_788 = arith.constant dense<0.000000e+00> : vector<4x16xf32>
    %1118 = tpu.matmul %1115, %1117, %cst_788 {dimension_numbers = #tpu.dot_dimension_numbers<[1], [0], [0], [1], [0, 0, 1, 1], [], []>} : vector<4x16xbf16>, vector<16x16xbf16>, vector<4x16xf32> -> vector<4x16xf32>
    %c8_789 = arith.constant 8 : index
    %c0_790 = arith.constant 0 : index
    %1119 = vector.load %arg4[%c8_789, %c0_790] : memref<12x128xf32, #tpu.memory_space<vmem>>, vector<1x16xf32>
    %1120 = vector.broadcast %1119 : vector<1x16xf32> to vector<4x16xf32>
    %1121 = arith.addf %1118, %1120 : vector<4x16xf32>
    %cst_791 = arith.constant 0.000000e+00 : f32
    %1122 = vector.broadcast %cst_791 : f32 to vector<4x16xf32>
    %1123 = arith.maximumf %1121, %1122 : vector<4x16xf32>
    %1124 = arith.truncf %1123 : vector<4x16xf32> to vector<4x16xbf16>
    %c21_792 = arith.constant 21 : index
    %c0_793 = arith.constant 0 : index
    %c0_794 = arith.constant 0 : index
    %1125 = vector.load %arg2[%c21_792, %c0_793, %c0_794] : memref<31x128x128xbf16, #tpu.memory_space<vmem>>, vector<1x16x4xbf16>
    %1126 = vector.shape_cast %1125 : vector<1x16x4xbf16> to vector<16x4xbf16>
    %cst_795 = arith.constant dense<0.000000e+00> : vector<4x4xf32>
    %1127 = tpu.matmul %1124, %1126, %cst_795 {dimension_numbers = #tpu.dot_dimension_numbers<[1], [0], [0], [1], [0, 0, 1, 1], [], []>} : vector<4x16xbf16>, vector<16x4xbf16>, vector<4x4xf32> -> vector<4x4xf32>
    %c9_796 = arith.constant 9 : index
    %c0_797 = arith.constant 0 : index
    %1128 = vector.load %arg4[%c9_796, %c0_797] : memref<12x128xf32, #tpu.memory_space<vmem>>, vector<1x4xf32>
    %1129 = vector.broadcast %1128 : vector<1x4xf32> to vector<4x4xf32>
    %1130 = arith.addf %1127, %1129 : vector<4x4xf32>
    %cst_798 = arith.constant 0.000000e+00 : f32
    %1131 = vector.broadcast %cst_798 : f32 to vector<4x4xf32>
    %1132 = arith.maximumf %1130, %1131 : vector<4x4xf32>
    %c22_799 = arith.constant 22 : index
    %c0_800 = arith.constant 0 : index
    %c0_801 = arith.constant 0 : index
    %1133 = vector.load %arg2[%c22_799, %c0_800, %c0_801] : memref<31x128x128xbf16, #tpu.memory_space<vmem>>, vector<1x4x4xbf16>
    %1134 = vector.shape_cast %1133 : vector<1x4x4xbf16> to vector<4x4xbf16>
    %1135 = arith.extf %1134 : vector<4x4xbf16> to vector<4x4xf32>
    %1136 = arith.mulf %1132, %1135 : vector<4x4xf32>
    %cst_802 = arith.constant dense<0.000000e+00> : vector<4xf32>
    %1137 = vector.multi_reduction <add>, %1136, %cst_802 [1] : vector<4x4xf32> to vector<4xf32>
    %1138 = vector.shape_cast %1137 : vector<4xf32> to vector<4x1xf32>
    %cst_803 = arith.constant dense<0.000000e+00> : vector<1xf32>
    %1139 = vector.multi_reduction <add>, %1138, %cst_803 [0] : vector<4x1xf32> to vector<1xf32>
    %1140 = vector.shape_cast %1139 : vector<1xf32> to vector<1x1xf32>
    %c10_804 = arith.constant 10 : index
    %c0_805 = arith.constant 0 : index
    %1141 = vector.load %arg4[%c10_804, %c0_805] : memref<12x128xf32, #tpu.memory_space<vmem>>, vector<1x1xf32>
    %1142 = arith.addf %1140, %1141 : vector<1x1xf32>
    %cst_806 = arith.constant 0.000000e+00 : f32
    %1143 = vector.broadcast %cst_806 : f32 to vector<1x1xf32>
    %1144 = arith.maximumf %1142, %1143 : vector<1x1xf32>
    %1145 = arith.addf %988, %1144 : vector<1x1xf32>
    %1146 = math.absf %1145 : vector<1x1xf32>
    %cst_807 = arith.constant 0.000000e+00 : f32
    %1147 = vector.broadcast %cst_807 : f32 to vector<1x1xf32>
    %1148 = arith.subf %1147, %1146 : vector<1x1xf32>
    %1149 = math.exp %1148 : vector<1x1xf32>
    %cst_808 = arith.constant 0.000000e+00 : f32
    %1150 = vector.broadcast %cst_808 : f32 to vector<1x1xf32>
    %1151 = arith.cmpf oge, %1145, %1150 : vector<1x1xf32>
    %cst_809 = arith.constant 1.000000e+00 : f32
    %1152 = vector.broadcast %cst_809 : f32 to vector<1x1xf32>
    %1153 = arith.addf %1152, %1149 : vector<1x1xf32>
    %cst_810 = arith.constant 1.000000e+00 : f32
    %1154 = vector.broadcast %cst_810 : f32 to vector<1x1xf32>
    %1155 = arith.divf %1154, %1153 : vector<1x1xf32>
    %cst_811 = arith.constant 1.000000e+00 : f32
    %1156 = vector.broadcast %cst_811 : f32 to vector<1x1xf32>
    %1157 = arith.addf %1156, %1149 : vector<1x1xf32>
    %1158 = arith.divf %1149, %1157 : vector<1x1xf32>
    %1159 = arith.select %1151, %1155, %1158 : vector<1x1xi1>, vector<1x1xf32>
    %1160 = tpu.concatenate %289, %579, %869, %1159 in 1 : vector<1x1xf32>, vector<1x1xf32>, vector<1x1xf32>, vector<1x1xf32> -> vector<1x4xf32>
    %c0_812 = arith.constant 0 : index
    %c0_813 = arith.constant 0 : index
    %c0_814 = arith.constant 0 : index
    %1161 = vector.load %arg5[%c0_812, %c0_813, %c0_814] : memref<1x1x4xf32, #tpu.memory_space<vmem>>, vector<1x1x4xf32>
    %1162 = vector.shape_cast %1161 : vector<1x1x4xf32> to vector<1x4xf32>
    %1163 = vector.shape_cast %1160 : vector<1x4xf32> to vector<1x1x4xf32>
    tpu.vector_store %arg5[%c0_812, %c0_813, %c0_814], %1163 {strides = array<i32>} : memref<1x1x4xf32, #tpu.memory_space<vmem>>, vector<1x1x4xf32>,
    return
  }
  func.func @transform_0(%arg0: i32) -> (i32, i32, i32) {
    %c0_i32 = arith.constant 0 : i32
    %c0_i32_0 = arith.constant 0 : i32
    %c0_i32_1 = arith.constant 0 : i32
    return %arg0, %c0_i32, %c0_i32_0 : i32, i32, i32
  }
  func.func @transform_1(%arg0: i32) -> (i32, i32, i32) {
    %c0_i32 = arith.constant 0 : i32
    %c0_i32_0 = arith.constant 0 : i32
    %c0_i32_1 = arith.constant 0 : i32
    %c0_i32_2 = arith.constant 0 : i32
    return %c0_i32, %c0_i32_0, %c0_i32_1 : i32, i32, i32
  }
  func.func @transform_2(%arg0: i32) -> (i32, i32) {
    %c0_i32 = arith.constant 0 : i32
    %c0_i32_0 = arith.constant 0 : i32
    %c0_i32_1 = arith.constant 0 : i32
    return %c0_i32, %c0_i32_0 : i32, i32
  }
  func.func @transform_3(%arg0: i32) -> (i32, i32) {
    %c0_i32 = arith.constant 0 : i32
    %c0_i32_0 = arith.constant 0 : i32
    %c0_i32_1 = arith.constant 0 : i32
    return %c0_i32, %c0_i32_0 : i32, i32
  }
  func.func @transform_4(%arg0: i32) -> (i32, i32, i32) {
    %c0_i32 = arith.constant 0 : i32
    %c0_i32_0 = arith.constant 0 : i32
    %c0_i32_1 = arith.constant 0 : i32
    return %arg0, %c0_i32, %c0_i32_0 : i32, i32, i32
  }
}

</mosaic_0001>

<bundles_post_ra>
// kernel: _lambda_.1
= control target key start
LH: loop header
LB: loop body
LE: loop exit
PB: predicated region body
PF: predicated region fallthrough
CT: control target
= control target key end

     0   :  { %9 = vsyncpa [#allocation3], 0  ;;  %s8369_s15 = smov 0   ;;  %s9948_s0 = inlined_call_operand.vmem [shape: f32[8,8,16], index: 0, kind: input, shape index: {}]   ;;  %s9949_s1 = inlined_call_operand.hbm [shape: bf16[31,128,128], index: 1, kind: input, shape index: {}]   ;;  %s9950_s2 = inlined_call_operand.vmem [shape: f32[128,13], index: 2, kind: input, shape index: {}]   ;;  %s9951_s3 = inlined_call_operand.vmem [shape: f32[12,128], index: 3, kind: input, shape index: {}]   ;;  %s9952_s4 = inlined_call_operand.vmem [shape: f32[2,1,4], index: 4, kind: output, shape index: {}]  }
   0x1 LB: > { %s146_s18 = sshll.u32 %s9949_s1, 4  ;;  %s8378_s19 = sadd.s32 4294967295, %s8315_s15   ;;  %s8315_s15 = sphi %s8369_s15, %s15_s15   ;;  %s147_s18 = int_to_ptr.hbm [resolvable:$true] %s146_s18 }
   0x2   : > { %p6945_p0 = scmp.ge.s32.totalorder %s8315_s15, 1  ;;  %p135_p1 = scmp.lt.s32.totalorder %s8315_s15, 3 }
   0x3   : > { %p7807_p2 = scmp.eq.s32.totalorder %s8378_s19, 0  ;;  %s8317_s20 = smov [#allocation2]  }
   0x4   : > { %p136_p3 = pnand %p6945_p0, %p135_p1  ;;  %s148_s21 = sshll.u32 %s8317_s20, 4  ;;  %s149_s21 = int_to_ptr.vmem [resolvable:$true] %s148_s21 }
   0x5   : > { %s8318_s22 = smov 64   ;;  %s8319_s23 = smov 4  }
   0x6   : > { %p7803_p4 = pneg %p136_p3  ;;  %179 = sbr.rel (%p136_p3) target bundleno = 15116 (0x3b0c), region = 36 }
   0x8   : > { %p7804_p5 = pnand %p7807_p2, %p7803_p4 }
   0xa   : > { %7806 = dma.hbm_to_vmem [thread:$0]  (!%p7804_p5), %s147_s18, 31744, %s149_s21, [#allocation3], %s8318_s22, %s8318_s22, %s8319_s23  }
   0xb   : > { %8310 = dma.done.wait (%p7807_p2), [#allocation3], 31744  }
   0xc   : > { %8312 = vsyncadd (%p7807_p2), [#allocation3], 4294935552  ;;  %s6950_s24 = sshll.u32 %s8378_s19, 2  ;;  %v8320_v0 = vmov 1   ;;  %v8392_v1 = vld [vmem:[%s9950_s2] sm:$0xff]  ;;  %v8397_v2 = vld [vmem:[%s9950_s2 + $0x10] sm:$0xff] }
   0xd   : > { %7844 = vset.pattern.permute.xlu0 %v8320_v0  ;;  %7845 = vset.pattern.permute.xlu1 %v8320_v0  ;;  %p205_p6 = scmp.lt.s32.totalorder %s6950_s24, 7  ;;  %vm241_vm0 = vcmask 1043456   ;;  %v7693_v6 = vld [vmem:[#allocation2 + $0x40] sm:$0xff]  ;;  %vm413_vm1 = vcmask 64512   ;;  %v8413_v7 = vld [vmem:[%s9950_s2 + $0x8] sm:$0xff]  ;;  %v8418_v8 = vld [vmem:[%s9950_s2 + $0x18] sm:$0xff] }
   0xe   : > { %7846 = vset.pattern.permute.xlu2 %v8320_v0  ;;  %295 = vperm.xlu0 %7844, %v8392_v1   ;;  %v8426_v9 = vld [vmem:[%s9950_s2 + $0x20] sm:$0xff]  ;;  %v8432_v10 = vld [vmem:[%s9950_s2 + $0x30] sm:$0xff]  ;;  %v8437_v11 = vld [vmem:[%s9950_s2 + $0x38] sm:$0xff]  ;;  %s8321_s12 = smov 2   ;;  %vm525_vm2 = vcmask 130048   ;;  %vm219_vm3 = vcmask 15360  }
   0xf   : > { %s10343_s24 = smov (!%p205_p6, %s6950_s24), 7  ;;  %305 = vperm.xlu1 %7845, %v8397_v2   ;;  %315 = vperm.xlu2 %7846, %v8426_v9   ;;  %v8442_v12 = vld [vmem:[%s9950_s2 + $0x28] sm:$0xff]  ;;  %v8455_v15 = vld [vmem:[%s9950_s2 + $0x50] sm:$0xff]  ;;  %v8461_v16 = vld [vmem:[%s9950_s2 + $0x40] sm:$0xff]  ;;  %s8322_s13 = smov 127   ;;  %vm8324_vm5 = vmmov 1  }
  0x10   : > { %s6951_s25 = sshll.u32 %s10343_s24, 3  ;;  %v7694_v13 = vld [vmem:[#allocation2 + $0x48] sm:$0xff]  ;;  %v8469_v17 = vld [vmem:[%s9950_s2 + $0x60] sm:$0xff]  ;;  %v8479_v19 = vld [vmem:[%s9950_s2 + $0x58] sm:$0xff]  ;;  %s8323_s14 = smov 126   ;;  %vm237_vm7 = vcmask 195584  }
  0x11   : > { %s8387_s28 = scalar_lea.vmem %s9948_s0, %s6951_s25  ;;  %v8450_v14 = vld [vmem:[%s9950_s2 + $0x48] sm:$0xff]  ;;  %v7695_v20 = vld [vmem:[#allocation2 + $0x50] sm:$0xff]  ;;  %v8487_v21 = vld [vmem:[%s9950_s2 + $0x78] sm:$0xff]  ;;  %s8327_s21 = smov 4   ;;  %vm732_vm8 = vcmask 31744   ;;  %vm2356_vm11 = vcmask 523264  }
  0x12   : > { %v8400_v3 = vld [vmem:[%s8387_s28] sm:$0xff]  ;;  %v8474_v18 = vld [vmem:[%s9950_s2 + $0x68] sm:$0xff]  ;;  %v8493_v22 = vld [vmem:[%s9950_s2 + $0x70] sm:$0xff]  ;;  %s8329_s22 = smov 124   ;;  %vm2629_vm12 = vcmask 261120   ;;  %vm2877_vm13 = vcmask 27648  }
  0x13   : > { %v276_v4 = vpack.c.bf16 %v8400_v3, %v8400_v3  ;;  %v7696_v23 = vld [vmem:[#allocation2 + $0x58] sm:$0xff]  ;;  %v7697_v24 = vld [vmem:[#allocation2 + $0x60] sm:$0xff]  ;;  %v7698_v25 = vld [vmem:[#allocation2 + $0x68] sm:$0xff]  ;;  %s8339_s9 = smov 12   ;;  %vm1209_vm14 = vcmask 105568   ;;  %s8340_s8 = smov 116  }
  0x14   : > { %v7699_v26 = vld [vmem:[#allocation2 + $0x70] sm:$0xff]  ;;  %v7701_v27 = vld [vmem:[#allocation2 + $0x80] sm:$0xff]  ;;  %v7700_v28 = vld [vmem:[#allocation2 + $0x78] sm:$0xff]  ;;  %s8342_s10 = smov 117   ;;  %s8343_s11 = smov 119  }
  0x15   : > { %v8407_v5 = vsel %vm241_vm0, %v276_v4, 0  ;;  %557 = vmatpush.bf16.msra.mxu2 %v7701_v27  ;;  %vm6952_vm4 = vmneg %vm219_vm3  ;;  %p210_p7 = scmp.lt.s32.totalorder %s8378_s19, 1 }
  0x16   : > { %448 = vmatpush.bf16.msra.mxu1 %v8407_v5  ;;  %300 = vperm.xlu0 %7844, %v8413_v7   ;;  %vm8576_vm6 = vmpackc.low %vm8324_vm5, %vm6952_vm4 }
  0x17   : > { %310 = vperm.xlu1 %7845, %v8418_v8   ;;  %320 = vperm.xlu2 %7846, %v8442_v12   ;;  %vm7041_vm9 = vmneg %vm732_vm8  ;;  %s10345_s19 = smov (!%p210_p7, %s8378_s19), 1 }
  0x18   : > { %vm8640_vm10 = vmpackc.low %vm8324_vm5, %vm7041_vm9  ;;  %s212_s18 = scalar_lea.vmem %s9952_s4, %s10345_s19 }
  0x19   : > { %6989 = vmatmul.msk.bf16.vlgmr.msra.gmra.mxu1 %vm413_vm1, %v7693_v6 }
  0x1e   : > { %325 = vperm.xlu0 %7844, %v8432_v10  }
  0x1f   : > { %330 = vperm.xlu1 %7845, %v8437_v11   ;;  %335 = vperm.xlu2 %7846, %v8461_v16  }
  0x26   : > { %340 = vperm.xlu0 %7844, %v8450_v14  }
  0x27   : > { %345 = vperm.xlu1 %7845, %v8455_v15   ;;  %350 = vperm.xlu2 %7846, %v8479_v19  }
  0x29   : > { %6990 = vmatmul.msk.bf16.gmra.mxu1 %vm413_vm1, %v7694_v13 }
  0x2e   : > { %355 = vperm.xlu0 %7844, %v8469_v17  }
  0x2f   : > { %360 = vperm.xlu1 %7845, %v8474_v18   ;;  %365 = vperm.xlu2 %7846, %v8493_v22  }
  0x36   : > { %370 = vperm.xlu0 %7844, %v8487_v21  }
  0x37   : > { %216 = vrot.lane.b32.xlu1 %v8400_v3, %s8321_s12 }
  0x39   : > { %6991 = vmatmul.msk.bf16.gmra.mxu1 %vm413_vm1, %v7695_v20 }
  0x49   : > { %6992 = vmatmul.msk.bf16.gmra.mxu1 %vm413_vm1, %v7696_v23 }
  0x59   : > { %6993 = vmatmul.msk.bf16.gmra.mxu1 %vm413_vm1, %v7697_v24 }
  0x69   : > { %6994 = vmatmul.msk.bf16.gmra.mxu1 %vm413_vm1, %v7698_v25  ;;  %v8517_v47 = vpop.permute.xlu2 %315 }
  0x6a   : > { %10088 = vst [vmem:[#allocation8_spill] sm:$0xff] %v8517_v47 }
  0x71   : > { %v8521_v50 = vpop.permute.xlu2 %320 }
  0x72   : > { %10089 = vst [vmem:[#allocation9_spill] sm:$0xff] %v8521_v50 }
  0x79   : > { %6995 = vmatmul.msk.bf16.gmra.mxu1 %vm413_vm1, %v7699_v26  ;;  %v8532_v6 = vpop.permute.xlu2 %335 }
  0x7a   : > { %10092 = vst [vmem:[#allocation12_spill] sm:$0xff] %v8532_v6 }
  0x80   : > { %v8504_v29 = vpop.permute.xlu0 %295 }
  0x81   : > { %v8510_v38 = vpop.permute.xlu1 %305 }
  0x82   : > { %10086 = vst [vmem:[#allocation6_spill] sm:$0xff] %v8510_v38 }
  0x88   : > { %v8507_v32 = vpop.permute.xlu0 %300 }
  0x89   : > { %6996 = vmatmul.msk.bf16.gmra.mxu1 %vm413_vm1, %v7700_v28  ;;  %10085 = vst [vmem:[#allocation5_spill] sm:$0xff] %v8507_v32  ;;  %v8514_v41 = vpop.permute.xlu1 %310 }
  0x8a   : > { %10087 = vst [vmem:[#allocation7_spill] sm:$0xff] %v8514_v41 }
  0x90   : > { %v8525_v57 = vpop.permute.xlu0 %325 }
  0x91   : > { %10090 = vst [vmem:[#allocation10_spill] sm:$0xff] %v8525_v57  ;;  %v8528_v59 = vpop.permute.xlu1 %330 }
  0x92   : > { %10091 = vst [vmem:[#allocation11_spill] sm:$0xff] %v8528_v59 }
  0x96   : > { %v450_v30 = vpop.f32.mrf.mxu1 }
  0x97   : > { %v451_v31 = vadd.f32 %v450_v30, %v8504_v29 }
  0x98   : > { %v8535_v20 = vpop.permute.xlu0 %340 }
  0x99   : > { %v490_v35 = vmax.f32 %v451_v31, 0.0  ;;  %10093 = vst [vmem:[#allocation13_spill] sm:$0xff] %v8535_v20  ;;  %v8539_v30 = vpop.permute.xlu1 %345 }
  0x9a   : > { %10094 = vst [vmem:[#allocation14_spill] sm:$0xff] %v8539_v30 }
  0x9e   : > { %v452_v33 = vpop.f32.mrf.mxu1 }
  0x9f   : > { %v453_v34 = vadd.f32 %v452_v33, %v8507_v32  ;;  %v8542_v33 = vpop.permute.xlu2 %350 }
  0xa0   : > { %10095 = vst [vmem:[#allocation15_spill] sm:$0xff] %v8542_v33 }
  0xa1   : > { %v491_v36 = vmax.f32 %v453_v34, 0.0 }
  0xa3   : > { %v506_v37 = vpack.c.bf16 %v491_v36, %v490_v35 }
  0xa5   : > { %7001 = vmatmul.msk.bf16.vlgmr.msra.gmra.mxu2 %vm525_vm2, %v506_v37 }
  0xa6   : > { %v455_v39 = vpop.f32.mrf.mxu1 }
  0xa7   : > { %v456_v40 = vadd.f32 %v455_v39, %v8510_v38 }
  0xa9   : > { %v492_v44 = vmax.f32 %v456_v40, 0.0 }
  0xae   : > { %v457_v42 = vpop.f32.mrf.mxu1 }
  0xaf   : > { %v458_v43 = vadd.f32 %v457_v42, %v8514_v41  ;;  %v8546_v42 = vpop.permute.xlu0 %355 }
  0xb0   : > { %10096 = vst [vmem:[#allocation16_spill] sm:$0xff] %v8546_v42 }
  0xb1   : > { %v493_v45 = vmax.f32 %v458_v43, 0.0 }
  0xb3   : > { %v507_v46 = vpack.c.bf16 %v493_v45, %v492_v44  ;;  %v8549_v44 = vpop.permute.xlu1 %360 }
  0xb4   : > { %10097 = vst [vmem:[#allocation17_spill] sm:$0xff] %v8549_v44 }
  0xb5   : > { %7002 = vmatmul.msk.bf16.gmra.mxu2 %vm525_vm2, %v507_v46 }
  0xb6   : > { %v460_v48 = vpop.f32.mrf.mxu1 }
  0xb7   : > { %v461_v49 = vadd.f32 %v460_v48, %v8517_v47 }
  0xb9   : > { %v494_v53 = vmax.f32 %v461_v49, 0.0 }
  0xbe   : > { %v462_v51 = vpop.f32.mrf.mxu1 }
  0xbf   : > { %v463_v52 = vadd.f32 %v462_v51, %v8521_v50 }
  0xc1   : > { %v495_v54 = vmax.f32 %v463_v52, 0.0 }
  0xc3   : > { %v508_v55 = vpack.c.bf16 %v495_v54, %v494_v53  ;;  %v8553_v53 = vpop.permute.xlu2 %365 }
  0xc4   : > { %10098 = vst [vmem:[#allocation18_spill] sm:$0xff] %v8553_v53 }
  0xc5   : > { %7003 = vmatmul.msk.bf16.gmra.mxu2 %vm525_vm2, %v508_v55  ;;  %v8556_v55 = vpop.permute.xlu0 %370 }
  0xc6   : > { %v465_v56 = vpop.f32.mrf.mxu1  ;;  %10099 = vst [vmem:[#allocation19_spill] sm:$0xff] %v8556_v55 }
  0xc7   : > { %v466_v58 = vadd.f32 %v465_v56, %v8525_v57 }
  0xc9   : > { %v496_v62 = vmax.f32 %v466_v58, 0.0 }
  0xce   : > { %v467_v60 = vpop.f32.mrf.mxu1 }
  0xcf   : > { %v468_v61 = vadd.f32 %v467_v60, %v8528_v59 }
  0xd1   : > { %v497_v63 = vmax.f32 %v468_v61, 0.0 }
  0xd3   : > { %v509_v0 = vpack.c.bf16 %v497_v63, %v496_v62  ;;  %v217_v63 = vpop.permute.xlu1 %216 }
  0xd5   : > { %7004 = vmatmul.msk.bf16.gmra.mxu2 %vm525_vm2, %v509_v0  ;;  %v220_v0 = vsel %vm219_vm3, 0.0, %v217_v63 }
  0xd6   : > { %v470_v4 = vpop.f32.mrf.mxu1  ;;  %222 = vrot.lane.b32.xlu0 %v220_v0, %s8322_s13  ;;  %225 = vrot.lane.b32.xlu2 %v220_v0, %s8323_s14 }
  0xd7   : > { %v471_v13 = vadd.f32 %v470_v4, %v8532_v6 }
  0xd9   : > { %v498_v25 = vmax.f32 %v471_v13, 0.0 }
  0xde   : > { %v472_v23 = vpop.f32.mrf.mxu1 }
  0xdf   : > { %v473_v24 = vadd.f32 %v472_v23, %v8535_v20 }
  0xe1   : > { %v499_v26 = vmax.f32 %v473_v24, 0.0 }
  0xe3   : > { %v510_v27 = vpack.c.bf16 %v499_v26, %v498_v25 }
  0xe5   : > { %7005 = vmatmul.msk.bf16.gmra.mxu2 %vm525_vm2, %v510_v27 }
  0xe6   : > { %v475_v28 = vpop.f32.mrf.mxu1 }
  0xe7   : > { %v476_v31 = vadd.f32 %v475_v28, %v8539_v30 }
  0xe9   : > { %v500_v36 = vmax.f32 %v476_v31, 0.0 }
  0xee   : > { %v477_v34 = vpop.f32.mrf.mxu1 }
  0xef   : > { %v478_v35 = vadd.f32 %v477_v34, %v8542_v33 }
  0xf1   : > { %v501_v37 = vmax.f32 %v478_v35, 0.0 }
  0xf3   : > { %v511_v39 = vpack.c.bf16 %v501_v37, %v500_v36 }
  0xf5   : > { %7006 = vmatmul.msk.bf16.gmra.mxu2 %vm525_vm2, %v511_v39 }
  0xf6   : > { %v480_v40 = vpop.f32.mrf.mxu1 }
  0xf7   : > { %v481_v43 = vadd.f32 %v480_v40, %v8546_v42 }
  0xf9   : > { %v502_v48 = vmax.f32 %v481_v43, 0.0 }
  0xfe   : > { %v482_v45 = vpop.f32.mrf.mxu1 }
  0xff   : > { %v483_v46 = vadd.f32 %v482_v45, %v8549_v44 }
 0x101   : > { %v503_v49 = vmax.f32 %v483_v46, 0.0 }
 0x103   : > { %v512_v51 = vpack.c.bf16 %v503_v49, %v502_v48 }
 0x105   : > { %7007 = vmatmul.msk.bf16.gmra.mxu2 %vm525_vm2, %v512_v51 }
 0x106   : > { %v485_v52 = vpop.f32.mrf.mxu1 }
 0x107   : > { %v486_v54 = vadd.f32 %v485_v52, %v8553_v53  ;;  %v7871_v52 = vld [vmem:[%s9951_s3] ss:$0 sm:$0xff] }
 0x109   : > { %v504_v60 = vmax.f32 %v486_v54, 0.0 }
 0x10e   : > { %v487_v56 = vpop.f32.mrf.mxu1 }
 0x10f   : > { %v488_v58 = vadd.f32 %v487_v56, %v8556_v55 }
 0x111   : > { %v505_v61 = vmax.f32 %v488_v58, 0.0 }
 0x113   : > { %v513_v62 = vpack.c.bf16 %v505_v61, %v504_v60 }
 0x115   : > { %7008 = vmatmul.msk.bf16.gmra.mxu2 %vm525_vm2, %v513_v62 }
 0x128   : > { %v8563_v4 = vpop.f32.mrf.mxu2 }
 0x130   : > { %v8565_v13 = vpop.f32.mrf.mxu2  ;;  %v226_v40 = vpop.permute.xlu2 %225 }
 0x131   : > { %v230_v43 = vpack.c.bf16 %v226_v40, %v226_v40 }
 0x133   : > { %v243_v45 = vsel %vm241_vm0, %v230_v43, 0 }
 0x134   : > { %251 = vmatpush.bf16.msra.mxu0 %v243_v45  ;;  %v7709_v45 = vld [vmem:[#allocation2 + $0x138] sm:$0xff] }
 0x138   : > { %v8567_v23 = vpop.f32.mrf.mxu2 }
 0x140   : > { %v8569_v24 = vpop.f32.mrf.mxu2 }
 0x148   : > { %v8571_v25 = vpop.f32.mrf.mxu2  ;;  %v223_v46 = vpop.permute.xlu0 %222 }
 0x149   : > { %v6954_v49 = vpack.c.bf16 %v223_v46, %v217_v63  ;;  %v228_v46 = vld [vmem:[#allocation2] sm:$0xf] }
 0x14b   : > { %6955 = vmatpush.bf16.msk.msra.mxu0 %vm8576_vm6, %v6954_v49  ;;  %v8325_v49 = vmov 2  }
 0x14c   : > { %7847 = vset.pattern.permute.xlu1 %v8325_v49 }
 0x14d   : > { %626 = vperm.xlu1 %7847, %v8392_v1  }
 0x14e   : > { %6956 = vmatmul.msk.bf16.vlgmr.msra.gmra.mxu0 %vm237_vm7, %v228_v46  ;;  %v565_v46 = vadd.f32 %v7871_v52, %v8567_v23 }
 0x14f   : > { %711 = vmatpush.bf16.msrb.mxu0 %v7709_v45 }
 0x150   : > { %v571_v26 = vpop.f32.mrf.mxu2 }
 0x151   : > { %v572_v45 = vadd.f32 %v7871_v52, %v571_v26  ;;  %v562_v26 = vadd.f32 %v7871_v52, %v8565_v13 }
 0x158   : > { %v574_v27 = vpop.f32.mrf.mxu2 }
 0x160   : > { %v576_v28 = vpop.f32.mrf.mxu2 }
 0x168   : > { %v579_v31 = vpop.f32.mrf.mxu2 }
 0x170   : > { %v581_v34 = vpop.f32.mrf.mxu2 }
 0x178   : > { %v584_v35 = vpop.f32.mrf.mxu2 }
 0x179   : > { %v585_v55 = vadd.f32 %v7871_v52, %v584_v35 }
 0x180   : > { %v586_v36 = vpop.f32.mrf.mxu2 }
 0x181   : > { %v587_v0 = vadd.f32 %v7871_v52, %v586_v36  ;;  %v580_v36 = vadd.f32 %v7871_v52, %v579_v31  ;;  %v567_v31 = vadd.f32 %v7871_v52, %v8569_v24 }
 0x188   : > { %v589_v37 = vpop.f32.mrf.mxu2 }
 0x189   : > { %v590_v61 = vadd.f32 %v7871_v52, %v589_v37 }
 0x18b   : > { %v611_v53 = vmax.f32 %v590_v61, 0.0 }
 0x190   : > { %v591_v39 = vpop.f32.mrf.mxu2 }
 0x191   : > { %v592_v58 = vadd.f32 %v7871_v52, %v591_v39  ;;  %v582_v39 = vadd.f32 %v7871_v52, %v581_v34 }
 0x193   : > { %v612_v40 = vmax.f32 %v592_v58, 0.0  ;;  %v7707_v58 = vld [vmem:[#allocation2 + $0x128] sm:$0xff]  ;;  %v608_v35 = vmax.f32 %v582_v39, 0.0  ;;  %v602_v39 = vmax.f32 %v567_v31, 0.0 }
 0x195   : > { %v623_v37 = vpack.c.bf16 %v612_v40, %v611_v53  ;;  %v570_v53 = vadd.f32 %v7871_v52, %v8571_v25  ;;  %v604_v40 = vmax.f32 %v572_v45, 0.0  ;;  %v560_v25 = vadd.f32 %v7871_v52, %v8563_v4 }
 0x198   : > { %v594_v48 = vpop.f32.mrf.mxu2 }
 0x199   : > { %v595_v54 = vadd.f32 %v7871_v52, %v594_v48  ;;  %v7708_v48 = vld [vmem:[#allocation2 + $0x130] sm:$0xff] }
 0x19a   : > { %712 = vmatpush.bf16.msrb.mxu0 %v7708_v48  ;;  %v7704_v48 = vld [vmem:[#allocation2 + $0x110] sm:$0xff] }
 0x19b   : > { %v613_v62 = vmax.f32 %v595_v54, 0.0  ;;  %v609_v54 = vmax.f32 %v585_v55, 0.0  ;;  %v7705_v55 = vld [vmem:[#allocation2 + $0x118] sm:$0xff] }
 0x19e   : > { %713 = vmatpush.bf16.msrb.mxu0 %v7707_v58  ;;  %v599_v58 = vmax.f32 %v560_v25, 0.0  ;;  %v7710_v25 = vld [vmem:[#allocation2 + $0x180] sm:$0xff] }
 0x1a0   : > { %v596_v56 = vpop.f32.mrf.mxu2 }
 0x1a1   : > { %v597_v60 = vadd.f32 %v7871_v52, %v596_v56  ;;  %v610_v56 = vmax.f32 %v587_v0, 0.0 }
 0x1a3   : > { %v614_v63 = vmax.f32 %v597_v60, 0.0  ;;  %v577_v60 = vadd.f32 %v7871_v52, %v576_v28  ;;  %v622_v61 = vpack.c.bf16 %v610_v56, %v609_v54  ;;  %v600_v54 = vmax.f32 %v562_v26, 0.0 }
 0x1a5   : > { %v624_v43 = vpack.c.bf16 %v614_v63, %v613_v62  ;;  %v575_v62 = vadd.f32 %v7871_v52, %v574_v27  ;;  %v607_v63 = vmax.f32 %v580_v36, 0.0  ;;  %v606_v49 = vmax.f32 %v577_v60, 0.0  ;;  %v7703_v36 = vld [vmem:[#allocation2 + $0x108] sm:$0xff]  ;;  %v616_v60 = vld [vmem:[#allocation2 + $0xc0] sm:$0xf] }
 0x1a6   : > { %v603_v27 = vmax.f32 %v570_v53, 0.0  ;;  %v617_v23 = vpack.c.bf16 %v600_v54, %v599_v58  ;;  %v8328_v54 = vmov 4   ;;  %v7715_v58 = vld [vmem:[#allocation2 + $0x1a8] sm:$0xff] }
 0x1a7   : > { %629 = vmatpush.bf16.msra.mxu3 %v624_v43  ;;  %v7706_v43 = vld [vmem:[#allocation2 + $0x120] sm:$0xff]  ;;  %v621_v34 = vpack.c.bf16 %v608_v35, %v607_v63  ;;  %v605_v0 = vmax.f32 %v575_v62, 0.0  ;;  %7849 = vset.pattern.permute.xlu0 %v8328_v54 }
 0x1a8   : > { %714 = vmatpush.bf16.msrb.mxu0 %v7706_v43  ;;  %v619_v56 = vpack.c.bf16 %v604_v40, %v603_v27  ;;  %v7702_v35 = vld [vmem:[#allocation2 + $0x100] sm:$0xff]  ;;  %7850 = vset.pattern.permute.xlu1 %v8328_v54 }
 0x1a9   : > { %v620_v28 = vpack.c.bf16 %v606_v49, %v605_v0  ;;  %v7872_v0 = vld [vmem:[%s9951_s3 + $0x1] ss:$0 sm:$0xff] }
 0x1ab   : > { %630 = vmatpush.bf16.msra.mxu3 %v623_v37  ;;  %v601_v37 = vmax.f32 %v565_v46, 0.0 }
 0x1ac   : > { %715 = vmatpush.bf16.msrb.mxu0 %v7705_v55 }
 0x1ad   : > { %v618_v24 = vpack.c.bf16 %v602_v39, %v601_v37  ;;  %v7711_v37 = vld [vmem:[#allocation2 + $0x188] sm:$0xff] }
 0x1af   : > { %631 = vmatpush.bf16.msra.mxu3 %v622_v61  ;;  %v8326_v61 = vmov 0  }
 0x1b0   : > { %716 = vmatpush.bf16.msrb.mxu0 %v7704_v48  ;;  %7848 = vset.pattern.permute.xlu2 %v8326_v61 }
 0x1b1   : > { %234 = vperm.xlu2 %7848, %v8392_v1  }
 0x1b3   : > { %632 = vmatpush.bf16.msra.mxu3 %v621_v34 }
 0x1b4   : > { %717 = vmatpush.bf16.msrb.mxu0 %v7703_v36  ;;  %v7713_v36 = vld [vmem:[#allocation2 + $0x198] sm:$0xff] }
 0x1b7   : > { %633 = vmatpush.bf16.msra.mxu3 %v620_v28 }
 0x1b8   : > { %718 = vmatpush.bf16.msrb.mxu0 %v7702_v35  ;;  %v7717_v35 = vld [vmem:[#allocation2 + $0x1b8] sm:$0xff] }
 0x1b9   : > { %7851 = vset.pattern.permute.xlu2 %v8328_v54 }
 0x1bb   : > { %634 = vmatpush.bf16.msra.mxu3 %v619_v56 }
 0x1bf   : > { %635 = vmatpush.bf16.msra.mxu3 %v618_v24  ;;  %v8593_v52 = vpop.permute.xlu1 %626  ;;  %v7714_v24 = vld [vmem:[#allocation2 + $0x1a0] sm:$0xff] }
 0x1c3   : > { %636 = vmatpush.bf16.msra.mxu3 %v617_v23  ;;  %v7716_v23 = vld [vmem:[#allocation2 + $0x1b0] sm:$0xff] }
 0x1c6   : > { %637 = vmatmul.bf16.vlgmr.msra.gmra.mxu3 %v616_v60 }
 0x1cb   : > { %v254_v13 = vpop.f32.mrf.mxu0 }
 0x1d3   : > { %v256_v4 = vpop.f32.mrf.mxu0 }
 0x20b   : > { %v8596_v34 = vpop.permute.xlu2 %234 }
 0x20c   : > { %v255_v53 = vadd.f32 %v254_v13, %v8596_v34 }
 0x20e   : > { %v258_v55 = vmax.f32 %v255_v53, 0.0  ;;  %v10103_v53 = vmov 0 }
 0x20f   : > { %v10104_v53 = vsel %vm8640_vm10, 4294967295, %v10103_v53 }
 0x210   : > { %v725_v46 = vadd.f32 %v258_v55, %v8400_v3  ;;  %v7712_v3 = vld [vmem:[#allocation2 + $0x190] sm:$0xff]  ;;  %10105 = vst [vmem:[#allocation21_spill] sm:$0xff] %v10104_v53 }
 0x249   : > { %v638_v62 = vpop.f32.mrf.mxu3 }
 0x24a   : > { %v639_v63 = vadd.f32 %v638_v62, %v8593_v52 }
 0x24c   : > { %v642_v43 = vmax.f32 %v639_v63, 0.0 }
 0x24e   : > { %v643_v45 = vpack.c.bf16 %v642_v43, %v642_v43 }
 0x250   : > { %719 = vmatmul.bf16.vlgmr.msrb.gmra.mxu0 %v643_v45 }
 0x251   : > { %v640_v49 = vpop.f32.mrf.mxu3 }
 0x2cd   : > { %v720_v31 = vpop.f32.mrf.mxu0 }
 0x2ce   : > { %v721_v40 = vadd.f32 %v7872_v0, %v720_v31  ;;  %v7718_v0 = vld [vmem:[#allocation2 + $0x1c0] sm:$0xff] }
 0x2d0   : > { %v724_v28 = vmax.f32 %v721_v40, 0.0  ;;  %v742_v40 = vld [vmem:[#allocation2 + $0x140] sm:$0xf] }
 0x2d2   : > { %v726_v27 = vadd.f32 %v725_v46, %v724_v28 }
 0x2d4   : > { %v8603_v48 = vmax.f32 %v726_v27, 0.0 }
 0x2d5   : > { %v722_v26 = vpop.f32.mrf.mxu0 }
 0x2d6   : > { %10102 = vst [vmem:[#allocation20_spill] sm:$0xff] %v8603_v48  ;;  %729 = vrot.lane.b32.xlu0 %v8603_v48, %s8327_s21  ;;  %v786_v39 = vpack.c.bf16 %v8603_v48, %v8603_v48 }
 0x2d8   : > { %v916_v56 = vsel %vm241_vm0, %v786_v39, 0 }
 0x2d9   : > { %925 = vmatpush.bf16.msra.mxu0 %v916_v56 }
 0x2dc   : > { %7078 = vmatmul.msk.bf16.vlgmr.msra.gmra.mxu0 %vm413_vm1, %v7710_v25 }
 0x2de   : > { %788 = vperm.xlu0 %7849, %v8392_v1  }
 0x2e6   : > { %808 = vperm.xlu0 %7849, %v8442_v12  }
 0x2ec   : > { %7079 = vmatmul.msk.bf16.gmra.mxu0 %vm413_vm1, %v7711_v37 }
 0x2ee   : > { %820 = vperm.xlu0 %7849, %v8461_v16  }
 0x2f6   : > { %832 = vperm.xlu0 %7849, %v8479_v19  }
 0x2fc   : > { %7080 = vmatmul.msk.bf16.gmra.mxu0 %vm413_vm1, %v7712_v3 }
 0x2fe   : > { %844 = vperm.xlu0 %7849, %v8493_v22  }
 0x30c   : > { %7081 = vmatmul.msk.bf16.gmra.mxu0 %vm413_vm1, %v7713_v36 }
 0x31c   : > { %7082 = vmatmul.msk.bf16.gmra.mxu0 %vm413_vm1, %v7714_v24 }
 0x32c   : > { %7083 = vmatmul.msk.bf16.gmra.mxu0 %vm413_vm1, %v7715_v58 }
 0x33c   : > { %7084 = vmatmul.msk.bf16.gmra.mxu0 %vm413_vm1, %v7716_v23 }
 0x348   : > { %v730_v60 = vpop.permute.xlu0 %729 }
 0x349   : > { %v733_v13 = vsel %vm732_vm8, 0.0, %v730_v60 }
 0x34a   : > { %735 = vrot.lane.b32.xlu2 %v733_v13, %s8323_s14  ;;  %738 = vrot.lane.b32.xlu1 %v733_v13, %s8329_s22 }
 0x34c   : > { %7085 = vmatmul.msk.bf16.gmra.mxu0 %vm413_vm1, %v7717_v35 }
 0x350   : > { %v8647_v28 = vpop.permute.xlu0 %788 }
 0x351   : > { %10106 = vst [vmem:[#allocation22_spill] sm:$0xff] %v8647_v28 }
 0x352   : > { %792 = vperm.xlu1 %7850, %v8413_v7   ;;  %796 = vperm.xlu2 %7851, %v8397_v2  }
 0x359   : > { %v927_v61 = vpop.f32.mrf.mxu0 }
 0x35a   : > { %800 = vperm.xlu1 %7850, %v8418_v8   ;;  %804 = vperm.xlu2 %7851, %v8426_v9   ;;  %v928_v27 = vadd.f32 %v927_v61, %v8647_v28  ;;  %v8661_v61 = vpop.permute.xlu0 %808 }
 0x35b   : > { %10110 = vst [vmem:[#allocation26_spill] sm:$0xff] %v8661_v61 }
 0x35c   : > { %v967_v56 = vmax.f32 %v928_v27, 0.0 }
 0x361   : > { %v929_v4 = vpop.f32.mrf.mxu0 }
 0x362   : > { %812 = vperm.xlu1 %7850, %v8432_v10   ;;  %816 = vperm.xlu2 %7851, %v8437_v11  }
 0x369   : > { %v932_v62 = vpop.f32.mrf.mxu0 }
 0x36a   : > { %824 = vperm.xlu1 %7850, %v8450_v14   ;;  %828 = vperm.xlu2 %7851, %v8455_v15  }
 0x371   : > { %v934_v31 = vpop.f32.mrf.mxu0 }
 0x372   : > { %836 = vperm.xlu1 %7850, %v8469_v17   ;;  %840 = vperm.xlu2 %7851, %v8474_v18  }
 0x379   : > { %v937_v39 = vpop.f32.mrf.mxu0 }
 0x37a   : > { %848 = vperm.xlu1 %7850, %v8487_v21  }
 0x381   : > { %v939_v3 = vpop.f32.mrf.mxu0 }
 0x389   : > { %v942_v35 = vpop.f32.mrf.mxu0 }
 0x3a4   : > { %v736_v45 = vpop.permute.xlu2 %735 }
 0x3a5   : > { %v7043_v55 = vpack.c.bf16 %v736_v45, %v730_v60 }
 0x3ac   : > { %v8654_v36 = vpop.permute.xlu2 %796 }
 0x3ad   : > { %10108 = vst [vmem:[#allocation24_spill] sm:$0xff] %v8654_v36  ;;  %v933_v24 = vadd.f32 %v932_v62, %v8654_v36 }
 0x3af   : > { %v969_v23 = vmax.f32 %v933_v24, 0.0 }
 0x3bc   : > { %v739_v63 = vpop.permute.xlu1 %738 }
 0x3bd   : > { %v744_v43 = vpack.c.bf16 %v739_v63, %v739_v63  ;;  %v8663_v63 = vpop.permute.xlu2 %804 }
 0x3be   : > { %10111 = vst [vmem:[#allocation27_spill] sm:$0xff] %v8663_v63  ;;  %v938_v45 = vadd.f32 %v937_v39, %v8663_v63 }
 0x3bf   : > { %v753_v49 = vsel %vm241_vm0, %v744_v43, 0  ;;  %v940_v43 = vadd.f32 %v939_v3, %v8661_v61 }
 0x3c0   : > { %761 = vmatpush.bf16.msrb.mxu3 %v753_v49  ;;  %v971_v49 = vmax.f32 %v938_v45, 0.0 }
 0x3c4   : > { %7044 = vmatpush.bf16.msk.msrb.mxu3 %vm8640_vm10, %v7043_v55  ;;  %v8649_v46 = vpop.permute.xlu1 %792 }
 0x3c5   : > { %10107 = vst [vmem:[#allocation23_spill] sm:$0xff] %v8649_v46  ;;  %v930_v26 = vadd.f32 %v929_v4, %v8649_v46  ;;  %v944_v4 = vpop.f32.mrf.mxu0 }
 0x3c7   : > { %7045 = vmatmul.msk.bf16.vlgmr.msrb.gmra.mxu3 %vm237_vm7, %v742_v40  ;;  %v968_v25 = vmax.f32 %v930_v26, 0.0  ;;  %v8670_v40 = vpop.permute.xlu2 %816 }
 0x3c8   : > { %1033 = vmatpush.bf16.msra.mxu3 %v7718_v0  ;;  %v972_v0 = vmax.f32 %v940_v43, 0.0  ;;  %10113 = vst [vmem:[#allocation29_spill] sm:$0xff] %v8670_v40  ;;  %v945_v27 = vadd.f32 %v944_v4, %v8670_v40 }
 0x3c9   : > { %v983_v37 = vpack.c.bf16 %v968_v25, %v967_v56 }
 0x3ca   : > { %v985_v62 = vpack.c.bf16 %v972_v0, %v971_v49 }
 0x3cc   : > { %v8656_v54 = vpop.permute.xlu1 %800 }
 0x3cd   : > { %10109 = vst [vmem:[#allocation25_spill] sm:$0xff] %v8656_v54  ;;  %v935_v58 = vadd.f32 %v934_v31, %v8656_v54  ;;  %v947_v55 = vpop.f32.mrf.mxu0 }
 0x3cf   : > { %v970_v60 = vmax.f32 %v935_v58, 0.0 }
 0x3d1   : > { %v984_v13 = vpack.c.bf16 %v970_v60, %v969_v23  ;;  %v8678_v23 = vpop.permute.xlu0 %820 }
 0x3d2   : > { %10115 = vst [vmem:[#allocation31_spill] sm:$0xff] %v8678_v23  ;;  %v948_v60 = vadd.f32 %v947_v55, %v8678_v23 }
 0x3d4   : > { %v8668_v31 = vpop.permute.xlu1 %812  ;;  %v975_v43 = vmax.f32 %v948_v60, 0.0 }
 0x3d5   : > { %10112 = vst [vmem:[#allocation28_spill] sm:$0xff] %v8668_v31  ;;  %v943_v26 = vadd.f32 %v942_v35, %v8668_v31  ;;  %v949_v56 = vpop.f32.mrf.mxu0  ;;  %v8682_v35 = vpop.permute.xlu2 %828 }
 0x3d6   : > { %10116 = vst [vmem:[#allocation32_spill] sm:$0xff] %v8682_v35 }
 0x3d7   : > { %7090 = vmatmul.msk.bf16.vlgmr.msra.gmra.mxu3 %vm525_vm2, %v983_v37  ;;  %v973_v25 = vmax.f32 %v943_v26, 0.0  ;;  %v974_v37 = vmax.f32 %v945_v27, 0.0 }
 0x3d9   : > { %v986_v3 = vpack.c.bf16 %v974_v37, %v973_v25  ;;  %v8684_v49 = vpop.permute.xlu0 %832 }
 0x3da   : > { %10117 = vst [vmem:[#allocation33_spill] sm:$0xff] %v8684_v49 }
 0x3dc   : > { %v8675_v24 = vpop.permute.xlu1 %824 }
 0x3dd   : > { %v952_v39 = vpop.f32.mrf.mxu0  ;;  %10114 = vst [vmem:[#allocation30_spill] sm:$0xff] %v8675_v24  ;;  %v950_v58 = vadd.f32 %v949_v56, %v8675_v24 }
 0x3e4   : > { %v8689_v37 = vpop.permute.xlu1 %836 }
 0x3e5   : > { %v954_v4 = vpop.f32.mrf.mxu0  ;;  %10118 = vst [vmem:[#allocation34_spill] sm:$0xff] %v8689_v37 }
 0x3e6   : > { %v955_v0 = vadd.f32 %v954_v4, %v8684_v49  ;;  %v8330_v49 = vmov 6  }
 0x3e7   : > { %7091 = vmatmul.msk.bf16.gmra.mxu3 %vm525_vm2, %v984_v13  ;;  %v976_v13 = vmax.f32 %v950_v58, 0.0  ;;  %7853 = vset.pattern.permute.xlu0 %v8330_v49 }
 0x3e8   : > { %v978_v56 = vmax.f32 %v955_v0, 0.0  ;;  %7854 = vset.pattern.permute.xlu1 %v8330_v49  ;;  %1301 = vperm.xlu0 %7853, %v8487_v21  }
 0x3e9   : > { %v987_v45 = vpack.c.bf16 %v976_v13, %v975_v43  ;;  %1289 = vperm.xlu1 %7854, %v8469_v17   ;;  %7852 = vset.pattern.permute.xlu2 %v8330_v49 }
 0x3ea   : > { %1297 = vperm.xlu2 %7852, %v8493_v22  }
 0x3ed   : > { %v957_v27 = vpop.f32.mrf.mxu0 }
 0x3ee   : > { %v958_v58 = vadd.f32 %v957_v27, %v8689_v37 }
 0x3f0   : > { %v979_v13 = vmax.f32 %v958_v58, 0.0  ;;  %1273 = vperm.xlu0 %7853, %v8461_v16  }
 0x3f1   : > { %1281 = vperm.xlu1 %7854, %v8455_v15  }
 0x3f2   : > { %1293 = vperm.xlu2 %7852, %v8474_v18  }
 0x3f5   : > { %v959_v55 = vpop.f32.mrf.mxu0 }
 0x3f7   : > { %7092 = vmatmul.msk.bf16.gmra.mxu3 %vm525_vm2, %v985_v62  ;;  %v953_v62 = vadd.f32 %v952_v39, %v8682_v35  ;;  %v8696_v39 = vpop.permute.xlu1 %848 }
 0x3f8   : > { %10120 = vst [vmem:[#allocation36_spill] sm:$0xff] %v8696_v39  ;;  %1265 = vperm.xlu0 %7853, %v8432_v10  }
 0x3f9   : > { %v977_v26 = vmax.f32 %v953_v62, 0.0  ;;  %v8698_v62 = vpop.permute.xlu0 %844  ;;  %1277 = vperm.xlu1 %7854, %v8450_v14  }
 0x3fa   : > { %10121 = vst [vmem:[#allocation37_spill] sm:$0xff] %v8698_v62  ;;  %1285 = vperm.xlu2 %7852, %v8479_v19  }
 0x3fb   : > { %v988_v25 = vpack.c.bf16 %v978_v56, %v977_v26 }
 0x3fd   : > { %v962_v43 = vpop.f32.mrf.mxu0 }
 0x3fe   : > { %v963_v56 = vadd.f32 %v962_v43, %v8698_v62 }
 0x400   : > { %v981_v48 = vmax.f32 %v963_v56, 0.0  ;;  %1261 = vperm.xlu0 %7853, %v8442_v12   ;;  %v8331_v12 = vmov 5  }
 0x401   : > { %1269 = vperm.xlu1 %7854, %v8437_v11   ;;  %v7727_v11 = vld [vmem:[#allocation2 + $0x280] sm:$0xff] }
 0x402   : > { %7855 = vset.pattern.permute.xlu2 %v8331_v12  ;;  %v8332_v12 = vmov 7  }
 0x403   : > { %1102 = vperm.xlu2 %7855, %v8392_v1  }
 0x405   : > { %v964_v0 = vpop.f32.mrf.mxu0 }
 0x406   : > { %v965_v26 = vadd.f32 %v964_v0, %v8696_v39 }
 0x407   : > { %7093 = vmatmul.msk.bf16.gmra.mxu3 %vm525_vm2, %v986_v3  ;;  %v8691_v3 = vpop.permute.xlu2 %840 }
 0x408   : > { %10119 = vst [vmem:[#allocation35_spill] sm:$0xff] %v8691_v3  ;;  %v960_v60 = vadd.f32 %v959_v55, %v8691_v3  ;;  %1241 = vperm.xlu0 %7853, %v8392_v1   ;;  %v7726_v1 = vld [vmem:[#allocation2 + $0x278] sm:$0xff] }
 0x409   : > { %1249 = vperm.xlu1 %7854, %v8397_v2   ;;  %v7728_v2 = vld [vmem:[#allocation2 + $0x288] sm:$0xff]  ;;  %1187 = vmatpush.bf16.msrb.mxu2 %v7726_v1 }
 0x40a   : > { %v980_v4 = vmax.f32 %v960_v60, 0.0 }
 0x40b   : > { %7856 = vset.pattern.permute.xlu2 %v8330_v49  ;;  %v7724_v49 = vld [vmem:[#allocation2 + $0x268] sm:$0xff] }
 0x40c   : > { %1257 = vperm.xlu2 %7856, %v8426_v9   ;;  %v7731_v9 = vld [vmem:[#allocation2 + $0x2a0] sm:$0xff] }
 0x410   : > { %7858 = vset.pattern.permute.xlu0 %v8332_v12 }
 0x411   : > { %1245 = vperm.xlu1 %7854, %v8413_v7   ;;  %v7725_v7 = vld [vmem:[#allocation2 + $0x270] sm:$0xff] }
 0x412   : > { %1188 = vmatpush.bf16.msrb.mxu2 %v7725_v7 }
 0x414   : > { %1253 = vperm.xlu2 %7856, %v8418_v8   ;;  %v7722_v8 = vld [vmem:[#allocation2 + $0x258] sm:$0xff] }
 0x416   : > { %1189 = vmatpush.bf16.msrb.mxu2 %v7724_v49 }
 0x417   : > { %7094 = vmatmul.msk.bf16.gmra.mxu3 %vm525_vm2, %v987_v45  ;;  %v989_v45 = vpack.c.bf16 %v980_v4, %v979_v13 }
 0x419   : > { %7859 = vset.pattern.permute.xlu1 %v8332_v12 }
 0x41c   : > { %7857 = vset.pattern.permute.xlu2 %v8332_v12 }
 0x427   : > { %7095 = vmatmul.msk.bf16.gmra.mxu3 %vm525_vm2, %v988_v25  ;;  %v982_v25 = vmax.f32 %v965_v26, 0.0 }
 0x429   : > { %v990_v27 = vpack.c.bf16 %v982_v25, %v981_v48 }
 0x437   : > { %7096 = vmatmul.msk.bf16.gmra.mxu3 %vm525_vm2, %v989_v45 }
 0x447   : > { %7097 = vmatmul.msk.bf16.gmra.mxu3 %vm525_vm2, %v990_v27 }
 0x44a   : > { %v8703_v55 = vpop.f32.mrf.mxu3 }
 0x44b   : > { %10122 = vst [vmem:[#allocation38_spill] sm:$0xff] %v8703_v55 }
 0x452   : > { %v766_v58 = vpop.f32.mrf.mxu3 }
 0x453   : > { %v7873_v58 = vld [vmem:[%s9951_s3 + $0x2] ss:$0 sm:$0xff] }
 0x45a   : > { %v8705_v60 = vpop.f32.mrf.mxu3 }
 0x45b   : > { %v1036_v10 = vadd.f32 %v7873_v58, %v8705_v60  ;;  %v7730_v60 = vld [vmem:[#allocation2 + $0x298] sm:$0xff] }
 0x462   : > { %v8707_v13 = vpop.f32.mrf.mxu3 }
 0x46a   : > { %v1040_v4 = vpop.f32.mrf.mxu3 }
 0x472   : > { %v1042_v45 = vpop.f32.mrf.mxu3 }
 0x47a   : > { %v1045_v37 = vpop.f32.mrf.mxu3 }
 0x47b   : > { %v1046_v16 = vadd.f32 %v7873_v58, %v1045_v37 }
 0x482   : > { %v1047_v3 = vpop.f32.mrf.mxu3 }
 0x48a   : > { %v1050_v35 = vpop.f32.mrf.mxu3 }
 0x492   : > { %v1052_v0 = vpop.f32.mrf.mxu3 }
 0x49a   : > { %v1055_v39 = vpop.f32.mrf.mxu3 }
 0x49b   : > { %v1056_v17 = vadd.f32 %v7873_v58, %v1055_v39 }
 0x4a2   : > { %v1057_v43 = vpop.f32.mrf.mxu3 }
 0x4a3   : > { %v1058_v46 = vadd.f32 %v7873_v58, %v1057_v43  ;;  %v7721_v43 = vld [vmem:[#allocation2 + $0x250] sm:$0xff] }
 0x4a5   : > { %v1084_v22 = vmax.f32 %v1058_v46, 0.0  ;;  %v1041_v46 = vadd.f32 %v7873_v58, %v1040_v4  ;;  %v7723_v4 = vld [vmem:[#allocation2 + $0x260] sm:$0xff] }
 0x4a6   : > { %1190 = vmatpush.bf16.msrb.mxu2 %v7723_v4 }
 0x4a7   : > { %v1077_v14 = vmax.f32 %v1041_v46, 0.0 }
 0x4aa   : > { %v1060_v26 = vpop.f32.mrf.mxu3  ;;  %1191 = vmatpush.bf16.msrb.mxu2 %v7722_v8 }
 0x4ab   : > { %v1061_v54 = vadd.f32 %v7873_v58, %v1060_v26  ;;  %v7720_v26 = vld [vmem:[#allocation2 + $0x248] sm:$0xff] }
 0x4ad   : > { %v1085_v21 = vmax.f32 %v1061_v54, 0.0 }
 0x4ae   : > { %1192 = vmatpush.bf16.msrb.mxu2 %v7721_v43 }
 0x4b2   : > { %v1062_v56 = vpop.f32.mrf.mxu3  ;;  %1193 = vmatpush.bf16.msrb.mxu2 %v7720_v26 }
 0x4ba   : > { %v1065_v48 = vpop.f32.mrf.mxu3 }
 0x4bb   : > { %v1066_v31 = vadd.f32 %v7873_v58, %v1065_v48  ;;  %v8741_v48 = vpop.permute.xlu2 %1297 }
 0x4bc   : > { %10123 = vst [vmem:[#allocation39_spill] sm:$0xff] %v8741_v48 }
 0x4bd   : > { %v1087_v28 = vmax.f32 %v1066_v31, 0.0  ;;  %v1048_v31 = vadd.f32 %v7873_v58, %v1047_v3 }
 0x4bf   : > { %v1080_v18 = vmax.f32 %v1048_v31, 0.0 }
 0x4c2   : > { %v1067_v25 = vpop.f32.mrf.mxu3 }
 0x4c3   : > { %v1068_v23 = vadd.f32 %v7873_v58, %v1067_v25 }
 0x4c5   : > { %v1088_v61 = vmax.f32 %v1068_v23, 0.0  ;;  %v1051_v23 = vadd.f32 %v7873_v58, %v1050_v35  ;;  %v1038_v35 = vadd.f32 %v7873_v58, %v8707_v13  ;;  %v1092_v13 = vld [vmem:[#allocation2 + $0x200] sm:$0xf] }
 0x4c7   : > { %v1081_v15 = vmax.f32 %v1051_v23, 0.0  ;;  %v1076_v37 = vmax.f32 %v1038_v35, 0.0 }
 0x4ca   : > { %v1070_v27 = vpop.f32.mrf.mxu3 }
 0x4cb   : > { %v1071_v55 = vadd.f32 %v7873_v58, %v1070_v27  ;;  %v1063_v27 = vadd.f32 %v7873_v58, %v1062_v56  ;;  %v7732_v56 = vld [vmem:[#allocation2 + $0x2a8] sm:$0xff] }
 0x4cd   : > { %v1089_v40 = vmax.f32 %v1071_v55, 0.0  ;;  %v1086_v25 = vmax.f32 %v1063_v27, 0.0  ;;  %v8744_v27 = vpop.permute.xlu2 %1293 }
 0x4ce   : > { %10124 = vst [vmem:[#allocation40_spill] sm:$0xff] %v8744_v27 }
 0x4cf   : > { %v1098_v55 = vpack.c.bf16 %v1086_v25, %v1085_v21  ;;  %v7733_v25 = vld [vmem:[#allocation2 + $0x2b0] sm:$0xff]  ;;  %v7734_v21 = vld [vmem:[#allocation2 + $0x2b8] sm:$0xff] }
 0x4d2   : > { %v1072_v62 = vpop.f32.mrf.mxu3 }
 0x4d3   : > { %v1073_v24 = vadd.f32 %v7873_v58, %v1072_v62  ;;  %v1099_v62 = vpack.c.bf16 %v1088_v61, %v1087_v28  ;;  %v1043_v28 = vadd.f32 %v7873_v58, %v1042_v45  ;;  %v1079_v61 = vmax.f32 %v1046_v16, 0.0 }
 0x4d4   : > { %v1075_v45 = vmax.f32 %v1036_v10, 0.0 }
 0x4d5   : > { %v1090_v63 = vmax.f32 %v1073_v24, 0.0  ;;  %v1053_v24 = vadd.f32 %v7873_v58, %v1052_v0  ;;  %v1078_v3 = vmax.f32 %v1043_v28, 0.0  ;;  %v1095_v39 = vpack.c.bf16 %v1080_v18, %v1079_v61  ;;  %v7719_v58 = vld [vmem:[#allocation2 + $0x240] sm:$0xff] }
 0x4d6   : > { %v1093_v0 = vpack.c.bf16 %v1076_v37, %v1075_v45  ;;  %1194 = vmatpush.bf16.msrb.mxu2 %v7719_v58  ;;  %v8771_v37 = vpop.permute.xlu0 %1301 }
 0x4d7   : > { %v1100_v36 = vpack.c.bf16 %v1090_v63, %v1089_v40  ;;  %v1083_v63 = vmax.f32 %v1056_v17, 0.0  ;;  %v1094_v19 = vpack.c.bf16 %v1078_v3, %v1077_v14  ;;  %10129 = vst [vmem:[#allocation45_spill] sm:$0xff] %v8771_v37 }
 0x4d9   : > { %1105 = vmatpush.bf16.msrb.mxu1 %v1100_v36  ;;  %v1082_v36 = vmax.f32 %v1053_v24, 0.0  ;;  %v1097_v40 = vpack.c.bf16 %v1084_v22, %v1083_v63 }
 0x4db   : > { %v1096_v54 = vpack.c.bf16 %v1082_v36, %v1081_v15 }
 0x4dd   : > { %1106 = vmatpush.bf16.msrb.mxu1 %v1099_v62  ;;  %v8747_v62 = vpop.permute.xlu2 %1285 }
 0x4de   : > { %10125 = vst [vmem:[#allocation41_spill] sm:$0xff] %v8747_v62 }
 0x4e1   : > { %1107 = vmatpush.bf16.msrb.mxu1 %v1098_v55 }
 0x4e5   : > { %1108 = vmatpush.bf16.msrb.mxu1 %v1097_v40  ;;  %v8749_v17 = vpop.permute.xlu2 %1102 }
 0x4e6   : > { %10126 = vst [vmem:[#allocation42_spill] sm:$0xff] %v8749_v17 }
 0x4e9   : > { %1109 = vmatpush.bf16.msrb.mxu1 %v1096_v54 }
 0x4ed   : > { %1110 = vmatpush.bf16.msrb.mxu1 %v1095_v39  ;;  %v8767_v39 = vpop.permute.xlu1 %1289 }
 0x4ee   : > { %10127 = vst [vmem:[#allocation43_spill] sm:$0xff] %v8767_v39 }
 0x4f1   : > { %1111 = vmatpush.bf16.msrb.mxu1 %v1094_v19 }
 0x4f5   : > { %1112 = vmatpush.bf16.msrb.mxu1 %v1093_v0  ;;  %v8769_v14 = vpop.permute.xlu1 %1281 }
 0x4f6   : > { %10128 = vst [vmem:[#allocation44_spill] sm:$0xff] %v8769_v14 }
 0x4f8   : > { %1113 = vmatmul.bf16.vlgmr.msrb.gmra.mxu1 %v1092_v13  ;;  %v8775_v13 = vpop.permute.xlu0 %1273 }
 0x4f9   : > { %1375 = vmatpush.bf16.msra.mxu1 %v8407_v5  ;;  %v7729_v5 = vld [vmem:[#allocation2 + $0x290] sm:$0xff]  ;;  %10131 = vst [vmem:[#allocation47_spill] sm:$0xff] %v8775_v13 }
 0x4fd   : > { %v8773_v45 = vpop.permute.xlu1 %1277 }
 0x4fe   : > { %10130 = vst [vmem:[#allocation46_spill] sm:$0xff] %v8773_v45 }
 0x508   : > { %7162 = vmatmul.msk.bf16.vlgmr.msra.gmra.mxu1 %vm413_vm1, %v7727_v11  ;;  %v7897_v11 = vld [vmem:[%s9950_s2 + $0x8] sm:$0xff] }
 0x509   : > { %1463 = vperm.xlu0 %7858, %v7897_v11  }
 0x518   : > { %7163 = vmatmul.msk.bf16.gmra.mxu1 %vm413_vm1, %v7728_v2  ;;  %v7898_v2 = vld [vmem:[%s9950_s2] sm:$0xff] }
 0x519   : > { %1459 = vperm.xlu2 %7857, %v7898_v2  }
 0x528   : > { %7164 = vmatmul.msk.bf16.gmra.mxu1 %vm413_vm1, %v7729_v5  ;;  %v7899_v5 = vld [vmem:[%s9950_s2 + $0x10] sm:$0xff] }
 0x529   : > { %1467 = vperm.xlu1 %7859, %v7899_v5  }
 0x538   : > { %7165 = vmatmul.msk.bf16.gmra.mxu1 %vm413_vm1, %v7730_v60 }
 0x548   : > { %7166 = vmatmul.msk.bf16.gmra.mxu1 %vm413_vm1, %v7731_v9  ;;  %v8789_v9 = vpop.permute.xlu1 %1269 }
 0x549   : > { %10132 = vst [vmem:[#allocation48_spill] sm:$0xff] %v8789_v9 }
 0x550   : > { %v8811_v5 = vpop.permute.xlu1 %1249 }
 0x551   : > { %10136 = vst [vmem:[#allocation52_spill] sm:$0xff] %v8811_v5 }
 0x558   : > { %7167 = vmatmul.msk.bf16.gmra.mxu1 %vm413_vm1, %v7732_v56  ;;  %v8794_v56 = vpop.permute.xlu0 %1265 }
 0x559   : > { %10134 = vst [vmem:[#allocation50_spill] sm:$0xff] %v8794_v56 }
 0x568   : > { %7168 = vmatmul.msk.bf16.gmra.mxu1 %vm413_vm1, %v7733_v25 }
 0x575   : > { %v1114_v24 = vpop.f32.mrf.mxu1 }
 0x576   : > { %v1115_v22 = vadd.f32 %v1114_v24, %v8749_v17  ;;  %v7900_v24 = vld [vmem:[%s9950_s2 + $0x30] sm:$0xff] }
 0x577   : > { %1483 = vperm.xlu0 %7858, %v7900_v24  }
 0x578   : > { %v1118_v55 = vmax.f32 %v1115_v22, 0.0  ;;  %7169 = vmatmul.msk.bf16.gmra.mxu1 %vm413_vm1, %v7734_v21  ;;  %v7901_v22 = vld [vmem:[%s9950_s2 + $0x18] sm:$0xff] }
 0x579   : > { %1471 = vperm.xlu2 %7857, %v7901_v22  }
 0x57a   : > { %v1119_v23 = vpack.c.bf16 %v1118_v55, %v1118_v55  ;;  %v7902_v55 = vld [vmem:[%s9950_s2 + $0x20] sm:$0xff] }
 0x57b   : > { %1475 = vperm.xlu1 %7859, %v7902_v55  }
 0x57c   : > { %1195 = vmatmul.bf16.vlgmr.msrb.gmra.mxu2 %v1119_v23 }
 0x57d   : > { %v1116_v63 = vpop.f32.mrf.mxu1 }
 0x585   : > { %v8753_v31 = vpop.f32.mrf.mxu1 }
 0x58d   : > { %v8755_v36 = vpop.f32.mrf.mxu1 }
 0x595   : > { %v8757_v40 = vpop.f32.mrf.mxu1 }
 0x59d   : > { %v8759_v16 = vpop.f32.mrf.mxu1 }
 0x5a5   : > { %v8761_v15 = vpop.f32.mrf.mxu1 }
 0x5ad   : > { %v8763_v28 = vpop.f32.mrf.mxu1 }
 0x5b5   : > { %v8765_v18 = vpop.f32.mrf.mxu1 }
 0x5bd   : > { %v1394_v54 = vpop.f32.mrf.mxu1 }
 0x5c5   : > { %v1397_v46 = vpop.f32.mrf.mxu1 }
 0x5c6   : > { %v1398_v11 = vadd.f32 %v1397_v46, %v8775_v13  ;;  %v7905_v46 = vld [vmem:[%s9950_s2 + $0x38] sm:$0xff] }
 0x5c7   : > { %1487 = vperm.xlu1 %7859, %v7905_v46   ;;  %v7735_v46 = vld [vmem:[#allocation2 + $0x2c0] sm:$0xff] }
 0x5cd   : > { %v1399_v61 = vpop.f32.mrf.mxu1 }
 0x5d5   : > { %v1402_v35 = vpop.f32.mrf.mxu1 }
 0x5d6   : > { %v1403_v23 = vadd.f32 %v1402_v35, %v8769_v14  ;;  %v7903_v35 = vld [vmem:[%s9950_s2 + $0x48] sm:$0xff] }
 0x5d7   : > { %1495 = vperm.xlu0 %7858, %v7903_v35   ;;  %v7910_v35 = vld [vmem:[%s9950_s2 + $0x58] sm:$0xff] }
 0x5d8   : > { %v1427_v2 = vmax.f32 %v1403_v23, 0.0 }
 0x5dd   : > { %v1404_v3 = vpop.f32.mrf.mxu1 }
 0x5de   : > { %v1405_v58 = vadd.f32 %v1404_v3, %v8747_v62  ;;  %v8807_v3 = vpop.permute.xlu2 %1257 }
 0x5df   : > { %10135 = vst [vmem:[#allocation51_spill] sm:$0xff] %v8807_v3 }
 0x5e5   : > { %v1407_v10 = vpop.f32.mrf.mxu1 }
 0x5e6   : > { %v1408_v8 = vadd.f32 %v1407_v10, %v8767_v39  ;;  %v1400_v10 = vadd.f32 %v1399_v61, %v8773_v45  ;;  %v7904_v61 = vld [vmem:[%s9950_s2 + $0x28] sm:$0xff] }
 0x5e7   : > { %1479 = vperm.xlu2 %7857, %v7904_v61  }
 0x5e8   : > { %v1429_v63 = vmax.f32 %v1408_v8, 0.0  ;;  %v1425_v8 = vmax.f32 %v1398_v11, 0.0 }
 0x5ed   : > { %v1409_v19 = vpop.f32.mrf.mxu1 }
 0x5ee   : > { %v1410_v7 = vadd.f32 %v1409_v19, %v8744_v27  ;;  %v1428_v19 = vmax.f32 %v1405_v58, 0.0 }
 0x5f0   : > { %v1430_v25 = vmax.f32 %v1410_v7, 0.0  ;;  %v1455_v7 = vpack.c.bf16 %v1428_v19, %v1427_v2 }
 0x5f5   : > { %v1412_v0 = vpop.f32.mrf.mxu1 }
 0x5f6   : > { %v1413_v60 = vadd.f32 %v1412_v0, %v8741_v48  ;;  %v1456_v0 = vpack.c.bf16 %v1430_v25, %v1429_v63  ;;  %v8829_v25 = vpop.permute.xlu2 %1253  ;;  %v7907_v63 = vld [vmem:[%s9950_s2 + $0x40] sm:$0xff] }
 0x5f7   : > { %10138 = vst [vmem:[#allocation54_spill] sm:$0xff] %v8829_v25  ;;  %v1385_v22 = vadd.f32 %v8759_v16, %v8829_v25  ;;  %1491 = vperm.xlu2 %7857, %v7907_v63   ;;  %v1383_v16 = vadd.f32 %v8757_v40, %v8811_v5  ;;  %v7909_v40 = vld [vmem:[%s9950_s2 + $0x78] sm:$0xff] }
 0x5f8   : > { %v1431_v43 = vmax.f32 %v1413_v60, 0.0  ;;  %v1395_v60 = vadd.f32 %v1394_v54, %v8789_v9  ;;  %v1393_v54 = vadd.f32 %v8765_v18, %v8794_v56  ;;  %v7906_v18 = vld [vmem:[%s9950_s2 + $0x60] sm:$0xff] }
 0x5f9   : > { %1507 = vperm.xlu0 %7858, %v7906_v18  }
 0x5fa   : > { %v1423_v24 = vmax.f32 %v1393_v54, 0.0  ;;  %v7912_v54 = vld [vmem:[%s9950_s2 + $0x70] sm:$0xff] }
 0x5fd   : > { %v1414_v1 = vpop.f32.mrf.mxu1 }
 0x5fe   : > { %v1415_v49 = vadd.f32 %v1414_v1, %v8771_v37  ;;  %v1426_v1 = vmax.f32 %v1400_v10, 0.0  ;;  %v8866_v18 = vpop.permute.xlu2 %1459 }
 0x5ff   : > { %v8791_v4 = vpop.f32.mrf.mxu2  ;;  %1503 = vperm.xlu2 %7857, %v7910_v35   ;;  %10141 = vst [vmem:[#allocation57_spill] sm:$0xff] %v8866_v18 }
 0x600   : > { %10133 = vst [vmem:[#allocation49_spill] sm:$0xff] %v8791_v4  ;;  %v1432_v26 = vmax.f32 %v1415_v49, 0.0  ;;  %v8817_v49 = vpop.permute.xlu0 %1261  ;;  %v1454_v58 = vpack.c.bf16 %v1426_v1, %v1425_v8  ;;  %v7736_v8 = vld [vmem:[#allocation2 + $0x2c8] sm:$0xff] }
 0x601   : > { %10137 = vst [vmem:[#allocation53_spill] sm:$0xff] %v8817_v49  ;;  %1519 = vperm.xlu0 %7858, %v7909_v40  }
 0x602   : > { %v1457_v21 = vpack.c.bf16 %v1432_v26, %v1431_v43  ;;  %v1390_v43 = vadd.f32 %v8763_v28, %v8817_v49  ;;  %v1424_v26 = vmax.f32 %v1395_v60, 0.0  ;;  %v8838_v28 = vpop.permute.xlu1 %1245  ;;  %v1419_v60 = vmax.f32 %v1383_v16, 0.0 }
 0x603   : > { %10139 = vst [vmem:[#allocation55_spill] sm:$0xff] %v8838_v28 }
 0x604   : > { %1570 = vmatpush.bf16.msra.mxu2 %v1457_v21  ;;  %v1388_v21 = vadd.f32 %v8761_v15, %v8807_v3  ;;  %v1422_v55 = vmax.f32 %v1390_v43, 0.0  ;;  %v1453_v23 = vpack.c.bf16 %v1424_v26, %v1423_v24  ;;  %v7908_v15 = vld [vmem:[%s9950_s2 + $0x50] sm:$0xff]  ;;  %v7738_v26 = vld [vmem:[#allocation2 + $0x2d8] sm:$0xff]  ;;  %v7743_v24 = vld [vmem:[#allocation2 + $0x300] sm:$0xff] }
 0x605   : > { %1499 = vperm.xlu1 %7859, %v7908_v15   ;;  %v7737_v43 = vld [vmem:[#allocation2 + $0x2d0] sm:$0xff]  ;;  %1685 = vmatpush.bf16.msrb.mxu0 %v7743_v24 }
 0x606   : > { %v1421_v10 = vmax.f32 %v1388_v21, 0.0  ;;  %v7740_v21 = vld [vmem:[#allocation2 + $0x2e8] sm:$0xff] }
 0x607   : > { %v1198_v12 = vpop.f32.mrf.mxu2  ;;  %1515 = vperm.xlu2 %7857, %v7912_v54  }
 0x608   : > { %1571 = vmatpush.bf16.msra.mxu2 %v1456_v0  ;;  %v8848_v19 = vpop.permute.xlu0 %1241  ;;  %v1380_v0 = vadd.f32 %v8755_v36, %v8838_v28  ;;  %v1420_v12 = vmax.f32 %v1385_v22, 0.0  ;;  %v1452_v11 = vpack.c.bf16 %v1422_v55, %v1421_v10  ;;  %v7911_v36 = vld [vmem:[%s9950_s2 + $0x68] sm:$0xff]  ;;  %v7741_v22 = vld [vmem:[#allocation2 + $0x2f0] sm:$0xff]  ;;  %v7742_v55 = vld [vmem:[#allocation2 + $0x2f8] sm:$0xff] }
 0x609   : > { %10140 = vst [vmem:[#allocation56_spill] sm:$0xff] %v8848_v19  ;;  %v1378_v2 = vadd.f32 %v8753_v31, %v8848_v19 }
 0x60a   : > { %v1418_v1 = vmax.f32 %v1380_v0, 0.0 }
 0x60b   : > { %v1417_v31 = vmax.f32 %v1378_v2, 0.0 }
 0x60c   : > { %1572 = vmatpush.bf16.msra.mxu2 %v1455_v7  ;;  %v1451_v7 = vpack.c.bf16 %v1420_v12, %v1419_v60  ;;  %v8873_v60 = vpop.permute.xlu1 %1467 }
 0x60d   : > { %1511 = vperm.xlu1 %7859, %v7911_v36   ;;  %v1450_v61 = vpack.c.bf16 %v1418_v1, %v1417_v31  ;;  %10143 = vst [vmem:[#allocation59_spill] sm:$0xff] %v8873_v60 }
 0x610   : > { %1573 = vmatpush.bf16.msra.mxu2 %v1454_v58  ;;  %v7739_v58 = vld [vmem:[#allocation2 + $0x2e0] sm:$0xff]  ;;  %v8869_v15 = vpop.permute.xlu0 %1463 }
 0x611   : > { %10142 = vst [vmem:[#allocation58_spill] sm:$0xff] %v8869_v15 }
 0x614   : > { %1574 = vmatpush.bf16.msra.mxu2 %v1453_v23  ;;  %v8880_v54 = vpop.permute.xlu1 %1475 }
 0x615   : > { %10145 = vst [vmem:[#allocation61_spill] sm:$0xff] %v8880_v54 }
 0x618   : > { %1575 = vmatpush.bf16.msra.mxu2 %v1452_v11 }
 0x61c   : > { %1576 = vmatpush.bf16.msra.mxu2 %v1451_v7  ;;  %v8876_v7 = vpop.permute.xlu2 %1471 }
 0x61d   : > { %10144 = vst [vmem:[#allocation60_spill] sm:$0xff] %v8876_v7 }
 0x620   : > { %1577 = vmatpush.bf16.msra.mxu2 %v1450_v61 }
 0x623   : > { %1578 = vmatmul.bf16.vlgmr.msra.gmra.mxu2 %v7735_v46 }
 0x633   : > { %1583 = vmatmul.bf16.gmra.mxu2 %v7736_v8 }
 0x643   : > { %1588 = vmatmul.bf16.gmra.mxu2 %v7737_v43  ;;  %v8883_v43 = vpop.permute.xlu2 %1479 }
 0x644   : > { %10146 = vst [vmem:[#allocation62_spill] sm:$0xff] %v8883_v43 }
 0x653   : > { %1593 = vmatmul.bf16.gmra.mxu2 %v7738_v26 }
 0x663   : > { %1598 = vmatmul.bf16.gmra.mxu2 %v7739_v58 }
 0x673   : > { %1603 = vmatmul.bf16.gmra.mxu2 %v7740_v21 }
 0x683   : > { %1608 = vmatmul.bf16.gmra.mxu2 %v7741_v22 }
 0x693   : > { %1613 = vmatmul.bf16.gmra.mxu2 %v7742_v55 }
 0x6a6   : > { %v1579_v23 = vpop.f32.mrf.mxu2 }
 0x6a7   : > { %v1580_v63 = vadd.f32 %v1579_v23, %v8866_v18  ;;  %v8887_v23 = vpop.permute.xlu0 %1483 }
 0x6a8   : > { %10147 = vst [vmem:[#allocation63_spill] sm:$0xff] %v8887_v23 }
 0x6a9   : > { %v1619_v0 = vmax.f32 %v1580_v63, 0.0 }
 0x6ae   : > { %v1581_v16 = vpop.f32.mrf.mxu2 }
 0x6af   : > { %v1582_v10 = vadd.f32 %v1581_v16, %v8869_v15  ;;  %v8890_v16 = vpop.permute.xlu1 %1487 }
 0x6b0   : > { %10148 = vst [vmem:[#allocation64_spill] sm:$0xff] %v8890_v16 }
 0x6b1   : > { %v1620_v12 = vmax.f32 %v1582_v10, 0.0 }
 0x6b3   : > { %v1635_v11 = vpack.c.bf16 %v1620_v12, %v1619_v0 }
 0x6b5   : > { %7206 = vmatmul.msk.bf16.vlgmr.msrb.gmra.mxu0 %vm525_vm2, %v1635_v11 }
 0x6b6   : > { %v1584_v2 = vpop.f32.mrf.mxu2 }
 0x6b7   : > { %v1585_v1 = vadd.f32 %v1584_v2, %v8873_v60 }
 0x6b9   : > { %v1621_v36 = vmax.f32 %v1585_v1, 0.0 }
 0x6be   : > { %v1586_v40 = vpop.f32.mrf.mxu2 }
 0x6bf   : > { %v1587_v35 = vadd.f32 %v1586_v40, %v8876_v7  ;;  %v8894_v40 = vpop.permute.xlu2 %1491 }
 0x6c0   : > { %10149 = vst [vmem:[#allocation65_spill] sm:$0xff] %v8894_v40 }
 0x6c1   : > { %v1622_v31 = vmax.f32 %v1587_v35, 0.0 }
 0x6c3   : > { %v1636_v61 = vpack.c.bf16 %v1622_v31, %v1621_v36  ;;  %v8897_v36 = vpop.permute.xlu0 %1495 }
 0x6c4   : > { %10150 = vst [vmem:[#allocation66_spill] sm:$0xff] %v8897_v36 }
 0x6c5   : > { %7207 = vmatmul.msk.bf16.gmra.mxu0 %vm525_vm2, %v1636_v61 }
 0x6c6   : > { %v1589_v46 = vpop.f32.mrf.mxu2 }
 0x6c7   : > { %v1590_v8 = vadd.f32 %v1589_v46, %v8880_v54 }
 0x6c9   : > { %v1623_v21 = vmax.f32 %v1590_v8, 0.0 }
 0x6ce   : > { %v1591_v26 = vpop.f32.mrf.mxu2 }
 0x6cf   : > { %v1592_v58 = vadd.f32 %v1591_v26, %v8883_v43 }
 0x6d1   : > { %v1624_v24 = vmax.f32 %v1592_v58, 0.0 }
 0x6d3   : > { %v1637_v22 = vpack.c.bf16 %v1624_v24, %v1623_v21  ;;  %v8901_v21 = vpop.permute.xlu1 %1499 }
 0x6d4   : > { %10151 = vst [vmem:[#allocation67_spill] sm:$0xff] %v8901_v21 }
 0x6d5   : > { %7208 = vmatmul.msk.bf16.gmra.mxu0 %vm525_vm2, %v1637_v22  ;;  %v8904_v22 = vpop.permute.xlu2 %1503 }
 0x6d6   : > { %v1594_v55 = vpop.f32.mrf.mxu2  ;;  %10152 = vst [vmem:[#allocation68_spill] sm:$0xff] %v8904_v22 }
 0x6d7   : > { %v1595_v63 = vadd.f32 %v1594_v55, %v8887_v23 }
 0x6d9   : > { %v1625_v12 = vmax.f32 %v1595_v63, 0.0 }
 0x6de   : > { %v1596_v10 = vpop.f32.mrf.mxu2 }
 0x6df   : > { %v1597_v0 = vadd.f32 %v1596_v10, %v8890_v16  ;;  %v7751_v10 = vld [vmem:[#allocation2 + $0x378] sm:$0xff] }
 0x6e0   : > { %1818 = vmatpush.bf16.msrb.mxu3 %v7751_v10 }
 0x6e1   : > { %v1626_v11 = vmax.f32 %v1597_v0, 0.0 }
 0x6e3   : > { %v1638_v2 = vpack.c.bf16 %v1626_v11, %v1625_v12 }
 0x6e5   : > { %7209 = vmatmul.msk.bf16.gmra.mxu0 %vm525_vm2, %v1638_v2  ;;  %v7750_v2 = vld [vmem:[#allocation2 + $0x370] sm:$0xff] }
 0x6e6   : > { %v1599_v1 = vpop.f32.mrf.mxu2  ;;  %1819 = vmatpush.bf16.msrb.mxu3 %v7750_v2  ;;  %v8915_v2 = vpop.permute.xlu2 %1515 }
 0x6e7   : > { %v1600_v35 = vadd.f32 %v1599_v1, %v8894_v40  ;;  %10155 = vst [vmem:[#allocation71_spill] sm:$0xff] %v8915_v2 }
 0x6e9   : > { %v1627_v46 = vmax.f32 %v1600_v35, 0.0  ;;  %v7749_v35 = vld [vmem:[#allocation2 + $0x368] sm:$0xff] }
 0x6ea   : > { %1820 = vmatpush.bf16.msrb.mxu3 %v7749_v35 }
 0x6ee   : > { %v1601_v31 = vpop.f32.mrf.mxu2 }
 0x6ef   : > { %v1602_v61 = vadd.f32 %v1601_v31, %v8897_v36  ;;  %v7748_v31 = vld [vmem:[#allocation2 + $0x360] sm:$0xff] }
 0x6f0   : > { %1821 = vmatpush.bf16.msrb.mxu3 %v7748_v31 }
 0x6f1   : > { %v1628_v8 = vmax.f32 %v1602_v61, 0.0  ;;  %v8908_v61 = vpop.permute.xlu0 %1507 }
 0x6f2   : > { %10153 = vst [vmem:[#allocation69_spill] sm:$0xff] %v8908_v61 }
 0x6f3   : > { %v1639_v26 = vpack.c.bf16 %v1628_v8, %v1627_v46  ;;  %v8911_v8 = vpop.permute.xlu1 %1511 }
 0x6f4   : > { %10154 = vst [vmem:[#allocation70_spill] sm:$0xff] %v8911_v8 }
 0x6f5   : > { %7210 = vmatmul.msk.bf16.gmra.mxu0 %vm525_vm2, %v1639_v26 }
 0x6f6   : > { %v1604_v58 = vpop.f32.mrf.mxu2 }
 0x6f7   : > { %v1605_v24 = vadd.f32 %v1604_v58, %v8901_v21 }
 0x6f9   : > { %v1629_v0 = vmax.f32 %v1605_v24, 0.0  ;;  %v7747_v24 = vld [vmem:[#allocation2 + $0x358] sm:$0xff]  ;;  %v8918_v31 = vpop.permute.xlu0 %1519 }
 0x6fa   : > { %1822 = vmatpush.bf16.msrb.mxu3 %v7747_v24  ;;  %10156 = vst [vmem:[#allocation72_spill] sm:$0xff] %v8918_v31 }
 0x6fe   : > { %v1606_v55 = vpop.f32.mrf.mxu2 }
 0x6ff   : > { %v1607_v63 = vadd.f32 %v1606_v55, %v8904_v22 }
 0x701   : > { %v1630_v12 = vmax.f32 %v1607_v63, 0.0 }
 0x703   : > { %v1640_v11 = vpack.c.bf16 %v1630_v12, %v1629_v0  ;;  %v7746_v0 = vld [vmem:[#allocation2 + $0x350] sm:$0xff] }
 0x704   : > { %1823 = vmatpush.bf16.msrb.mxu3 %v7746_v0 }
 0x705   : > { %7211 = vmatmul.msk.bf16.gmra.mxu0 %vm525_vm2, %v1640_v11  ;;  %v7745_v11 = vld [vmem:[#allocation2 + $0x348] sm:$0xff] }
 0x706   : > { %v1609_v1 = vpop.f32.mrf.mxu2 }
 0x707   : > { %v1610_v46 = vadd.f32 %v1609_v1, %v8908_v61  ;;  %v7744_v1 = vld [vmem:[#allocation2 + $0x340] sm:$0xff] }
 0x708   : > { %1824 = vmatpush.bf16.msrb.mxu3 %v7745_v11 }
 0x709   : > { %v1631_v55 = vmax.f32 %v1610_v46, 0.0 }
 0x70c   : > { %1825 = vmatpush.bf16.msrb.mxu3 %v7744_v1 }
 0x70e   : > { %v1611_v26 = vpop.f32.mrf.mxu2 }
 0x70f   : > { %v1612_v58 = vadd.f32 %v1611_v26, %v8911_v8 }
 0x711   : > { %v1632_v63 = vmax.f32 %v1612_v58, 0.0 }
 0x713   : > { %v1641_v10 = vpack.c.bf16 %v1632_v63, %v1631_v55 }
 0x715   : > { %7212 = vmatmul.msk.bf16.gmra.mxu0 %vm525_vm2, %v1641_v10  ;;  %v8925_v10 = vld [vmem:[%s9951_s3 + $0x4] ss:$0 sm:$0xff] }
 0x716   : > { %v1614_v12 = vpop.f32.mrf.mxu2 }
 0x717   : > { %v1615_v35 = vadd.f32 %v1614_v12, %v8915_v2 }
 0x719   : > { %v1633_v58 = vmax.f32 %v1615_v35, 0.0 }
 0x71e   : > { %v1616_v26 = vpop.f32.mrf.mxu2 }
 0x71f   : > { %v1617_v46 = vadd.f32 %v1616_v26, %v8918_v31 }
 0x721   : > { %v1634_v24 = vmax.f32 %v1617_v46, 0.0 }
 0x723   : > { %v1642_v55 = vpack.c.bf16 %v1634_v24, %v1633_v58 }
 0x725   : > { %7213 = vmatmul.msk.bf16.gmra.mxu0 %vm525_vm2, %v1642_v55 }
 0x732   : > { %v1687_v63 = vpop.f32.mrf.mxu0 }
 0x733   : > { %v1688_v0 = vadd.f32 %v8925_v10, %v1687_v63 }
 0x735   : > { %v1727_v4 = vmax.f32 %v1688_v0, 0.0 }
 0x73a   : > { %v1689_v12 = vpop.f32.mrf.mxu0 }
 0x73b   : > { %v1690_v11 = vadd.f32 %v8925_v10, %v1689_v12 }
 0x73d   : > { %v1728_v1 = vmax.f32 %v1690_v11, 0.0 }
 0x73f   : > { %v1743_v2 = vpack.c.bf16 %v1728_v1, %v1727_v4 }
 0x741   : > { %1826 = vmatmul.bf16.vlgmr.msrb.gmra.mxu3 %v1743_v2 }
 0x742   : > { %v1692_v35 = vpop.f32.mrf.mxu0 }
 0x743   : > { %v1693_v26 = vadd.f32 %v8925_v10, %v1692_v35 }
 0x745   : > { %v1729_v24 = vmax.f32 %v1693_v26, 0.0 }
 0x74a   : > { %v1694_v46 = vpop.f32.mrf.mxu0 }
 0x74b   : > { %v1695_v58 = vadd.f32 %v8925_v10, %v1694_v46 }
 0x74d   : > { %v1730_v55 = vmax.f32 %v1695_v58, 0.0 }
 0x74f   : > { %v1744_v31 = vpack.c.bf16 %v1730_v55, %v1729_v24 }
 0x751   : > { %1831 = vmatmul.bf16.gmra.mxu3 %v1744_v31 }
 0x752   : > { %v1697_v8 = vpop.f32.mrf.mxu0 }
 0x753   : > { %v1698_v63 = vadd.f32 %v8925_v10, %v1697_v8 }
 0x755   : > { %v1731_v0 = vmax.f32 %v1698_v63, 0.0 }
 0x75a   : > { %v1699_v61 = vpop.f32.mrf.mxu0 }
 0x75b   : > { %v1700_v12 = vadd.f32 %v8925_v10, %v1699_v61 }
 0x75d   : > { %v1732_v11 = vmax.f32 %v1700_v12, 0.0 }
 0x75f   : > { %v1745_v4 = vpack.c.bf16 %v1732_v11, %v1731_v0 }
 0x761   : > { %1836 = vmatmul.bf16.gmra.mxu3 %v1745_v4 }
 0x762   : > { %v1702_v2 = vpop.f32.mrf.mxu0 }
 0x763   : > { %v1703_v1 = vadd.f32 %v8925_v10, %v1702_v2 }
 0x765   : > { %v1733_v26 = vmax.f32 %v1703_v1, 0.0 }
 0x76a   : > { %v1704_v35 = vpop.f32.mrf.mxu0 }
 0x76b   : > { %v1705_v46 = vadd.f32 %v8925_v10, %v1704_v35 }
 0x76d   : > { %v1734_v58 = vmax.f32 %v1705_v46, 0.0 }
 0x76f   : > { %v1746_v24 = vpack.c.bf16 %v1734_v58, %v1733_v26  ;;  %v7759_v58 = vld [vmem:[#allocation2 + $0x5f8] sm:$0xff] }
 0x770   : > { %1956 = vmatpush.bf16.msrb.mxu1 %v7759_v58  ;;  %v7755_v58 = vld [vmem:[#allocation2 + $0x5d8] sm:$0xff] }
 0x771   : > { %1841 = vmatmul.bf16.gmra.mxu3 %v1746_v24  ;;  %v7767_v24 = vld [vmem:[#allocation2 + $0x638] sm:$0xff] }
 0x772   : > { %v1707_v31 = vpop.f32.mrf.mxu0  ;;  %2070 = vmatpush.bf16.msrb.mxu2 %v7767_v24  ;;  %v7763_v24 = vld [vmem:[#allocation2 + $0x618] sm:$0xff] }
 0x773   : > { %v1708_v8 = vadd.f32 %v8925_v10, %v1707_v31 }
 0x775   : > { %v1735_v63 = vmax.f32 %v1708_v8, 0.0  ;;  %v7766_v8 = vld [vmem:[#allocation2 + $0x630] sm:$0xff] }
 0x776   : > { %2071 = vmatpush.bf16.msrb.mxu2 %v7766_v8 }
 0x77a   : > { %v1709_v55 = vpop.f32.mrf.mxu0 }
 0x77b   : > { %v1710_v61 = vadd.f32 %v8925_v10, %v1709_v55  ;;  %v7758_v55 = vld [vmem:[#allocation2 + $0x5f0] sm:$0xff] }
 0x77c   : > { %1957 = vmatpush.bf16.msrb.mxu1 %v7758_v55  ;;  %v7754_v55 = vld [vmem:[#allocation2 + $0x5d0] sm:$0xff] }
 0x77d   : > { %v1736_v12 = vmax.f32 %v1710_v61, 0.0  ;;  %v7757_v61 = vld [vmem:[#allocation2 + $0x5e8] sm:$0xff] }
 0x77f   : > { %v1747_v0 = vpack.c.bf16 %v1736_v12, %v1735_v63  ;;  %v7765_v63 = vld [vmem:[#allocation2 + $0x628] sm:$0xff] }
 0x780   : > { %1958 = vmatpush.bf16.msrb.mxu1 %v7757_v61  ;;  %2072 = vmatpush.bf16.msrb.mxu2 %v7765_v63  ;;  %v7753_v63 = vld [vmem:[#allocation2 + $0x5c8] sm:$0xff] }
 0x781   : > { %1846 = vmatmul.bf16.gmra.mxu3 %v1747_v0 }
 0x782   : > { %v1712_v11 = vpop.f32.mrf.mxu0 }
 0x783   : > { %v1713_v4 = vadd.f32 %v8925_v10, %v1712_v11 }
 0x785   : > { %v1737_v1 = vmax.f32 %v1713_v4, 0.0  ;;  %v7756_v4 = vld [vmem:[#allocation2 + $0x5e0] sm:$0xff] }
 0x786   : > { %1959 = vmatpush.bf16.msrb.mxu1 %v7756_v4 }
 0x78a   : > { %v1714_v2 = vpop.f32.mrf.mxu0  ;;  %1960 = vmatpush.bf16.msrb.mxu1 %v7755_v58 }
 0x78b   : > { %v1715_v35 = vadd.f32 %v8925_v10, %v1714_v2  ;;  %v7764_v2 = vld [vmem:[#allocation2 + $0x620] sm:$0xff] }
 0x78c   : > { %2073 = vmatpush.bf16.msrb.mxu2 %v7764_v2  ;;  %v7752_v2 = vld [vmem:[#allocation2 + $0x5c0] sm:$0xff] }
 0x78d   : > { %v1738_v46 = vmax.f32 %v1715_v35, 0.0 }
 0x78e   : > { %1961 = vmatpush.bf16.msrb.mxu1 %v7754_v55 }
 0x78f   : > { %v1748_v26 = vpack.c.bf16 %v1738_v46, %v1737_v1 }
 0x790   : > { %2074 = vmatpush.bf16.msrb.mxu2 %v7763_v24 }
 0x791   : > { %1851 = vmatmul.bf16.gmra.mxu3 %v1748_v26 }
 0x792   : > { %v1717_v31 = vpop.f32.mrf.mxu0  ;;  %1962 = vmatpush.bf16.msrb.mxu1 %v7753_v63 }
 0x793   : > { %v1718_v12 = vadd.f32 %v8925_v10, %v1717_v31  ;;  %v7762_v31 = vld [vmem:[#allocation2 + $0x610] sm:$0xff] }
 0x794   : > { %2075 = vmatpush.bf16.msrb.mxu2 %v7762_v31 }
 0x795   : > { %v1739_v35 = vmax.f32 %v1718_v12, 0.0 }
 0x796   : > { %1963 = vmatpush.bf16.msrb.mxu1 %v7752_v2 }
 0x79a   : > { %v1719_v0 = vpop.f32.mrf.mxu0 }
 0x79b   : > { %v1720_v11 = vadd.f32 %v8925_v10, %v1719_v0  ;;  %v7761_v0 = vld [vmem:[#allocation2 + $0x608] sm:$0xff] }
 0x79c   : > { %2076 = vmatpush.bf16.msrb.mxu2 %v7761_v0 }
 0x79d   : > { %v1740_v1 = vmax.f32 %v1720_v11, 0.0 }
 0x79f   : > { %v1749_v46 = vpack.c.bf16 %v1740_v1, %v1739_v35  ;;  %v7760_v35 = vld [vmem:[#allocation2 + $0x600] sm:$0xff] }
 0x7a0   : > { %2077 = vmatpush.bf16.msrb.mxu2 %v7760_v35 }
 0x7a1   : > { %1856 = vmatmul.bf16.gmra.mxu3 %v1749_v46 }
 0x7a2   : > { %v1722_v26 = vpop.f32.mrf.mxu0 }
 0x7a3   : > { %v1723_v8 = vadd.f32 %v8925_v10, %v1722_v26  ;;  %v8946_v26 = vld [vmem:[%s9951_s3 + $0x5] ss:$0 sm:$0xff] }
 0x7a5   : > { %v1741_v11 = vmax.f32 %v1723_v8, 0.0 }
 0x7aa   : > { %v1724_v61 = vpop.f32.mrf.mxu0 }
 0x7ab   : > { %v1725_v12 = vadd.f32 %v8925_v10, %v1724_v61 }
 0x7ad   : > { %v1742_v4 = vmax.f32 %v1725_v12, 0.0 }
 0x7af   : > { %v1750_v1 = vpack.c.bf16 %v1742_v4, %v1741_v11 }
 0x7b1   : > { %1861 = vmatmul.bf16.gmra.mxu3 %v1750_v1 }
 0x7c4   : > { %v1827_v46 = vpop.f32.mrf.mxu3 }
 0x7c5   : > { %v1828_v58 = vadd.f32 %v8946_v26, %v1827_v46 }
 0x7c7   : > { %v1867_v55 = vmax.f32 %v1828_v58, 0.0 }
 0x7cc   : > { %v1829_v24 = vpop.f32.mrf.mxu3 }
 0x7cd   : > { %v1830_v10 = vadd.f32 %v8946_v26, %v1829_v24 }
 0x7cf   : > { %v1868_v31 = vmax.f32 %v1830_v10, 0.0 }
 0x7d1   : > { %v1883_v8 = vpack.c.bf16 %v1868_v31, %v1867_v55 }
 0x7d3   : > { %1964 = vmatmul.bf16.vlgmr.msrb.gmra.mxu1 %v1883_v8  ;;  %2078 = vmatmul.bf16.vlgmr.msrb.gmra.mxu2 %v1883_v8 }
 0x7d4   : > { %v1832_v61 = vpop.f32.mrf.mxu3 }
 0x7d5   : > { %v1833_v63 = vadd.f32 %v8946_v26, %v1832_v61 }
 0x7d7   : > { %v1869_v11 = vmax.f32 %v1833_v63, 0.0 }
 0x7dc   : > { %v1834_v0 = vpop.f32.mrf.mxu3 }
 0x7dd   : > { %v1835_v12 = vadd.f32 %v8946_v26, %v1834_v0 }
 0x7df   : > { %v1870_v4 = vmax.f32 %v1835_v12, 0.0 }
 0x7e1   : > { %v1884_v2 = vpack.c.bf16 %v1870_v4, %v1869_v11 }
 0x7e3   : > { %1969 = vmatmul.bf16.gmra.mxu1 %v1884_v2  ;;  %2083 = vmatmul.bf16.gmra.mxu2 %v1884_v2 }
 0x7e4   : > { %v1837_v35 = vpop.f32.mrf.mxu3 }
 0x7e5   : > { %v1838_v1 = vadd.f32 %v8946_v26, %v1837_v35 }
 0x7e7   : > { %v1871_v24 = vmax.f32 %v1838_v1, 0.0 }
 0x7ec   : > { %v1839_v46 = vpop.f32.mrf.mxu3 }
 0x7ed   : > { %v1840_v58 = vadd.f32 %v8946_v26, %v1839_v46 }
 0x7ef   : > { %v1872_v10 = vmax.f32 %v1840_v58, 0.0 }
 0x7f1   : > { %v1885_v55 = vpack.c.bf16 %v1872_v10, %v1871_v24 }
 0x7f3   : > { %1974 = vmatmul.bf16.gmra.mxu1 %v1885_v55  ;;  %2088 = vmatmul.bf16.gmra.mxu2 %v1885_v55 }
 0x7f4   : > { %v1842_v31 = vpop.f32.mrf.mxu3 }
 0x7f5   : > { %v1843_v8 = vadd.f32 %v8946_v26, %v1842_v31 }
 0x7f7   : > { %v1873_v0 = vmax.f32 %v1843_v8, 0.0 }
 0x7fc   : > { %v1844_v61 = vpop.f32.mrf.mxu3 }
 0x7fd   : > { %v1845_v63 = vadd.f32 %v8946_v26, %v1844_v61 }
 0x7ff   : > { %v1874_v12 = vmax.f32 %v1845_v63, 0.0 }
 0x801   : > { %v1886_v11 = vpack.c.bf16 %v1874_v12, %v1873_v0 }
 0x803   : > { %1979 = vmatmul.bf16.gmra.mxu1 %v1886_v11  ;;  %2093 = vmatmul.bf16.gmra.mxu2 %v1886_v11 }
 0x804   : > { %v1847_v4 = vpop.f32.mrf.mxu3 }
 0x805   : > { %v1848_v2 = vadd.f32 %v8946_v26, %v1847_v4 }
 0x807   : > { %v1875_v46 = vmax.f32 %v1848_v2, 0.0 }
 0x80c   : > { %v1849_v35 = vpop.f32.mrf.mxu3 }
 0x80d   : > { %v1850_v1 = vadd.f32 %v8946_v26, %v1849_v35 }
 0x80f   : > { %v1876_v58 = vmax.f32 %v1850_v1, 0.0 }
 0x811   : > { %v1887_v24 = vpack.c.bf16 %v1876_v58, %v1875_v46 }
 0x813   : > { %1984 = vmatmul.bf16.gmra.mxu1 %v1887_v24  ;;  %2098 = vmatmul.bf16.gmra.mxu2 %v1887_v24 }
 0x814   : > { %v1852_v10 = vpop.f32.mrf.mxu3 }
 0x815   : > { %v1853_v55 = vadd.f32 %v8946_v26, %v1852_v10 }
 0x817   : > { %v1877_v61 = vmax.f32 %v1853_v55, 0.0 }
 0x81c   : > { %v1854_v31 = vpop.f32.mrf.mxu3 }
 0x81d   : > { %v1855_v8 = vadd.f32 %v8946_v26, %v1854_v31 }
 0x81f   : > { %v1878_v63 = vmax.f32 %v1855_v8, 0.0 }
 0x821   : > { %v1888_v0 = vpack.c.bf16 %v1878_v63, %v1877_v61 }
 0x823   : > { %1989 = vmatmul.bf16.gmra.mxu1 %v1888_v0  ;;  %2103 = vmatmul.bf16.gmra.mxu2 %v1888_v0 }
 0x824   : > { %v1857_v12 = vpop.f32.mrf.mxu3 }
 0x825   : > { %v1858_v11 = vadd.f32 %v8946_v26, %v1857_v12 }
 0x827   : > { %v1879_v35 = vmax.f32 %v1858_v11, 0.0 }
 0x82c   : > { %v1859_v4 = vpop.f32.mrf.mxu3 }
 0x82d   : > { %v1860_v2 = vadd.f32 %v8946_v26, %v1859_v4 }
 0x82f   : > { %v1880_v1 = vmax.f32 %v1860_v2, 0.0 }
 0x831   : > { %v1889_v46 = vpack.c.bf16 %v1880_v1, %v1879_v35 }
 0x833   : > { %1994 = vmatmul.bf16.gmra.mxu1 %v1889_v46  ;;  %2108 = vmatmul.bf16.gmra.mxu2 %v1889_v46 }
 0x834   : > { %v1862_v58 = vpop.f32.mrf.mxu3 }
 0x835   : > { %v1863_v24 = vadd.f32 %v8946_v26, %v1862_v58 }
 0x837   : > { %v1881_v31 = vmax.f32 %v1863_v24, 0.0 }
 0x83c   : > { %v1864_v10 = vpop.f32.mrf.mxu3 }
 0x83d   : > { %v1865_v55 = vadd.f32 %v8946_v26, %v1864_v10 }
 0x83f   : > { %v1882_v8 = vmax.f32 %v1865_v55, 0.0 }
 0x841   : > { %v1890_v61 = vpack.c.bf16 %v1882_v8, %v1881_v31 }
 0x843   : > { %1999 = vmatmul.bf16.gmra.mxu1 %v1890_v61  ;;  %2113 = vmatmul.bf16.gmra.mxu2 %v1890_v61 }
 0x850   : > { %v8964_v63 = vpop.f32.mrf.mxu1 }
 0x856   : > { %v8966_v0 = vpop.f32.mrf.mxu2 }
 0x858   : > { %v8970_v11 = vpop.f32.mrf.mxu1 }
 0x85e   : > { %v8972_v4 = vpop.f32.mrf.mxu2 }
 0x860   : > { %v1970_v2 = vpop.f32.mrf.mxu1 }
 0x866   : > { %v2084_v35 = vpop.f32.mrf.mxu2 }
 0x867   : > { %v2121_v1 = vmax.f32 %v1970_v2, %v2084_v35 }
 0x868   : > { %v1972_v26 = vpop.f32.mrf.mxu1 }
 0x86e   : > { %v2086_v46 = vpop.f32.mrf.mxu2 }
 0x870   : > { %v1975_v58 = vpop.f32.mrf.mxu1 }
 0x876   : > { %v2089_v24 = vpop.f32.mrf.mxu2 }
 0x877   : > { %v2123_v10 = vmax.f32 %v1975_v58, %v2089_v24 }
 0x878   : > { %v1977_v55 = vpop.f32.mrf.mxu1 }
 0x87e   : > { %v2091_v31 = vpop.f32.mrf.mxu2 }
 0x880   : > { %v1980_v8 = vpop.f32.mrf.mxu1 }
 0x886   : > { %v2094_v61 = vpop.f32.mrf.mxu2 }
 0x887   : > { %v2125_v22 = vmax.f32 %v1980_v8, %v2094_v61 }
 0x888   : > { %v1982_v21 = vpop.f32.mrf.mxu1 }
 0x88e   : > { %v2096_v36 = vpop.f32.mrf.mxu2 }
 0x88f   : > { %v2126_v45 = vmax.f32 %v1982_v21, %v2096_v36 }
 0x890   : > { %v1985_v12 = vpop.f32.mrf.mxu1 }
 0x896   : > { %v2099_v40 = vpop.f32.mrf.mxu2 }
 0x897   : > { %v2127_v16 = vmax.f32 %v1985_v12, %v2099_v40 }
 0x898   : > { %v1987_v23 = vpop.f32.mrf.mxu1 }
 0x89e   : > { %v2101_v43 = vpop.f32.mrf.mxu2 }
 0x89f   : > { %v2128_v9 = vmax.f32 %v1987_v23, %v2101_v43 }
 0x8a0   : > { %v1990_v54 = vpop.f32.mrf.mxu1 }
 0x8a1   : > { %v2148_v14 = vpack.c.bf16 %v2128_v9, %v2127_v16 }
 0x8a6   : > { %v2104_v7 = vpop.f32.mrf.mxu2 }
 0x8a7   : > { %v2129_v56 = vmax.f32 %v1990_v54, %v2104_v7  ;;  %v7771_v7 = vld [vmem:[#allocation2 + $0x658] sm:$0xff] }
 0x8a8   : > { %v1992_v2 = vpop.f32.mrf.mxu1  ;;  %v7775_v54 = vld [vmem:[#allocation2 + $0x698] sm:$0xff] }
 0x8ae   : > { %v2106_v35 = vpop.f32.mrf.mxu2 }
 0x8af   : > { %v2130_v40 = vmax.f32 %v1992_v2, %v2106_v35 }
 0x8b0   : > { %v1995_v60 = vpop.f32.mrf.mxu1 }
 0x8b1   : > { %v2149_v13 = vpack.c.bf16 %v2130_v40, %v2129_v56  ;;  %v7768_v56 = vld [vmem:[#allocation2 + $0x640] sm:$0xff] }
 0x8b6   : > { %v2109_v15 = vpop.f32.mrf.mxu2 }
 0x8b7   : > { %v2131_v49 = vmax.f32 %v1995_v60, %v2109_v15  ;;  %v7770_v15 = vld [vmem:[#allocation2 + $0x650] sm:$0xff] }
 0x8b8   : > { %v1997_v18 = vpop.f32.mrf.mxu1  ;;  %v7774_v60 = vld [vmem:[#allocation2 + $0x690] sm:$0xff] }
 0x8be   : > { %v2111_v58 = vpop.f32.mrf.mxu2 }
 0x8bf   : > { %v2132_v25 = vmax.f32 %v1997_v18, %v2111_v58 }
 0x8c0   : > { %v2000_v24 = vpop.f32.mrf.mxu1 }
 0x8c1   : > { %v2150_v12 = vpack.c.bf16 %v2132_v25, %v2131_v49  ;;  %v7773_v25 = vld [vmem:[#allocation2 + $0x688] sm:$0xff] }
 0x8c6   : > { %v2114_v19 = vpop.f32.mrf.mxu2 }
 0x8c7   : > { %v2133_v8 = vmax.f32 %v2000_v24, %v2114_v19  ;;  %v2124_v19 = vmax.f32 %v1977_v55, %v2091_v31  ;;  %v8333_v55 = vmov 8  }
 0x8c8   : > { %v2002_v28 = vpop.f32.mrf.mxu1  ;;  %7862 = vset.pattern.permute.xlu0 %v8333_v55  ;;  %7861 = vset.pattern.permute.xlu2 %v8333_v55 }
 0x8c9   : > { %v2146_v18 = vpack.c.bf16 %v2124_v19, %v2123_v10  ;;  %v2292_v10 = vld [vmem:[%s9950_s2 + $0x20] sm:$0xff]  ;;  %7860 = vset.pattern.permute.xlu1 %v8333_v55  ;;  %v2295_v19 = vld [vmem:[%s9950_s2 + $0x38] sm:$0xff] }
 0x8ca   : > { %2318 = vperm.xlu0 %7862, %v2292_v10   ;;  %2333 = vperm.xlu2 %7861, %v2295_v19  }
 0x8ce   : > { %v2116_v5 = vpop.f32.mrf.mxu2 }
 0x8cf   : > { %v2134_v61 = vmax.f32 %v2002_v28, %v2116_v5  ;;  %v2147_v5 = vpack.c.bf16 %v2126_v45, %v2125_v22  ;;  %v2122_v28 = vmax.f32 %v1972_v26, %v2086_v46  ;;  %v7769_v45 = vld [vmem:[#allocation2 + $0x648] sm:$0xff] }
 0x8d1   : > { %v2151_v3 = vpack.c.bf16 %v2134_v61, %v2133_v8  ;;  %v2145_v49 = vpack.c.bf16 %v2122_v28, %v2121_v1 }
 0x8d3   : > { %2176 = vmatpush.bf16.msra.mxu0 %v2151_v3  ;;  %2238 = vmatpush.bf16.msra.mxu3 %v2151_v3  ;;  %v2120_v3 = vmax.f32 %v8970_v11, %v8972_v4 }
 0x8d7   : > { %2177 = vmatpush.bf16.msra.mxu0 %v2150_v12  ;;  %2239 = vmatpush.bf16.msra.mxu3 %v2150_v12  ;;  %v8985_v12 = vld [vmem:[%s9950_s2 + $0x8] sm:$0xff] }
 0x8d8   : > { %2303 = vperm.xlu0 %7862, %v8985_v12  }
 0x8db   : > { %2178 = vmatpush.bf16.msra.mxu0 %v2149_v13  ;;  %2240 = vmatpush.bf16.msra.mxu3 %v2149_v13  ;;  %v10157_v13 = vmax.f32 %v8964_v63, %v8966_v0 }
 0x8dd   : > { %v2144_v9 = vpack.c.bf16 %v2120_v3, %v10157_v13 }
 0x8df   : > { %2179 = vmatpush.bf16.msra.mxu0 %v2148_v14  ;;  %2241 = vmatpush.bf16.msra.mxu3 %v2148_v14  ;;  %v7772_v14 = vld [vmem:[#allocation2 + $0x680] sm:$0xff] }
 0x8e3   : > { %2180 = vmatpush.bf16.msra.mxu0 %v2147_v5  ;;  %2242 = vmatpush.bf16.msra.mxu3 %v2147_v5  ;;  %v2294_v5 = vld [vmem:[%s9950_s2 + $0x30] sm:$0xff] }
 0x8e4   : > { %2328 = vperm.xlu1 %7860, %v2294_v5  }
 0x8e7   : > { %2181 = vmatpush.bf16.msra.mxu0 %v2146_v18  ;;  %2243 = vmatpush.bf16.msra.mxu3 %v2146_v18 }
 0x8eb   : > { %2182 = vmatpush.bf16.msra.mxu0 %v2145_v49  ;;  %2244 = vmatpush.bf16.msra.mxu3 %v2145_v49 }
 0x8ef   : > { %2183 = vmatpush.bf16.msra.mxu0 %v2144_v9  ;;  %2245 = vmatpush.bf16.msra.mxu3 %v2144_v9 }
 0x8f2   : > { %2184 = vmatmul.bf16.vlgmr.msra.gmra.mxu0 %v7768_v56  ;;  %2246 = vmatmul.bf16.vlgmr.msra.gmra.mxu3 %v7772_v14  ;;  %v2290_v56 = vld [vmem:[%s9950_s2 + $0x10] sm:$0xff]  ;;  %v2293_v14 = vld [vmem:[%s9950_s2 + $0x28] sm:$0xff] }
 0x8f3   : > { %2308 = vperm.xlu2 %7861, %v2290_v56   ;;  %2323 = vperm.xlu1 %7860, %v2293_v14  }
 0x902   : > { %2189 = vmatmul.bf16.gmra.mxu0 %v7769_v45  ;;  %2251 = vmatmul.bf16.gmra.mxu3 %v7773_v25  ;;  %v7776_v25 = vld [vmem:[#allocation2 + $0x380] sm:$0xff] }
 0x912   : > { %2194 = vmatmul.bf16.gmra.mxu0 %v7770_v15  ;;  %2256 = vmatmul.bf16.gmra.mxu3 %v7774_v60  ;;  %v9004_v15 = vld [vmem:[%s9950_s2] sm:$0xff]  ;;  %v2291_v60 = vld [vmem:[%s9950_s2 + $0x18] sm:$0xff] }
 0x913   : > { %2298 = vperm.xlu2 %7861, %v9004_v15   ;;  %2313 = vperm.xlu1 %7860, %v2291_v60  }
 0x922   : > { %2199 = vmatmul.bf16.gmra.mxu0 %v7771_v7  ;;  %2261 = vmatmul.bf16.gmra.mxu3 %v7775_v54  ;;  %v7777_v7 = vld [vmem:[#allocation2 + $0x388] sm:$0xff]  ;;  %v7778_v54 = vld [vmem:[#allocation2 + $0x390] sm:$0xff] }
 0x96f   : > { %v2185_v43 = vpop.f32.mrf.mxu0 }
 0x975   : > { %v2247_v23 = vpop.f32.mrf.mxu3 }
 0x976   : > { %v2267_v16 = vmax.f32 %v2185_v43, %v2247_v23  ;;  %v7779_v43 = vld [vmem:[#allocation2 + $0x398] sm:$0xff] }
 0x977   : > { %v2187_v36 = vpop.f32.mrf.mxu0 }
 0x97d   : > { %v2249_v21 = vpop.f32.mrf.mxu3 }
 0x97e   : > { %v2268_v13 = vmax.f32 %v2187_v36, %v2249_v21 }
 0x97f   : > { %v2190_v22 = vpop.f32.mrf.mxu0 }
 0x980   : > { %v2284_v45 = vpack.c.bf16 %v2268_v13, %v2267_v16 }
 0x985   : > { %v2252_v63 = vpop.f32.mrf.mxu3 }
 0x986   : > { %v2269_v49 = vmax.f32 %v2190_v22, %v2252_v63  ;;  %v9013_v63 = vpop.permute.xlu1 %2328 }
 0x987   : > { %v2192_v0 = vpop.f32.mrf.mxu0 }
 0x98d   : > { %v2254_v11 = vpop.f32.mrf.mxu3 }
 0x98e   : > { %v2270_v18 = vmax.f32 %v2192_v0, %v2254_v11  ;;  %v9015_v11 = vpop.permute.xlu2 %2333 }
 0x98f   : > { %v2195_v4 = vpop.f32.mrf.mxu0 }
 0x990   : > { %v2285_v9 = vpack.c.bf16 %v2270_v18, %v2269_v49  ;;  %v7785_v18 = vld [vmem:[#allocation2 + $0x418] sm:$0xff] }
 0x991   : > { %2525 = vmatpush.bf16.msra.mxu1 %v7785_v18 }
 0x995   : > { %v2257_v1 = vpop.f32.mrf.mxu3 }
 0x996   : > { %v2271_v28 = vmax.f32 %v2195_v4, %v2257_v1  ;;  %v8334_v4 = vmov 9   ;;  %v9017_v1 = vpop.permute.xlu1 %2323  ;;  %v9023_v10 = vpop.permute.xlu2 %2308 }
 0x997   : > { %v2197_v26 = vpop.f32.mrf.mxu0  ;;  %7863 = vset.pattern.permute.xlu1 %v8334_v4  ;;  %7865 = vset.pattern.permute.xlu0 %v8334_v4 }
 0x998   : > { %2421 = vperm.xlu1 %7863, %v9004_v15   ;;  %2431 = vperm.xlu0 %7865, %v2290_v56  }
 0x999   : > { %7864 = vset.pattern.permute.xlu2 %v8334_v4 }
 0x99a   : > { %2426 = vperm.xlu2 %7864, %v8985_v12  }
 0x99d   : > { %v2259_v46 = vpop.f32.mrf.mxu3 }
 0x99e   : > { %v2272_v61 = vmax.f32 %v2197_v26, %v2259_v46  ;;  %v9021_v46 = vpop.permute.xlu0 %2318  ;;  %v9035_v13 = vpop.permute.xlu2 %2298 }
 0x99f   : > { %v2200_v31 = vpop.f32.mrf.mxu0 }
 0x9a0   : > { %v2286_v3 = vpack.c.bf16 %v2272_v61, %v2271_v28  ;;  %2436 = vperm.xlu1 %7863, %v2291_v60  }
 0x9a5   : > { %v2262_v2 = vpop.f32.mrf.mxu3 }
 0x9a6   : > { %v2273_v24 = vmax.f32 %v2200_v31, %v2262_v2  ;;  %v9032_v28 = vpop.permute.xlu0 %2303 }
 0x9a7   : > { %v2202_v35 = vpop.f32.mrf.mxu0 }
 0x9ad   : > { %v2264_v58 = vpop.f32.mrf.mxu3 }
 0x9ae   : > { %v2274_v8 = vmax.f32 %v2202_v35, %v2264_v58  ;;  %v9028_v58 = vpop.permute.xlu1 %2313 }
 0x9b0   : > { %v2287_v40 = vpack.c.bf16 %v2274_v8, %v2273_v24 }
 0x9b2   : > { %2373 = vmatpush.bf16.msrb.mxu0 %v2287_v40 }
 0x9b6   : > { %2374 = vmatpush.bf16.msrb.mxu0 %v2286_v3 }
 0x9ba   : > { %2375 = vmatpush.bf16.msrb.mxu0 %v2285_v9 }
 0x9be   : > { %2376 = vmatpush.bf16.msrb.mxu0 %v2284_v45 }
 0x9c1   : > { %7358 = vmatmul.msk.bf16.vlgmr.msrb.gmra.mxu0 %vm2356_vm11, %v7776_v25 }
 0x9d1   : > { %7359 = vmatmul.msk.bf16.gmra.mxu0 %vm2356_vm11, %v7777_v7 }
 0x9e1   : > { %7360 = vmatmul.msk.bf16.gmra.mxu0 %vm2356_vm11, %v7778_v54 }
 0x9f1   : > { %7361 = vmatmul.msk.bf16.gmra.mxu0 %vm2356_vm11, %v7779_v43 }
 0xa0a   : > { %v9041_v4 = vpop.permute.xlu1 %2421 }
 0xa3e   : > { %v2378_v23 = vpop.f32.mrf.mxu0 }
 0xa3f   : > { %v2379_v45 = vadd.f32 %v2378_v23, %v9035_v13 }
 0xa41   : > { %v2398_v54 = vmax.f32 %v2379_v45, 0.0  ;;  %v7788_v45 = vld [vmem:[#allocation2 + $0x450] sm:$0xff] }
 0xa46   : > { %v2380_v16 = vpop.f32.mrf.mxu0 }
 0xa47   : > { %v2381_v9 = vadd.f32 %v2380_v16, %v9032_v28  ;;  %v7783_v16 = vld [vmem:[#allocation2 + $0x408] sm:$0xff] }
 0xa49   : > { %v2399_v60 = vmax.f32 %v2381_v9, 0.0 }
 0xa4b   : > { %v2411_v43 = vpack.c.bf16 %v2399_v60, %v2398_v54  ;;  %v7786_v60 = vld [vmem:[#allocation2 + $0x440] sm:$0xff] }
 0xa4e   : > { %v2383_v36 = vpop.f32.mrf.mxu0 }
 0xa4f   : > { %v2384_v3 = vadd.f32 %v2383_v36, %v9023_v10  ;;  %v7781_v36 = vld [vmem:[#allocation2 + $0x3c8] sm:$0xff] }
 0xa51   : > { %v2400_v25 = vmax.f32 %v2384_v3, 0.0 }
 0xa56   : > { %v2385_v21 = vpop.f32.mrf.mxu0 }
 0xa57   : > { %v2386_v40 = vadd.f32 %v2385_v21, %v9028_v58  ;;  %v7780_v21 = vld [vmem:[#allocation2 + $0x3c0] sm:$0xff] }
 0xa59   : > { %v2401_v56 = vmax.f32 %v2386_v40, 0.0  ;;  %v9048_v40 = vpop.permute.xlu0 %2431 }
 0xa5b   : > { %v2412_v7 = vpack.c.bf16 %v2401_v56, %v2400_v25  ;;  %v7787_v25 = vld [vmem:[#allocation2 + $0x448] sm:$0xff] }
 0xa5e   : > { %v2388_v22 = vpop.f32.mrf.mxu0 }
 0xa5f   : > { %v2389_v24 = vadd.f32 %v2388_v22, %v9021_v46  ;;  %v7784_v22 = vld [vmem:[#allocation2 + $0x410] sm:$0xff] }
 0xa60   : > { %2526 = vmatpush.bf16.msra.mxu1 %v7784_v22 }
 0xa61   : > { %v2402_v49 = vmax.f32 %v2389_v24, 0.0 }
 0xa64   : > { %2527 = vmatpush.bf16.msra.mxu1 %v7783_v16 }
 0xa66   : > { %v2390_v0 = vpop.f32.mrf.mxu0 }
 0xa67   : > { %v2391_v2 = vadd.f32 %v2390_v0, %v9017_v1  ;;  %v7782_v0 = vld [vmem:[#allocation2 + $0x400] sm:$0xff] }
 0xa68   : > { %2528 = vmatpush.bf16.msra.mxu1 %v7782_v0 }
 0xa69   : > { %v2403_v19 = vmax.f32 %v2391_v2, 0.0 }
 0xa6b   : > { %v2413_v14 = vpack.c.bf16 %v2403_v19, %v2402_v49 }
 0xa6e   : > { %v2393_v26 = vpop.f32.mrf.mxu0 }
 0xa6f   : > { %v2394_v55 = vadd.f32 %v2393_v26, %v9013_v63  ;;  %v9043_v26 = vpop.permute.xlu2 %2426 }
 0xa71   : > { %v2404_v8 = vmax.f32 %v2394_v55, 0.0 }
 0xa76   : > { %v2395_v31 = vpop.f32.mrf.mxu0 }
 0xa77   : > { %v2396_v35 = vadd.f32 %v2395_v31, %v9015_v11 }
 0xa79   : > { %v2405_v61 = vmax.f32 %v2396_v35, 0.0 }
 0xa7b   : > { %v2414_v5 = vpack.c.bf16 %v2405_v61, %v2404_v8 }
 0xa7d   : > { %2459 = vmatpush.bf16.msrb.mxu3 %v2414_v5  ;;  %v9051_v5 = vpop.permute.xlu1 %2436 }
 0xa81   : > { %2460 = vmatpush.bf16.msrb.mxu3 %v2413_v14  ;;  %v7789_v14 = vld [vmem:[#allocation2 + $0x458] sm:$0xff] }
 0xa85   : > { %2461 = vmatpush.bf16.msrb.mxu3 %v2412_v7  ;;  %v7791_v7 = vld [vmem:[#allocation2 + $0x6c8] sm:$0xff] }
 0xa86   : > { %2642 = vmatpush.bf16.msra.mxu2 %v7791_v7 }
 0xa89   : > { %2462 = vmatpush.bf16.msrb.mxu3 %v2411_v43  ;;  %v7877_v43 = vld [vmem:[%s9951_s3 + $0x6] ss:$0 sm:$0xff] }
 0xa8c   : > { %7370 = vmatmul.msk.bf16.vlgmr.msrb.gmra.mxu3 %vm2356_vm11, %v7780_v21 }
 0xa8d   : > { %2591 = vmatpush.bf16.msra.mxu3 %v7789_v14 }
 0xa91   : > { %2592 = vmatpush.bf16.msra.mxu3 %v7788_v45 }
 0xa95   : > { %2593 = vmatpush.bf16.msra.mxu3 %v7787_v25 }
 0xa99   : > { %2594 = vmatpush.bf16.msra.mxu3 %v7786_v60 }
 0xa9c   : > { %7371 = vmatmul.msk.bf16.gmra.mxu3 %vm2356_vm11, %v7781_v36 }
 0xb0f   : > { %v2464_v23 = vpop.f32.mrf.mxu3 }
 0xb10   : > { %v2465_v55 = vadd.f32 %v2464_v23, %v9041_v4 }
 0xb12   : > { %v2474_v35 = vmax.f32 %v2465_v55, 0.0 }
 0xb17   : > { %v2466_v31 = vpop.f32.mrf.mxu3 }
 0xb18   : > { %v2467_v2 = vadd.f32 %v2466_v31, %v9043_v26 }
 0xb1a   : > { %v2475_v24 = vmax.f32 %v2467_v2, 0.0 }
 0xb1c   : > { %v2478_v8 = vpack.c.bf16 %v2475_v24, %v2474_v35 }
 0xb1e   : > { %7388 = vmatmul.msk.bf16.vlgmr.msra.gmra.mxu1 %vm2356_vm11, %v2478_v8 }
 0xb1f   : > { %v2469_v61 = vpop.f32.mrf.mxu3 }
 0xb20   : > { %v2470_v19 = vadd.f32 %v2469_v61, %v9048_v40 }
 0xb22   : > { %v2476_v49 = vmax.f32 %v2470_v19, 0.0  ;;  %v7793_v19 = vld [vmem:[#allocation2 + $0x708] sm:$0xff] }
 0xb23   : > { %2678 = vmatpush.bf16.msrb.mxu1 %v7793_v19  ;;  %v2792_v19 = vld [vmem:[%s9950_s2] sm:$0xf] }
 0xb27   : > { %v2471_v18 = vpop.f32.mrf.mxu3 }
 0xb28   : > { %v2472_v3 = vadd.f32 %v2471_v18, %v9051_v5  ;;  %v7790_v18 = vld [vmem:[#allocation2 + $0x6c0] sm:$0xff] }
 0xb29   : > { %2643 = vmatpush.bf16.msra.mxu2 %v7790_v18 }
 0xb2a   : > { %v2477_v9 = vmax.f32 %v2472_v3, 0.0  ;;  %v7792_v3 = vld [vmem:[#allocation2 + $0x700] sm:$0xff] }
 0xb2b   : > { %2679 = vmatpush.bf16.msrb.mxu1 %v7792_v3  ;;  %v10044_v3 = vmov 11  }
 0xb2c   : > { %v2479_v56 = vpack.c.bf16 %v2477_v9, %v2476_v49  ;;  %v9061_v49 = vld [vmem:[%s8387_s28 + $0x8] sm:$0xff] }
 0xb2d   : > { %2922 = vrot.lane.b32.xlu0 %v9061_v49, %s8321_s12 }
 0xb2e   : > { %7389 = vmatmul.msk.bf16.gmra.mxu1 %vm2356_vm11, %v2479_v56  ;;  %v7878_v56 = vld [vmem:[%s9951_s3 + $0x7] ss:$0 sm:$0xff] }
 0xb9b   : > { %v2530_v54 = vpop.f32.mrf.mxu1 }
 0xb9c   : > { %v2531_v21 = vadd.f32 %v7877_v43, %v2530_v54 }
 0xb9e   : > { %v2540_v16 = vmax.f32 %v2531_v21, 0.0 }
 0xba3   : > { %v2532_v36 = vpop.f32.mrf.mxu1 }
 0xba4   : > { %v2533_v22 = vadd.f32 %v7877_v43, %v2532_v36 }
 0xba6   : > { %v2541_v0 = vmax.f32 %v2533_v22, 0.0 }
 0xba8   : > { %v2544_v23 = vpack.c.bf16 %v2541_v0, %v2540_v16 }
 0xbaa   : > { %7406 = vmatmul.msk.bf16.vlgmr.msra.gmra.mxu3 %vm2356_vm11, %v2544_v23 }
 0xbab   : > { %v2535_v55 = vpop.f32.mrf.mxu1 }
 0xbac   : > { %v2536_v31 = vadd.f32 %v7877_v43, %v2535_v55 }
 0xbae   : > { %v2542_v24 = vmax.f32 %v2536_v31, 0.0 }
 0xbb3   : > { %v2537_v2 = vpop.f32.mrf.mxu1 }
 0xbb4   : > { %v2538_v35 = vadd.f32 %v7877_v43, %v2537_v2 }
 0xbb6   : > { %v2543_v8 = vmax.f32 %v2538_v35, 0.0  ;;  %v8335_v35 = vmov 10  }
 0xbb7   : > { %7867 = vset.pattern.permute.xlu1 %v8335_v35  ;;  %7866 = vset.pattern.permute.xlu2 %v8335_v35 }
 0xbb8   : > { %v2545_v61 = vpack.c.bf16 %v2543_v8, %v2542_v24  ;;  %2762 = vperm.xlu1 %7867, %v8985_v12   ;;  %2757 = vperm.xlu2 %7866, %v9004_v15   ;;  %v2923_v8 = vpop.permute.xlu0 %2922 }
 0xbba   : > { %7407 = vmatmul.msk.bf16.gmra.mxu3 %vm2356_vm11, %v2545_v61  ;;  %v2925_v61 = vsel %vm219_vm3, 0.0, %v2923_v8 }
 0xbc0   : > { %2930 = vrot.lane.b32.xlu1 %v2925_v61, %s8323_s14  ;;  %7868 = vset.pattern.permute.xlu2 %v10044_v3 }
 0xbc1   : > { %2795 = vperm.xlu2 %7868, %v2792_v19  }
 0xbc9   : > { %2927 = vrot.lane.b32.xlu2 %v2925_v61, %s8322_s13 }
 0xc2d   : > { %v2596_v9 = vpop.f32.mrf.mxu3 }
 0xc2e   : > { %v2597_v14 = vadd.f32 %v7878_v56, %v2596_v9 }
 0xc30   : > { %v2606_v60 = vmax.f32 %v2597_v14, 0.0 }
 0xc35   : > { %v2598_v45 = vpop.f32.mrf.mxu3 }
 0xc36   : > { %v2599_v25 = vadd.f32 %v7878_v56, %v2598_v45 }
 0xc38   : > { %v2607_v7 = vmax.f32 %v2599_v25, 0.0 }
 0xc3a   : > { %v2610_v54 = vpack.c.bf16 %v2607_v7, %v2606_v60 }
 0xc3c   : > { %7416 = vmatmul.msk.bf16.vlgmr.msra.gmra.mxu2 %vm2629_vm12, %v2610_v54  ;;  %7426 = vmatmul.msk.bf16.vlgmr.msrb.gmra.mxu1 %vm2629_vm12, %v2610_v54  ;;  %v7794_v54 = vld [vmem:[#allocation2 + $0x740] sm:$0xff] }
 0xc3d   : > { %v2601_v43 = vpop.f32.mrf.mxu3 }
 0xc3e   : > { %v2602_v21 = vadd.f32 %v7878_v56, %v2601_v43  ;;  %v7795_v43 = vld [vmem:[#allocation2 + $0x780] sm:$0xff] }
 0xc40   : > { %v2608_v16 = vmax.f32 %v2602_v21, 0.0  ;;  %v9083_v21 = vpop.permute.xlu2 %2757 }
 0xc45   : > { %v2603_v36 = vpop.f32.mrf.mxu3 }
 0xc46   : > { %v2604_v22 = vadd.f32 %v7878_v56, %v2603_v36  ;;  %v9085_v36 = vpop.permute.xlu1 %2762 }
 0xc48   : > { %v2609_v0 = vmax.f32 %v2604_v22, 0.0 }
 0xc4a   : > { %v2611_v23 = vpack.c.bf16 %v2609_v0, %v2608_v16  ;;  %v9087_v0 = vpop.permute.xlu2 %2795 }
 0xc4c   : > { %7417 = vmatmul.msk.bf16.gmra.mxu2 %vm2629_vm12, %v2611_v23  ;;  %7427 = vmatmul.msk.bf16.gmra.mxu1 %vm2629_vm12, %v2611_v23 }
 0xc4e   : > { %v2931_v23 = vpop.permute.xlu1 %2930 }
 0xcb9   : > { %v2681_v55 = vpop.f32.mrf.mxu1 }
 0xcbf   : > { %v2645_v31 = vpop.f32.mrf.mxu2 }
 0xcc0   : > { %v2691_v60 = vmax.f32 %v2645_v31, %v2681_v55  ;;  %v2934_v55 = vpack.c.bf16 %v2931_v23, %v2931_v23  ;;  %v2952_v23 = vpack.c.bf16 %v9061_v49, %v9061_v49 }
 0xcc1   : > { %v2683_v2 = vpop.f32.mrf.mxu1 }
 0xcc2   : > { %v2936_v19 = vsel %vm241_vm0, %v2934_v55, 0 }
 0xcc7   : > { %v2647_v24 = vpop.f32.mrf.mxu2 }
 0xcc8   : > { %v2692_v45 = vmax.f32 %v2647_v24, %v2683_v2 }
 0xcc9   : > { %v2686_v18 = vpop.f32.mrf.mxu1 }
 0xcca   : > { %v2698_v7 = vpack.c.bf16 %v2692_v45, %v2691_v60  ;;  %v7916_v45 = vld [vmem:[#allocation2 + $0x120] sm:$0xff]  ;;  %v7918_v60 = vld [vmem:[#allocation2 + $0x118] sm:$0xff] }
 0xccf   : > { %v2650_v9 = vpop.f32.mrf.mxu2 }
 0xcd0   : > { %v2693_v56 = vmax.f32 %v2650_v9, %v2686_v18  ;;  %v2928_v18 = vpop.permute.xlu2 %2927  ;;  %v7796_v9 = vld [vmem:[#allocation2 + $0x480] sm:$0xff] }
 0xcd1   : > { %v2688_v12 = vpop.f32.mrf.mxu1 }
 0xcd7   : > { %v2652_v15 = vpop.f32.mrf.mxu2 }
 0xcd8   : > { %v2694_v14 = vmax.f32 %v2652_v15, %v2688_v12  ;;  %v7457_v12 = vpack.c.bf16 %v2928_v18, %v2923_v8  ;;  %v7913_v15 = vld [vmem:[#allocation2 + $0x138] sm:$0xff]  ;;  %v7920_v8 = vld [vmem:[#allocation2 + $0x108] sm:$0xff] }
 0xcda   : > { %v2699_v25 = vpack.c.bf16 %v2694_v14, %v2693_v56  ;;  %v7914_v56 = vld [vmem:[#allocation2 + $0x130] sm:$0xff]  ;;  %v7915_v14 = vld [vmem:[#allocation2 + $0x128] sm:$0xff] }
 0xcdc   : > { %2714 = vmatpush.bf16.msra.mxu0 %v2699_v25  ;;  %2739 = vmatpush.bf16.msrb.mxu3 %v2699_v25  ;;  %v7917_v25 = vld [vmem:[#allocation2] sm:$0xf] }
 0xce0   : > { %2715 = vmatpush.bf16.msra.mxu0 %v2698_v7  ;;  %2740 = vmatpush.bf16.msrb.mxu3 %v2698_v7  ;;  %v7919_v7 = vld [vmem:[#allocation2 + $0x110] sm:$0xff] }
 0xce3   : > { %7432 = vmatmul.msk.bf16.vlgmr.msra.gmra.mxu0 %vm2629_vm12, %v7794_v54  ;;  %7437 = vmatmul.msk.bf16.vlgmr.msrb.gmra.mxu3 %vm2629_vm12, %v7795_v43  ;;  %v7921_v54 = vld [vmem:[#allocation2 + $0x100] sm:$0xff] }
 0xd60   : > { %v2717_v22 = vpop.f32.mrf.mxu0 }
 0xd66   : > { %v2742_v16 = vpop.f32.mrf.mxu3 }
 0xd67   : > { %v2747_v35 = vmax.f32 %v2717_v22, %v2742_v16 }
 0xd68   : > { %v2719_v31 = vpop.f32.mrf.mxu0 }
 0xd6e   : > { %v2744_v2 = vpop.f32.mrf.mxu3 }
 0xd6f   : > { %v2748_v24 = vmax.f32 %v2719_v31, %v2744_v2 }
 0xd71   : > { %v2752_v61 = vpack.c.bf16 %v2748_v24, %v2747_v35  ;;  %v9099_v24 = vsel %vm241_vm0, %v2952_v23, 0 }
 0xd73   : > { %2780 = vmatpush.bf16.msrb.mxu2 %v2752_v61  ;;  %v2790_v61 = vld [vmem:[#allocation2 + $0x4c0] sm:$0x3] }
 0xd76   : > { %7442 = vmatmul.msk.bf16.vlgmr.msrb.gmra.mxu2 %vm525_vm2, %v7796_v9  ;;  %v7922_v9 = vld [vmem:[#allocation2 + $0x40] sm:$0xff] }
 0xd77   : > { %2944 = vmatpush.bf16.msra.mxu2 %v2936_v19 }
 0xd7b   : > { %7458 = vmatpush.bf16.msk.msra.mxu2 %vm8576_vm6, %v7457_v12  ;;  %v7923_v12 = vld [vmem:[#allocation2 + $0x48] sm:$0xff] }
 0xd7f   : > { %3141 = vmatpush.bf16.msrb.mxu2 %v7913_v15  ;;  %v7924_v15 = vld [vmem:[#allocation2 + $0x50] sm:$0xff] }
 0xd83   : > { %3142 = vmatpush.bf16.msrb.mxu2 %v7914_v56  ;;  %v7925_v56 = vld [vmem:[#allocation2 + $0x58] sm:$0xff] }
 0xd86   : > { %7459 = vmatmul.msk.bf16.vlgmr.msra.gmra.mxu2 %vm237_vm7, %v7917_v25  ;;  %v7927_v25 = vld [vmem:[#allocation2 + $0x68] sm:$0xff] }
 0xd87   : > { %3143 = vmatpush.bf16.msrb.mxu2 %v7915_v14  ;;  %v7926_v14 = vld [vmem:[#allocation2 + $0x60] sm:$0xff] }
 0xd8b   : > { %3144 = vmatpush.bf16.msrb.mxu2 %v7916_v45  ;;  %v7797_v45 = vld [vmem:[#allocation2 + $0x500] sm:$0xff] }
 0xd8c   : > { %2837 = vmatpush.bf16.msra.mxu3 %v7797_v45  ;;  %v7936_v45 = vld [vmem:[#allocation2 + $0x250] sm:$0xff] }
 0xd8f   : > { %3145 = vmatpush.bf16.msrb.mxu2 %v7918_v60  ;;  %v7928_v60 = vld [vmem:[#allocation2 + $0x80] sm:$0xff] }
 0xd90   : > { %3060 = vmatpush.bf16.msrb.mxu3 %v7928_v60 }
 0xd93   : > { %3146 = vmatpush.bf16.msrb.mxu2 %v7919_v7  ;;  %v7929_v7 = vld [vmem:[#allocation2 + $0x70] sm:$0xff] }
 0xd97   : > { %3147 = vmatpush.bf16.msrb.mxu2 %v7920_v8 }
 0xd9b   : > { %3148 = vmatpush.bf16.msrb.mxu2 %v7921_v54 }
 0xdf9   : > { %v2782_v43 = vpop.f32.mrf.mxu2 }
 0xdfa   : > { %v2783_v22 = vadd.f32 %v2782_v43, %v9083_v21 }
 0xdfc   : > { %v2787_v31 = vmax.f32 %v2783_v22, 0.0  ;;  %v7930_v22 = vld [vmem:[#allocation2 + $0x78] sm:$0xff] }
 0xe01   : > { %v2784_v16 = vpop.f32.mrf.mxu2 }
 0xe02   : > { %v2785_v55 = vadd.f32 %v2784_v16, %v9085_v36 }
 0xe04   : > { %v2788_v2 = vmax.f32 %v2785_v55, 0.0  ;;  %v7931_v55 = vld [vmem:[#allocation2 + $0x278] sm:$0xff] }
 0xe06   : > { %v2791_v35 = vpack.c.bf16 %v2788_v2, %v2787_v31  ;;  %v7932_v31 = vld [vmem:[#allocation2 + $0x270] sm:$0xff] }
 0xe08   : > { %2808 = vmatpush.bf16.msrb.mxu0 %v2791_v35  ;;  %v7933_v35 = vld [vmem:[#allocation2 + $0x268] sm:$0xff] }
 0xe09   : > { %v9101_v19 = vpop.f32.mrf.mxu2 }
 0xe0b   : > { %7443 = vmatmul.msk.bf16.vlgmr.msrb.gmra.mxu0 %vm525_vm2, %v2790_v61  ;;  %v7934_v61 = vld [vmem:[#allocation2 + $0x260] sm:$0xff] }
 0xe0c   : > { %2963 = vmatpush.bf16.msra.mxu0 %v9099_v24 }
 0xe11   : > { %v2949_v18 = vpop.f32.mrf.mxu2 }
 0xe1b   : > { %7460 = vmatmul.msk.bf16.vlgmr.msra.gmra.mxu0 %vm413_vm1, %v7922_v9 }
 0xe2b   : > { %7461 = vmatmul.msk.bf16.gmra.mxu0 %vm413_vm1, %v7923_v12  ;;  %v7935_v12 = vld [vmem:[#allocation2 + $0x258] sm:$0xff] }
 0xe3b   : > { %7462 = vmatmul.msk.bf16.gmra.mxu0 %vm413_vm1, %v7924_v15 }
 0xe4b   : > { %7463 = vmatmul.msk.bf16.gmra.mxu0 %vm413_vm1, %v7925_v56 }
 0xe5b   : > { %7464 = vmatmul.msk.bf16.gmra.mxu0 %vm413_vm1, %v7926_v14 }
 0xe6b   : > { %7465 = vmatmul.msk.bf16.gmra.mxu0 %vm413_vm1, %v7927_v25 }
 0xe7b   : > { %7466 = vmatmul.msk.bf16.gmra.mxu0 %vm413_vm1, %v7929_v7  ;;  %v7937_v7 = vld [vmem:[#allocation2 + $0x248] sm:$0xff] }
 0xe88   : > { %v2810_v8 = vpop.f32.mrf.mxu0 }
 0xe89   : > { %v2811_v54 = vadd.f32 %v2810_v8, %v9087_v0  ;;  %v7938_v8 = vld [vmem:[#allocation2 + $0x240] sm:$0xff] }
 0xe8b   : > { %v2814_v43 = vmax.f32 %v2811_v54, 0.0  ;;  %7467 = vmatmul.msk.bf16.gmra.mxu0 %vm413_vm1, %v7930_v22 }
 0xe8d   : > { %v2815_v16 = vpack.c.bf16 %v2814_v43, %v2814_v43 }
 0xe8f   : > { %7448 = vmatmul.msk.bf16.vlgmr.msra.gmra.mxu3 %vm525_vm2, %v2815_v16 }
 0xe90   : > { %v2812_v23 = vpop.f32.mrf.mxu0  ;;  %3378 = vmatpush.bf16.msra.mxu3 %v7931_v55 }
 0xe94   : > { %3379 = vmatpush.bf16.msra.mxu3 %v7932_v31 }
 0xe98   : > { %v2965_v2 = vpop.f32.mrf.mxu0  ;;  %3380 = vmatpush.bf16.msra.mxu3 %v7933_v35 }
 0xe99   : > { %v2966_v18 = vadd.f32 %v2965_v2, %v8504_v29 }
 0xe9b   : > { %v3005_v56 = vmax.f32 %v2966_v18, 0.0 }
 0xe9c   : > { %3381 = vmatpush.bf16.msra.mxu3 %v7934_v61 }
 0xea0   : > { %v2967_v9 = vpop.f32.mrf.mxu0  ;;  %3382 = vmatpush.bf16.msra.mxu3 %v7935_v12 }
 0xea1   : > { %v2968_v15 = vadd.f32 %v2967_v9, %v8507_v32 }
 0xea3   : > { %v3006_v14 = vmax.f32 %v2968_v15, 0.0 }
 0xea4   : > { %3383 = vmatpush.bf16.msra.mxu3 %v7936_v45 }
 0xea5   : > { %v3021_v25 = vpack.c.bf16 %v3006_v14, %v3005_v56 }
 0xea7   : > { %7468 = vmatmul.msk.bf16.vlgmr.msrb.gmra.mxu3 %vm525_vm2, %v3021_v25 }
 0xea8   : > { %v2970_v60 = vpop.f32.mrf.mxu0  ;;  %3384 = vmatpush.bf16.msra.mxu3 %v7937_v7 }
 0xea9   : > { %v2971_v54 = vadd.f32 %v2970_v60, %v8510_v38 }
 0xeab   : > { %v3007_v16 = vmax.f32 %v2971_v54, 0.0 }
 0xeac   : > { %3385 = vmatpush.bf16.msra.mxu3 %v7938_v8 }
 0xeb0   : > { %v2972_v43 = vpop.f32.mrf.mxu0 }
 0xeb1   : > { %v2973_v22 = vadd.f32 %v2972_v43, %v8514_v41 }
 0xeb3   : > { %v3008_v23 = vmax.f32 %v2973_v22, 0.0 }
 0xeb5   : > { %v3022_v55 = vpack.c.bf16 %v3008_v23, %v3007_v16 }
 0xeb7   : > { %7469 = vmatmul.msk.bf16.gmra.mxu3 %vm525_vm2, %v3022_v55 }
 0xeb8   : > { %v2975_v31 = vpop.f32.mrf.mxu0 }
 0xeb9   : > { %v2976_v2 = vadd.f32 %v2975_v31, %v8517_v47 }
 0xebb   : > { %v3009_v18 = vmax.f32 %v2976_v2, 0.0 }
 0xec0   : > { %v2977_v35 = vpop.f32.mrf.mxu0 }
 0xec1   : > { %v2978_v61 = vadd.f32 %v2977_v35, %v8521_v50 }
 0xec3   : > { %v3010_v9 = vmax.f32 %v2978_v61, 0.0 }
 0xec5   : > { %v3023_v12 = vpack.c.bf16 %v3010_v9, %v3009_v18 }
 0xec7   : > { %7470 = vmatmul.msk.bf16.gmra.mxu3 %vm525_vm2, %v3023_v12  ;;  %v7798_v12 = vld [vmem:[#allocation2 + $0x540] sm:$0xff] }
 0xec8   : > { %v2980_v15 = vpop.f32.mrf.mxu0  ;;  %2866 = vmatpush.bf16.msra.mxu1 %v7798_v12 }
 0xec9   : > { %v2981_v56 = vadd.f32 %v2980_v15, %v8525_v57 }
 0xecb   : > { %v3011_v25 = vmax.f32 %v2981_v56, 0.0 }
 0xed0   : > { %v2982_v14 = vpop.f32.mrf.mxu0 }
 0xed1   : > { %v2983_v45 = vadd.f32 %v2982_v14, %v8528_v59 }
 0xed3   : > { %v3012_v60 = vmax.f32 %v2983_v45, 0.0 }
 0xed5   : > { %v3024_v7 = vpack.c.bf16 %v3012_v60, %v3011_v25 }
 0xed7   : > { %7471 = vmatmul.msk.bf16.gmra.mxu3 %vm525_vm2, %v3024_v7 }
 0xed8   : > { %v2985_v8 = vpop.f32.mrf.mxu0 }
 0xed9   : > { %v2986_v54 = vadd.f32 %v2985_v8, %v8532_v6 }
 0xedb   : > { %v3013_v16 = vmax.f32 %v2986_v54, 0.0 }
 0xee0   : > { %v2987_v43 = vpop.f32.mrf.mxu0 }
 0xee1   : > { %v2988_v22 = vadd.f32 %v2987_v43, %v8535_v20  ;;  %v10158_v43 = vld [vmem:[#allocation18_spill] sm:$0xff] }
 0xee3   : > { %v3014_v23 = vmax.f32 %v2988_v22, 0.0 }
 0xee5   : > { %v3025_v55 = vpack.c.bf16 %v3014_v23, %v3013_v16  ;;  %v7879_v16 = vld [vmem:[%s9951_s3 + $0x8] ss:$0 sm:$0xff] }
 0xee7   : > { %7472 = vmatmul.msk.bf16.gmra.mxu3 %vm525_vm2, %v3025_v55  ;;  %v10159_v55 = vld [vmem:[#allocation19_spill] sm:$0xff] }
 0xee8   : > { %v2990_v31 = vpop.f32.mrf.mxu0 }
 0xee9   : > { %v2991_v2 = vadd.f32 %v2990_v31, %v8539_v30 }
 0xeeb   : > { %v3015_v18 = vmax.f32 %v2991_v2, 0.0 }
 0xef0   : > { %v2992_v35 = vpop.f32.mrf.mxu0 }
 0xef1   : > { %v2993_v61 = vadd.f32 %v2992_v35, %v8542_v33 }
 0xef3   : > { %v3016_v9 = vmax.f32 %v2993_v61, 0.0 }
 0xef5   : > { %v3026_v15 = vpack.c.bf16 %v3016_v9, %v3015_v18 }
 0xef7   : > { %7473 = vmatmul.msk.bf16.gmra.mxu3 %vm525_vm2, %v3026_v15 }
 0xef8   : > { %v2995_v56 = vpop.f32.mrf.mxu0 }
 0xef9   : > { %v2996_v14 = vadd.f32 %v2995_v56, %v8546_v42 }
 0xefb   : > { %v3017_v60 = vmax.f32 %v2996_v14, 0.0 }
 0xf00   : > { %v2997_v45 = vpop.f32.mrf.mxu0 }
 0xf01   : > { %v2998_v25 = vadd.f32 %v2997_v45, %v8549_v44 }
 0xf03   : > { %v3018_v7 = vmax.f32 %v2998_v25, 0.0 }
 0xf05   : > { %v3027_v8 = vpack.c.bf16 %v3018_v7, %v3017_v60 }
 0xf07   : > { %7474 = vmatmul.msk.bf16.gmra.mxu3 %vm525_vm2, %v3027_v8 }
 0xf08   : > { %v3000_v54 = vpop.f32.mrf.mxu0 }
 0xf09   : > { %v3001_v22 = vadd.f32 %v3000_v54, %v10158_v43 }
 0xf0b   : > { %v3019_v35 = vmax.f32 %v3001_v22, 0.0 }
 0xf10   : > { %v3002_v23 = vpop.f32.mrf.mxu0 }
 0xf11   : > { %v3003_v31 = vadd.f32 %v3002_v23, %v10159_v55 }
 0xf12   : > { %v2839_v2 = vpop.f32.mrf.mxu3 }
 0xf13   : > { %v3020_v61 = vmax.f32 %v3003_v31, 0.0  ;;  %v2840_v18 = vadd.f32 %v7879_v16, %v2839_v2 }
 0xf15   : > { %v3028_v9 = vpack.c.bf16 %v3020_v61, %v3019_v35  ;;  %v2843_v12 = vmax.f32 %v2840_v18, 0.0 }
 0xf17   : > { %v2844_v15 = vpack.c.bf16 %v2843_v12, %v2843_v12  ;;  %7475 = vmatmul.msk.bf16.gmra.mxu3 %vm525_vm2, %v3028_v9  ;;  %v7939_v12 = vld [vmem:[%s9951_s3] ss:$0 sm:$0xff] }
 0xf19   : > { %7453 = vmatmul.msk.bf16.vlgmr.msra.gmra.mxu1 %vm525_vm2, %v2844_v15 }
 0xf1a   : > { %v2841_v56 = vpop.f32.mrf.mxu3 }
 0xf2a   : > { %v3062_v14 = vpop.f32.mrf.mxu3 }
 0xf32   : > { %v3064_v45 = vpop.f32.mrf.mxu3 }
 0xf3a   : > { %v3067_v25 = vpop.f32.mrf.mxu3 }
 0xf42   : > { %v3069_v60 = vpop.f32.mrf.mxu3 }
 0xf4a   : > { %v3072_v7 = vpop.f32.mrf.mxu3 }
 0xf52   : > { %v3074_v8 = vpop.f32.mrf.mxu3 }
 0xf5a   : > { %v3077_v54 = vpop.f32.mrf.mxu3 }
 0xf62   : > { %v3079_v23 = vpop.f32.mrf.mxu3 }
 0xf63   : > { %v3080_v38 = vadd.f32 %v7939_v12, %v3079_v23  ;;  %v3063_v23 = vadd.f32 %v7939_v12, %v3062_v14  ;;  %v2948_v14 = vadd.f32 %v9101_v19, %v8596_v34 }
 0xf6a   : > { %v3082_v3 = vpop.f32.mrf.mxu3 }
 0xf6b   : > { %v3083_v47 = vadd.f32 %v7939_v12, %v3082_v3 }
 0xf72   : > { %v3084_v22 = vpop.f32.mrf.mxu3 }
 0xf7a   : > { %v3087_v31 = vpop.f32.mrf.mxu3 }
 0xf7b   : > { %v3088_v59 = vadd.f32 %v7939_v12, %v3087_v31 }
 0xf7d   : > { %v3112_v41 = vmax.f32 %v3088_v59, 0.0  ;;  %v3065_v59 = vadd.f32 %v7939_v12, %v3064_v45 }
 0xf82   : > { %v3089_v16 = vpop.f32.mrf.mxu3 }
 0xf83   : > { %v3090_v30 = vadd.f32 %v7939_v12, %v3089_v16 }
 0xf85   : > { %v3113_v50 = vmax.f32 %v3090_v30, 0.0  ;;  %v3068_v30 = vadd.f32 %v7939_v12, %v3067_v25 }
 0xf87   : > { %v3123_v32 = vpack.c.bf16 %v3113_v50, %v3112_v41  ;;  %v3104_v41 = vmax.f32 %v3068_v30, 0.0  ;;  %v3102_v50 = vmax.f32 %v3063_v23, 0.0 }
 0xf8a   : > { %v3092_v2 = vpop.f32.mrf.mxu3 }
 0xf8b   : > { %v3093_v44 = vadd.f32 %v7939_v12, %v3092_v2  ;;  %v3075_v2 = vadd.f32 %v7939_v12, %v3074_v8 }
 0xf8d   : > { %v3114_v57 = vmax.f32 %v3093_v44, 0.0 }
 0xf92   : > { %v3094_v35 = vpop.f32.mrf.mxu3 }
 0xf93   : > { %v3095_v55 = vadd.f32 %v7939_v12, %v3094_v35  ;;  %v3078_v35 = vadd.f32 %v7939_v12, %v3077_v54 }
 0xf95   : > { %v3115_v20 = vmax.f32 %v3095_v55, 0.0  ;;  %v3073_v55 = vadd.f32 %v7939_v12, %v3072_v7  ;;  %v7940_v7 = vld [vmem:[#allocation2 + $0xc0] sm:$0xf] }
 0xf96   : > { %v9143_v61 = vpop.f32.mrf.mxu1 }
 0xf97   : > { %10160 = vst [vmem:[#allocation73_spill] sm:$0xff] %v9143_v61  ;;  %v3085_v61 = vadd.f32 %v7939_v12, %v3084_v22  ;;  %v2951_v22 = vmax.f32 %v2948_v14, 0.0  ;;  %v10162_v14 = vld [vmem:[#allocation23_spill] sm:$0xff] }
 0xf9a   : > { %v3097_v18 = vpop.f32.mrf.mxu3 }
 0xf9b   : > { %v3098_v15 = vadd.f32 %v7939_v12, %v3097_v18  ;;  %v3111_v18 = vmax.f32 %v3085_v61, 0.0  ;;  %v7941_v61 = vld [vmem:[%s9951_s3 + $0x1] ss:$0 sm:$0xff] }
 0xf9d   : > { %v3116_v42 = vmax.f32 %v3098_v15, 0.0  ;;  %v3155_v15 = vadd.f32 %v9061_v49, %v2951_v22  ;;  %v7944_v49 = vld [vmem:[#allocation2 + $0x188] sm:$0xff] }
 0xf9e   : > { %v2870_v9 = vpop.f32.mrf.mxu1 }
 0xf9f   : > { %v3124_v9 = vpack.c.bf16 %v3115_v20, %v3114_v57  ;;  %v3106_v57 = vmax.f32 %v3073_v55, 0.0  ;;  %v7945_v55 = vld [vmem:[#allocation2 + $0x190] sm:$0xff] }
 0xfa2   : > { %v3099_v56 = vpop.f32.mrf.mxu3 }
 0xfa3   : > { %v3100_v43 = vadd.f32 %v7939_v12, %v3099_v56  ;;  %v3110_v56 = vmax.f32 %v3083_v47, 0.0  ;;  %v3103_v47 = vmax.f32 %v3065_v59, 0.0  ;;  %v7950_v59 = vld [vmem:[#allocation2 + $0x1b8] sm:$0xff] }
 0xfa5   : > { %v3117_v33 = vmax.f32 %v3100_v43, 0.0  ;;  %v3109_v43 = vmax.f32 %v3080_v38, 0.0  ;;  %v3122_v16 = vpack.c.bf16 %v3111_v18, %v3110_v56  ;;  %v3118_v38 = vpack.c.bf16 %v3103_v47, %v3102_v50 }
 0xfa7   : > { %v3125_v6 = vpack.c.bf16 %v3117_v33, %v3116_v42  ;;  %v3108_v33 = vmax.f32 %v3078_v35, 0.0  ;;  %v3070_v42 = vadd.f32 %v7939_v12, %v3069_v60 }
 0xfa9   : > { %3126 = vmatpush.bf16.msrb.mxu1 %v3125_v6  ;;  %v3107_v6 = vmax.f32 %v3075_v2, 0.0  ;;  %v3121_v44 = vpack.c.bf16 %v3109_v43, %v3108_v33  ;;  %v3105_v20 = vmax.f32 %v3070_v42, 0.0  ;;  %v7942_v43 = vld [vmem:[#allocation2 + $0x300] sm:$0xff]  ;;  %v7946_v33 = vld [vmem:[#allocation2 + $0x198] sm:$0xff] }
 0xfaa   : > { %v7947_v42 = vld [vmem:[#allocation2 + $0x1a0] sm:$0xff] }
 0xfab   : > { %v3120_v3 = vpack.c.bf16 %v3107_v6, %v3106_v57  ;;  %v7948_v6 = vld [vmem:[#allocation2 + $0x1a8] sm:$0xff] }
 0xfad   : > { %3127 = vmatpush.bf16.msrb.mxu1 %v3124_v9 }
 0xfb1   : > { %3128 = vmatpush.bf16.msrb.mxu1 %v3123_v32  ;;  %v3119_v32 = vpack.c.bf16 %v3105_v20, %v3104_v41 }
 0xfb5   : > { %3129 = vmatpush.bf16.msrb.mxu1 %v3122_v16  ;;  %v7943_v16 = vld [vmem:[#allocation2 + $0x180] sm:$0xff] }
 0xfb9   : > { %3130 = vmatpush.bf16.msrb.mxu1 %v3121_v44  ;;  %v7949_v44 = vld [vmem:[#allocation2 + $0x1b0] sm:$0xff] }
 0xfbd   : > { %3131 = vmatpush.bf16.msrb.mxu1 %v3120_v3 }
 0xfc1   : > { %3132 = vmatpush.bf16.msrb.mxu1 %v3119_v32 }
 0xfc5   : > { %3133 = vmatpush.bf16.msrb.mxu1 %v3118_v38 }
 0xfc8   : > { %3134 = vmatmul.bf16.vlgmr.msrb.gmra.mxu1 %v7940_v7 }
0x1045   : > { %v3135_v60 = vpop.f32.mrf.mxu1 }
0x1046   : > { %v3136_v8 = vadd.f32 %v3135_v60, %v8593_v52  ;;  %v7951_v60 = vld [vmem:[#allocation2 + $0x1c0] sm:$0xff] }
0x1048   : > { %v3139_v25 = vmax.f32 %v3136_v8, 0.0  ;;  %v7952_v8 = vld [vmem:[#allocation2 + $0x140] sm:$0xf] }
0x104a   : > { %v3140_v54 = vpack.c.bf16 %v3139_v25, %v3139_v25  ;;  %v7953_v25 = vld [vmem:[#allocation2 + $0x378] sm:$0xff] }
0x104c   : > { %3149 = vmatmul.bf16.vlgmr.msrb.gmra.mxu2 %v3140_v54 }
0x104d   : > { %v3137_v45 = vpop.f32.mrf.mxu1 }
0x104e   : > { %v7954_v45 = vld [vmem:[#allocation2 + $0x370] sm:$0xff] }
0x10cf   : > { %v3150_v31 = vpop.f32.mrf.mxu2 }
0x10d0   : > { %v3151_v12 = vadd.f32 %v7941_v61, %v3150_v31  ;;  %v10163_v31 = vld [vmem:[#allocation22_spill] sm:$0xff] }
0x10d2   : > { %v3154_v9 = vmax.f32 %v3151_v12, 0.0  ;;  %v7955_v12 = vld [vmem:[#allocation2 + $0x368] sm:$0xff] }
0x10d4   : > { %v3156_v18 = vadd.f32 %v3155_v15, %v3154_v9 }
0x10d6   : > { %v9155_v35 = vmax.f32 %v3156_v18, 0.0  ;;  %v7956_v18 = vld [vmem:[#allocation2 + $0x360] sm:$0xff] }
0x10d7   : > { %v3152_v56 = vpop.f32.mrf.mxu2 }
0x10d8   : > { %10161 = vst [vmem:[#allocation74_spill] sm:$0xff] %v9155_v35  ;;  %3159 = vrot.lane.b32.xlu0 %v9155_v35, %s8327_s21  ;;  %v3189_v19 = vpack.c.bf16 %v9155_v35, %v9155_v35 }
0x10da   : > { %v3191_v2 = vsel %vm241_vm0, %v3189_v19, 0 }
0x10db   : > { %3200 = vmatpush.bf16.msra.mxu2 %v3191_v2  ;;  %v7957_v2 = vld [vmem:[#allocation2 + $0x358] sm:$0xff] }
0x10de   : > { %7481 = vmatmul.msk.bf16.vlgmr.msra.gmra.mxu2 %vm413_vm1, %v7943_v16  ;;  %v10164_v16 = vld [vmem:[#allocation25_spill] sm:$0xff] }
0x10df   : > { %3585 = vmatpush.bf16.msrb.mxu2 %v7942_v43  ;;  %v7958_v43 = vld [vmem:[#allocation2 + $0x350] sm:$0xff] }
0x10ee   : > { %7482 = vmatmul.msk.bf16.gmra.mxu2 %vm413_vm1, %v7944_v49 }
0x10fe   : > { %7483 = vmatmul.msk.bf16.gmra.mxu2 %vm413_vm1, %v7945_v55  ;;  %v10165_v55 = vld [vmem:[#allocation24_spill] sm:$0xff] }
0x110e   : > { %7484 = vmatmul.msk.bf16.gmra.mxu2 %vm413_vm1, %v7946_v33 }
0x111e   : > { %7485 = vmatmul.msk.bf16.gmra.mxu2 %vm413_vm1, %v7947_v42 }
0x112e   : > { %7486 = vmatmul.msk.bf16.gmra.mxu2 %vm413_vm1, %v7948_v6  ;;  %v7959_v6 = vld [vmem:[#allocation2 + $0x348] sm:$0xff] }
0x113e   : > { %7487 = vmatmul.msk.bf16.gmra.mxu2 %vm413_vm1, %v7949_v44 }
0x114a   : > { %v3160_v30 = vpop.permute.xlu0 %3159 }
0x114b   : > { %v3162_v57 = vsel %vm732_vm8, 0.0, %v3160_v30 }
0x114c   : > { %3164 = vrot.lane.b32.xlu2 %v3162_v57, %s8323_s14  ;;  %3167 = vrot.lane.b32.xlu1 %v3162_v57, %s8329_s22  ;;  %v7960_v57 = vld [vmem:[#allocation2 + $0x340] sm:$0xff] }
0x114e   : > { %7488 = vmatmul.msk.bf16.gmra.mxu2 %vm413_vm1, %v7950_v59 }
0x1161   : > { %v3202_v20 = vpop.f32.mrf.mxu2 }
0x1162   : > { %v3203_v61 = vadd.f32 %v3202_v20, %v10163_v31 }
0x1164   : > { %v3242_v9 = vmax.f32 %v3203_v61, 0.0 }
0x1169   : > { %v3204_v3 = vpop.f32.mrf.mxu2 }
0x116a   : > { %v3205_v22 = vadd.f32 %v3204_v3, %v10162_v14  ;;  %v10166_v3 = vld [vmem:[#allocation26_spill] sm:$0xff] }
0x116c   : > { %v3243_v15 = vmax.f32 %v3205_v22, 0.0 }
0x116e   : > { %v3258_v56 = vpack.c.bf16 %v3243_v15, %v3242_v9 }
0x1171   : > { %v3207_v23 = vpop.f32.mrf.mxu2 }
0x1172   : > { %v3208_v33 = vadd.f32 %v3207_v23, %v10165_v55  ;;  %v10168_v23 = vld [vmem:[#allocation29_spill] sm:$0xff] }
0x1179   : > { %v3209_v38 = vpop.f32.mrf.mxu2 }
0x117a   : > { %v3210_v49 = vadd.f32 %v3209_v38, %v10164_v16 }
0x117c   : > { %v3245_v44 = vmax.f32 %v3210_v49, 0.0 }
0x1181   : > { %v3212_v54 = vpop.f32.mrf.mxu2 }
0x1189   : > { %v3214_v19 = vpop.f32.mrf.mxu2 }
0x1191   : > { %v3217_v42 = vpop.f32.mrf.mxu2 }
0x1199   : > { %v3219_v20 = vpop.f32.mrf.mxu2 }
0x11a1   : > { %v3222_v38 = vpop.f32.mrf.mxu2 }
0x11a6   : > { %v3165_v32 = vpop.permute.xlu2 %3164 }
0x11a7   : > { %v7478_v7 = vpack.c.bf16 %v3165_v32, %v3160_v30  ;;  %v3244_v30 = vmax.f32 %v3208_v33, 0.0 }
0x11a9   : > { %v3259_v59 = vpack.c.bf16 %v3245_v44, %v3244_v30  ;;  %v10172_v44 = vld [vmem:[#allocation33_spill] sm:$0xff] }
0x11be   : > { %v3168_v41 = vpop.permute.xlu1 %3167 }
0x11bf   : > { %v3171_v47 = vpack.c.bf16 %v3168_v41, %v3168_v41  ;;  %v3215_v41 = vadd.f32 %v3214_v19, %v10166_v3 }
0x11c1   : > { %v3173_v50 = vsel %vm241_vm0, %v3171_v47, 0  ;;  %v10167_v47 = vld [vmem:[#allocation27_spill] sm:$0xff] }
0x11c2   : > { %3181 = vmatpush.bf16.msra.mxu1 %v3173_v50  ;;  %v3213_v32 = vadd.f32 %v3212_v54, %v10167_v47  ;;  %v3247_v50 = vmax.f32 %v3215_v41, 0.0  ;;  %v10171_v54 = vld [vmem:[#allocation31_spill] sm:$0xff] }
0x11c3   : > { %v3223_v19 = vadd.f32 %v3222_v38, %v10171_v54  ;;  %v10175_v38 = vld [vmem:[#allocation34_spill] sm:$0xff] }
0x11c5   : > { %v3250_v49 = vmax.f32 %v3223_v19, 0.0 }
0x11c6   : > { %7479 = vmatpush.bf16.msk.msra.mxu1 %vm8640_vm10, %v7478_v7  ;;  %v3246_v7 = vmax.f32 %v3213_v32, 0.0 }
0x11c9   : > { %7480 = vmatmul.msk.bf16.vlgmr.msra.gmra.mxu1 %vm237_vm7, %v7952_v8  ;;  %v3220_v8 = vadd.f32 %v3219_v20, %v10168_v23 }
0x11ca   : > { %3297 = vmatpush.bf16.msrb.mxu1 %v7951_v60  ;;  %v3260_v60 = vpack.c.bf16 %v3247_v50, %v3246_v7  ;;  %v10174_v50 = vld [vmem:[#allocation35_spill] sm:$0xff] }
0x11cb   : > { %v3249_v61 = vmax.f32 %v3220_v8, 0.0 }
0x11ce   : > { %3651 = vmatpush.bf16.msra.mxu1 %v7953_v25  ;;  %v3224_v25 = vpop.f32.mrf.mxu2 }
0x11d2   : > { %3652 = vmatpush.bf16.msra.mxu1 %v7954_v45  ;;  %v10169_v45 = vld [vmem:[#allocation28_spill] sm:$0xff] }
0x11d3   : > { %v3218_v22 = vadd.f32 %v3217_v42, %v10169_v45  ;;  %v10173_v42 = vld [vmem:[#allocation32_spill] sm:$0xff] }
0x11d6   : > { %3653 = vmatpush.bf16.msra.mxu1 %v7955_v12  ;;  %v3248_v12 = vmax.f32 %v3218_v22, 0.0  ;;  %v3227_v9 = vpop.f32.mrf.mxu2 }
0x11d8   : > { %v3261_v15 = vpack.c.bf16 %v3249_v61, %v3248_v12 }
0x11d9   : > { %7489 = vmatmul.msk.bf16.vlgmr.msrb.gmra.mxu1 %vm525_vm2, %v3258_v56 }
0x11da   : > { %3654 = vmatpush.bf16.msra.mxu1 %v7956_v18  ;;  %v10170_v18 = vld [vmem:[#allocation30_spill] sm:$0xff] }
0x11db   : > { %v3225_v56 = vadd.f32 %v3224_v25, %v10170_v18 }
0x11de   : > { %3655 = vmatpush.bf16.msra.mxu1 %v7957_v2  ;;  %v3251_v2 = vmax.f32 %v3225_v56, 0.0 }
0x11e0   : > { %v3262_v33 = vpack.c.bf16 %v3251_v2, %v3250_v49 }
0x11e2   : > { %3656 = vmatpush.bf16.msra.mxu1 %v7958_v43  ;;  %v3229_v43 = vpop.f32.mrf.mxu2 }
0x11e3   : > { %v3230_v30 = vadd.f32 %v3229_v43, %v10172_v44 }
0x11e6   : > { %3657 = vmatpush.bf16.msra.mxu1 %v7959_v6 }
0x11e9   : > { %7490 = vmatmul.msk.bf16.gmra.mxu1 %vm525_vm2, %v3259_v59  ;;  %v3253_v59 = vmax.f32 %v3230_v30, 0.0 }
0x11ea   : > { %3658 = vmatpush.bf16.msra.mxu1 %v7960_v57  ;;  %v3232_v6 = vpop.f32.mrf.mxu2  ;;  %v3228_v57 = vadd.f32 %v3227_v9, %v10173_v42  ;;  %v10177_v9 = vld [vmem:[#allocation37_spill] sm:$0xff] }
0x11ec   : > { %v3252_v20 = vmax.f32 %v3228_v57, 0.0 }
0x11ee   : > { %v3263_v41 = vpack.c.bf16 %v3253_v59, %v3252_v20 }
0x11f2   : > { %v3234_v32 = vpop.f32.mrf.mxu2 }
0x11f3   : > { %v3235_v7 = vadd.f32 %v3234_v32, %v10174_v50 }
0x11f5   : > { %v3255_v25 = vmax.f32 %v3235_v7, 0.0 }
0x11f9   : > { %7491 = vmatmul.msk.bf16.gmra.mxu1 %vm525_vm2, %v3260_v60  ;;  %v3233_v60 = vadd.f32 %v3232_v6, %v10175_v38 }
0x11fa   : > { %v3237_v8 = vpop.f32.mrf.mxu2 }
0x11fb   : > { %v3254_v22 = vmax.f32 %v3233_v60, 0.0  ;;  %v3238_v19 = vadd.f32 %v3237_v8, %v10177_v9 }
0x11fd   : > { %v3264_v61 = vpack.c.bf16 %v3255_v25, %v3254_v22  ;;  %v3256_v43 = vmax.f32 %v3238_v19, 0.0 }
0x1202   : > { %v3239_v12 = vpop.f32.mrf.mxu2 }
0x1209   : > { %7492 = vmatmul.msk.bf16.gmra.mxu1 %vm525_vm2, %v3261_v15  ;;  %v10176_v15 = vld [vmem:[#allocation36_spill] sm:$0xff] }
0x120a   : > { %v3240_v56 = vadd.f32 %v3239_v12, %v10176_v15 }
0x120c   : > { %v3257_v2 = vmax.f32 %v3240_v56, 0.0 }
0x1219   : > { %7493 = vmatmul.msk.bf16.gmra.mxu1 %vm525_vm2, %v3262_v33  ;;  %v3265_v33 = vpack.c.bf16 %v3257_v2, %v3256_v43  ;;  %v7961_v2 = vld [vmem:[%s9951_s3 + $0x2] ss:$0 sm:$0xff] }
0x1229   : > { %7494 = vmatmul.msk.bf16.gmra.mxu1 %vm525_vm2, %v3263_v41 }
0x1239   : > { %7495 = vmatmul.msk.bf16.gmra.mxu1 %vm525_vm2, %v3264_v61 }
0x1246   : > { %v9200_v49 = vpop.f32.mrf.mxu1 }
0x1247   : > { %10178 = vst [vmem:[#allocation75_spill] sm:$0xff] %v9200_v49 }
0x1249   : > { %7496 = vmatmul.msk.bf16.gmra.mxu1 %vm525_vm2, %v3265_v33 }
0x124e   : > { %v3186_v30 = vpop.f32.mrf.mxu1 }
0x1256   : > { %v3299_v6 = vpop.f32.mrf.mxu1 }
0x125e   : > { %v3301_v57 = vpop.f32.mrf.mxu1 }
0x1266   : > { %v3304_v59 = vpop.f32.mrf.mxu1 }
0x126e   : > { %v3306_v20 = vpop.f32.mrf.mxu1 }
0x1276   : > { %v3309_v41 = vpop.f32.mrf.mxu1 }
0x127e   : > { %v3311_v32 = vpop.f32.mrf.mxu1 }
0x1286   : > { %v3314_v7 = vpop.f32.mrf.mxu1 }
0x128e   : > { %v3316_v60 = vpop.f32.mrf.mxu1 }
0x128f   : > { %v3317_v55 = vadd.f32 %v7961_v2, %v3316_v60  ;;  %v7969_v60 = vld [vmem:[#allocation2 + $0x5d0] sm:$0xff] }
0x1296   : > { %v3319_v25 = vpop.f32.mrf.mxu1 }
0x1297   : > { %v3320_v47 = vadd.f32 %v7961_v2, %v3319_v25  ;;  %v7970_v25 = vld [vmem:[#allocation2 + $0x5c8] sm:$0xff] }
0x129e   : > { %v3321_v22 = vpop.f32.mrf.mxu1 }
0x129f   : > { %v3322_v18 = vadd.f32 %v7961_v2, %v3321_v22  ;;  %v7972_v22 = vld [vmem:[#allocation2 + $0x418] sm:$0xff] }
0x12a6   : > { %v3324_v61 = vpop.f32.mrf.mxu1 }
0x12a7   : > { %v3325_v44 = vadd.f32 %v7961_v2, %v3324_v61  ;;  %v7973_v61 = vld [vmem:[#allocation2 + $0x288] sm:$0xff] }
0x12a9   : > { %v3349_v3 = vmax.f32 %v3325_v44, 0.0  ;;  %v3302_v44 = vadd.f32 %v7961_v2, %v3301_v57  ;;  %v7965_v57 = vld [vmem:[#allocation2 + $0x5e8] sm:$0xff] }
0x12ae   : > { %v3326_v8 = vpop.f32.mrf.mxu1 }
0x12af   : > { %v3327_v38 = vadd.f32 %v7961_v2, %v3326_v8 }
0x12b1   : > { %v3350_v45 = vmax.f32 %v3327_v38, 0.0  ;;  %v3305_v38 = vadd.f32 %v7961_v2, %v3304_v59  ;;  %v7964_v59 = vld [vmem:[#allocation2 + $0x5f0] sm:$0xff] }
0x12b3   : > { %v3360_v16 = vpack.c.bf16 %v3350_v45, %v3349_v3  ;;  %v3341_v3 = vmax.f32 %v3305_v38, 0.0 }
0x12b6   : > { %v3329_v12 = vpop.f32.mrf.mxu1 }
0x12b7   : > { %v3330_v49 = vadd.f32 %v7961_v2, %v3329_v12  ;;  %v3312_v12 = vadd.f32 %v7961_v2, %v3311_v32  ;;  %v7966_v32 = vld [vmem:[#allocation2 + $0x5e0] sm:$0xff] }
0x12b9   : > { %v3351_v54 = vmax.f32 %v3330_v49, 0.0 }
0x12be   : > { %v3331_v56 = vpop.f32.mrf.mxu1 }
0x12bf   : > { %v3332_v30 = vadd.f32 %v7961_v2, %v3331_v56  ;;  %v3315_v56 = vadd.f32 %v7961_v2, %v3314_v7  ;;  %v7968_v7 = vld [vmem:[#allocation2 + $0x5d8] sm:$0xff] }
0x12c1   : > { %v3352_v50 = vmax.f32 %v3332_v30, 0.0  ;;  %v7975_v30 = vld [vmem:[#allocation2 + $0x408] sm:$0xff] }
0x12c3   : > { %v3361_v23 = vpack.c.bf16 %v3352_v50, %v3351_v54 }
0x12c6   : > { %v3334_v19 = vpop.f32.mrf.mxu1 }
0x12c7   : > { %v3335_v43 = vadd.f32 %v7961_v2, %v3334_v19  ;;  %v3348_v19 = vmax.f32 %v3322_v18, 0.0  ;;  %v3300_v18 = vadd.f32 %v7961_v2, %v3299_v6  ;;  %v7967_v6 = vld [vmem:[#allocation2 + $0x280] sm:$0xff] }
0x12c9   : > { %v3353_v9 = vmax.f32 %v3335_v43, 0.0  ;;  %v3310_v43 = vadd.f32 %v7961_v2, %v3309_v41  ;;  %v3339_v45 = vmax.f32 %v3300_v18, 0.0  ;;  %v7963_v41 = vld [vmem:[#allocation2 + $0x5f8] sm:$0xff] }
0x12cb   : > { %v3343_v54 = vmax.f32 %v3310_v43, 0.0 }
0x12ce   : > { %v3336_v33 = vpop.f32.mrf.mxu1 }
0x12cf   : > { %v3337_v35 = vadd.f32 %v7961_v2, %v3336_v33  ;;  %v3347_v33 = vmax.f32 %v3320_v47, 0.0  ;;  %v3340_v47 = vmax.f32 %v3302_v44, 0.0 }
0x12d1   : > { %v3354_v15 = vmax.f32 %v3337_v35, 0.0  ;;  %v3346_v35 = vmax.f32 %v3317_v55, 0.0  ;;  %v3359_v8 = vpack.c.bf16 %v3348_v19, %v3347_v33  ;;  %v3355_v55 = vpack.c.bf16 %v3340_v47, %v3339_v45  ;;  %v7976_v19 = vld [vmem:[#allocation2 + $0x400] sm:$0xff]  ;;  %v7978_v33 = vld [vmem:[#allocation2 + $0x298] sm:$0xff] }
0x12d3   : > { %v3362_v42 = vpack.c.bf16 %v3354_v15, %v3353_v9  ;;  %v3345_v15 = vmax.f32 %v3315_v56, 0.0  ;;  %v3307_v9 = vadd.f32 %v7961_v2, %v3306_v20  ;;  %v7962_v20 = vld [vmem:[#allocation2 + $0x200] sm:$0xf]  ;;  %v7974_v2 = vld [vmem:[#allocation2 + $0x410] sm:$0xff] }
0x12d4   : > { %v7977_v56 = vld [vmem:[#allocation2 + $0x290] sm:$0xff] }
0x12d5   : > { %3363 = vmatpush.bf16.msrb.mxu0 %v3362_v42  ;;  %v3344_v42 = vmax.f32 %v3312_v12, 0.0  ;;  %v3358_v49 = vpack.c.bf16 %v3346_v35, %v3345_v15  ;;  %v7979_v12 = vld [vmem:[#allocation2 + $0x2a0] sm:$0xff]  ;;  %v7980_v35 = vld [vmem:[#allocation2 + $0x2a8] sm:$0xff] }
0x12d7   : > { %v3357_v50 = vpack.c.bf16 %v3344_v42, %v3343_v54  ;;  %v7982_v42 = vld [vmem:[#allocation2 + $0x2b8] sm:$0xff] }
0x12d9   : > { %3364 = vmatpush.bf16.msrb.mxu0 %v3361_v23  ;;  %v3342_v23 = vmax.f32 %v3307_v9, 0.0 }
0x12dd   : > { %3365 = vmatpush.bf16.msrb.mxu0 %v3360_v16  ;;  %v3356_v16 = vpack.c.bf16 %v3342_v23, %v3341_v3 }
0x12e1   : > { %3366 = vmatpush.bf16.msrb.mxu0 %v3359_v8  ;;  %v7981_v8 = vld [vmem:[#allocation2 + $0x2b0] sm:$0xff] }
0x12e5   : > { %3367 = vmatpush.bf16.msrb.mxu0 %v3358_v49 }
0x12e9   : > { %3368 = vmatpush.bf16.msrb.mxu0 %v3357_v50 }
0x12ed   : > { %3369 = vmatpush.bf16.msrb.mxu0 %v3356_v16 }
0x12f1   : > { %3370 = vmatpush.bf16.msrb.mxu0 %v3355_v55 }
0x12f4   : > { %3371 = vmatmul.bf16.vlgmr.msrb.gmra.mxu0 %v7962_v20 }
0x12f5   : > { %3415 = vmatpush.bf16.msra.mxu0 %v9099_v24  ;;  %v7971_v24 = vld [vmem:[#allocation2 + $0x5c0] sm:$0xff] }
0x12f9   : > { %3724 = vmatpush.bf16.msrb.mxu0 %v7963_v41 }
0x12fd   : > { %3725 = vmatpush.bf16.msrb.mxu0 %v7964_v59 }
0x1301   : > { %3726 = vmatpush.bf16.msrb.mxu0 %v7965_v57 }
0x1304   : > { %7497 = vmatmul.msk.bf16.vlgmr.msra.gmra.mxu0 %vm413_vm1, %v7967_v6 }
0x1305   : > { %3727 = vmatpush.bf16.msrb.mxu0 %v7966_v32 }
0x1309   : > { %3728 = vmatpush.bf16.msrb.mxu0 %v7968_v7 }
0x130d   : > { %3729 = vmatpush.bf16.msrb.mxu0 %v7969_v60 }
0x1311   : > { %3730 = vmatpush.bf16.msrb.mxu0 %v7970_v25 }
0x1314   : > { %7498 = vmatmul.msk.bf16.gmra.mxu0 %vm413_vm1, %v7973_v61 }
0x1315   : > { %3731 = vmatpush.bf16.msrb.mxu0 %v7971_v24 }
0x1319   : > { %3992 = vmatpush.bf16.msra.mxu0 %v7972_v22 }
0x131d   : > { %3993 = vmatpush.bf16.msra.mxu0 %v7974_v2 }
0x1321   : > { %3994 = vmatpush.bf16.msra.mxu0 %v7975_v30 }
0x1324   : > { %7499 = vmatmul.msk.bf16.gmra.mxu0 %vm413_vm1, %v7977_v56 }
0x1325   : > { %3995 = vmatpush.bf16.msra.mxu0 %v7976_v19 }
0x1334   : > { %7500 = vmatmul.msk.bf16.gmra.mxu0 %vm413_vm1, %v7978_v33  ;;  %v10180_v33 = vld [vmem:[#allocation44_spill] sm:$0xff] }
0x1344   : > { %7501 = vmatmul.msk.bf16.gmra.mxu0 %vm413_vm1, %v7979_v12 }
0x1354   : > { %7502 = vmatmul.msk.bf16.gmra.mxu0 %vm413_vm1, %v7980_v35 }
0x1364   : > { %7503 = vmatmul.msk.bf16.gmra.mxu0 %vm413_vm1, %v7981_v8  ;;  %v10181_v8 = vld [vmem:[#allocation46_spill] sm:$0xff] }
0x1371   : > { %v3372_v43 = vpop.f32.mrf.mxu0 }
0x1372   : > { %v3373_v15 = vadd.f32 %v3372_v43, %v8749_v17 }
0x1374   : > { %v3376_v9 = vmax.f32 %v3373_v15, 0.0  ;;  %7504 = vmatmul.msk.bf16.gmra.mxu0 %vm413_vm1, %v7982_v42 }
0x1376   : > { %v3377_v49 = vpack.c.bf16 %v3376_v9, %v3376_v9 }
0x1378   : > { %3386 = vmatmul.bf16.vlgmr.msra.gmra.mxu3 %v3377_v49  ;;  %v10182_v49 = vld [vmem:[#allocation47_spill] sm:$0xff] }
0x1379   : > { %v3374_v38 = vpop.f32.mrf.mxu0 }
0x1381   : > { %v3417_v54 = vpop.f32.mrf.mxu0 }
0x1389   : > { %v3419_v44 = vpop.f32.mrf.mxu0 }
0x1391   : > { %v3422_v23 = vpop.f32.mrf.mxu0 }
0x1399   : > { %v3424_v50 = vpop.f32.mrf.mxu0 }
0x13a1   : > { %v3427_v18 = vpop.f32.mrf.mxu0 }
0x13a9   : > { %v3429_v3 = vpop.f32.mrf.mxu0 }
0x13b1   : > { %v3432_v47 = vpop.f32.mrf.mxu0 }
0x13b9   : > { %v3434_v16 = vpop.f32.mrf.mxu0 }
0x13c1   : > { %v3437_v45 = vpop.f32.mrf.mxu0 }
0x13c2   : > { %v3438_v38 = vadd.f32 %v3437_v45, %v10182_v49 }
0x13c9   : > { %v3439_v55 = vpop.f32.mrf.mxu0 }
0x13ca   : > { %v3440_v43 = vadd.f32 %v3439_v55, %v10181_v8  ;;  %v10186_v55 = vld [vmem:[#allocation51_spill] sm:$0xff] }
0x13d1   : > { %v3442_v20 = vpop.f32.mrf.mxu0 }
0x13d2   : > { %v3443_v12 = vadd.f32 %v3442_v20, %v10180_v33  ;;  %v10185_v20 = vld [vmem:[#allocation53_spill] sm:$0xff] }
0x13d9   : > { %v3444_v41 = vpop.f32.mrf.mxu0 }
0x13da   : > { %v3445_v30 = vadd.f32 %v3444_v41, %v8747_v62  ;;  %v10184_v41 = vld [vmem:[#allocation50_spill] sm:$0xff] }
0x13dc   : > { %v3468_v15 = vmax.f32 %v3445_v30, 0.0  ;;  %v3428_v30 = vadd.f32 %v3427_v18, %v10186_v55 }
0x13e1   : > { %v3447_v59 = vpop.f32.mrf.mxu0 }
0x13e2   : > { %v3448_v22 = vadd.f32 %v3447_v59, %v8767_v39  ;;  %v10183_v59 = vld [vmem:[#allocation48_spill] sm:$0xff] }
0x13e4   : > { %v3469_v35 = vmax.f32 %v3448_v22, 0.0  ;;  %v3430_v22 = vadd.f32 %v3429_v3, %v10185_v20 }
0x13e9   : > { %v3449_v57 = vpop.f32.mrf.mxu0 }
0x13ea   : > { %v3450_v60 = vadd.f32 %v3449_v57, %v8744_v27  ;;  %v3467_v57 = vmax.f32 %v3443_v12, 0.0  ;;  %v3462_v12 = vmax.f32 %v3430_v22, 0.0  ;;  %v7986_v22 = vld [vmem:[#allocation2 + $0x628] sm:$0xff] }
0x13ec   : > { %v3470_v19 = vmax.f32 %v3450_v60, 0.0  ;;  %v3433_v60 = vadd.f32 %v3432_v47, %v10184_v41 }
0x13ee   : > { %v3479_v9 = vpack.c.bf16 %v3470_v19, %v3469_v35  ;;  %v3463_v19 = vmax.f32 %v3433_v60, 0.0 }
0x13f1   : > { %v3452_v32 = vpop.f32.mrf.mxu0 }
0x13f2   : > { %v3453_v6 = vadd.f32 %v3452_v32, %v8741_v48  ;;  %v3435_v32 = vadd.f32 %v3434_v16, %v10183_v59 }
0x13f4   : > { %v3471_v61 = vmax.f32 %v3453_v6, 0.0  ;;  %v3466_v6 = vmax.f32 %v3440_v43, 0.0  ;;  %v3461_v43 = vmax.f32 %v3428_v30, 0.0  ;;  %v7991_v30 = vld [vmem:[#allocation2 + $0x608] sm:$0xff] }
0x13f9   : > { %v3454_v7 = vpop.f32.mrf.mxu0 }
0x13fa   : > { %v3455_v25 = vadd.f32 %v3454_v7, %v8771_v37  ;;  %v3478_v7 = vpack.c.bf16 %v3468_v15, %v3467_v57  ;;  %v10189_v15 = vld [vmem:[#allocation55_spill] sm:$0xff]  ;;  %v10190_v57 = vld [vmem:[#allocation56_spill] sm:$0xff] }
0x13fb   : > { %v9219_v24 = vpop.f32.mrf.mxu3  ;;  %v3420_v47 = vadd.f32 %v3419_v44, %v10189_v15  ;;  %v3418_v3 = vadd.f32 %v3417_v54, %v10190_v57  ;;  %v7987_v44 = vld [vmem:[#allocation2 + $0x620] sm:$0xff]  ;;  %v7989_v54 = vld [vmem:[#allocation2 + $0x2c8] sm:$0xff] }
0x13fc   : > { %10179 = vst [vmem:[#allocation76_spill] sm:$0xff] %v9219_v24  ;;  %v3472_v2 = vmax.f32 %v3455_v25, 0.0  ;;  %v3465_v25 = vmax.f32 %v3438_v38, 0.0  ;;  %v3475_v38 = vpack.c.bf16 %v3462_v12, %v3461_v43  ;;  %v7994_v12 = vld [vmem:[#allocation2 + $0x6c0] sm:$0xff]  ;;  %v10201_v24 = vld [vmem:[#allocation67_spill] sm:$0xff] }
0x13fd   : > { %v7997_v43 = vld [vmem:[#allocation2 + $0x2e0] sm:$0xff] }
0x13fe   : > { %v3480_v56 = vpack.c.bf16 %v3472_v2, %v3471_v61  ;;  %v3464_v61 = vmax.f32 %v3435_v32, 0.0  ;;  %v3477_v2 = vpack.c.bf16 %v3466_v6, %v3465_v25  ;;  %v3458_v6 = vmax.f32 %v3420_v47, 0.0  ;;  %v7984_v25 = vld [vmem:[#allocation2 + $0x2c0] sm:$0xff]  ;;  %v7998_v47 = vld [vmem:[#allocation2 + $0x2e8] sm:$0xff] }
0x1400   : > { %3481 = vmatpush.bf16.msrb.mxu3 %v3480_v56  ;;  %v10187_v56 = vld [vmem:[#allocation54_spill] sm:$0xff]  ;;  %v3476_v35 = vpack.c.bf16 %v3464_v61, %v3463_v19  ;;  %v7988_v61 = vld [vmem:[#allocation2 + $0x618] sm:$0xff]  ;;  %v7992_v19 = vld [vmem:[#allocation2 + $0x600] sm:$0xff] }
0x1401   : > { %v3425_v45 = vadd.f32 %v3424_v50, %v10187_v56  ;;  %v7983_v50 = vld [vmem:[#allocation2 + $0x638] sm:$0xff] }
0x1403   : > { %v3389_v42 = vpop.f32.mrf.mxu3 }
0x1404   : > { %3482 = vmatpush.bf16.msrb.mxu3 %v3479_v9  ;;  %v10188_v9 = vld [vmem:[#allocation52_spill] sm:$0xff]  ;;  %v3460_v42 = vmax.f32 %v3425_v45, 0.0  ;;  %v7993_v45 = vld [vmem:[#allocation2 + $0x6c8] sm:$0xff] }
0x1405   : > { %v3423_v16 = vadd.f32 %v3422_v23, %v10188_v9  ;;  %v7985_v23 = vld [vmem:[#allocation2 + $0x630] sm:$0xff] }
0x1407   : > { %v3459_v32 = vmax.f32 %v3423_v16, 0.0  ;;  %v7996_v16 = vld [vmem:[#allocation2 + $0x2d8] sm:$0xff] }
0x1408   : > { %3483 = vmatpush.bf16.msrb.mxu3 %v3478_v7  ;;  %v3457_v7 = vmax.f32 %v3418_v3, 0.0 }
0x1409   : > { %v3474_v18 = vpack.c.bf16 %v3460_v42, %v3459_v32  ;;  %v7999_v42 = vld [vmem:[#allocation2 + $0x2f0] sm:$0xff]  ;;  %v10191_v32 = vld [vmem:[#allocation57_spill] sm:$0xff] }
0x140a   : > { %v3473_v60 = vpack.c.bf16 %v3458_v6, %v3457_v7  ;;  %v10192_v7 = vld [vmem:[#allocation58_spill] sm:$0xff] }
0x140c   : > { %3484 = vmatpush.bf16.msrb.mxu3 %v3477_v2  ;;  %v7990_v2 = vld [vmem:[#allocation2 + $0x610] sm:$0xff] }
0x1410   : > { %3485 = vmatpush.bf16.msrb.mxu3 %v3476_v35  ;;  %v7995_v35 = vld [vmem:[#allocation2 + $0x2d0] sm:$0xff] }
0x1414   : > { %3486 = vmatpush.bf16.msrb.mxu3 %v3475_v38  ;;  %v8000_v38 = vld [vmem:[#allocation2 + $0x2f8] sm:$0xff] }
0x1418   : > { %3487 = vmatpush.bf16.msrb.mxu3 %v3474_v18 }
0x141c   : > { %3488 = vmatpush.bf16.msrb.mxu3 %v3473_v60 }
0x141f   : > { %3489 = vmatmul.bf16.vlgmr.msrb.gmra.mxu3 %v7984_v25 }
0x1420   : > { %3773 = vmatpush.bf16.msra.mxu3 %v7983_v50 }
0x1424   : > { %3774 = vmatpush.bf16.msra.mxu3 %v7985_v23 }
0x1428   : > { %3775 = vmatpush.bf16.msra.mxu3 %v7986_v22 }
0x142c   : > { %3776 = vmatpush.bf16.msra.mxu3 %v7987_v44  ;;  %v10193_v44 = vld [vmem:[#allocation59_spill] sm:$0xff] }
0x142f   : > { %3494 = vmatmul.bf16.gmra.mxu3 %v7989_v54 }
0x1430   : > { %3777 = vmatpush.bf16.msra.mxu3 %v7988_v61 }
0x1434   : > { %3778 = vmatpush.bf16.msra.mxu3 %v7990_v2  ;;  %v10194_v2 = vld [vmem:[#allocation60_spill] sm:$0xff] }
0x1438   : > { %3779 = vmatpush.bf16.msra.mxu3 %v7991_v30 }
0x143c   : > { %3780 = vmatpush.bf16.msra.mxu3 %v7992_v19 }
0x143f   : > { %3499 = vmatmul.bf16.gmra.mxu3 %v7995_v35 }
0x1440   : > { %4056 = vmatpush.bf16.msrb.mxu3 %v7993_v45 }
0x1444   : > { %4057 = vmatpush.bf16.msrb.mxu3 %v7994_v12 }
0x144f   : > { %3504 = vmatmul.bf16.gmra.mxu3 %v7996_v16  ;;  %v10195_v16 = vld [vmem:[#allocation61_spill] sm:$0xff] }
0x145f   : > { %3509 = vmatmul.bf16.gmra.mxu3 %v7997_v43 }
0x146f   : > { %3514 = vmatmul.bf16.gmra.mxu3 %v7998_v47 }
0x147f   : > { %3519 = vmatmul.bf16.gmra.mxu3 %v7999_v42  ;;  %v10196_v42 = vld [vmem:[#allocation62_spill] sm:$0xff] }
0x148f   : > { %3524 = vmatmul.bf16.gmra.mxu3 %v8000_v38 }
0x14a2   : > { %v3490_v3 = vpop.f32.mrf.mxu3 }
0x14a3   : > { %v3491_v6 = vadd.f32 %v3490_v3, %v10191_v32 }
0x14a5   : > { %v3530_v50 = vmax.f32 %v3491_v6, 0.0 }
0x14aa   : > { %v3492_v18 = vpop.f32.mrf.mxu3 }
0x14ab   : > { %v3493_v60 = vadd.f32 %v3492_v18, %v10192_v7 }
0x14ad   : > { %v3531_v25 = vmax.f32 %v3493_v60, 0.0 }
0x14af   : > { %v3546_v23 = vpack.c.bf16 %v3531_v25, %v3530_v50  ;;  %v10197_v50 = vld [vmem:[#allocation63_spill] sm:$0xff] }
0x14b1   : > { %7505 = vmatmul.msk.bf16.vlgmr.msrb.gmra.mxu2 %vm525_vm2, %v3546_v23 }
0x14b2   : > { %v3495_v22 = vpop.f32.mrf.mxu3 }
0x14b3   : > { %v3496_v61 = vadd.f32 %v3495_v22, %v10193_v44  ;;  %v10198_v22 = vld [vmem:[#allocation64_spill] sm:$0xff] }
0x14b5   : > { %v3532_v19 = vmax.f32 %v3496_v61, 0.0 }
0x14ba   : > { %v3497_v54 = vpop.f32.mrf.mxu3 }
0x14bb   : > { %v3498_v30 = vadd.f32 %v3497_v54, %v10194_v2 }
0x14bd   : > { %v3533_v45 = vmax.f32 %v3498_v30, 0.0 }
0x14bf   : > { %v3547_v12 = vpack.c.bf16 %v3533_v45, %v3532_v19 }
0x14c1   : > { %7506 = vmatmul.msk.bf16.gmra.mxu2 %vm525_vm2, %v3547_v12  ;;  %v10199_v12 = vld [vmem:[#allocation65_spill] sm:$0xff] }
0x14c2   : > { %v3500_v35 = vpop.f32.mrf.mxu3 }
0x14c3   : > { %v3501_v43 = vadd.f32 %v3500_v35, %v10195_v16 }
0x14c5   : > { %v3534_v3 = vmax.f32 %v3501_v43, 0.0  ;;  %v10200_v43 = vld [vmem:[#allocation66_spill] sm:$0xff] }
0x14ca   : > { %v3502_v47 = vpop.f32.mrf.mxu3 }
0x14cb   : > { %v3503_v38 = vadd.f32 %v3502_v47, %v10196_v42 }
0x14cd   : > { %v3535_v6 = vmax.f32 %v3503_v38, 0.0 }
0x14cf   : > { %v3548_v18 = vpack.c.bf16 %v3535_v6, %v3534_v3 }
0x14d1   : > { %7507 = vmatmul.msk.bf16.gmra.mxu2 %vm525_vm2, %v3548_v18 }
0x14d2   : > { %v3505_v60 = vpop.f32.mrf.mxu3 }
0x14d3   : > { %v3506_v25 = vadd.f32 %v3505_v60, %v10197_v50 }
0x14d5   : > { %v3536_v54 = vmax.f32 %v3506_v25, 0.0  ;;  %v10202_v25 = vld [vmem:[#allocation68_spill] sm:$0xff] }
0x14da   : > { %v3507_v23 = vpop.f32.mrf.mxu3 }
0x14db   : > { %v3508_v61 = vadd.f32 %v3507_v23, %v10198_v22 }
0x14dd   : > { %v3537_v30 = vmax.f32 %v3508_v61, 0.0 }
0x14df   : > { %v3549_v19 = vpack.c.bf16 %v3537_v30, %v3536_v54 }
0x14e1   : > { %7508 = vmatmul.msk.bf16.gmra.mxu2 %vm525_vm2, %v3549_v19 }
0x14e2   : > { %v3510_v45 = vpop.f32.mrf.mxu3 }
0x14e3   : > { %v3511_v35 = vadd.f32 %v3510_v45, %v10199_v12  ;;  %v10203_v12 = vld [vmem:[#allocation69_spill] sm:$0xff] }
0x14e5   : > { %v3538_v3 = vmax.f32 %v3511_v35, 0.0  ;;  %v10204_v35 = vld [vmem:[#allocation70_spill] sm:$0xff] }
0x14ea   : > { %v3512_v47 = vpop.f32.mrf.mxu3 }
0x14eb   : > { %v3513_v38 = vadd.f32 %v3512_v47, %v10200_v43 }
0x14ed   : > { %v3539_v6 = vmax.f32 %v3513_v38, 0.0 }
0x14ef   : > { %v3550_v18 = vpack.c.bf16 %v3539_v6, %v3538_v3 }
0x14f1   : > { %7509 = vmatmul.msk.bf16.gmra.mxu2 %vm525_vm2, %v3550_v18 }
0x14f2   : > { %v3515_v60 = vpop.f32.mrf.mxu3 }
0x14f3   : > { %v3516_v50 = vadd.f32 %v3515_v60, %v10201_v24  ;;  %v10205_v24 = vld [vmem:[#allocation71_spill] sm:$0xff] }
0x14f5   : > { %v3540_v54 = vmax.f32 %v3516_v50, 0.0  ;;  %v10206_v50 = vld [vmem:[#allocation72_spill] sm:$0xff] }
0x14fa   : > { %v3517_v23 = vpop.f32.mrf.mxu3 }
0x14fb   : > { %v3518_v61 = vadd.f32 %v3517_v23, %v10202_v25 }
0x14fd   : > { %v3541_v30 = vmax.f32 %v3518_v61, 0.0 }
0x14ff   : > { %v3551_v19 = vpack.c.bf16 %v3541_v30, %v3540_v54 }
0x1501   : > { %7510 = vmatmul.msk.bf16.gmra.mxu2 %vm525_vm2, %v3551_v19 }
0x1502   : > { %v3520_v45 = vpop.f32.mrf.mxu3 }
0x1503   : > { %v3521_v22 = vadd.f32 %v3520_v45, %v10203_v12 }
0x1505   : > { %v3542_v3 = vmax.f32 %v3521_v22, 0.0  ;;  %v8001_v22 = vld [vmem:[%s9951_s3 + $0x4] ss:$0 sm:$0xff] }
0x150a   : > { %v3522_v47 = vpop.f32.mrf.mxu3 }
0x150b   : > { %v3523_v38 = vadd.f32 %v3522_v47, %v10204_v35 }
0x150d   : > { %v3543_v6 = vmax.f32 %v3523_v38, 0.0 }
0x150f   : > { %v3552_v18 = vpack.c.bf16 %v3543_v6, %v3542_v3 }
0x1511   : > { %7511 = vmatmul.msk.bf16.gmra.mxu2 %vm525_vm2, %v3552_v18 }
0x1512   : > { %v3525_v60 = vpop.f32.mrf.mxu3 }
0x1513   : > { %v3526_v43 = vadd.f32 %v3525_v60, %v10205_v24 }
0x1515   : > { %v3544_v54 = vmax.f32 %v3526_v43, 0.0 }
0x151a   : > { %v3527_v23 = vpop.f32.mrf.mxu3 }
0x151b   : > { %v3528_v61 = vadd.f32 %v3527_v23, %v10206_v50 }
0x151d   : > { %v3545_v30 = vmax.f32 %v3528_v61, 0.0 }
0x151f   : > { %v3553_v19 = vpack.c.bf16 %v3545_v30, %v3544_v54 }
0x1521   : > { %7512 = vmatmul.msk.bf16.gmra.mxu2 %vm525_vm2, %v3553_v19 }
0x1534   : > { %v3587_v45 = vpop.f32.mrf.mxu2 }
0x1535   : > { %v3588_v47 = vadd.f32 %v8001_v22, %v3587_v45 }
0x1537   : > { %v3627_v6 = vmax.f32 %v3588_v47, 0.0 }
0x153c   : > { %v3589_v38 = vpop.f32.mrf.mxu2 }
0x153d   : > { %v3590_v3 = vadd.f32 %v8001_v22, %v3589_v38 }
0x153f   : > { %v3628_v18 = vmax.f32 %v3590_v3, 0.0 }
0x1541   : > { %v3643_v35 = vpack.c.bf16 %v3628_v18, %v3627_v6 }
0x1543   : > { %3659 = vmatmul.bf16.vlgmr.msra.gmra.mxu1 %v3643_v35 }
0x1544   : > { %v3592_v60 = vpop.f32.mrf.mxu2 }
0x1545   : > { %v3593_v24 = vadd.f32 %v8001_v22, %v3592_v60 }
0x1547   : > { %v3629_v61 = vmax.f32 %v3593_v24, 0.0 }
0x154c   : > { %v3594_v23 = vpop.f32.mrf.mxu2 }
0x154d   : > { %v3595_v43 = vadd.f32 %v8001_v22, %v3594_v23 }
0x154f   : > { %v3630_v54 = vmax.f32 %v3595_v43, 0.0 }
0x1551   : > { %v3644_v30 = vpack.c.bf16 %v3630_v54, %v3629_v61 }
0x1553   : > { %3664 = vmatmul.bf16.gmra.mxu1 %v3644_v30 }
0x1554   : > { %v3597_v19 = vpop.f32.mrf.mxu2 }
0x1555   : > { %v3598_v50 = vadd.f32 %v8001_v22, %v3597_v19 }
0x1557   : > { %v3631_v42 = vmax.f32 %v3598_v50, 0.0 }
0x155c   : > { %v3599_v12 = vpop.f32.mrf.mxu2 }
0x155d   : > { %v3600_v25 = vadd.f32 %v8001_v22, %v3599_v12 }
0x155f   : > { %v3632_v45 = vmax.f32 %v3600_v25, 0.0 }
0x1561   : > { %v3645_v16 = vpack.c.bf16 %v3632_v45, %v3631_v42 }
0x1563   : > { %3669 = vmatmul.bf16.gmra.mxu1 %v3645_v16 }
0x1564   : > { %v3602_v47 = vpop.f32.mrf.mxu2 }
0x1565   : > { %v3603_v38 = vadd.f32 %v8001_v22, %v3602_v47 }
0x1567   : > { %v3633_v6 = vmax.f32 %v3603_v38, 0.0 }
0x156c   : > { %v3604_v3 = vpop.f32.mrf.mxu2 }
0x156d   : > { %v3605_v35 = vadd.f32 %v8001_v22, %v3604_v3 }
0x156f   : > { %v3634_v18 = vmax.f32 %v3605_v35, 0.0 }
0x1571   : > { %v3646_v60 = vpack.c.bf16 %v3634_v18, %v3633_v6 }
0x1573   : > { %3674 = vmatmul.bf16.gmra.mxu1 %v3646_v60 }
0x1574   : > { %v3607_v24 = vpop.f32.mrf.mxu2 }
0x1575   : > { %v3608_v23 = vadd.f32 %v8001_v22, %v3607_v24 }
0x1577   : > { %v3635_v54 = vmax.f32 %v3608_v23, 0.0 }
0x157c   : > { %v3609_v43 = vpop.f32.mrf.mxu2 }
0x157d   : > { %v3610_v61 = vadd.f32 %v8001_v22, %v3609_v43 }
0x157f   : > { %v3636_v30 = vmax.f32 %v3610_v61, 0.0 }
0x1581   : > { %v3647_v19 = vpack.c.bf16 %v3636_v30, %v3635_v54 }
0x1583   : > { %3679 = vmatmul.bf16.gmra.mxu1 %v3647_v19 }
0x1584   : > { %v3612_v12 = vpop.f32.mrf.mxu2 }
0x1585   : > { %v3613_v25 = vadd.f32 %v8001_v22, %v3612_v12 }
0x1587   : > { %v3637_v50 = vmax.f32 %v3613_v25, 0.0 }
0x158c   : > { %v3614_v42 = vpop.f32.mrf.mxu2 }
0x158d   : > { %v3615_v16 = vadd.f32 %v8001_v22, %v3614_v42  ;;  %v9264_v42 = vld [vmem:[%s9951_s3 + $0x5] ss:$0 sm:$0xff] }
0x158f   : > { %v3638_v45 = vmax.f32 %v3615_v16, 0.0 }
0x1591   : > { %v3648_v47 = vpack.c.bf16 %v3638_v45, %v3637_v50 }
0x1593   : > { %3684 = vmatmul.bf16.gmra.mxu1 %v3648_v47 }
0x1594   : > { %v3617_v38 = vpop.f32.mrf.mxu2 }
0x1595   : > { %v3618_v3 = vadd.f32 %v8001_v22, %v3617_v38 }
0x1597   : > { %v3639_v18 = vmax.f32 %v3618_v3, 0.0 }
0x159c   : > { %v3619_v35 = vpop.f32.mrf.mxu2 }
0x159d   : > { %v3620_v6 = vadd.f32 %v8001_v22, %v3619_v35 }
0x159f   : > { %v3640_v60 = vmax.f32 %v3620_v6, 0.0 }
0x15a1   : > { %v3649_v24 = vpack.c.bf16 %v3640_v60, %v3639_v18 }
0x15a3   : > { %3689 = vmatmul.bf16.gmra.mxu1 %v3649_v24 }
0x15a4   : > { %v3622_v23 = vpop.f32.mrf.mxu2 }
0x15a5   : > { %v3623_v43 = vadd.f32 %v8001_v22, %v3622_v23 }
0x15a7   : > { %v3641_v30 = vmax.f32 %v3623_v43, 0.0 }
0x15ac   : > { %v3624_v61 = vpop.f32.mrf.mxu2 }
0x15ad   : > { %v3625_v54 = vadd.f32 %v8001_v22, %v3624_v61 }
0x15af   : > { %v3642_v19 = vmax.f32 %v3625_v54, 0.0 }
0x15b1   : > { %v3650_v12 = vpack.c.bf16 %v3642_v19, %v3641_v30 }
0x15b3   : > { %3694 = vmatmul.bf16.gmra.mxu1 %v3650_v12 }
0x15c0   : > { %v3660_v25 = vpop.f32.mrf.mxu1 }
0x15c1   : > { %v3661_v16 = vadd.f32 %v9264_v42, %v3660_v25 }
0x15c3   : > { %v3700_v47 = vmax.f32 %v3661_v16, 0.0 }
0x15c8   : > { %v3662_v50 = vpop.f32.mrf.mxu1 }
0x15c9   : > { %v3663_v45 = vadd.f32 %v9264_v42, %v3662_v50 }
0x15cb   : > { %v3701_v38 = vmax.f32 %v3663_v45, 0.0 }
0x15cd   : > { %v3716_v3 = vpack.c.bf16 %v3701_v38, %v3700_v47 }
0x15cf   : > { %3732 = vmatmul.bf16.vlgmr.msrb.gmra.mxu0 %v3716_v3  ;;  %3781 = vmatmul.bf16.vlgmr.msra.gmra.mxu3 %v3716_v3 }
0x15d0   : > { %v3665_v22 = vpop.f32.mrf.mxu1 }
0x15d1   : > { %v3666_v35 = vadd.f32 %v9264_v42, %v3665_v22 }
0x15d3   : > { %v3702_v60 = vmax.f32 %v3666_v35, 0.0 }
0x15d8   : > { %v3667_v6 = vpop.f32.mrf.mxu1 }
0x15d9   : > { %v3668_v18 = vadd.f32 %v9264_v42, %v3667_v6 }
0x15db   : > { %v3703_v24 = vmax.f32 %v3668_v18, 0.0 }
0x15dd   : > { %v3717_v23 = vpack.c.bf16 %v3703_v24, %v3702_v60 }
0x15df   : > { %3737 = vmatmul.bf16.gmra.mxu0 %v3717_v23  ;;  %3786 = vmatmul.bf16.gmra.mxu3 %v3717_v23 }
0x15e0   : > { %v3670_v43 = vpop.f32.mrf.mxu1 }
0x15e1   : > { %v3671_v61 = vadd.f32 %v9264_v42, %v3670_v43 }
0x15e3   : > { %v3704_v19 = vmax.f32 %v3671_v61, 0.0 }
0x15e8   : > { %v3672_v54 = vpop.f32.mrf.mxu1 }
0x15e9   : > { %v3673_v30 = vadd.f32 %v9264_v42, %v3672_v54 }
0x15eb   : > { %v3705_v12 = vmax.f32 %v3673_v30, 0.0 }
0x15ed   : > { %v3718_v25 = vpack.c.bf16 %v3705_v12, %v3704_v19 }
0x15ef   : > { %3742 = vmatmul.bf16.gmra.mxu0 %v3718_v25  ;;  %3791 = vmatmul.bf16.gmra.mxu3 %v3718_v25 }
0x15f0   : > { %v3675_v16 = vpop.f32.mrf.mxu1 }
0x15f1   : > { %v3676_v50 = vadd.f32 %v9264_v42, %v3675_v16 }
0x15f3   : > { %v3706_v38 = vmax.f32 %v3676_v50, 0.0 }
0x15f8   : > { %v3677_v45 = vpop.f32.mrf.mxu1 }
0x15f9   : > { %v3678_v47 = vadd.f32 %v9264_v42, %v3677_v45 }
0x15fb   : > { %v3707_v3 = vmax.f32 %v3678_v47, 0.0 }
0x15fd   : > { %v3719_v22 = vpack.c.bf16 %v3707_v3, %v3706_v38 }
0x15ff   : > { %3747 = vmatmul.bf16.gmra.mxu0 %v3719_v22  ;;  %3796 = vmatmul.bf16.gmra.mxu3 %v3719_v22 }
0x1600   : > { %v3680_v35 = vpop.f32.mrf.mxu1 }
0x1601   : > { %v3681_v6 = vadd.f32 %v9264_v42, %v3680_v35 }
0x1603   : > { %v3708_v24 = vmax.f32 %v3681_v6, 0.0 }
0x1608   : > { %v3682_v18 = vpop.f32.mrf.mxu1 }
0x1609   : > { %v3683_v60 = vadd.f32 %v9264_v42, %v3682_v18 }
0x160b   : > { %v3709_v23 = vmax.f32 %v3683_v60, 0.0 }
0x160d   : > { %v3720_v43 = vpack.c.bf16 %v3709_v23, %v3708_v24 }
0x160f   : > { %3752 = vmatmul.bf16.gmra.mxu0 %v3720_v43  ;;  %3801 = vmatmul.bf16.gmra.mxu3 %v3720_v43 }
0x1610   : > { %v3685_v61 = vpop.f32.mrf.mxu1 }
0x1611   : > { %v3686_v54 = vadd.f32 %v9264_v42, %v3685_v61 }
0x1613   : > { %v3710_v12 = vmax.f32 %v3686_v54, 0.0 }
0x1618   : > { %v3687_v30 = vpop.f32.mrf.mxu1 }
0x1619   : > { %v3688_v19 = vadd.f32 %v9264_v42, %v3687_v30 }
0x161b   : > { %v3711_v25 = vmax.f32 %v3688_v19, 0.0 }
0x161d   : > { %v3721_v16 = vpack.c.bf16 %v3711_v25, %v3710_v12 }
0x161f   : > { %3757 = vmatmul.bf16.gmra.mxu0 %v3721_v16  ;;  %3806 = vmatmul.bf16.gmra.mxu3 %v3721_v16 }
0x1620   : > { %v3690_v50 = vpop.f32.mrf.mxu1 }
0x1621   : > { %v3691_v45 = vadd.f32 %v9264_v42, %v3690_v50 }
0x1623   : > { %v3712_v3 = vmax.f32 %v3691_v45, 0.0 }
0x1628   : > { %v3692_v47 = vpop.f32.mrf.mxu1 }
0x1629   : > { %v3693_v38 = vadd.f32 %v9264_v42, %v3692_v47 }
0x162b   : > { %v3713_v22 = vmax.f32 %v3693_v38, 0.0 }
0x162d   : > { %v3722_v35 = vpack.c.bf16 %v3713_v22, %v3712_v3 }
0x162f   : > { %3762 = vmatmul.bf16.gmra.mxu0 %v3722_v35  ;;  %3811 = vmatmul.bf16.gmra.mxu3 %v3722_v35 }
0x1630   : > { %v3695_v6 = vpop.f32.mrf.mxu1 }
0x1631   : > { %v3696_v18 = vadd.f32 %v9264_v42, %v3695_v6 }
0x1633   : > { %v3714_v23 = vmax.f32 %v3696_v18, 0.0 }
0x1638   : > { %v3697_v60 = vpop.f32.mrf.mxu1 }
0x1639   : > { %v3698_v24 = vadd.f32 %v9264_v42, %v3697_v60 }
0x163b   : > { %v3715_v43 = vmax.f32 %v3698_v24, 0.0 }
0x163d   : > { %v3723_v61 = vpack.c.bf16 %v3715_v43, %v3714_v23 }
0x163f   : > { %3767 = vmatmul.bf16.gmra.mxu0 %v3723_v61  ;;  %3816 = vmatmul.bf16.gmra.mxu3 %v3723_v61 }
0x164c   : > { %v9282_v54 = vpop.f32.mrf.mxu0 }
0x1652   : > { %v9284_v30 = vpop.f32.mrf.mxu3 }
0x1654   : > { %v9288_v12 = vpop.f32.mrf.mxu0 }
0x165a   : > { %v9290_v25 = vpop.f32.mrf.mxu3 }
0x165c   : > { %v3738_v16 = vpop.f32.mrf.mxu0 }
0x1662   : > { %v3787_v50 = vpop.f32.mrf.mxu3 }
0x1663   : > { %v3824_v45 = vmax.f32 %v3738_v16, %v3787_v50 }
0x1664   : > { %v3740_v42 = vpop.f32.mrf.mxu0 }
0x166a   : > { %v3789_v47 = vpop.f32.mrf.mxu3 }
0x166c   : > { %v3743_v38 = vpop.f32.mrf.mxu0 }
0x1672   : > { %v3792_v3 = vpop.f32.mrf.mxu3 }
0x1673   : > { %v3826_v22 = vmax.f32 %v3743_v38, %v3792_v3 }
0x1674   : > { %v3745_v35 = vpop.f32.mrf.mxu0 }
0x167a   : > { %v3794_v6 = vpop.f32.mrf.mxu3 }
0x167c   : > { %v3748_v18 = vpop.f32.mrf.mxu0 }
0x1682   : > { %v3797_v60 = vpop.f32.mrf.mxu3 }
0x1683   : > { %v3828_v24 = vmax.f32 %v3748_v18, %v3797_v60 }
0x1684   : > { %v3750_v23 = vpop.f32.mrf.mxu0 }
0x168a   : > { %v3799_v43 = vpop.f32.mrf.mxu3 }
0x168b   : > { %v3829_v37 = vmax.f32 %v3750_v23, %v3799_v43 }
0x168c   : > { %v3753_v61 = vpop.f32.mrf.mxu0 }
0x1692   : > { %v3802_v19 = vpop.f32.mrf.mxu3 }
0x1693   : > { %v3830_v2 = vmax.f32 %v3753_v61, %v3802_v19 }
0x1694   : > { %v3755_v44 = vpop.f32.mrf.mxu0 }
0x169a   : > { %v3804_v7 = vpop.f32.mrf.mxu3 }
0x169b   : > { %v3831_v62 = vmax.f32 %v3755_v44, %v3804_v7 }
0x169c   : > { %v3758_v32 = vpop.f32.mrf.mxu0 }
0x169d   : > { %v3842_v27 = vpack.c.bf16 %v3831_v62, %v3830_v2 }
0x16a2   : > { %v3807_v57 = vpop.f32.mrf.mxu3 }
0x16a3   : > { %v3832_v33 = vmax.f32 %v3758_v32, %v3807_v57  ;;  %v8009_v57 = vld [vmem:[#allocation2 + $0x658] sm:$0xff] }
0x16a4   : > { %v3760_v16 = vpop.f32.mrf.mxu0  ;;  %v8010_v32 = vld [vmem:[#allocation2 + $0x698] sm:$0xff] }
0x16aa   : > { %v3809_v50 = vpop.f32.mrf.mxu3 }
0x16ab   : > { %v3833_v19 = vmax.f32 %v3760_v16, %v3809_v50 }
0x16ac   : > { %v3763_v15 = vpop.f32.mrf.mxu0 }
0x16ad   : > { %v3843_v39 = vpack.c.bf16 %v3833_v19, %v3832_v33  ;;  %v8005_v33 = vld [vmem:[#allocation2 + $0x648] sm:$0xff] }
0x16b2   : > { %v3812_v9 = vpop.f32.mrf.mxu3 }
0x16b3   : > { %v3834_v8 = vmax.f32 %v3763_v15, %v3812_v9  ;;  %v8007_v9 = vld [vmem:[#allocation2 + $0x650] sm:$0xff] }
0x16b4   : > { %v3765_v56 = vpop.f32.mrf.mxu0  ;;  %v8008_v15 = vld [vmem:[#allocation2 + $0x690] sm:$0xff] }
0x16ba   : > { %v3814_v38 = vpop.f32.mrf.mxu3 }
0x16bb   : > { %v3835_v59 = vmax.f32 %v3765_v56, %v3814_v38 }
0x16bc   : > { %v3768_v3 = vpop.f32.mrf.mxu0 }
0x16bd   : > { %v3844_v61 = vpack.c.bf16 %v3835_v59, %v3834_v8  ;;  %v3823_v8 = vmax.f32 %v9288_v12, %v9290_v25  ;;  %v8006_v59 = vld [vmem:[#allocation2 + $0x688] sm:$0xff] }
0x16c2   : > { %v3817_v55 = vpop.f32.mrf.mxu3 }
0x16c3   : > { %v3836_v18 = vmax.f32 %v3768_v3, %v3817_v55  ;;  %v3827_v55 = vmax.f32 %v3745_v35, %v3794_v6 }
0x16c4   : > { %v3770_v20 = vpop.f32.mrf.mxu0 }
0x16c5   : > { %v3840_v56 = vpack.c.bf16 %v3827_v55, %v3826_v22 }
0x16ca   : > { %v3819_v41 = vpop.f32.mrf.mxu3 }
0x16cb   : > { %v3837_v60 = vmax.f32 %v3770_v20, %v3819_v41  ;;  %v3841_v41 = vpack.c.bf16 %v3829_v37, %v3828_v24  ;;  %v3825_v20 = vmax.f32 %v3740_v42, %v3789_v47  ;;  %v8004_v37 = vld [vmem:[#allocation2 + $0x680] sm:$0xff] }
0x16cd   : > { %v3845_v49 = vpack.c.bf16 %v3837_v60, %v3836_v18 }
0x16cf   : > { %3846 = vmatpush.bf16.msra.mxu2 %v3845_v49  ;;  %3875 = vmatpush.bf16.msrb.mxu1 %v3845_v49  ;;  %v3839_v49 = vpack.c.bf16 %v3825_v20, %v3824_v45 }
0x16d3   : > { %3847 = vmatpush.bf16.msra.mxu2 %v3844_v61  ;;  %3876 = vmatpush.bf16.msrb.mxu1 %v3844_v61 }
0x16d7   : > { %3848 = vmatpush.bf16.msra.mxu2 %v3843_v39  ;;  %3877 = vmatpush.bf16.msrb.mxu1 %v3843_v39  ;;  %v10207_v39 = vmax.f32 %v9282_v54, %v9284_v30 }
0x16d9   : > { %v3838_v62 = vpack.c.bf16 %v3823_v8, %v10207_v39  ;;  %v8011_v8 = vld [vmem:[#allocation2 + $0x708] sm:$0xff]  ;;  %v8013_v39 = vld [vmem:[#allocation2 + $0x700] sm:$0xff] }
0x16db   : > { %3849 = vmatpush.bf16.msra.mxu2 %v3842_v27  ;;  %3878 = vmatpush.bf16.msrb.mxu1 %v3842_v27  ;;  %v8003_v27 = vld [vmem:[#allocation2 + $0x640] sm:$0xff] }
0x16df   : > { %3850 = vmatpush.bf16.msra.mxu2 %v3841_v41  ;;  %3879 = vmatpush.bf16.msrb.mxu1 %v3841_v41 }
0x16e3   : > { %3851 = vmatpush.bf16.msra.mxu2 %v3840_v56  ;;  %3880 = vmatpush.bf16.msrb.mxu1 %v3840_v56 }
0x16e7   : > { %3852 = vmatpush.bf16.msra.mxu2 %v3839_v49  ;;  %3881 = vmatpush.bf16.msrb.mxu1 %v3839_v49  ;;  %v8012_v49 = vld [vmem:[#allocation2 + $0x380] sm:$0xff] }
0x16eb   : > { %3853 = vmatpush.bf16.msra.mxu2 %v3838_v62  ;;  %3882 = vmatpush.bf16.msrb.mxu1 %v3838_v62  ;;  %v8014_v62 = vld [vmem:[#allocation2 + $0x540] sm:$0xff] }
0x16ee   : > { %3854 = vmatmul.bf16.vlgmr.msra.gmra.mxu2 %v8003_v27  ;;  %3883 = vmatmul.bf16.vlgmr.msrb.gmra.mxu1 %v8004_v37  ;;  %v8015_v27 = vld [vmem:[#allocation2 + $0x388] sm:$0xff]  ;;  %v8016_v37 = vld [vmem:[#allocation2 + $0x390] sm:$0xff] }
0x16fe   : > { %3859 = vmatmul.bf16.gmra.mxu2 %v8005_v33  ;;  %3888 = vmatmul.bf16.gmra.mxu1 %v8006_v59  ;;  %v8017_v33 = vld [vmem:[#allocation2 + $0x398] sm:$0xff] }
0x170e   : > { %3864 = vmatmul.bf16.gmra.mxu2 %v8007_v9  ;;  %3893 = vmatmul.bf16.gmra.mxu1 %v8008_v15 }
0x171e   : > { %3869 = vmatmul.bf16.gmra.mxu2 %v8009_v57  ;;  %3898 = vmatmul.bf16.gmra.mxu1 %v8010_v32 }
0x176b   : > { %v3884_v7 = vpop.f32.mrf.mxu1 }
0x1771   : > { %v3855_v44 = vpop.f32.mrf.mxu2 }
0x1772   : > { %v3904_v2 = vmax.f32 %v3855_v44, %v3884_v7 }
0x1773   : > { %v3886_v54 = vpop.f32.mrf.mxu1 }
0x1779   : > { %v3857_v30 = vpop.f32.mrf.mxu2 }
0x177a   : > { %v3905_v41 = vmax.f32 %v3857_v30, %v3886_v54 }
0x177b   : > { %v3889_v12 = vpop.f32.mrf.mxu1 }
0x177c   : > { %v3912_v56 = vpack.c.bf16 %v3905_v41, %v3904_v2  ;;  %v8020_v41 = vld [vmem:[#allocation2 + $0x450] sm:$0xff] }
0x1781   : > { %v3860_v25 = vpop.f32.mrf.mxu2 }
0x1782   : > { %v3906_v55 = vmax.f32 %v3860_v25, %v3889_v12 }
0x1783   : > { %v3891_v45 = vpop.f32.mrf.mxu1 }
0x1789   : > { %v3862_v42 = vpop.f32.mrf.mxu2 }
0x178a   : > { %v3907_v19 = vmax.f32 %v3862_v42, %v3891_v45 }
0x178b   : > { %v3894_v47 = vpop.f32.mrf.mxu1 }
0x178c   : > { %v3913_v20 = vpack.c.bf16 %v3907_v19, %v3906_v55  ;;  %v8019_v55 = vld [vmem:[#allocation2 + $0x3c0] sm:$0xff] }
0x1791   : > { %v3865_v22 = vpop.f32.mrf.mxu2 }
0x1792   : > { %v3908_v60 = vmax.f32 %v3865_v22, %v3894_v47 }
0x1793   : > { %v3896_v35 = vpop.f32.mrf.mxu1 }
0x1799   : > { %v3867_v6 = vpop.f32.mrf.mxu2 }
0x179a   : > { %v3909_v3 = vmax.f32 %v3867_v6, %v3896_v35 }
0x179b   : > { %v3899_v24 = vpop.f32.mrf.mxu1 }
0x179c   : > { %v3914_v61 = vpack.c.bf16 %v3909_v3, %v3908_v60 }
0x17a1   : > { %v3870_v23 = vpop.f32.mrf.mxu2 }
0x17a2   : > { %v3910_v50 = vmax.f32 %v3870_v23, %v3899_v24 }
0x17a3   : > { %v3901_v43 = vpop.f32.mrf.mxu1 }
0x17a9   : > { %v3872_v16 = vpop.f32.mrf.mxu2 }
0x17aa   : > { %v3911_v38 = vmax.f32 %v3872_v16, %v3901_v43 }
0x17ac   : > { %v3915_v18 = vpack.c.bf16 %v3911_v38, %v3910_v50 }
0x17ae   : > { %3920 = vmatpush.bf16.msrb.mxu2 %v3915_v18 }
0x17b2   : > { %3921 = vmatpush.bf16.msrb.mxu2 %v3914_v61  ;;  %v8018_v61 = vld [vmem:[#allocation2 + $0x458] sm:$0xff] }
0x17b6   : > { %3922 = vmatpush.bf16.msrb.mxu2 %v3913_v20  ;;  %v8021_v20 = vld [vmem:[#allocation2 + $0x448] sm:$0xff] }
0x17ba   : > { %3923 = vmatpush.bf16.msrb.mxu2 %v3912_v56  ;;  %v8022_v56 = vld [vmem:[#allocation2 + $0x440] sm:$0xff] }
0x17bd   : > { %7513 = vmatmul.msk.bf16.vlgmr.msrb.gmra.mxu2 %vm2356_vm11, %v8012_v49 }
0x17be   : > { %4075 = vmatpush.bf16.msra.mxu2 %v8011_v8  ;;  %v8023_v8 = vld [vmem:[#allocation2 + $0x3c8] sm:$0xff] }
0x17c2   : > { %4076 = vmatpush.bf16.msra.mxu2 %v8013_v39 }
0x17c6   : > { %4185 = vmatpush.bf16.msrb.mxu2 %v8014_v62 }
0x17cd   : > { %7514 = vmatmul.msk.bf16.gmra.mxu2 %vm2356_vm11, %v8015_v27 }
0x17dd   : > { %7515 = vmatmul.msk.bf16.gmra.mxu2 %vm2356_vm11, %v8016_v37 }
0x17ed   : > { %7516 = vmatmul.msk.bf16.gmra.mxu2 %vm2356_vm11, %v8017_v33 }
0x1840   : > { %v3925_v59 = vpop.f32.mrf.mxu2 }
0x1841   : > { %v3926_v50 = vadd.f32 %v3925_v59, %v9035_v13 }
0x1843   : > { %v3945_v60 = vmax.f32 %v3926_v50, 0.0 }
0x1848   : > { %v3927_v9 = vpop.f32.mrf.mxu2 }
0x1849   : > { %v3928_v23 = vadd.f32 %v3927_v9, %v9032_v28 }
0x184b   : > { %v3946_v3 = vmax.f32 %v3928_v23, 0.0 }
0x184d   : > { %v3953_v19 = vpack.c.bf16 %v3946_v3, %v3945_v60 }
0x1850   : > { %v3930_v15 = vpop.f32.mrf.mxu2 }
0x1851   : > { %v3931_v6 = vadd.f32 %v3930_v15, %v9023_v10 }
0x1853   : > { %v3947_v38 = vmax.f32 %v3931_v6, 0.0 }
0x1858   : > { %v3932_v57 = vpop.f32.mrf.mxu2 }
0x1859   : > { %v3933_v47 = vadd.f32 %v3932_v57, %v9028_v58 }
0x185b   : > { %v3948_v43 = vmax.f32 %v3933_v47, 0.0 }
0x185d   : > { %v3954_v18 = vpack.c.bf16 %v3948_v43, %v3947_v38  ;;  %v9323_v38 = vld [vmem:[%s8387_s28 + $0x10] sm:$0xff] }
0x185e   : > { %4236 = vrot.lane.b32.xlu0 %v9323_v38, %s8321_s12 }
0x1860   : > { %v3935_v32 = vpop.f32.mrf.mxu2 }
0x1861   : > { %v3936_v25 = vadd.f32 %v3935_v32, %v9021_v46 }
0x1863   : > { %v3949_v24 = vmax.f32 %v3936_v25, 0.0 }
0x1868   : > { %v3937_v7 = vpop.f32.mrf.mxu2 }
0x1869   : > { %v3938_v30 = vadd.f32 %v3937_v7, %v9017_v1 }
0x186b   : > { %v3950_v22 = vmax.f32 %v3938_v30, 0.0  ;;  %v8024_v30 = vld [vmem:[%s9951_s3 + $0x6] ss:$0 sm:$0xff] }
0x186d   : > { %v3955_v16 = vpack.c.bf16 %v3950_v22, %v3949_v24 }
0x1870   : > { %v3940_v44 = vpop.f32.mrf.mxu2 }
0x1871   : > { %v3941_v2 = vadd.f32 %v3940_v44, %v9013_v63 }
0x1873   : > { %v3951_v45 = vmax.f32 %v3941_v2, 0.0 }
0x1878   : > { %v3942_v54 = vpop.f32.mrf.mxu2 }
0x1879   : > { %v3943_v12 = vadd.f32 %v3942_v54, %v9015_v11 }
0x187b   : > { %v3952_v42 = vmax.f32 %v3943_v12, 0.0 }
0x187d   : > { %v3956_v35 = vpack.c.bf16 %v3952_v42, %v3951_v45 }
0x187f   : > { %3961 = vmatpush.bf16.msra.mxu1 %v3956_v35 }
0x1883   : > { %3962 = vmatpush.bf16.msra.mxu1 %v3955_v16 }
0x1887   : > { %3963 = vmatpush.bf16.msra.mxu1 %v3954_v18  ;;  %v8025_v18 = vld [vmem:[%s9951_s3 + $0x7] ss:$0 sm:$0xff] }
0x188b   : > { %3964 = vmatpush.bf16.msra.mxu1 %v3953_v19 }
0x188e   : > { %7517 = vmatmul.msk.bf16.vlgmr.msra.gmra.mxu1 %vm2356_vm11, %v8019_v55 }
0x188f   : > { %4023 = vmatpush.bf16.msrb.mxu1 %v8018_v61 }
0x1893   : > { %4024 = vmatpush.bf16.msrb.mxu1 %v8020_v41 }
0x1897   : > { %4025 = vmatpush.bf16.msrb.mxu1 %v8021_v20 }
0x189b   : > { %4026 = vmatpush.bf16.msrb.mxu1 %v8022_v56 }
0x189e   : > { %7518 = vmatmul.msk.bf16.gmra.mxu1 %vm2356_vm11, %v8023_v8 }
0x190b   : > { %v3966_v49 = vpop.f32.mrf.mxu1 }
0x190c   : > { %v3967_v39 = vadd.f32 %v3966_v49, %v9041_v4 }
0x190e   : > { %v3976_v37 = vmax.f32 %v3967_v39, 0.0 }
0x1913   : > { %v3968_v62 = vpop.f32.mrf.mxu1 }
0x1914   : > { %v3969_v27 = vadd.f32 %v3968_v62, %v9043_v26 }
0x1916   : > { %v3977_v33 = vmax.f32 %v3969_v27, 0.0 }
0x1918   : > { %v3980_v59 = vpack.c.bf16 %v3977_v33, %v3976_v37 }
0x191a   : > { %7519 = vmatmul.msk.bf16.vlgmr.msra.gmra.mxu0 %vm2356_vm11, %v3980_v59 }
0x191b   : > { %v3971_v9 = vpop.f32.mrf.mxu1 }
0x191c   : > { %v3972_v15 = vadd.f32 %v3971_v9, %v9048_v40  ;;  %v4237_v9 = vpop.permute.xlu0 %4236 }
0x191e   : > { %v3978_v7 = vmax.f32 %v3972_v15, 0.0  ;;  %v4239_v15 = vsel %vm219_vm3, 0.0, %v4237_v9 }
0x191f   : > { %4244 = vrot.lane.b32.xlu1 %v4239_v15, %s8323_s14  ;;  %4241 = vrot.lane.b32.xlu2 %v4239_v15, %s8322_s13 }
0x1923   : > { %v3973_v57 = vpop.f32.mrf.mxu1 }
0x1924   : > { %v3974_v32 = vadd.f32 %v3973_v57, %v9051_v5 }
0x1926   : > { %v3979_v44 = vmax.f32 %v3974_v32, 0.0 }
0x1928   : > { %v3981_v2 = vpack.c.bf16 %v3979_v44, %v3978_v7 }
0x192a   : > { %7520 = vmatmul.msk.bf16.gmra.mxu0 %vm2356_vm11, %v3981_v2 }
0x1997   : > { %v3997_v54 = vpop.f32.mrf.mxu0 }
0x1998   : > { %v3998_v12 = vadd.f32 %v8024_v30, %v3997_v54 }
0x199a   : > { %v4007_v42 = vmax.f32 %v3998_v12, 0.0 }
0x199f   : > { %v3999_v25 = vpop.f32.mrf.mxu0 }
0x19a0   : > { %v4000_v45 = vadd.f32 %v8024_v30, %v3999_v25 }
0x19a2   : > { %v4008_v47 = vmax.f32 %v4000_v45, 0.0 }
0x19a4   : > { %v4011_v22 = vpack.c.bf16 %v4008_v47, %v4007_v42 }
0x19a6   : > { %7521 = vmatmul.msk.bf16.vlgmr.msrb.gmra.mxu1 %vm2356_vm11, %v4011_v22  ;;  %v8026_v22 = vld [vmem:[#allocation2 + $0x500] sm:$0xff] }
0x19a7   : > { %v4002_v35 = vpop.f32.mrf.mxu0 }
0x19a8   : > { %v4003_v6 = vadd.f32 %v8024_v30, %v4002_v35  ;;  %v8027_v35 = vld [vmem:[#allocation2 + $0x740] sm:$0xff] }
0x19aa   : > { %v4009_v43 = vmax.f32 %v4003_v6, 0.0  ;;  %v8028_v6 = vld [vmem:[#allocation2 + $0x780] sm:$0xff] }
0x19af   : > { %v4004_v24 = vpop.f32.mrf.mxu0 }
0x19b0   : > { %v4005_v23 = vadd.f32 %v8024_v30, %v4004_v24  ;;  %v8029_v24 = vld [vmem:[#allocation2 + $0x80] sm:$0xff] }
0x19b2   : > { %v4010_v16 = vmax.f32 %v4005_v23, 0.0 }
0x19b4   : > { %v4012_v50 = vpack.c.bf16 %v4010_v16, %v4009_v43  ;;  %v4245_v16 = vpop.permute.xlu1 %4244 }
0x19b6   : > { %7522 = vmatmul.msk.bf16.gmra.mxu1 %vm2356_vm11, %v4012_v50  ;;  %v4248_v50 = vpack.c.bf16 %v4245_v16, %v4245_v16  ;;  %v8048_v16 = vld [vmem:[#allocation2 + $0x78] sm:$0xff] }
0x1a23   : > { %v4028_v3 = vpop.f32.mrf.mxu1 }
0x1a24   : > { %v4029_v60 = vadd.f32 %v8025_v18, %v4028_v3 }
0x1a26   : > { %v4038_v55 = vmax.f32 %v4029_v60, 0.0 }
0x1a2b   : > { %v4030_v19 = vpop.f32.mrf.mxu1 }
0x1a2c   : > { %v4031_v61 = vadd.f32 %v8025_v18, %v4030_v19 }
0x1a2e   : > { %v4039_v41 = vmax.f32 %v4031_v61, 0.0 }
0x1a30   : > { %v4042_v20 = vpack.c.bf16 %v4039_v41, %v4038_v55  ;;  %v4250_v55 = vsel %vm241_vm0, %v4248_v50, 0  ;;  %v4242_v41 = vpop.permute.xlu2 %4241 }
0x1a32   : > { %7523 = vmatmul.msk.bf16.vlgmr.msrb.gmra.mxu3 %vm2629_vm12, %v4042_v20  ;;  %7525 = vmatmul.msk.bf16.vlgmr.msra.gmra.mxu2 %vm2629_vm12, %v4042_v20  ;;  %v7536_v20 = vpack.c.bf16 %v4242_v41, %v4237_v9  ;;  %v8039_v9 = vld [vmem:[#allocation2 + $0x100] sm:$0xff] }
0x1a33   : > { %v4033_v56 = vpop.f32.mrf.mxu1 }
0x1a34   : > { %v4034_v8 = vadd.f32 %v8025_v18, %v4033_v56  ;;  %v8030_v56 = vld [vmem:[#allocation2 + $0x480] sm:$0xff] }
0x1a36   : > { %v4040_v62 = vmax.f32 %v4034_v8, 0.0  ;;  %v8031_v8 = vld [vmem:[#allocation2 + $0x138] sm:$0xff] }
0x1a3b   : > { %v4035_v49 = vpop.f32.mrf.mxu1 }
0x1a3c   : > { %v4036_v39 = vadd.f32 %v8025_v18, %v4035_v49  ;;  %v8032_v49 = vld [vmem:[#allocation2 + $0x130] sm:$0xff] }
0x1a3e   : > { %v4041_v27 = vmax.f32 %v4036_v39, 0.0  ;;  %v8033_v39 = vld [vmem:[#allocation2 + $0x128] sm:$0xff] }
0x1a40   : > { %v4043_v37 = vpack.c.bf16 %v4041_v27, %v4040_v62  ;;  %v8034_v62 = vld [vmem:[#allocation2 + $0x120] sm:$0xff] }
0x1a41   : > { %v8035_v27 = vld [vmem:[#allocation2] sm:$0xf] }
0x1a42   : > { %7524 = vmatmul.msk.bf16.gmra.mxu3 %vm2629_vm12, %v4043_v37  ;;  %7526 = vmatmul.msk.bf16.gmra.mxu2 %vm2629_vm12, %v4043_v37  ;;  %v8036_v37 = vld [vmem:[#allocation2 + $0x118] sm:$0xff] }
0x1ab5   : > { %v4059_v33 = vpop.f32.mrf.mxu3  ;;  %v4078_v59 = vpop.f32.mrf.mxu2 }
0x1ab6   : > { %v4088_v42 = vmax.f32 %v4059_v33, %v4078_v59  ;;  %v8037_v33 = vld [vmem:[#allocation2 + $0x110] sm:$0xff]  ;;  %v8038_v59 = vld [vmem:[#allocation2 + $0x108] sm:$0xff] }
0x1abd   : > { %v4061_v57 = vpop.f32.mrf.mxu3  ;;  %v4080_v32 = vpop.f32.mrf.mxu2 }
0x1abe   : > { %v4089_v25 = vmax.f32 %v4061_v57, %v4080_v32 }
0x1ac0   : > { %v4092_v47 = vpack.c.bf16 %v4089_v25, %v4088_v42 }
0x1ac5   : > { %v4064_v7 = vpop.f32.mrf.mxu3  ;;  %v4083_v44 = vpop.f32.mrf.mxu2 }
0x1ac6   : > { %v4090_v30 = vmax.f32 %v4064_v7, %v4083_v44  ;;  %v4266_v7 = vpack.c.bf16 %v9323_v38, %v9323_v38 }
0x1acd   : > { %v4066_v2 = vpop.f32.mrf.mxu3  ;;  %v4085_v54 = vpop.f32.mrf.mxu2 }
0x1ace   : > { %v4091_v12 = vmax.f32 %v4066_v2, %v4085_v54 }
0x1ad0   : > { %v4093_v45 = vpack.c.bf16 %v4091_v12, %v4090_v30  ;;  %v9349_v12 = vsel %vm241_vm0, %v4266_v7, 0  ;;  %v10209_v7 = vld [vmem:[#allocation6_spill] sm:$0xff] }
0x1ad2   : > { %4100 = vmatpush.bf16.msrb.mxu0 %v4093_v45  ;;  %4114 = vmatpush.bf16.msra.mxu1 %v4093_v45  ;;  %v8040_v45 = vld [vmem:[#allocation2 + $0x4c0] sm:$0x3] }
0x1ad6   : > { %4101 = vmatpush.bf16.msrb.mxu0 %v4092_v47  ;;  %4115 = vmatpush.bf16.msra.mxu1 %v4092_v47  ;;  %v8041_v47 = vld [vmem:[#allocation2 + $0x40] sm:$0xff] }
0x1ad9   : > { %7527 = vmatmul.msk.bf16.vlgmr.msrb.gmra.mxu0 %vm2629_vm12, %v8027_v35  ;;  %7528 = vmatmul.msk.bf16.vlgmr.msra.gmra.mxu1 %vm2629_vm12, %v8028_v6  ;;  %v8043_v35 = vld [vmem:[#allocation2 + $0x50] sm:$0xff]  ;;  %v8044_v6 = vld [vmem:[#allocation2 + $0x58] sm:$0xff] }
0x1ada   : > { %4167 = vmatpush.bf16.msrb.mxu1 %v8026_v22  ;;  %v8042_v22 = vld [vmem:[#allocation2 + $0x48] sm:$0xff] }
0x1ade   : > { %4374 = vmatpush.bf16.msra.mxu1 %v8029_v24  ;;  %v8045_v24 = vld [vmem:[#allocation2 + $0x60] sm:$0xff] }
0x1b56   : > { %v4103_v23 = vpop.f32.mrf.mxu0  ;;  %v4117_v43 = vpop.f32.mrf.mxu1 }
0x1b57   : > { %v4122_v60 = vmax.f32 %v4103_v23, %v4117_v43  ;;  %v8046_v23 = vld [vmem:[#allocation2 + $0x68] sm:$0xff]  ;;  %v8047_v43 = vld [vmem:[#allocation2 + $0x70] sm:$0xff] }
0x1b5e   : > { %v4105_v3 = vpop.f32.mrf.mxu0  ;;  %v4119_v18 = vpop.f32.mrf.mxu1 }
0x1b5f   : > { %v4123_v19 = vmax.f32 %v4105_v3, %v4119_v18 }
0x1b61   : > { %v4124_v61 = vpack.c.bf16 %v4123_v19, %v4122_v60 }
0x1b63   : > { %4132 = vmatpush.bf16.msra.mxu0 %v4124_v61  ;;  %v8049_v61 = vld [vmem:[#allocation2 + $0x278] sm:$0xff] }
0x1b66   : > { %7529 = vmatmul.msk.bf16.vlgmr.msra.gmra.mxu0 %vm525_vm2, %v8030_v56  ;;  %v8052_v56 = vld [vmem:[#allocation2 + $0x260] sm:$0xff] }
0x1b67   : > { %4258 = vmatpush.bf16.msrb.mxu0 %v4250_v55  ;;  %v8050_v55 = vld [vmem:[#allocation2 + $0x270] sm:$0xff] }
0x1b6b   : > { %7537 = vmatpush.bf16.msk.msrb.mxu0 %vm8576_vm6, %v7536_v20  ;;  %v8051_v20 = vld [vmem:[#allocation2 + $0x268] sm:$0xff] }
0x1b6f   : > { %4455 = vmatpush.bf16.msra.mxu0 %v8031_v8 }
0x1b73   : > { %4456 = vmatpush.bf16.msra.mxu0 %v8032_v49 }
0x1b76   : > { %7538 = vmatmul.msk.bf16.vlgmr.msrb.gmra.mxu0 %vm237_vm7, %v8035_v27 }
0x1b77   : > { %4457 = vmatpush.bf16.msra.mxu0 %v8033_v39  ;;  %v8053_v39 = vld [vmem:[#allocation2 + $0x258] sm:$0xff] }
0x1b7b   : > { %4458 = vmatpush.bf16.msra.mxu0 %v8034_v62  ;;  %v10208_v62 = vld [vmem:[#allocation5_spill] sm:$0xff] }
0x1b7f   : > { %4459 = vmatpush.bf16.msra.mxu0 %v8036_v37 }
0x1b83   : > { %4460 = vmatpush.bf16.msra.mxu0 %v8037_v33 }
0x1b87   : > { %4461 = vmatpush.bf16.msra.mxu0 %v8038_v59  ;;  %v8054_v59 = vld [vmem:[#allocation2 + $0x250] sm:$0xff] }
0x1b8b   : > { %4462 = vmatpush.bf16.msra.mxu0 %v8039_v9 }
0x1be3   : > { %v4134_v15 = vpop.f32.mrf.mxu0 }
0x1be4   : > { %v4135_v57 = vadd.f32 %v4134_v15, %v9083_v21 }
0x1be6   : > { %v4139_v2 = vmax.f32 %v4135_v57, 0.0  ;;  %v8055_v57 = vld [vmem:[#allocation2 + $0x248] sm:$0xff] }
0x1beb   : > { %v4136_v32 = vpop.f32.mrf.mxu0 }
0x1bec   : > { %v4137_v44 = vadd.f32 %v4136_v32, %v9085_v36  ;;  %v8056_v32 = vld [vmem:[#allocation2 + $0x240] sm:$0xff] }
0x1bee   : > { %v4140_v54 = vmax.f32 %v4137_v44, 0.0 }
0x1bf0   : > { %v4141_v30 = vpack.c.bf16 %v4140_v54, %v4139_v2  ;;  %v10210_v54 = vld [vmem:[#allocation7_spill] sm:$0xff] }
0x1bf2   : > { %4149 = vmatpush.bf16.msra.mxu3 %v4141_v30 }
0x1bf3   : > { %v9351_v25 = vpop.f32.mrf.mxu0 }
0x1bf5   : > { %7530 = vmatmul.msk.bf16.vlgmr.msra.gmra.mxu3 %vm525_vm2, %v8040_v45 }
0x1bf6   : > { %4277 = vmatpush.bf16.msrb.mxu3 %v9349_v12 }
0x1bfb   : > { %v4263_v42 = vpop.f32.mrf.mxu0 }
0x1c05   : > { %7539 = vmatmul.msk.bf16.vlgmr.msrb.gmra.mxu3 %vm413_vm1, %v8041_v47 }
0x1c15   : > { %7540 = vmatmul.msk.bf16.gmra.mxu3 %vm413_vm1, %v8042_v22 }
0x1c25   : > { %7541 = vmatmul.msk.bf16.gmra.mxu3 %vm413_vm1, %v8043_v35  ;;  %v10211_v35 = vld [vmem:[#allocation8_spill] sm:$0xff] }
0x1c35   : > { %7542 = vmatmul.msk.bf16.gmra.mxu3 %vm413_vm1, %v8044_v6 }
0x1c45   : > { %7543 = vmatmul.msk.bf16.gmra.mxu3 %vm413_vm1, %v8045_v24 }
0x1c55   : > { %7544 = vmatmul.msk.bf16.gmra.mxu3 %vm413_vm1, %v8046_v23  ;;  %v10212_v23 = vld [vmem:[#allocation9_spill] sm:$0xff] }
0x1c65   : > { %7545 = vmatmul.msk.bf16.gmra.mxu3 %vm413_vm1, %v8047_v43 }
0x1c75   : > { %7546 = vmatmul.msk.bf16.gmra.mxu3 %vm413_vm1, %v8048_v16 }
0x1c78   : > { %v4151_v50 = vpop.f32.mrf.mxu3 }
0x1c79   : > { %v4152_v3 = vadd.f32 %v4151_v50, %v9087_v0 }
0x1c7b   : > { %v4155_v18 = vmax.f32 %v4152_v3, 0.0 }
0x1c7d   : > { %v4156_v60 = vpack.c.bf16 %v4155_v18, %v4155_v18 }
0x1c7f   : > { %7531 = vmatmul.msk.bf16.vlgmr.msrb.gmra.mxu1 %vm525_vm2, %v4156_v60  ;;  %v10213_v60 = vld [vmem:[#allocation10_spill] sm:$0xff] }
0x1c80   : > { %v4153_v19 = vpop.f32.mrf.mxu3  ;;  %4692 = vmatpush.bf16.msrb.mxu1 %v8049_v61 }
0x1c84   : > { %4693 = vmatpush.bf16.msrb.mxu1 %v8050_v55  ;;  %v10214_v55 = vld [vmem:[#allocation11_spill] sm:$0xff] }
0x1c88   : > { %v4279_v41 = vpop.f32.mrf.mxu3  ;;  %4694 = vmatpush.bf16.msrb.mxu1 %v8051_v20 }
0x1c89   : > { %v4280_v8 = vadd.f32 %v4279_v41, %v8504_v29 }
0x1c8b   : > { %v4319_v37 = vmax.f32 %v4280_v8, 0.0 }
0x1c8c   : > { %4695 = vmatpush.bf16.msrb.mxu1 %v8052_v56 }
0x1c90   : > { %v4281_v49 = vpop.f32.mrf.mxu3  ;;  %4696 = vmatpush.bf16.msrb.mxu1 %v8053_v39  ;;  %v10215_v39 = vld [vmem:[#allocation12_spill] sm:$0xff] }
0x1c91   : > { %v4282_v27 = vadd.f32 %v4281_v49, %v10208_v62 }
0x1c93   : > { %v4320_v33 = vmax.f32 %v4282_v27, 0.0 }
0x1c94   : > { %4697 = vmatpush.bf16.msrb.mxu1 %v8054_v59 }
0x1c95   : > { %v4335_v9 = vpack.c.bf16 %v4320_v33, %v4319_v37  ;;  %v10216_v33 = vld [vmem:[#allocation13_spill] sm:$0xff] }
0x1c97   : > { %7547 = vmatmul.msk.bf16.vlgmr.msra.gmra.mxu1 %vm525_vm2, %v4335_v9 }
0x1c98   : > { %v4284_v15 = vpop.f32.mrf.mxu3  ;;  %4698 = vmatpush.bf16.msrb.mxu1 %v8055_v57 }
0x1c99   : > { %v4285_v44 = vadd.f32 %v4284_v15, %v10209_v7 }
0x1c9b   : > { %v4321_v45 = vmax.f32 %v4285_v44, 0.0  ;;  %v10217_v44 = vld [vmem:[#allocation14_spill] sm:$0xff] }
0x1c9c   : > { %4699 = vmatpush.bf16.msrb.mxu1 %v8056_v32 }
0x1ca0   : > { %v4286_v2 = vpop.f32.mrf.mxu3 }
0x1ca1   : > { %v4287_v30 = vadd.f32 %v4286_v2, %v10210_v54 }
0x1ca3   : > { %v4322_v42 = vmax.f32 %v4287_v30, 0.0 }
0x1ca5   : > { %v4336_v47 = vpack.c.bf16 %v4322_v42, %v4321_v45  ;;  %v10218_v45 = vld [vmem:[#allocation15_spill] sm:$0xff] }
0x1ca7   : > { %7548 = vmatmul.msk.bf16.gmra.mxu1 %vm525_vm2, %v4336_v47 }
0x1ca8   : > { %v4289_v22 = vpop.f32.mrf.mxu3 }
0x1ca9   : > { %v4290_v6 = vadd.f32 %v4289_v22, %v10211_v35 }
0x1cab   : > { %v4323_v16 = vmax.f32 %v4290_v6, 0.0 }
0x1cb0   : > { %v4291_v24 = vpop.f32.mrf.mxu3 }
0x1cb1   : > { %v4292_v43 = vadd.f32 %v4291_v24, %v10212_v23 }
0x1cb3   : > { %v4324_v50 = vmax.f32 %v4292_v43, 0.0  ;;  %v10219_v43 = vld [vmem:[#allocation16_spill] sm:$0xff] }
0x1cb5   : > { %v4337_v3 = vpack.c.bf16 %v4324_v50, %v4323_v16 }
0x1cb7   : > { %7549 = vmatmul.msk.bf16.gmra.mxu1 %vm525_vm2, %v4337_v3  ;;  %v10220_v3 = vld [vmem:[#allocation17_spill] sm:$0xff] }
0x1cb8   : > { %v4294_v18 = vpop.f32.mrf.mxu3 }
0x1cb9   : > { %v4295_v19 = vadd.f32 %v4294_v18, %v10213_v60 }
0x1cbb   : > { %v4325_v20 = vmax.f32 %v4295_v19, 0.0 }
0x1cc0   : > { %v4296_v61 = vpop.f32.mrf.mxu3 }
0x1cc1   : > { %v4297_v41 = vadd.f32 %v4296_v61, %v10214_v55 }
0x1cc3   : > { %v4326_v56 = vmax.f32 %v4297_v41, 0.0 }
0x1cc5   : > { %v4338_v8 = vpack.c.bf16 %v4326_v56, %v4325_v20 }
0x1cc7   : > { %7550 = vmatmul.msk.bf16.gmra.mxu1 %vm525_vm2, %v4338_v8  ;;  %v8057_v8 = vld [vmem:[%s9951_s3 + $0x8] ss:$0 sm:$0xff] }
0x1cc8   : > { %v4299_v49 = vpop.f32.mrf.mxu3 }
0x1cc9   : > { %v4300_v27 = vadd.f32 %v4299_v49, %v10215_v39 }
0x1ccb   : > { %v4327_v9 = vmax.f32 %v4300_v27, 0.0  ;;  %v10221_v27 = vld [vmem:[#allocation18_spill] sm:$0xff] }
0x1cd0   : > { %v4301_v37 = vpop.f32.mrf.mxu3 }
0x1cd1   : > { %v4302_v59 = vadd.f32 %v4301_v37, %v10216_v33 }
0x1cd3   : > { %v4328_v15 = vmax.f32 %v4302_v59, 0.0 }
0x1cd5   : > { %v4339_v57 = vpack.c.bf16 %v4328_v15, %v4327_v9 }
0x1cd7   : > { %7551 = vmatmul.msk.bf16.gmra.mxu1 %vm525_vm2, %v4339_v57  ;;  %v10222_v57 = vld [vmem:[#allocation19_spill] sm:$0xff] }
0x1cd8   : > { %v4304_v32 = vpop.f32.mrf.mxu3 }
0x1cd9   : > { %v4305_v2 = vadd.f32 %v4304_v32, %v10217_v44 }
0x1cdb   : > { %v4329_v47 = vmax.f32 %v4305_v2, 0.0 }
0x1ce0   : > { %v4306_v30 = vpop.f32.mrf.mxu3 }
0x1ce1   : > { %v4307_v42 = vadd.f32 %v4306_v30, %v10218_v45 }
0x1ce3   : > { %v4330_v22 = vmax.f32 %v4307_v42, 0.0 }
0x1ce5   : > { %v4340_v6 = vpack.c.bf16 %v4330_v22, %v4329_v47 }
0x1ce7   : > { %7552 = vmatmul.msk.bf16.gmra.mxu1 %vm525_vm2, %v4340_v6 }
0x1ce8   : > { %v4309_v24 = vpop.f32.mrf.mxu3 }
0x1ce9   : > { %v4310_v16 = vadd.f32 %v4309_v24, %v10219_v43 }
0x1ceb   : > { %v4331_v19 = vmax.f32 %v4310_v16, 0.0 }
0x1cf0   : > { %v4311_v50 = vpop.f32.mrf.mxu3 }
0x1cf1   : > { %v4312_v18 = vadd.f32 %v4311_v50, %v10220_v3 }
0x1cf3   : > { %v4332_v61 = vmax.f32 %v4312_v18, 0.0 }
0x1cf5   : > { %v4341_v41 = vpack.c.bf16 %v4332_v61, %v4331_v19 }
0x1cf7   : > { %7553 = vmatmul.msk.bf16.gmra.mxu1 %vm525_vm2, %v4341_v41 }
0x1cf8   : > { %v4314_v20 = vpop.f32.mrf.mxu3 }
0x1cf9   : > { %v4315_v37 = vadd.f32 %v4314_v20, %v10221_v27 }
0x1cfb   : > { %v4333_v2 = vmax.f32 %v4315_v37, 0.0 }
0x1cfc   : > { %v4169_v56 = vpop.f32.mrf.mxu1 }
0x1cfd   : > { %v4170_v49 = vadd.f32 %v8057_v8, %v4169_v56 }
0x1cff   : > { %v4173_v59 = vmax.f32 %v4170_v49, 0.0 }
0x1d00   : > { %v4316_v9 = vpop.f32.mrf.mxu3 }
0x1d01   : > { %v4174_v15 = vpack.c.bf16 %v4173_v59, %v4173_v59  ;;  %v4317_v32 = vadd.f32 %v4316_v9, %v10222_v57 }
0x1d03   : > { %v4334_v30 = vmax.f32 %v4317_v32, 0.0  ;;  %7532 = vmatmul.msk.bf16.vlgmr.msrb.gmra.mxu2 %vm525_vm2, %v4174_v15  ;;  %v8058_v15 = vld [vmem:[%s9951_s3] ss:$0 sm:$0xff] }
0x1d04   : > { %v4171_v42 = vpop.f32.mrf.mxu1 }
0x1d05   : > { %v4342_v47 = vpack.c.bf16 %v4334_v30, %v4333_v2 }
0x1d07   : > { %7554 = vmatmul.msk.bf16.gmra.mxu1 %vm525_vm2, %v4342_v47 }
0x1d14   : > { %v4376_v22 = vpop.f32.mrf.mxu1 }
0x1d1c   : > { %v4378_v6 = vpop.f32.mrf.mxu1 }
0x1d24   : > { %v4381_v24 = vpop.f32.mrf.mxu1 }
0x1d2c   : > { %v4383_v16 = vpop.f32.mrf.mxu1 }
0x1d34   : > { %v4386_v50 = vpop.f32.mrf.mxu1 }
0x1d3c   : > { %v4388_v18 = vpop.f32.mrf.mxu1 }
0x1d44   : > { %v4391_v19 = vpop.f32.mrf.mxu1 }
0x1d4c   : > { %v4393_v61 = vpop.f32.mrf.mxu1 }
0x1d54   : > { %v4396_v41 = vpop.f32.mrf.mxu1 }
0x1d55   : > { %v4397_v23 = vadd.f32 %v8058_v15, %v4396_v41 }
0x1d5c   : > { %v4398_v20 = vpop.f32.mrf.mxu1 }
0x1d5d   : > { %v4399_v55 = vadd.f32 %v8058_v15, %v4398_v20 }
0x1d5f   : > { %v4425_v54 = vmax.f32 %v4399_v55, 0.0  ;;  %v4377_v55 = vadd.f32 %v8058_v15, %v4376_v22  ;;  %v4262_v22 = vadd.f32 %v9351_v25, %v8596_v34 }
0x1d61   : > { %v4265_v20 = vmax.f32 %v4262_v22, 0.0 }
0x1d64   : > { %v4401_v56 = vpop.f32.mrf.mxu1 }
0x1d65   : > { %v4402_v33 = vadd.f32 %v8058_v15, %v4401_v56 }
0x1d67   : > { %v4426_v35 = vmax.f32 %v4402_v33, 0.0  ;;  %v4379_v33 = vadd.f32 %v8058_v15, %v4378_v6 }
0x1d6c   : > { %v4403_v8 = vpop.f32.mrf.mxu1 }
0x1d6d   : > { %v4404_v43 = vadd.f32 %v8058_v15, %v4403_v8 }
0x1d74   : > { %v4406_v49 = vpop.f32.mrf.mxu1 }
0x1d75   : > { %v4407_v57 = vadd.f32 %v8058_v15, %v4406_v49  ;;  %v4389_v49 = vadd.f32 %v8058_v15, %v4388_v18  ;;  %v4416_v18 = vmax.f32 %v4377_v55, 0.0 }
0x1d77   : > { %v4428_v39 = vmax.f32 %v4407_v57, 0.0 }
0x1d7c   : > { %v4408_v37 = vpop.f32.mrf.mxu1 }
0x1d7d   : > { %v4409_v30 = vadd.f32 %v8058_v15, %v4408_v37 }
0x1d7f   : > { %v4429_v45 = vmax.f32 %v4409_v30, 0.0  ;;  %v4387_v30 = vadd.f32 %v8058_v15, %v4386_v50  ;;  %v8059_v50 = vld [vmem:[#allocation2 + $0xc0] sm:$0xf] }
0x1d81   : > { %v4438_v60 = vpack.c.bf16 %v4429_v45, %v4428_v39  ;;  %v4420_v39 = vmax.f32 %v4387_v30, 0.0  ;;  %v8064_v30 = vld [vmem:[#allocation2 + $0x190] sm:$0xff] }
0x1d84   : > { %v4411_v59 = vpop.f32.mrf.mxu1 }
0x1d85   : > { %v4412_v32 = vadd.f32 %v8058_v15, %v4411_v59  ;;  %v4394_v59 = vadd.f32 %v8058_v15, %v4393_v61 }
0x1d86   : > { %v9393_v9 = vpop.f32.mrf.mxu2 }
0x1d87   : > { %10223 = vst [vmem:[#allocation5_spill] sm:$0xff] %v9393_v9  ;;  %v4430_v27 = vmax.f32 %v4412_v32, 0.0  ;;  %v4427_v9 = vmax.f32 %v4404_v43, 0.0  ;;  %v4423_v32 = vmax.f32 %v4394_v59, 0.0  ;;  %v4382_v43 = vadd.f32 %v8058_v15, %v4381_v24 }
0x1d89   : > { %v4437_v37 = vpack.c.bf16 %v4427_v9, %v4426_v35  ;;  %v4418_v35 = vmax.f32 %v4382_v43, 0.0  ;;  %v8060_v9 = vld [vmem:[%s9951_s3 + $0x1] ss:$0 sm:$0xff] }
0x1d8c   : > { %v4413_v2 = vpop.f32.mrf.mxu1 }
0x1d8d   : > { %v4414_v42 = vadd.f32 %v8058_v15, %v4413_v2  ;;  %v4392_v2 = vadd.f32 %v8058_v15, %v4391_v19 }
0x1d8e   : > { %v4189_v47 = vpop.f32.mrf.mxu2 }
0x1d8f   : > { %v4431_v3 = vmax.f32 %v4414_v42, 0.0  ;;  %v4424_v47 = vmax.f32 %v4397_v23, 0.0  ;;  %v4417_v23 = vmax.f32 %v4379_v33, 0.0  ;;  %v4469_v42 = vadd.f32 %v9323_v38, %v4265_v20  ;;  %v8063_v38 = vld [vmem:[#allocation2 + $0x188] sm:$0xff]  ;;  %v8069_v33 = vld [vmem:[#allocation2 + $0x1b8] sm:$0xff] }
0x1d91   : > { %v4439_v44 = vpack.c.bf16 %v4431_v3, %v4430_v27  ;;  %v4436_v8 = vpack.c.bf16 %v4425_v54, %v4424_v47  ;;  %v4422_v3 = vmax.f32 %v4392_v2, 0.0  ;;  %v4384_v27 = vadd.f32 %v8058_v15, %v4383_v16 }
0x1d92   : > { %v4432_v54 = vpack.c.bf16 %v4417_v23, %v4416_v18 }
0x1d93   : > { %4440 = vmatpush.bf16.msra.mxu2 %v4439_v44  ;;  %v4421_v44 = vmax.f32 %v4389_v49, 0.0  ;;  %v4435_v57 = vpack.c.bf16 %v4423_v32, %v4422_v3  ;;  %v8061_v32 = vld [vmem:[#allocation2 + $0x300] sm:$0xff]  ;;  %v8065_v3 = vld [vmem:[#allocation2 + $0x198] sm:$0xff] }
0x1d95   : > { %v4434_v45 = vpack.c.bf16 %v4421_v44, %v4420_v39  ;;  %v8067_v44 = vld [vmem:[#allocation2 + $0x1a8] sm:$0xff] }
0x1d97   : > { %4441 = vmatpush.bf16.msra.mxu2 %v4438_v60  ;;  %v4419_v60 = vmax.f32 %v4384_v27, 0.0  ;;  %v8066_v27 = vld [vmem:[#allocation2 + $0x1a0] sm:$0xff] }
0x1d99   : > { %v4433_v19 = vpack.c.bf16 %v4419_v60, %v4418_v35 }
0x1d9b   : > { %4442 = vmatpush.bf16.msra.mxu2 %v4437_v37 }
0x1d9f   : > { %4443 = vmatpush.bf16.msra.mxu2 %v4436_v8  ;;  %v8062_v8 = vld [vmem:[#allocation2 + $0x180] sm:$0xff] }
0x1da3   : > { %4444 = vmatpush.bf16.msra.mxu2 %v4435_v57  ;;  %v8068_v57 = vld [vmem:[#allocation2 + $0x1b0] sm:$0xff] }
0x1da7   : > { %4445 = vmatpush.bf16.msra.mxu2 %v4434_v45 }
0x1dab   : > { %4446 = vmatpush.bf16.msra.mxu2 %v4433_v19 }
0x1daf   : > { %4447 = vmatpush.bf16.msra.mxu2 %v4432_v54 }
0x1db2   : > { %4448 = vmatmul.bf16.vlgmr.msra.gmra.mxu2 %v8059_v50 }
0x1e35   : > { %v4449_v16 = vpop.f32.mrf.mxu2 }
0x1e36   : > { %v4450_v61 = vadd.f32 %v4449_v16, %v8593_v52  ;;  %v8070_v16 = vld [vmem:[#allocation2 + $0x1c0] sm:$0xff] }
0x1e38   : > { %v4453_v24 = vmax.f32 %v4450_v61, 0.0  ;;  %v8071_v61 = vld [vmem:[#allocation2 + $0x140] sm:$0xf] }
0x1e3a   : > { %v4454_v41 = vpack.c.bf16 %v4453_v24, %v4453_v24  ;;  %v8072_v24 = vld [vmem:[#allocation2 + $0x378] sm:$0xff] }
0x1e3c   : > { %4463 = vmatmul.bf16.vlgmr.msra.gmra.mxu0 %v4454_v41 }
0x1e3d   : > { %v4451_v6 = vpop.f32.mrf.mxu2 }
0x1e3e   : > { %v8073_v6 = vld [vmem:[#allocation2 + $0x370] sm:$0xff] }
0x1eb9   : > { %v4464_v56 = vpop.f32.mrf.mxu0 }
0x1eba   : > { %v4465_v15 = vadd.f32 %v8060_v9, %v4464_v56  ;;  %v8074_v56 = vld [vmem:[#allocation2 + $0x368] sm:$0xff] }
0x1ebc   : > { %v4468_v59 = vmax.f32 %v4465_v15, 0.0 }
0x1ebe   : > { %v4470_v37 = vadd.f32 %v4469_v42, %v4468_v59  ;;  %v8075_v42 = vld [vmem:[#allocation2 + $0x360] sm:$0xff] }
0x1ec0   : > { %v9405_v2 = vmax.f32 %v4470_v37, 0.0 }
0x1ec1   : > { %v4466_v47 = vpop.f32.mrf.mxu0 }
0x1ec2   : > { %4473 = vrot.lane.b32.xlu0 %v9405_v2, %s8327_s21  ;;  %v4503_v25 = vpack.c.bf16 %v9405_v2, %v9405_v2  ;;  %v8076_v47 = vld [vmem:[#allocation2 + $0x358] sm:$0xff] }
0x1ec4   : > { %v4505_v49 = vsel %vm241_vm0, %v4503_v25, 0  ;;  %v8077_v25 = vld [vmem:[#allocation2 + $0x350] sm:$0xff] }
0x1ec5   : > { %4514 = vmatpush.bf16.msrb.mxu0 %v4505_v49  ;;  %v10224_v49 = vld [vmem:[#allocation25_spill] sm:$0xff] }
0x1ec8   : > { %7560 = vmatmul.msk.bf16.vlgmr.msrb.gmra.mxu0 %vm413_vm1, %v8062_v8  ;;  %v10225_v8 = vld [vmem:[#allocation24_spill] sm:$0xff] }
0x1ec9   : > { %4899 = vmatpush.bf16.msra.mxu0 %v8061_v32 }
0x1ed8   : > { %7561 = vmatmul.msk.bf16.gmra.mxu0 %vm413_vm1, %v8063_v38 }
0x1ee8   : > { %7562 = vmatmul.msk.bf16.gmra.mxu0 %vm413_vm1, %v8064_v30 }
0x1ef8   : > { %7563 = vmatmul.msk.bf16.gmra.mxu0 %vm413_vm1, %v8065_v3  ;;  %v8078_v3 = vld [vmem:[#allocation2 + $0x348] sm:$0xff] }
0x1f08   : > { %7564 = vmatmul.msk.bf16.gmra.mxu0 %vm413_vm1, %v8066_v27 }
0x1f18   : > { %7565 = vmatmul.msk.bf16.gmra.mxu0 %vm413_vm1, %v8067_v44 }
0x1f28   : > { %7566 = vmatmul.msk.bf16.gmra.mxu0 %vm413_vm1, %v8068_v57  ;;  %v8079_v57 = vld [vmem:[#allocation2 + $0x340] sm:$0xff] }
0x1f34   : > { %v4474_v43 = vpop.permute.xlu0 %4473 }
0x1f35   : > { %v4476_v39 = vsel %vm732_vm8, 0.0, %v4474_v43 }
0x1f36   : > { %4478 = vrot.lane.b32.xlu2 %v4476_v39, %s8323_s14  ;;  %4481 = vrot.lane.b32.xlu1 %v4476_v39, %s8329_s22 }
0x1f38   : > { %7567 = vmatmul.msk.bf16.gmra.mxu0 %vm413_vm1, %v8069_v33  ;;  %v10226_v33 = vld [vmem:[#allocation26_spill] sm:$0xff] }
0x1f45   : > { %v4516_v60 = vpop.f32.mrf.mxu0 }
0x1f46   : > { %v4517_v20 = vadd.f32 %v4516_v60, %v10163_v31 }
0x1f48   : > { %v4556_v15 = vmax.f32 %v4517_v20, 0.0 }
0x1f4d   : > { %v4518_v45 = vpop.f32.mrf.mxu0 }
0x1f4e   : > { %v4519_v22 = vadd.f32 %v4518_v45, %v10162_v14  ;;  %v10227_v45 = vld [vmem:[#allocation27_spill] sm:$0xff] }
0x1f50   : > { %v4557_v9 = vmax.f32 %v4519_v22, 0.0 }
0x1f52   : > { %v4572_v59 = vpack.c.bf16 %v4557_v9, %v4556_v15  ;;  %v10230_v9 = vld [vmem:[#allocation30_spill] sm:$0xff] }
0x1f55   : > { %v4521_v55 = vpop.f32.mrf.mxu0 }
0x1f56   : > { %v4522_v38 = vadd.f32 %v4521_v55, %v10225_v8  ;;  %v10228_v55 = vld [vmem:[#allocation29_spill] sm:$0xff] }
0x1f58   : > { %v4558_v44 = vmax.f32 %v4522_v38, 0.0  ;;  %v10232_v38 = vld [vmem:[#allocation33_spill] sm:$0xff] }
0x1f5d   : > { %v4523_v54 = vpop.f32.mrf.mxu0 }
0x1f5e   : > { %v4524_v32 = vadd.f32 %v4523_v54, %v10224_v49 }
0x1f60   : > { %v4559_v27 = vmax.f32 %v4524_v32, 0.0 }
0x1f65   : > { %v4526_v41 = vpop.f32.mrf.mxu0 }
0x1f6d   : > { %v4528_v37 = vpop.f32.mrf.mxu0 }
0x1f6e   : > { %v4529_v60 = vadd.f32 %v4528_v37, %v10226_v33 }
0x1f75   : > { %v4531_v30 = vpop.f32.mrf.mxu0 }
0x1f7d   : > { %v4533_v39 = vpop.f32.mrf.mxu0 }
0x1f90   : > { %v4479_v19 = vpop.permute.xlu2 %4478 }
0x1f91   : > { %v7557_v50 = vpack.c.bf16 %v4479_v19, %v4474_v43  ;;  %v4573_v43 = vpack.c.bf16 %v4559_v27, %v4558_v44 }
0x1fa8   : > { %v4482_v35 = vpop.permute.xlu1 %4481 }
0x1fa9   : > { %v4485_v23 = vpack.c.bf16 %v4482_v35, %v4482_v35  ;;  %v4527_v35 = vadd.f32 %v4526_v41, %v10227_v45  ;;  %v10231_v41 = vld [vmem:[#allocation31_spill] sm:$0xff] }
0x1fab   : > { %v4487_v18 = vsel %vm241_vm0, %v4485_v23, 0  ;;  %v4561_v23 = vmax.f32 %v4529_v60, 0.0  ;;  %v4560_v19 = vmax.f32 %v4527_v35, 0.0  ;;  %v10234_v60 = vld [vmem:[#allocation35_spill] sm:$0xff] }
0x1fac   : > { %4495 = vmatpush.bf16.msrb.mxu2 %v4487_v18  ;;  %v4536_v18 = vpop.f32.mrf.mxu0 }
0x1fad   : > { %v4574_v54 = vpack.c.bf16 %v4561_v23, %v4560_v19  ;;  %v10235_v23 = vld [vmem:[#allocation34_spill] sm:$0xff] }
0x1fb0   : > { %7558 = vmatpush.bf16.msk.msrb.mxu2 %vm8640_vm10, %v7557_v50  ;;  %v4534_v50 = vadd.f32 %v4533_v39, %v10228_v55 }
0x1fb3   : > { %7559 = vmatmul.msk.bf16.vlgmr.msrb.gmra.mxu2 %vm237_vm7, %v8071_v61  ;;  %v10229_v61 = vld [vmem:[#allocation28_spill] sm:$0xff] }
0x1fb4   : > { %4611 = vmatpush.bf16.msra.mxu2 %v8070_v16  ;;  %v4538_v16 = vpop.f32.mrf.mxu0 }
0x1fb5   : > { %v4539_v15 = vadd.f32 %v4538_v16, %v10230_v9 }
0x1fb8   : > { %4965 = vmatpush.bf16.msrb.mxu2 %v8072_v24  ;;  %v4532_v24 = vadd.f32 %v4531_v30, %v10229_v61  ;;  %v10233_v30 = vld [vmem:[#allocation32_spill] sm:$0xff] }
0x1fba   : > { %v4562_v22 = vmax.f32 %v4532_v24, 0.0 }
0x1fbc   : > { %4966 = vmatpush.bf16.msrb.mxu2 %v8073_v6  ;;  %v4563_v6 = vmax.f32 %v4534_v50, 0.0 }
0x1fbe   : > { %v4575_v20 = vpack.c.bf16 %v4563_v6, %v4562_v22  ;;  %v10236_v6 = vld [vmem:[#allocation36_spill] sm:$0xff] }
0x1fc0   : > { %4967 = vmatpush.bf16.msrb.mxu2 %v8074_v56  ;;  %v4541_v56 = vpop.f32.mrf.mxu0 }
0x1fc1   : > { %v4542_v27 = vadd.f32 %v4541_v56, %v10233_v30 }
0x1fc3   : > { %7568 = vmatmul.msk.bf16.vlgmr.msra.gmra.mxu2 %vm525_vm2, %v4572_v59  ;;  %v4565_v59 = vmax.f32 %v4539_v15, 0.0 }
0x1fc4   : > { %4968 = vmatpush.bf16.msrb.mxu2 %v8075_v42  ;;  %v4537_v42 = vadd.f32 %v4536_v18, %v10231_v41 }
0x1fc8   : > { %4969 = vmatpush.bf16.msrb.mxu2 %v8076_v47  ;;  %v4543_v37 = vpop.f32.mrf.mxu0  ;;  %v4564_v47 = vmax.f32 %v4537_v42, 0.0 }
0x1fcc   : > { %4970 = vmatpush.bf16.msrb.mxu2 %v8077_v25  ;;  %v4576_v25 = vpack.c.bf16 %v4565_v59, %v4564_v47 }
0x1fd0   : > { %4971 = vmatpush.bf16.msrb.mxu2 %v8078_v3  ;;  %v4546_v32 = vpop.f32.mrf.mxu0  ;;  %v4544_v3 = vadd.f32 %v4543_v37, %v10232_v38 }
0x1fd1   : > { %v4547_v19 = vadd.f32 %v4546_v32, %v10235_v23 }
0x1fd2   : > { %v4567_v44 = vmax.f32 %v4544_v3, 0.0 }
0x1fd3   : > { %7569 = vmatmul.msk.bf16.gmra.mxu2 %vm525_vm2, %v4573_v43  ;;  %v4568_v50 = vmax.f32 %v4547_v19, 0.0 }
0x1fd4   : > { %4972 = vmatpush.bf16.msrb.mxu2 %v8079_v57  ;;  %v4566_v57 = vmax.f32 %v4542_v27, 0.0 }
0x1fd6   : > { %v4577_v43 = vpack.c.bf16 %v4567_v44, %v4566_v57 }
0x1fd8   : > { %v4548_v39 = vpop.f32.mrf.mxu0 }
0x1fd9   : > { %v4549_v35 = vadd.f32 %v4548_v39, %v10234_v60 }
0x1fe0   : > { %v4551_v18 = vpop.f32.mrf.mxu0 }
0x1fe3   : > { %7570 = vmatmul.msk.bf16.gmra.mxu2 %vm525_vm2, %v4574_v54  ;;  %v4569_v54 = vmax.f32 %v4549_v35, 0.0 }
0x1fe5   : > { %v4578_v16 = vpack.c.bf16 %v4569_v54, %v4568_v50 }
0x1fe8   : > { %v4553_v24 = vpop.f32.mrf.mxu0 }
0x1fe9   : > { %v4554_v22 = vadd.f32 %v4553_v24, %v10236_v6 }
0x1feb   : > { %v4571_v15 = vmax.f32 %v4554_v22, 0.0  ;;  %v8080_v22 = vld [vmem:[%s9951_s3 + $0x2] ss:$0 sm:$0xff] }
0x1ff3   : > { %7571 = vmatmul.msk.bf16.gmra.mxu2 %vm525_vm2, %v4575_v20  ;;  %v10237_v20 = vld [vmem:[#allocation37_spill] sm:$0xff] }
0x1ff4   : > { %v4552_v56 = vadd.f32 %v4551_v18, %v10237_v20 }
0x1ff6   : > { %v4570_v42 = vmax.f32 %v4552_v56, 0.0 }
0x1ff8   : > { %v4579_v59 = vpack.c.bf16 %v4571_v15, %v4570_v42 }
0x2003   : > { %7572 = vmatmul.msk.bf16.gmra.mxu2 %vm525_vm2, %v4576_v25 }
0x2013   : > { %7573 = vmatmul.msk.bf16.gmra.mxu2 %vm525_vm2, %v4577_v43 }
0x2023   : > { %7574 = vmatmul.msk.bf16.gmra.mxu2 %vm525_vm2, %v4578_v16 }
0x2033   : > { %7575 = vmatmul.msk.bf16.gmra.mxu2 %vm525_vm2, %v4579_v59 }
0x2036   : > { %v9451_v37 = vpop.f32.mrf.mxu2 }
0x203e   : > { %v4500_v47 = vpop.f32.mrf.mxu2 }
0x2046   : > { %v4613_v25 = vpop.f32.mrf.mxu2 }
0x204e   : > { %v4615_v32 = vpop.f32.mrf.mxu2 }
0x2056   : > { %v4618_v3 = vpop.f32.mrf.mxu2 }
0x205e   : > { %v4620_v27 = vpop.f32.mrf.mxu2 }
0x2066   : > { %v4623_v44 = vpop.f32.mrf.mxu2 }
0x206e   : > { %v4625_v57 = vpop.f32.mrf.mxu2 }
0x2076   : > { %v4628_v43 = vpop.f32.mrf.mxu2 }
0x207e   : > { %v4630_v39 = vpop.f32.mrf.mxu2 }
0x207f   : > { %v4631_v8 = vadd.f32 %v8080_v22, %v4630_v39  ;;  %v8088_v39 = vld [vmem:[#allocation2 + $0x5d0] sm:$0xff] }
0x2086   : > { %v4633_v35 = vpop.f32.mrf.mxu2 }
0x2087   : > { %v4634_v45 = vadd.f32 %v8080_v22, %v4633_v35  ;;  %v8089_v35 = vld [vmem:[#allocation2 + $0x5c8] sm:$0xff] }
0x208e   : > { %v4635_v19 = vpop.f32.mrf.mxu2 }
0x208f   : > { %v4636_v9 = vadd.f32 %v8080_v22, %v4635_v19 }
0x2096   : > { %v4638_v54 = vpop.f32.mrf.mxu2 }
0x2097   : > { %v4639_v38 = vadd.f32 %v8080_v22, %v4638_v54  ;;  %v8091_v54 = vld [vmem:[#allocation2 + $0x418] sm:$0xff] }
0x2099   : > { %v4663_v33 = vmax.f32 %v4639_v38, 0.0  ;;  %v4616_v38 = vadd.f32 %v8080_v22, %v4615_v32  ;;  %v8084_v32 = vld [vmem:[#allocation2 + $0x5e8] sm:$0xff] }
0x209e   : > { %v4640_v18 = vpop.f32.mrf.mxu2 }
0x209f   : > { %v4641_v23 = vadd.f32 %v8080_v22, %v4640_v18 }
0x20a1   : > { %v4664_v61 = vmax.f32 %v4641_v23, 0.0  ;;  %v4619_v23 = vadd.f32 %v8080_v22, %v4618_v3  ;;  %v8083_v3 = vld [vmem:[#allocation2 + $0x5f0] sm:$0xff] }
0x20a3   : > { %v4674_v49 = vpack.c.bf16 %v4664_v61, %v4663_v33  ;;  %v4655_v33 = vmax.f32 %v4619_v23, 0.0 }
0x20a6   : > { %v4643_v50 = vpop.f32.mrf.mxu2 }
0x20a7   : > { %v4644_v47 = vadd.f32 %v8080_v22, %v4643_v50  ;;  %v4626_v50 = vadd.f32 %v8080_v22, %v4625_v57  ;;  %v8085_v57 = vld [vmem:[#allocation2 + $0x5e0] sm:$0xff] }
0x20a9   : > { %v4665_v41 = vmax.f32 %v4644_v47, 0.0  ;;  %v8094_v47 = vld [vmem:[#allocation2 + $0x408] sm:$0xff] }
0x20ae   : > { %v4645_v16 = vpop.f32.mrf.mxu2 }
0x20af   : > { %v4646_v42 = vadd.f32 %v8080_v22, %v4645_v16  ;;  %v4629_v16 = vadd.f32 %v8080_v22, %v4628_v43  ;;  %v8087_v43 = vld [vmem:[#allocation2 + $0x5d8] sm:$0xff] }
0x20b1   : > { %v4666_v60 = vmax.f32 %v4646_v42, 0.0  ;;  %v4624_v42 = vadd.f32 %v8080_v22, %v4623_v44  ;;  %v8082_v44 = vld [vmem:[#allocation2 + $0x5f8] sm:$0xff] }
0x20b3   : > { %v4675_v55 = vpack.c.bf16 %v4666_v60, %v4665_v41  ;;  %v4657_v41 = vmax.f32 %v4624_v42, 0.0  ;;  %v8101_v42 = vld [vmem:[#allocation2 + $0x2b8] sm:$0xff] }
0x20b6   : > { %v4648_v24 = vpop.f32.mrf.mxu2 }
0x20b7   : > { %v4649_v56 = vadd.f32 %v8080_v22, %v4648_v24  ;;  %v4662_v24 = vmax.f32 %v4636_v9, 0.0  ;;  %v4614_v9 = vadd.f32 %v8080_v22, %v4613_v25  ;;  %v8086_v25 = vld [vmem:[#allocation2 + $0x280] sm:$0xff] }
0x20b9   : > { %v4667_v20 = vmax.f32 %v4649_v56, 0.0  ;;  %v4660_v56 = vmax.f32 %v4631_v8, 0.0  ;;  %v4653_v61 = vmax.f32 %v4614_v9, 0.0 }
0x20be   : > { %v4650_v15 = vpop.f32.mrf.mxu2 }
0x20bf   : > { %v4651_v59 = vadd.f32 %v8080_v22, %v4650_v15  ;;  %v4661_v15 = vmax.f32 %v4634_v45, 0.0  ;;  %v4654_v45 = vmax.f32 %v4616_v38, 0.0 }
0x20c1   : > { %v4668_v6 = vmax.f32 %v4651_v59, 0.0  ;;  %v4673_v18 = vpack.c.bf16 %v4662_v24, %v4661_v15  ;;  %v4669_v8 = vpack.c.bf16 %v4654_v45, %v4653_v61  ;;  %v8093_v59 = vld [vmem:[#allocation2 + $0x410] sm:$0xff]  ;;  %v8095_v24 = vld [vmem:[#allocation2 + $0x400] sm:$0xff]  ;;  %v8097_v15 = vld [vmem:[#allocation2 + $0x298] sm:$0xff] }
0x20c3   : > { %v4676_v30 = vpack.c.bf16 %v4668_v6, %v4667_v20  ;;  %v4659_v6 = vmax.f32 %v4629_v16, 0.0  ;;  %v4621_v20 = vadd.f32 %v8080_v22, %v4620_v27  ;;  %v8081_v27 = vld [vmem:[#allocation2 + $0x200] sm:$0xf]  ;;  %v8092_v22 = vld [vmem:[#allocation2 + $0x288] sm:$0xff]  ;;  %v8096_v16 = vld [vmem:[#allocation2 + $0x290] sm:$0xff] }
0x20c5   : > { %4677 = vmatpush.bf16.msra.mxu3 %v4676_v30  ;;  %v4658_v30 = vmax.f32 %v4626_v50, 0.0  ;;  %v4672_v19 = vpack.c.bf16 %v4660_v56, %v4659_v6  ;;  %v8098_v50 = vld [vmem:[#allocation2 + $0x2a0] sm:$0xff]  ;;  %v8099_v56 = vld [vmem:[#allocation2 + $0x2a8] sm:$0xff] }
0x20c7   : > { %v4671_v60 = vpack.c.bf16 %v4658_v30, %v4657_v41 }
0x20c9   : > { %4678 = vmatpush.bf16.msra.mxu3 %v4675_v55  ;;  %v4656_v55 = vmax.f32 %v4621_v20, 0.0 }
0x20cd   : > { %4679 = vmatpush.bf16.msra.mxu3 %v4674_v49  ;;  %v4670_v49 = vpack.c.bf16 %v4656_v55, %v4655_v33 }
0x20d1   : > { %4680 = vmatpush.bf16.msra.mxu3 %v4673_v18  ;;  %v8100_v18 = vld [vmem:[#allocation2 + $0x2b0] sm:$0xff] }
0x20d5   : > { %4681 = vmatpush.bf16.msra.mxu3 %v4672_v19 }
0x20d9   : > { %4682 = vmatpush.bf16.msra.mxu3 %v4671_v60 }
0x20dd   : > { %4683 = vmatpush.bf16.msra.mxu3 %v4670_v49 }
0x20e1   : > { %4684 = vmatpush.bf16.msra.mxu3 %v4669_v8 }
0x20e4   : > { %4685 = vmatmul.bf16.vlgmr.msra.gmra.mxu3 %v8081_v27 }
0x20e5   : > { %4729 = vmatpush.bf16.msrb.mxu3 %v9349_v12  ;;  %v8090_v12 = vld [vmem:[#allocation2 + $0x5c0] sm:$0xff] }
0x20e9   : > { %5038 = vmatpush.bf16.msra.mxu3 %v8082_v44 }
0x20ed   : > { %5039 = vmatpush.bf16.msra.mxu3 %v8083_v3 }
0x20f1   : > { %5040 = vmatpush.bf16.msra.mxu3 %v8084_v32 }
0x20f4   : > { %7576 = vmatmul.msk.bf16.vlgmr.msrb.gmra.mxu3 %vm413_vm1, %v8086_v25 }
0x20f5   : > { %5041 = vmatpush.bf16.msra.mxu3 %v8085_v57 }
0x20f9   : > { %5042 = vmatpush.bf16.msra.mxu3 %v8087_v43 }
0x20fd   : > { %5043 = vmatpush.bf16.msra.mxu3 %v8088_v39 }
0x2101   : > { %5044 = vmatpush.bf16.msra.mxu3 %v8089_v35  ;;  %v10238_v35 = vld [vmem:[#allocation40_spill] sm:$0xff] }
0x2104   : > { %7577 = vmatmul.msk.bf16.gmra.mxu3 %vm413_vm1, %v8092_v22 }
0x2105   : > { %5045 = vmatpush.bf16.msra.mxu3 %v8090_v12 }
0x2109   : > { %5306 = vmatpush.bf16.msrb.mxu3 %v8091_v54  ;;  %v10239_v54 = vld [vmem:[#allocation45_spill] sm:$0xff] }
0x210d   : > { %5307 = vmatpush.bf16.msrb.mxu3 %v8093_v59  ;;  %v10240_v59 = vld [vmem:[#allocation43_spill] sm:$0xff] }
0x2111   : > { %5308 = vmatpush.bf16.msrb.mxu3 %v8094_v47 }
0x2114   : > { %7578 = vmatmul.msk.bf16.gmra.mxu3 %vm413_vm1, %v8096_v16 }
0x2115   : > { %5309 = vmatpush.bf16.msrb.mxu3 %v8095_v24 }
0x2124   : > { %7579 = vmatmul.msk.bf16.gmra.mxu3 %vm413_vm1, %v8097_v15 }
0x2134   : > { %7580 = vmatmul.msk.bf16.gmra.mxu3 %vm413_vm1, %v8098_v50  ;;  %v10241_v50 = vld [vmem:[#allocation41_spill] sm:$0xff] }
0x2144   : > { %7581 = vmatmul.msk.bf16.gmra.mxu3 %vm413_vm1, %v8099_v56 }
0x2154   : > { %7582 = vmatmul.msk.bf16.gmra.mxu3 %vm413_vm1, %v8100_v18 }
0x2164   : > { %7583 = vmatmul.msk.bf16.gmra.mxu3 %vm413_vm1, %v8101_v42 }
0x2167   : > { %v4686_v6 = vpop.f32.mrf.mxu3 }
0x2168   : > { %v4687_v20 = vadd.f32 %v4686_v6, %v8749_v17  ;;  %v10242_v6 = vld [vmem:[#allocation44_spill] sm:$0xff] }
0x216a   : > { %v4690_v30 = vmax.f32 %v4687_v20, 0.0 }
0x216c   : > { %v4691_v19 = vpack.c.bf16 %v4690_v30, %v4690_v30 }
0x216e   : > { %4700 = vmatmul.bf16.vlgmr.msrb.gmra.mxu1 %v4691_v19  ;;  %v10243_v19 = vld [vmem:[#allocation46_spill] sm:$0xff] }
0x216f   : > { %v4688_v23 = vpop.f32.mrf.mxu3 }
0x2177   : > { %v4731_v41 = vpop.f32.mrf.mxu3 }
0x217f   : > { %v4733_v38 = vpop.f32.mrf.mxu3 }
0x2187   : > { %v4736_v55 = vpop.f32.mrf.mxu3 }
0x218f   : > { %v4738_v60 = vpop.f32.mrf.mxu3 }
0x2197   : > { %v4741_v9 = vpop.f32.mrf.mxu3 }
0x219f   : > { %v4743_v33 = vpop.f32.mrf.mxu3 }
0x21a7   : > { %v4746_v45 = vpop.f32.mrf.mxu3 }
0x21af   : > { %v4748_v49 = vpop.f32.mrf.mxu3 }
0x21b7   : > { %v4751_v61 = vpop.f32.mrf.mxu3 }
0x21bf   : > { %v4753_v8 = vpop.f32.mrf.mxu3 }
0x21c0   : > { %v4754_v23 = vadd.f32 %v4753_v8, %v10243_v19 }
0x21c7   : > { %v4756_v27 = vpop.f32.mrf.mxu3 }
0x21c8   : > { %v4757_v20 = vadd.f32 %v4756_v27, %v10242_v6 }
0x21cf   : > { %v4758_v44 = vpop.f32.mrf.mxu3 }
0x21d0   : > { %v4759_v56 = vadd.f32 %v4758_v44, %v10241_v50 }
0x21d7   : > { %v4761_v3 = vpop.f32.mrf.mxu3 }
0x21d8   : > { %v4762_v47 = vadd.f32 %v4761_v3, %v10240_v59  ;;  %v10245_v3 = vld [vmem:[#allocation48_spill] sm:$0xff]  ;;  %v10246_v59 = vld [vmem:[#allocation50_spill] sm:$0xff] }
0x21d9   : > { %v4747_v44 = vadd.f32 %v4746_v45, %v10246_v59 }
0x21da   : > { %v4783_v30 = vmax.f32 %v4762_v47, 0.0 }
0x21df   : > { %v4763_v32 = vpop.f32.mrf.mxu3 }
0x21e0   : > { %v4764_v12 = vadd.f32 %v4763_v32, %v10238_v35  ;;  %v10244_v32 = vld [vmem:[#allocation47_spill] sm:$0xff] }
0x21e1   : > { %v4752_v35 = vadd.f32 %v4751_v61, %v10244_v32 }
0x21e2   : > { %v4784_v18 = vmax.f32 %v4764_v12, 0.0 }
0x21e3   : > { %v4779_v12 = vmax.f32 %v4752_v35, 0.0 }
0x21e7   : > { %v4766_v57 = vpop.f32.mrf.mxu3 }
0x21e8   : > { %v4767_v43 = vadd.f32 %v4766_v57, %v8741_v48  ;;  %v4782_v57 = vmax.f32 %v4759_v56, 0.0  ;;  %v4793_v48 = vpack.c.bf16 %v4784_v18, %v4783_v30  ;;  %v4777_v56 = vmax.f32 %v4747_v44, 0.0  ;;  %v10249_v18 = vld [vmem:[#allocation54_spill] sm:$0xff]  ;;  %v10250_v30 = vld [vmem:[#allocation52_spill] sm:$0xff] }
0x21e9   : > { %v4739_v61 = vadd.f32 %v4738_v60, %v10249_v18  ;;  %v8102_v60 = vld [vmem:[#allocation2 + $0x638] sm:$0xff] }
0x21ea   : > { %v4785_v24 = vmax.f32 %v4767_v43, 0.0  ;;  %v4749_v43 = vadd.f32 %v4748_v49, %v10245_v3  ;;  %v4737_v49 = vadd.f32 %v4736_v55, %v10250_v30  ;;  %v8104_v55 = vld [vmem:[#allocation2 + $0x630] sm:$0xff] }
0x21eb   : > { %v9466_v25 = vpop.f32.mrf.mxu1  ;;  %v4774_v35 = vmax.f32 %v4739_v61, 0.0  ;;  %v8111_v61 = vld [vmem:[#allocation2 + $0x600] sm:$0xff] }
0x21ec   : > { %v4778_v47 = vmax.f32 %v4749_v43, 0.0  ;;  %v4773_v43 = vmax.f32 %v4737_v49, 0.0  ;;  %v8114_v49 = vld [vmem:[#allocation2 + $0x2d0] sm:$0xff] }
0x21ef   : > { %v4768_v39 = vpop.f32.mrf.mxu3 }
0x21f0   : > { %v4769_v22 = vadd.f32 %v4768_v39, %v10239_v54  ;;  %v4781_v39 = vmax.f32 %v4757_v20, 0.0 }
0x21f2   : > { %v4786_v16 = vmax.f32 %v4769_v22, 0.0  ;;  %v4780_v22 = vmax.f32 %v4754_v23, 0.0 }
0x21f3   : > { %v4703_v15 = vpop.f32.mrf.mxu1 }
0x21f4   : > { %v4794_v42 = vpack.c.bf16 %v4786_v16, %v4785_v24  ;;  %v4792_v15 = vpack.c.bf16 %v4782_v57, %v4781_v39  ;;  %v10247_v24 = vld [vmem:[#allocation53_spill] sm:$0xff]  ;;  %v4791_v16 = vpack.c.bf16 %v4780_v22, %v4779_v12  ;;  %v10251_v57 = vld [vmem:[#allocation55_spill] sm:$0xff] }
0x21f5   : > { %v4744_v27 = vadd.f32 %v4743_v33, %v10247_v24  ;;  %v4734_v45 = vadd.f32 %v4733_v38, %v10251_v57  ;;  %v8106_v38 = vld [vmem:[#allocation2 + $0x620] sm:$0xff] }
0x21f6   : > { %4795 = vmatpush.bf16.msra.mxu1 %v4794_v42  ;;  %v10248_v42 = vld [vmem:[#allocation51_spill] sm:$0xff] }
0x21f7   : > { %v4742_v8 = vadd.f32 %v4741_v9, %v10248_v42  ;;  %v4776_v20 = vmax.f32 %v4744_v27, 0.0  ;;  %v4772_v22 = vmax.f32 %v4734_v45, 0.0  ;;  %v4788_v9 = vpack.c.bf16 %v4774_v35, %v4773_v43  ;;  %v8103_v27 = vld [vmem:[#allocation2 + $0x2c0] sm:$0xff]  ;;  %v8117_v35 = vld [vmem:[#allocation2 + $0x2e8] sm:$0xff] }
0x21f8   : > { %v8116_v45 = vld [vmem:[#allocation2 + $0x2e0] sm:$0xff] }
0x21f9   : > { %v4775_v23 = vmax.f32 %v4742_v8, 0.0  ;;  %v8109_v8 = vld [vmem:[#allocation2 + $0x610] sm:$0xff] }
0x21fa   : > { %4796 = vmatpush.bf16.msra.mxu1 %v4793_v48  ;;  %v4790_v48 = vpack.c.bf16 %v4778_v47, %v4777_v56  ;;  %v8105_v47 = vld [vmem:[#allocation2 + $0x628] sm:$0xff] }
0x21fb   : > { %v4789_v39 = vpack.c.bf16 %v4776_v20, %v4775_v23  ;;  %v8110_v56 = vld [vmem:[#allocation2 + $0x608] sm:$0xff]  ;;  %v8115_v23 = vld [vmem:[#allocation2 + $0x2d8] sm:$0xff] }
0x21fc   : > { %v8112_v20 = vld [vmem:[#allocation2 + $0x6c8] sm:$0xff] }
0x21fe   : > { %4797 = vmatpush.bf16.msra.mxu1 %v4792_v15  ;;  %v10252_v15 = vld [vmem:[#allocation56_spill] sm:$0xff] }
0x21ff   : > { %v4732_v33 = vadd.f32 %v4731_v41, %v10252_v15  ;;  %v8108_v41 = vld [vmem:[#allocation2 + $0x2c8] sm:$0xff] }
0x2201   : > { %v4771_v44 = vmax.f32 %v4732_v33, 0.0  ;;  %v8119_v33 = vld [vmem:[#allocation2 + $0x2f8] sm:$0xff] }
0x2202   : > { %4798 = vmatpush.bf16.msra.mxu1 %v4791_v16  ;;  %v8107_v16 = vld [vmem:[#allocation2 + $0x618] sm:$0xff] }
0x2203   : > { %v4787_v12 = vpack.c.bf16 %v4772_v22, %v4771_v44  ;;  %v10253_v22 = vld [vmem:[#allocation57_spill] sm:$0xff] }
0x2206   : > { %4799 = vmatpush.bf16.msra.mxu1 %v4790_v48  ;;  %v8113_v48 = vld [vmem:[#allocation2 + $0x6c0] sm:$0xff] }
0x220a   : > { %4800 = vmatpush.bf16.msra.mxu1 %v4789_v39  ;;  %v8118_v39 = vld [vmem:[#allocation2 + $0x2f0] sm:$0xff] }
0x220e   : > { %4801 = vmatpush.bf16.msra.mxu1 %v4788_v9 }
0x2212   : > { %4802 = vmatpush.bf16.msra.mxu1 %v4787_v12  ;;  %v10254_v12 = vld [vmem:[#allocation58_spill] sm:$0xff] }
0x2215   : > { %4803 = vmatmul.bf16.vlgmr.msra.gmra.mxu1 %v8103_v27 }
0x2216   : > { %5087 = vmatpush.bf16.msrb.mxu1 %v8102_v60 }
0x221a   : > { %5088 = vmatpush.bf16.msrb.mxu1 %v8104_v55 }
0x221e   : > { %5089 = vmatpush.bf16.msrb.mxu1 %v8105_v47 }
0x2222   : > { %5090 = vmatpush.bf16.msrb.mxu1 %v8106_v38 }
0x2225   : > { %4808 = vmatmul.bf16.gmra.mxu1 %v8108_v41 }
0x2226   : > { %5091 = vmatpush.bf16.msrb.mxu1 %v8107_v16  ;;  %v10255_v16 = vld [vmem:[#allocation59_spill] sm:$0xff] }
0x222a   : > { %5092 = vmatpush.bf16.msrb.mxu1 %v8109_v8 }
0x222e   : > { %5093 = vmatpush.bf16.msrb.mxu1 %v8110_v56  ;;  %v10256_v56 = vld [vmem:[#allocation60_spill] sm:$0xff] }
0x2232   : > { %5094 = vmatpush.bf16.msrb.mxu1 %v8111_v61 }
0x2235   : > { %4813 = vmatmul.bf16.gmra.mxu1 %v8114_v49 }
0x2236   : > { %5370 = vmatpush.bf16.msra.mxu1 %v8112_v20 }
0x223a   : > { %5371 = vmatpush.bf16.msra.mxu1 %v8113_v48 }
0x2245   : > { %4818 = vmatmul.bf16.gmra.mxu1 %v8115_v23 }
0x2255   : > { %4823 = vmatmul.bf16.gmra.mxu1 %v8116_v45  ;;  %v10257_v45 = vld [vmem:[#allocation61_spill] sm:$0xff] }
0x2265   : > { %4828 = vmatmul.bf16.gmra.mxu1 %v8117_v35 }
0x2275   : > { %4833 = vmatmul.bf16.gmra.mxu1 %v8118_v39 }
0x2285   : > { %4838 = vmatmul.bf16.gmra.mxu1 %v8119_v33  ;;  %v10258_v33 = vld [vmem:[#allocation62_spill] sm:$0xff] }
0x2292   : > { %v4804_v43 = vpop.f32.mrf.mxu1 }
0x2293   : > { %v4805_v9 = vadd.f32 %v4804_v43, %v10253_v22 }
0x2295   : > { %v4844_v27 = vmax.f32 %v4805_v9, 0.0 }
0x229a   : > { %v4806_v44 = vpop.f32.mrf.mxu1 }
0x229b   : > { %v4807_v60 = vadd.f32 %v4806_v44, %v10254_v12 }
0x229d   : > { %v4845_v55 = vmax.f32 %v4807_v60, 0.0 }
0x229f   : > { %v4860_v47 = vpack.c.bf16 %v4845_v55, %v4844_v27  ;;  %v10259_v55 = vld [vmem:[#allocation63_spill] sm:$0xff] }
0x22a1   : > { %7584 = vmatmul.msk.bf16.vlgmr.msra.gmra.mxu0 %vm525_vm2, %v4860_v47 }
0x22a2   : > { %v4809_v38 = vpop.f32.mrf.mxu1 }
0x22a3   : > { %v4810_v41 = vadd.f32 %v4809_v38, %v10255_v16 }
0x22a5   : > { %v4846_v20 = vmax.f32 %v4810_v41, 0.0  ;;  %v10260_v41 = vld [vmem:[#allocation64_spill] sm:$0xff] }
0x22aa   : > { %v4811_v8 = vpop.f32.mrf.mxu1 }
0x22ab   : > { %v4812_v61 = vadd.f32 %v4811_v8, %v10256_v56 }
0x22ad   : > { %v4847_v48 = vmax.f32 %v4812_v61, 0.0 }
0x22af   : > { %v4861_v49 = vpack.c.bf16 %v4847_v48, %v4846_v20 }
0x22b1   : > { %7585 = vmatmul.msk.bf16.gmra.mxu0 %vm525_vm2, %v4861_v49 }
0x22b2   : > { %v4814_v23 = vpop.f32.mrf.mxu1 }
0x22b3   : > { %v4815_v35 = vadd.f32 %v4814_v23, %v10257_v45  ;;  %v10261_v23 = vld [vmem:[#allocation65_spill] sm:$0xff] }
0x22b5   : > { %v4848_v9 = vmax.f32 %v4815_v35, 0.0  ;;  %v10262_v35 = vld [vmem:[#allocation66_spill] sm:$0xff] }
0x22ba   : > { %v4816_v39 = vpop.f32.mrf.mxu1 }
0x22bb   : > { %v4817_v43 = vadd.f32 %v4816_v39, %v10258_v33 }
0x22bd   : > { %v4849_v44 = vmax.f32 %v4817_v43, 0.0 }
0x22bf   : > { %v4862_v60 = vpack.c.bf16 %v4849_v44, %v4848_v9 }
0x22c1   : > { %7586 = vmatmul.msk.bf16.gmra.mxu0 %vm525_vm2, %v4862_v60 }
0x22c2   : > { %v4819_v27 = vpop.f32.mrf.mxu1 }
0x22c3   : > { %v4820_v47 = vadd.f32 %v4819_v27, %v10259_v55  ;;  %v10263_v55 = vld [vmem:[#allocation67_spill] sm:$0xff] }
0x22c5   : > { %v4850_v61 = vmax.f32 %v4820_v47, 0.0  ;;  %v10264_v47 = vld [vmem:[#allocation68_spill] sm:$0xff] }
0x22ca   : > { %v4821_v38 = vpop.f32.mrf.mxu1 }
0x22cb   : > { %v4822_v8 = vadd.f32 %v4821_v38, %v10260_v41 }
0x22cd   : > { %v4851_v20 = vmax.f32 %v4822_v8, 0.0 }
0x22cf   : > { %v4863_v48 = vpack.c.bf16 %v4851_v20, %v4850_v61 }
0x22d1   : > { %7587 = vmatmul.msk.bf16.gmra.mxu0 %vm525_vm2, %v4863_v48 }
0x22d2   : > { %v4824_v49 = vpop.f32.mrf.mxu1 }
0x22d3   : > { %v4825_v45 = vadd.f32 %v4824_v49, %v10261_v23  ;;  %v10265_v23 = vld [vmem:[#allocation69_spill] sm:$0xff] }
0x22d5   : > { %v4852_v9 = vmax.f32 %v4825_v45, 0.0  ;;  %v10266_v45 = vld [vmem:[#allocation70_spill] sm:$0xff] }
0x22da   : > { %v4826_v39 = vpop.f32.mrf.mxu1 }
0x22db   : > { %v4827_v43 = vadd.f32 %v4826_v39, %v10262_v35 }
0x22dd   : > { %v4853_v44 = vmax.f32 %v4827_v43, 0.0 }
0x22df   : > { %v4864_v60 = vpack.c.bf16 %v4853_v44, %v4852_v9 }
0x22e1   : > { %7588 = vmatmul.msk.bf16.gmra.mxu0 %vm525_vm2, %v4864_v60 }
0x22e2   : > { %v4829_v27 = vpop.f32.mrf.mxu1 }
0x22e3   : > { %v4830_v33 = vadd.f32 %v4829_v27, %v10263_v55  ;;  %v10267_v55 = vld [vmem:[#allocation71_spill] sm:$0xff] }
0x22e5   : > { %v4854_v61 = vmax.f32 %v4830_v33, 0.0  ;;  %v10268_v33 = vld [vmem:[#allocation72_spill] sm:$0xff] }
0x22ea   : > { %v4831_v38 = vpop.f32.mrf.mxu1 }
0x22eb   : > { %v4832_v8 = vadd.f32 %v4831_v38, %v10264_v47 }
0x22ed   : > { %v4855_v20 = vmax.f32 %v4832_v8, 0.0 }
0x22ef   : > { %v4865_v48 = vpack.c.bf16 %v4855_v20, %v4854_v61 }
0x22f1   : > { %7589 = vmatmul.msk.bf16.gmra.mxu0 %vm525_vm2, %v4865_v48 }
0x22f2   : > { %v4834_v49 = vpop.f32.mrf.mxu1 }
0x22f3   : > { %v4835_v41 = vadd.f32 %v4834_v49, %v10265_v23 }
0x22f5   : > { %v4856_v9 = vmax.f32 %v4835_v41, 0.0  ;;  %v8120_v41 = vld [vmem:[%s9951_s3 + $0x4] ss:$0 sm:$0xff] }
0x22fa   : > { %v4836_v39 = vpop.f32.mrf.mxu1 }
0x22fb   : > { %v4837_v43 = vadd.f32 %v4836_v39, %v10266_v45 }
0x22fd   : > { %v4857_v44 = vmax.f32 %v4837_v43, 0.0 }
0x22ff   : > { %v4866_v60 = vpack.c.bf16 %v4857_v44, %v4856_v9 }
0x2301   : > { %7590 = vmatmul.msk.bf16.gmra.mxu0 %vm525_vm2, %v4866_v60 }
0x2302   : > { %v4839_v27 = vpop.f32.mrf.mxu1 }
0x2303   : > { %v4840_v35 = vadd.f32 %v4839_v27, %v10267_v55 }
0x2305   : > { %v4858_v61 = vmax.f32 %v4840_v35, 0.0 }
0x230a   : > { %v4841_v38 = vpop.f32.mrf.mxu1 }
0x230b   : > { %v4842_v8 = vadd.f32 %v4841_v38, %v10268_v33 }
0x230d   : > { %v4859_v20 = vmax.f32 %v4842_v8, 0.0 }
0x230f   : > { %v4867_v48 = vpack.c.bf16 %v4859_v20, %v4858_v61 }
0x2311   : > { %7591 = vmatmul.msk.bf16.gmra.mxu0 %vm525_vm2, %v4867_v48 }
0x231e   : > { %v4901_v49 = vpop.f32.mrf.mxu0 }
0x231f   : > { %v4902_v39 = vadd.f32 %v8120_v41, %v4901_v49 }
0x2321   : > { %v4941_v44 = vmax.f32 %v4902_v39, 0.0 }
0x2326   : > { %v4903_v43 = vpop.f32.mrf.mxu0 }
0x2327   : > { %v4904_v9 = vadd.f32 %v8120_v41, %v4903_v43 }
0x2329   : > { %v4942_v60 = vmax.f32 %v4904_v9, 0.0 }
0x232b   : > { %v4957_v45 = vpack.c.bf16 %v4942_v60, %v4941_v44 }
0x232d   : > { %4973 = vmatmul.bf16.vlgmr.msrb.gmra.mxu2 %v4957_v45 }
0x232e   : > { %v4906_v27 = vpop.f32.mrf.mxu0 }
0x232f   : > { %v4907_v55 = vadd.f32 %v8120_v41, %v4906_v27 }
0x2331   : > { %v4943_v8 = vmax.f32 %v4907_v55, 0.0 }
0x2336   : > { %v4908_v38 = vpop.f32.mrf.mxu0 }
0x2337   : > { %v4909_v35 = vadd.f32 %v8120_v41, %v4908_v38 }
0x2339   : > { %v4944_v61 = vmax.f32 %v4909_v35, 0.0 }
0x233b   : > { %v4958_v20 = vpack.c.bf16 %v4944_v61, %v4943_v8 }
0x233d   : > { %4978 = vmatmul.bf16.gmra.mxu2 %v4958_v20 }
0x233e   : > { %v4911_v48 = vpop.f32.mrf.mxu0 }
0x233f   : > { %v4912_v33 = vadd.f32 %v8120_v41, %v4911_v48 }
0x2341   : > { %v4945_v56 = vmax.f32 %v4912_v33, 0.0 }
0x2346   : > { %v4913_v23 = vpop.f32.mrf.mxu0 }
0x2347   : > { %v4914_v47 = vadd.f32 %v8120_v41, %v4913_v23 }
0x2349   : > { %v4946_v49 = vmax.f32 %v4914_v47, 0.0 }
0x234b   : > { %v4959_v16 = vpack.c.bf16 %v4946_v49, %v4945_v56 }
0x234d   : > { %4983 = vmatmul.bf16.gmra.mxu2 %v4959_v16 }
0x234e   : > { %v4916_v39 = vpop.f32.mrf.mxu0 }
0x234f   : > { %v4917_v43 = vadd.f32 %v8120_v41, %v4916_v39 }
0x2351   : > { %v4947_v44 = vmax.f32 %v4917_v43, 0.0 }
0x2356   : > { %v4918_v9 = vpop.f32.mrf.mxu0 }
0x2357   : > { %v4919_v45 = vadd.f32 %v8120_v41, %v4918_v9 }
0x2359   : > { %v4948_v60 = vmax.f32 %v4919_v45, 0.0 }
0x235b   : > { %v4960_v27 = vpack.c.bf16 %v4948_v60, %v4947_v44 }
0x235d   : > { %4988 = vmatmul.bf16.gmra.mxu2 %v4960_v27 }
0x235e   : > { %v4921_v55 = vpop.f32.mrf.mxu0 }
0x235f   : > { %v4922_v38 = vadd.f32 %v8120_v41, %v4921_v55 }
0x2361   : > { %v4949_v61 = vmax.f32 %v4922_v38, 0.0 }
0x2366   : > { %v4923_v35 = vpop.f32.mrf.mxu0 }
0x2367   : > { %v4924_v8 = vadd.f32 %v8120_v41, %v4923_v35 }
0x2369   : > { %v4950_v20 = vmax.f32 %v4924_v8, 0.0 }
0x236b   : > { %v4961_v48 = vpack.c.bf16 %v4950_v20, %v4949_v61 }
0x236d   : > { %4993 = vmatmul.bf16.gmra.mxu2 %v4961_v48 }
0x236e   : > { %v4926_v23 = vpop.f32.mrf.mxu0 }
0x236f   : > { %v4927_v47 = vadd.f32 %v8120_v41, %v4926_v23 }
0x2371   : > { %v4951_v33 = vmax.f32 %v4927_v47, 0.0 }
0x2376   : > { %v4928_v56 = vpop.f32.mrf.mxu0 }
0x2377   : > { %v4929_v16 = vadd.f32 %v8120_v41, %v4928_v56  ;;  %v9514_v56 = vld [vmem:[%s9951_s3 + $0x5] ss:$0 sm:$0xff] }
0x2379   : > { %v4952_v49 = vmax.f32 %v4929_v16, 0.0 }
0x237b   : > { %v4962_v39 = vpack.c.bf16 %v4952_v49, %v4951_v33 }
0x237d   : > { %4998 = vmatmul.bf16.gmra.mxu2 %v4962_v39 }
0x237e   : > { %v4931_v43 = vpop.f32.mrf.mxu0 }
0x237f   : > { %v4932_v9 = vadd.f32 %v8120_v41, %v4931_v43 }
0x2381   : > { %v4953_v60 = vmax.f32 %v4932_v9, 0.0 }
0x2386   : > { %v4933_v45 = vpop.f32.mrf.mxu0 }
0x2387   : > { %v4934_v44 = vadd.f32 %v8120_v41, %v4933_v45 }
0x2389   : > { %v4954_v27 = vmax.f32 %v4934_v44, 0.0 }
0x238b   : > { %v4963_v55 = vpack.c.bf16 %v4954_v27, %v4953_v60 }
0x238d   : > { %5003 = vmatmul.bf16.gmra.mxu2 %v4963_v55 }
0x238e   : > { %v4936_v38 = vpop.f32.mrf.mxu0 }
0x238f   : > { %v4937_v35 = vadd.f32 %v8120_v41, %v4936_v38 }
0x2391   : > { %v4955_v20 = vmax.f32 %v4937_v35, 0.0 }
0x2396   : > { %v4938_v8 = vpop.f32.mrf.mxu0 }
0x2397   : > { %v4939_v61 = vadd.f32 %v8120_v41, %v4938_v8 }
0x2399   : > { %v4956_v48 = vmax.f32 %v4939_v61, 0.0 }
0x239b   : > { %v4964_v23 = vpack.c.bf16 %v4956_v48, %v4955_v20 }
0x239d   : > { %5008 = vmatmul.bf16.gmra.mxu2 %v4964_v23 }
0x23b0   : > { %v4974_v47 = vpop.f32.mrf.mxu2 }
0x23b1   : > { %v4975_v16 = vadd.f32 %v9514_v56, %v4974_v47 }
0x23b3   : > { %v5014_v39 = vmax.f32 %v4975_v16, 0.0 }
0x23b8   : > { %v4976_v33 = vpop.f32.mrf.mxu2 }
0x23b9   : > { %v4977_v49 = vadd.f32 %v9514_v56, %v4976_v33 }
0x23bb   : > { %v5015_v43 = vmax.f32 %v4977_v49, 0.0 }
0x23bd   : > { %v5030_v9 = vpack.c.bf16 %v5015_v43, %v5014_v39 }
0x23bf   : > { %5046 = vmatmul.bf16.vlgmr.msra.gmra.mxu3 %v5030_v9  ;;  %5095 = vmatmul.bf16.vlgmr.msrb.gmra.mxu1 %v5030_v9 }
0x23c0   : > { %v4979_v41 = vpop.f32.mrf.mxu2 }
0x23c1   : > { %v4980_v45 = vadd.f32 %v9514_v56, %v4979_v41 }
0x23c3   : > { %v5016_v27 = vmax.f32 %v4980_v45, 0.0 }
0x23c8   : > { %v4981_v44 = vpop.f32.mrf.mxu2 }
0x23c9   : > { %v4982_v60 = vadd.f32 %v9514_v56, %v4981_v44 }
0x23cb   : > { %v5017_v55 = vmax.f32 %v4982_v60, 0.0 }
0x23cd   : > { %v5031_v38 = vpack.c.bf16 %v5017_v55, %v5016_v27 }
0x23cf   : > { %5051 = vmatmul.bf16.gmra.mxu3 %v5031_v38  ;;  %5100 = vmatmul.bf16.gmra.mxu1 %v5031_v38 }
0x23d0   : > { %v4984_v35 = vpop.f32.mrf.mxu2 }
0x23d1   : > { %v4985_v8 = vadd.f32 %v9514_v56, %v4984_v35 }
0x23d3   : > { %v5018_v48 = vmax.f32 %v4985_v8, 0.0 }
0x23d8   : > { %v4986_v61 = vpop.f32.mrf.mxu2 }
0x23d9   : > { %v4987_v20 = vadd.f32 %v9514_v56, %v4986_v61 }
0x23db   : > { %v5019_v23 = vmax.f32 %v4987_v20, 0.0 }
0x23dd   : > { %v5032_v47 = vpack.c.bf16 %v5019_v23, %v5018_v48 }
0x23df   : > { %5056 = vmatmul.bf16.gmra.mxu3 %v5032_v47  ;;  %5105 = vmatmul.bf16.gmra.mxu1 %v5032_v47 }
0x23e0   : > { %v4989_v16 = vpop.f32.mrf.mxu2 }
0x23e1   : > { %v4990_v33 = vadd.f32 %v9514_v56, %v4989_v16 }
0x23e3   : > { %v5020_v43 = vmax.f32 %v4990_v33, 0.0 }
0x23e8   : > { %v4991_v49 = vpop.f32.mrf.mxu2 }
0x23e9   : > { %v4992_v39 = vadd.f32 %v9514_v56, %v4991_v49 }
0x23eb   : > { %v5021_v9 = vmax.f32 %v4992_v39, 0.0 }
0x23ed   : > { %v5033_v41 = vpack.c.bf16 %v5021_v9, %v5020_v43 }
0x23ef   : > { %5061 = vmatmul.bf16.gmra.mxu3 %v5033_v41  ;;  %5110 = vmatmul.bf16.gmra.mxu1 %v5033_v41 }
0x23f0   : > { %v4994_v45 = vpop.f32.mrf.mxu2 }
0x23f1   : > { %v4995_v44 = vadd.f32 %v9514_v56, %v4994_v45 }
0x23f3   : > { %v5022_v55 = vmax.f32 %v4995_v44, 0.0 }
0x23f8   : > { %v4996_v60 = vpop.f32.mrf.mxu2 }
0x23f9   : > { %v4997_v27 = vadd.f32 %v9514_v56, %v4996_v60 }
0x23fb   : > { %v5023_v38 = vmax.f32 %v4997_v27, 0.0 }
0x23fd   : > { %v5034_v35 = vpack.c.bf16 %v5023_v38, %v5022_v55 }
0x23ff   : > { %5066 = vmatmul.bf16.gmra.mxu3 %v5034_v35  ;;  %5115 = vmatmul.bf16.gmra.mxu1 %v5034_v35 }
0x2400   : > { %v4999_v8 = vpop.f32.mrf.mxu2 }
0x2401   : > { %v5000_v61 = vadd.f32 %v9514_v56, %v4999_v8 }
0x2403   : > { %v5024_v23 = vmax.f32 %v5000_v61, 0.0 }
0x2408   : > { %v5001_v20 = vpop.f32.mrf.mxu2 }
0x2409   : > { %v5002_v48 = vadd.f32 %v9514_v56, %v5001_v20 }
0x240b   : > { %v5025_v47 = vmax.f32 %v5002_v48, 0.0 }
0x240d   : > { %v5035_v16 = vpack.c.bf16 %v5025_v47, %v5024_v23 }
0x240f   : > { %5071 = vmatmul.bf16.gmra.mxu3 %v5035_v16  ;;  %5120 = vmatmul.bf16.gmra.mxu1 %v5035_v16 }
0x2410   : > { %v5004_v33 = vpop.f32.mrf.mxu2 }
0x2411   : > { %v5005_v49 = vadd.f32 %v9514_v56, %v5004_v33 }
0x2413   : > { %v5026_v9 = vmax.f32 %v5005_v49, 0.0 }
0x2418   : > { %v5006_v39 = vpop.f32.mrf.mxu2 }
0x2419   : > { %v5007_v43 = vadd.f32 %v9514_v56, %v5006_v39 }
0x241b   : > { %v5027_v41 = vmax.f32 %v5007_v43, 0.0 }
0x241d   : > { %v5036_v45 = vpack.c.bf16 %v5027_v41, %v5026_v9 }
0x241f   : > { %5076 = vmatmul.bf16.gmra.mxu3 %v5036_v45  ;;  %5125 = vmatmul.bf16.gmra.mxu1 %v5036_v45 }
0x2420   : > { %v5009_v44 = vpop.f32.mrf.mxu2 }
0x2421   : > { %v5010_v60 = vadd.f32 %v9514_v56, %v5009_v44 }
0x2423   : > { %v5028_v38 = vmax.f32 %v5010_v60, 0.0 }
0x2428   : > { %v5011_v27 = vpop.f32.mrf.mxu2 }
0x2429   : > { %v5012_v55 = vadd.f32 %v9514_v56, %v5011_v27 }
0x242b   : > { %v5029_v35 = vmax.f32 %v5012_v55, 0.0 }
0x242d   : > { %v5037_v8 = vpack.c.bf16 %v5029_v35, %v5028_v38 }
0x242f   : > { %5081 = vmatmul.bf16.gmra.mxu3 %v5037_v8  ;;  %5130 = vmatmul.bf16.gmra.mxu1 %v5037_v8 }
0x243c   : > { %v9532_v61 = vpop.f32.mrf.mxu1 }
0x2442   : > { %v9534_v20 = vpop.f32.mrf.mxu3 }
0x2444   : > { %v9538_v23 = vpop.f32.mrf.mxu1 }
0x244a   : > { %v9540_v47 = vpop.f32.mrf.mxu3 }
0x244c   : > { %v5101_v16 = vpop.f32.mrf.mxu1 }
0x2452   : > { %v5052_v33 = vpop.f32.mrf.mxu3 }
0x2453   : > { %v5138_v49 = vmax.f32 %v5052_v33, %v5101_v16 }
0x2454   : > { %v5103_v56 = vpop.f32.mrf.mxu1 }
0x245a   : > { %v5054_v39 = vpop.f32.mrf.mxu3 }
0x245c   : > { %v5106_v43 = vpop.f32.mrf.mxu1 }
0x2462   : > { %v5057_v9 = vpop.f32.mrf.mxu3 }
0x2463   : > { %v5140_v41 = vmax.f32 %v5057_v9, %v5106_v43 }
0x2464   : > { %v5108_v45 = vpop.f32.mrf.mxu1 }
0x246a   : > { %v5059_v44 = vpop.f32.mrf.mxu3 }
0x246c   : > { %v5111_v60 = vpop.f32.mrf.mxu1 }
0x2472   : > { %v5062_v27 = vpop.f32.mrf.mxu3 }
0x2473   : > { %v5142_v55 = vmax.f32 %v5062_v27, %v5111_v60 }
0x2474   : > { %v5113_v38 = vpop.f32.mrf.mxu1 }
0x247a   : > { %v5064_v35 = vpop.f32.mrf.mxu3 }
0x247b   : > { %v5143_v14 = vmax.f32 %v5064_v35, %v5113_v38 }
0x247c   : > { %v5116_v8 = vpop.f32.mrf.mxu1 }
0x2482   : > { %v5067_v48 = vpop.f32.mrf.mxu3 }
0x2483   : > { %v5144_v12 = vmax.f32 %v5067_v48, %v5116_v8 }
0x2484   : > { %v5118_v22 = vpop.f32.mrf.mxu1 }
0x248a   : > { %v5069_v15 = vpop.f32.mrf.mxu3 }
0x248b   : > { %v5145_v17 = vmax.f32 %v5069_v15, %v5118_v22 }
0x248c   : > { %v5121_v57 = vpop.f32.mrf.mxu1 }
0x248d   : > { %v5156_v53 = vpack.c.bf16 %v5145_v17, %v5144_v12 }
0x2492   : > { %v5072_v30 = vpop.f32.mrf.mxu3 }
0x2493   : > { %v5146_v54 = vmax.f32 %v5072_v30, %v5121_v57  ;;  %v8128_v30 = vld [vmem:[#allocation2 + $0x658] sm:$0xff] }
0x2494   : > { %v5123_v16 = vpop.f32.mrf.mxu1  ;;  %v8129_v57 = vld [vmem:[#allocation2 + $0x698] sm:$0xff] }
0x249a   : > { %v5074_v33 = vpop.f32.mrf.mxu3 }
0x249b   : > { %v5147_v48 = vmax.f32 %v5074_v33, %v5123_v16 }
0x249c   : > { %v5126_v18 = vpop.f32.mrf.mxu1 }
0x249d   : > { %v5157_v31 = vpack.c.bf16 %v5147_v48, %v5146_v54  ;;  %v8124_v54 = vld [vmem:[#allocation2 + $0x648] sm:$0xff] }
0x24a2   : > { %v5077_v42 = vpop.f32.mrf.mxu3 }
0x24a3   : > { %v5148_v50 = vmax.f32 %v5077_v42, %v5126_v18  ;;  %v8126_v42 = vld [vmem:[#allocation2 + $0x650] sm:$0xff] }
0x24a4   : > { %v5128_v24 = vpop.f32.mrf.mxu1  ;;  %v8127_v18 = vld [vmem:[#allocation2 + $0x690] sm:$0xff] }
0x24aa   : > { %v5079_v43 = vpop.f32.mrf.mxu3 }
0x24ab   : > { %v5149_v19 = vmax.f32 %v5079_v43, %v5128_v24 }
0x24ac   : > { %v5131_v9 = vpop.f32.mrf.mxu1 }
0x24ad   : > { %v5158_v8 = vpack.c.bf16 %v5149_v19, %v5148_v50  ;;  %v5137_v50 = vmax.f32 %v9540_v47, %v9538_v23  ;;  %v8125_v19 = vld [vmem:[#allocation2 + $0x688] sm:$0xff] }
0x24b2   : > { %v5082_v59 = vpop.f32.mrf.mxu3 }
0x24b3   : > { %v5150_v60 = vmax.f32 %v5082_v59, %v5131_v9  ;;  %v5141_v59 = vmax.f32 %v5059_v44, %v5108_v45 }
0x24b4   : > { %v5133_v3 = vpop.f32.mrf.mxu1 }
0x24b5   : > { %v5154_v24 = vpack.c.bf16 %v5141_v59, %v5140_v41 }
0x24ba   : > { %v5084_v32 = vpop.f32.mrf.mxu3 }
0x24bb   : > { %v5151_v27 = vmax.f32 %v5084_v32, %v5133_v3  ;;  %v5155_v32 = vpack.c.bf16 %v5143_v14, %v5142_v55  ;;  %v5139_v3 = vmax.f32 %v5054_v39, %v5103_v56  ;;  %v8123_v14 = vld [vmem:[#allocation2 + $0x680] sm:$0xff] }
0x24bd   : > { %v5159_v6 = vpack.c.bf16 %v5151_v27, %v5150_v60 }
0x24bf   : > { %5160 = vmatpush.bf16.msrb.mxu0 %v5159_v6  ;;  %5189 = vmatpush.bf16.msra.mxu2 %v5159_v6  ;;  %v5153_v6 = vpack.c.bf16 %v5139_v3, %v5138_v49 }
0x24c3   : > { %5161 = vmatpush.bf16.msrb.mxu0 %v5158_v8  ;;  %5190 = vmatpush.bf16.msra.mxu2 %v5158_v8 }
0x24c7   : > { %5162 = vmatpush.bf16.msrb.mxu0 %v5157_v31  ;;  %5191 = vmatpush.bf16.msra.mxu2 %v5157_v31  ;;  %v10269_v31 = vmax.f32 %v9534_v20, %v9532_v61 }
0x24c9   : > { %v5152_v17 = vpack.c.bf16 %v5137_v50, %v10269_v31  ;;  %v8130_v50 = vld [vmem:[#allocation2 + $0x708] sm:$0xff]  ;;  %v8132_v31 = vld [vmem:[#allocation2 + $0x700] sm:$0xff] }
0x24cb   : > { %5163 = vmatpush.bf16.msrb.mxu0 %v5156_v53  ;;  %5192 = vmatpush.bf16.msra.mxu2 %v5156_v53  ;;  %v8122_v53 = vld [vmem:[#allocation2 + $0x640] sm:$0xff] }
0x24cf   : > { %5164 = vmatpush.bf16.msrb.mxu0 %v5155_v32  ;;  %5193 = vmatpush.bf16.msra.mxu2 %v5155_v32 }
0x24d3   : > { %5165 = vmatpush.bf16.msrb.mxu0 %v5154_v24  ;;  %5194 = vmatpush.bf16.msra.mxu2 %v5154_v24 }
0x24d7   : > { %5166 = vmatpush.bf16.msrb.mxu0 %v5153_v6  ;;  %5195 = vmatpush.bf16.msra.mxu2 %v5153_v6  ;;  %v8131_v6 = vld [vmem:[#allocation2 + $0x380] sm:$0xff] }
0x24db   : > { %5167 = vmatpush.bf16.msrb.mxu0 %v5152_v17  ;;  %5196 = vmatpush.bf16.msra.mxu2 %v5152_v17  ;;  %v8133_v17 = vld [vmem:[#allocation2 + $0x540] sm:$0xff] }
0x24de   : > { %5168 = vmatmul.bf16.vlgmr.msrb.gmra.mxu0 %v8122_v53  ;;  %5197 = vmatmul.bf16.vlgmr.msra.gmra.mxu2 %v8123_v14  ;;  %v8134_v53 = vld [vmem:[#allocation2 + $0x388] sm:$0xff]  ;;  %v8135_v14 = vld [vmem:[#allocation2 + $0x390] sm:$0xff] }
0x24ee   : > { %5173 = vmatmul.bf16.gmra.mxu0 %v8124_v54  ;;  %5202 = vmatmul.bf16.gmra.mxu2 %v8125_v19  ;;  %v8136_v54 = vld [vmem:[#allocation2 + $0x398] sm:$0xff] }
0x24fe   : > { %5178 = vmatmul.bf16.gmra.mxu0 %v8126_v42  ;;  %5207 = vmatmul.bf16.gmra.mxu2 %v8127_v18 }
0x250e   : > { %5183 = vmatmul.bf16.gmra.mxu0 %v8128_v30  ;;  %5212 = vmatmul.bf16.gmra.mxu2 %v8129_v57 }
0x255b   : > { %v5169_v15 = vpop.f32.mrf.mxu0 }
0x2561   : > { %v5198_v22 = vpop.f32.mrf.mxu2 }
0x2562   : > { %v5218_v12 = vmax.f32 %v5169_v15, %v5198_v22 }
0x2563   : > { %v5171_v61 = vpop.f32.mrf.mxu0 }
0x2569   : > { %v5200_v20 = vpop.f32.mrf.mxu2 }
0x256a   : > { %v5219_v32 = vmax.f32 %v5171_v61, %v5200_v20 }
0x256b   : > { %v5174_v23 = vpop.f32.mrf.mxu0 }
0x256c   : > { %v5226_v24 = vpack.c.bf16 %v5219_v32, %v5218_v12  ;;  %v8139_v32 = vld [vmem:[#allocation2 + $0x450] sm:$0xff] }
0x2571   : > { %v5203_v47 = vpop.f32.mrf.mxu2 }
0x2572   : > { %v5220_v59 = vmax.f32 %v5174_v23, %v5203_v47 }
0x2573   : > { %v5176_v49 = vpop.f32.mrf.mxu0 }
0x2579   : > { %v5205_v56 = vpop.f32.mrf.mxu2 }
0x257a   : > { %v5221_v48 = vmax.f32 %v5176_v49, %v5205_v56 }
0x257b   : > { %v5179_v39 = vpop.f32.mrf.mxu0 }
0x257c   : > { %v5227_v3 = vpack.c.bf16 %v5221_v48, %v5220_v59  ;;  %v8138_v59 = vld [vmem:[#allocation2 + $0x3c0] sm:$0xff] }
0x2581   : > { %v5208_v41 = vpop.f32.mrf.mxu2 }
0x2582   : > { %v5222_v27 = vmax.f32 %v5179_v39, %v5208_v41 }
0x2583   : > { %v5181_v45 = vpop.f32.mrf.mxu0 }
0x2589   : > { %v5210_v44 = vpop.f32.mrf.mxu2 }
0x258a   : > { %v5223_v9 = vmax.f32 %v5181_v45, %v5210_v44 }
0x258b   : > { %v5184_v55 = vpop.f32.mrf.mxu0 }
0x258c   : > { %v5228_v8 = vpack.c.bf16 %v5223_v9, %v5222_v27 }
0x2591   : > { %v5213_v38 = vpop.f32.mrf.mxu2 }
0x2592   : > { %v5224_v33 = vmax.f32 %v5184_v55, %v5213_v38 }
0x2593   : > { %v5186_v35 = vpop.f32.mrf.mxu0 }
0x2599   : > { %v5215_v16 = vpop.f32.mrf.mxu2 }
0x259a   : > { %v5225_v43 = vmax.f32 %v5186_v35, %v5215_v16 }
0x259c   : > { %v5229_v60 = vpack.c.bf16 %v5225_v43, %v5224_v33 }
0x259e   : > { %5234 = vmatpush.bf16.msra.mxu0 %v5229_v60 }
0x25a2   : > { %5235 = vmatpush.bf16.msra.mxu0 %v5228_v8  ;;  %v8137_v8 = vld [vmem:[#allocation2 + $0x458] sm:$0xff] }
0x25a6   : > { %5236 = vmatpush.bf16.msra.mxu0 %v5227_v3  ;;  %v8140_v3 = vld [vmem:[#allocation2 + $0x448] sm:$0xff] }
0x25aa   : > { %5237 = vmatpush.bf16.msra.mxu0 %v5226_v24  ;;  %v8141_v24 = vld [vmem:[#allocation2 + $0x440] sm:$0xff] }
0x25ad   : > { %7592 = vmatmul.msk.bf16.vlgmr.msra.gmra.mxu0 %vm2356_vm11, %v8131_v6 }
0x25ae   : > { %5389 = vmatpush.bf16.msrb.mxu0 %v8130_v50  ;;  %v8142_v50 = vld [vmem:[#allocation2 + $0x3c8] sm:$0xff] }
0x25b2   : > { %5390 = vmatpush.bf16.msrb.mxu0 %v8132_v31 }
0x25b6   : > { %5499 = vmatpush.bf16.msra.mxu0 %v8133_v17 }
0x25bd   : > { %7593 = vmatmul.msk.bf16.gmra.mxu0 %vm2356_vm11, %v8134_v53 }
0x25cd   : > { %7594 = vmatmul.msk.bf16.gmra.mxu0 %vm2356_vm11, %v8135_v14 }
0x25dd   : > { %7595 = vmatmul.msk.bf16.gmra.mxu0 %vm2356_vm11, %v8136_v54 }
0x262a   : > { %v5239_v19 = vpop.f32.mrf.mxu0 }
0x262b   : > { %v5240_v33 = vadd.f32 %v5239_v19, %v9035_v13 }
0x262d   : > { %v5259_v27 = vmax.f32 %v5240_v33, 0.0 }
0x2632   : > { %v5241_v42 = vpop.f32.mrf.mxu0 }
0x2633   : > { %v5242_v38 = vadd.f32 %v5241_v42, %v9032_v28 }
0x2635   : > { %v5260_v9 = vmax.f32 %v5242_v38, 0.0 }
0x2637   : > { %v5267_v48 = vpack.c.bf16 %v5260_v9, %v5259_v27 }
0x263a   : > { %v5244_v18 = vpop.f32.mrf.mxu0 }
0x263b   : > { %v5245_v44 = vadd.f32 %v5244_v18, %v9023_v10 }
0x263d   : > { %v5261_v43 = vmax.f32 %v5245_v44, 0.0 }
0x2642   : > { %v5246_v30 = vpop.f32.mrf.mxu0 }
0x2643   : > { %v5247_v39 = vadd.f32 %v5246_v30, %v9028_v58 }
0x2645   : > { %v5262_v35 = vmax.f32 %v5247_v39, 0.0 }
0x2647   : > { %v5268_v60 = vpack.c.bf16 %v5262_v35, %v5261_v43  ;;  %v9573_v43 = vld [vmem:[%s8387_s28 + $0x18] sm:$0xff] }
0x2648   : > { %5550 = vrot.lane.b32.xlu0 %v9573_v43, %s8321_s12 }
0x264a   : > { %v5249_v57 = vpop.f32.mrf.mxu0 }
0x264b   : > { %v5250_v47 = vadd.f32 %v5249_v57, %v9021_v46 }
0x264d   : > { %v5263_v55 = vmax.f32 %v5250_v47, 0.0 }
0x2652   : > { %v5251_v15 = vpop.f32.mrf.mxu0 }
0x2653   : > { %v5252_v20 = vadd.f32 %v5251_v15, %v9017_v1 }
0x2655   : > { %v5264_v41 = vmax.f32 %v5252_v20, 0.0  ;;  %v8143_v20 = vld [vmem:[%s9951_s3 + $0x6] ss:$0 sm:$0xff] }
0x2657   : > { %v5269_v16 = vpack.c.bf16 %v5264_v41, %v5263_v55 }
0x265a   : > { %v5254_v22 = vpop.f32.mrf.mxu0 }
0x265b   : > { %v5255_v12 = vadd.f32 %v5254_v22, %v9013_v63 }
0x265d   : > { %v5265_v49 = vmax.f32 %v5255_v12, 0.0 }
0x2662   : > { %v5256_v61 = vpop.f32.mrf.mxu0 }
0x2663   : > { %v5257_v23 = vadd.f32 %v5256_v61, %v9015_v11 }
0x2665   : > { %v5266_v56 = vmax.f32 %v5257_v23, 0.0 }
0x2667   : > { %v5270_v45 = vpack.c.bf16 %v5266_v56, %v5265_v49 }
0x2669   : > { %5275 = vmatpush.bf16.msrb.mxu2 %v5270_v45 }
0x266d   : > { %5276 = vmatpush.bf16.msrb.mxu2 %v5269_v16 }
0x2671   : > { %5277 = vmatpush.bf16.msrb.mxu2 %v5268_v60  ;;  %v8144_v60 = vld [vmem:[%s9951_s3 + $0x7] ss:$0 sm:$0xff] }
0x2675   : > { %5278 = vmatpush.bf16.msrb.mxu2 %v5267_v48 }
0x2678   : > { %7596 = vmatmul.msk.bf16.vlgmr.msrb.gmra.mxu2 %vm2356_vm11, %v8138_v59 }
0x2679   : > { %5337 = vmatpush.bf16.msra.mxu2 %v8137_v8 }
0x267d   : > { %5338 = vmatpush.bf16.msra.mxu2 %v8139_v32 }
0x2681   : > { %5339 = vmatpush.bf16.msra.mxu2 %v8140_v3 }
0x2685   : > { %5340 = vmatpush.bf16.msra.mxu2 %v8141_v24 }
0x2688   : > { %7597 = vmatmul.msk.bf16.gmra.mxu2 %vm2356_vm11, %v8142_v50 }
0x26fb   : > { %v5280_v6 = vpop.f32.mrf.mxu2 }
0x26fc   : > { %v5281_v31 = vadd.f32 %v5280_v6, %v9041_v4 }
0x26fe   : > { %v5290_v14 = vmax.f32 %v5281_v31, 0.0 }
0x2703   : > { %v5282_v17 = vpop.f32.mrf.mxu2 }
0x2704   : > { %v5283_v53 = vadd.f32 %v5282_v17, %v9043_v26 }
0x2706   : > { %v5291_v54 = vmax.f32 %v5283_v53, 0.0 }
0x2708   : > { %v5294_v19 = vpack.c.bf16 %v5291_v54, %v5290_v14 }
0x270a   : > { %7598 = vmatmul.msk.bf16.vlgmr.msrb.gmra.mxu3 %vm2356_vm11, %v5294_v19 }
0x270b   : > { %v5285_v42 = vpop.f32.mrf.mxu2 }
0x270c   : > { %v5286_v18 = vadd.f32 %v5285_v42, %v9048_v40  ;;  %v5551_v42 = vpop.permute.xlu0 %5550 }
0x270e   : > { %v5292_v15 = vmax.f32 %v5286_v18, 0.0  ;;  %v5553_v18 = vsel %vm219_vm3, 0.0, %v5551_v42 }
0x270f   : > { %5558 = vrot.lane.b32.xlu1 %v5553_v18, %s8323_s14  ;;  %5555 = vrot.lane.b32.xlu2 %v5553_v18, %s8322_s13 }
0x2713   : > { %v5287_v30 = vpop.f32.mrf.mxu2 }
0x2714   : > { %v5288_v57 = vadd.f32 %v5287_v30, %v9051_v5 }
0x2716   : > { %v5293_v22 = vmax.f32 %v5288_v57, 0.0 }
0x2718   : > { %v5295_v12 = vpack.c.bf16 %v5293_v22, %v5292_v15 }
0x271a   : > { %7599 = vmatmul.msk.bf16.gmra.mxu3 %vm2356_vm11, %v5295_v12 }
0x278d   : > { %v5311_v61 = vpop.f32.mrf.mxu3 }
0x278e   : > { %v5312_v23 = vadd.f32 %v8143_v20, %v5311_v61 }
0x2790   : > { %v5321_v56 = vmax.f32 %v5312_v23, 0.0 }
0x2795   : > { %v5313_v47 = vpop.f32.mrf.mxu3 }
0x2796   : > { %v5314_v49 = vadd.f32 %v8143_v20, %v5313_v47 }
0x2798   : > { %v5322_v39 = vmax.f32 %v5314_v49, 0.0 }
0x279a   : > { %v5325_v41 = vpack.c.bf16 %v5322_v39, %v5321_v56 }
0x279c   : > { %7600 = vmatmul.msk.bf16.vlgmr.msra.gmra.mxu2 %vm2356_vm11, %v5325_v41  ;;  %v8145_v41 = vld [vmem:[#allocation2 + $0x500] sm:$0xff] }
0x279d   : > { %v5316_v45 = vpop.f32.mrf.mxu3 }
0x279e   : > { %v5317_v44 = vadd.f32 %v8143_v20, %v5316_v45  ;;  %v8146_v45 = vld [vmem:[#allocation2 + $0x740] sm:$0xff] }
0x27a0   : > { %v5323_v35 = vmax.f32 %v5317_v44, 0.0  ;;  %v8147_v44 = vld [vmem:[#allocation2 + $0x780] sm:$0xff] }
0x27a5   : > { %v5318_v55 = vpop.f32.mrf.mxu3 }
0x27a6   : > { %v5319_v38 = vadd.f32 %v8143_v20, %v5318_v55  ;;  %v8148_v55 = vld [vmem:[#allocation2 + $0x80] sm:$0xff] }
0x27a8   : > { %v5324_v16 = vmax.f32 %v5319_v38, 0.0 }
0x27aa   : > { %v5326_v33 = vpack.c.bf16 %v5324_v16, %v5323_v35  ;;  %v5559_v16 = vpop.permute.xlu1 %5558 }
0x27ac   : > { %7601 = vmatmul.msk.bf16.gmra.mxu2 %vm2356_vm11, %v5326_v33  ;;  %v5562_v33 = vpack.c.bf16 %v5559_v16, %v5559_v16 }
0x281f   : > { %v5342_v9 = vpop.f32.mrf.mxu2 }
0x2820   : > { %v5343_v27 = vadd.f32 %v8144_v60, %v5342_v9 }
0x2822   : > { %v5352_v59 = vmax.f32 %v5343_v27, 0.0 }
0x2827   : > { %v5344_v48 = vpop.f32.mrf.mxu2 }
0x2828   : > { %v5345_v8 = vadd.f32 %v8144_v60, %v5344_v48 }
0x282a   : > { %v5353_v32 = vmax.f32 %v5345_v8, 0.0 }
0x282c   : > { %v5356_v3 = vpack.c.bf16 %v5353_v32, %v5352_v59  ;;  %v5564_v59 = vsel %vm241_vm0, %v5562_v33, 0  ;;  %v5556_v32 = vpop.permute.xlu2 %5555 }
0x282e   : > { %7602 = vmatmul.msk.bf16.vlgmr.msra.gmra.mxu1 %vm2629_vm12, %v5356_v3  ;;  %7604 = vmatmul.msk.bf16.vlgmr.msrb.gmra.mxu0 %vm2629_vm12, %v5356_v3  ;;  %v7615_v3 = vpack.c.bf16 %v5556_v32, %v5551_v42  ;;  %v8158_v42 = vld [vmem:[#allocation2 + $0x100] sm:$0xff]  ;;  %v8170_v32 = vld [vmem:[#allocation2 + $0x268] sm:$0xff] }
0x282f   : > { %v5347_v24 = vpop.f32.mrf.mxu2 }
0x2830   : > { %v5348_v50 = vadd.f32 %v8144_v60, %v5347_v24  ;;  %v8149_v24 = vld [vmem:[#allocation2 + $0x480] sm:$0xff] }
0x2832   : > { %v5354_v17 = vmax.f32 %v5348_v50, 0.0  ;;  %v8150_v50 = vld [vmem:[#allocation2 + $0x138] sm:$0xff] }
0x2837   : > { %v5349_v6 = vpop.f32.mrf.mxu2 }
0x2838   : > { %v5350_v31 = vadd.f32 %v8144_v60, %v5349_v6  ;;  %v8151_v6 = vld [vmem:[#allocation2 + $0x130] sm:$0xff] }
0x283a   : > { %v5355_v53 = vmax.f32 %v5350_v31, 0.0  ;;  %v8152_v31 = vld [vmem:[#allocation2 + $0x128] sm:$0xff] }
0x283c   : > { %v5357_v14 = vpack.c.bf16 %v5355_v53, %v5354_v17  ;;  %v8153_v17 = vld [vmem:[#allocation2 + $0x120] sm:$0xff] }
0x283d   : > { %v8154_v53 = vld [vmem:[#allocation2] sm:$0xf] }
0x283e   : > { %7603 = vmatmul.msk.bf16.gmra.mxu1 %vm2629_vm12, %v5357_v14  ;;  %7605 = vmatmul.msk.bf16.gmra.mxu0 %vm2629_vm12, %v5357_v14  ;;  %v8155_v14 = vld [vmem:[#allocation2 + $0x118] sm:$0xff] }
0x28ab   : > { %v5373_v54 = vpop.f32.mrf.mxu1  ;;  %v5392_v19 = vpop.f32.mrf.mxu0 }
0x28ac   : > { %v5402_v56 = vmax.f32 %v5373_v54, %v5392_v19  ;;  %v8156_v54 = vld [vmem:[#allocation2 + $0x110] sm:$0xff]  ;;  %v8157_v19 = vld [vmem:[#allocation2 + $0x108] sm:$0xff] }
0x28b3   : > { %v5375_v30 = vpop.f32.mrf.mxu1  ;;  %v5394_v57 = vpop.f32.mrf.mxu0 }
0x28b4   : > { %v5403_v47 = vmax.f32 %v5375_v30, %v5394_v57  ;;  %v5580_v57 = vpack.c.bf16 %v9573_v43, %v9573_v43 }
0x28b6   : > { %v5406_v39 = vpack.c.bf16 %v5403_v47, %v5402_v56  ;;  %v8159_v47 = vld [vmem:[#allocation2 + $0x4c0] sm:$0x3] }
0x28b7   : > { %v8160_v56 = vld [vmem:[#allocation2 + $0x40] sm:$0xff] }
0x28bb   : > { %v5378_v15 = vpop.f32.mrf.mxu1  ;;  %v5397_v22 = vpop.f32.mrf.mxu0 }
0x28bc   : > { %v5404_v20 = vmax.f32 %v5378_v15, %v5397_v22 }
0x28c3   : > { %v5380_v12 = vpop.f32.mrf.mxu1  ;;  %v5399_v61 = vpop.f32.mrf.mxu0 }
0x28c4   : > { %v5405_v23 = vmax.f32 %v5380_v12, %v5399_v61 }
0x28c6   : > { %v5407_v49 = vpack.c.bf16 %v5405_v23, %v5404_v20  ;;  %v9599_v20 = vsel %vm241_vm0, %v5580_v57, 0 }
0x28c8   : > { %5414 = vmatpush.bf16.msra.mxu3 %v5407_v49  ;;  %5428 = vmatpush.bf16.msrb.mxu2 %v5407_v49 }
0x28cc   : > { %5415 = vmatpush.bf16.msra.mxu3 %v5406_v39  ;;  %5429 = vmatpush.bf16.msrb.mxu2 %v5406_v39  ;;  %v8161_v39 = vld [vmem:[#allocation2 + $0x48] sm:$0xff] }
0x28cf   : > { %7606 = vmatmul.msk.bf16.vlgmr.msra.gmra.mxu3 %vm2629_vm12, %v8146_v45  ;;  %7607 = vmatmul.msk.bf16.vlgmr.msrb.gmra.mxu2 %vm2629_vm12, %v8147_v44  ;;  %v8163_v45 = vld [vmem:[#allocation2 + $0x58] sm:$0xff]  ;;  %v8164_v44 = vld [vmem:[#allocation2 + $0x60] sm:$0xff] }
0x28d0   : > { %5481 = vmatpush.bf16.msra.mxu2 %v8145_v41  ;;  %v8162_v41 = vld [vmem:[#allocation2 + $0x50] sm:$0xff] }
0x28d4   : > { %5688 = vmatpush.bf16.msrb.mxu2 %v8148_v55  ;;  %v8165_v55 = vld [vmem:[#allocation2 + $0x68] sm:$0xff] }
0x2952   : > { %v5417_v38 = vpop.f32.mrf.mxu3  ;;  %v5431_v35 = vpop.f32.mrf.mxu2 }
0x2953   : > { %v5436_v27 = vmax.f32 %v5417_v38, %v5431_v35  ;;  %v8166_v38 = vld [vmem:[#allocation2 + $0x70] sm:$0xff] }
0x295a   : > { %v5419_v9 = vpop.f32.mrf.mxu3  ;;  %v5433_v60 = vpop.f32.mrf.mxu2 }
0x295b   : > { %v5437_v48 = vmax.f32 %v5419_v9, %v5433_v60  ;;  %v8167_v9 = vld [vmem:[#allocation2 + $0x78] sm:$0xff] }
0x295d   : > { %v5438_v8 = vpack.c.bf16 %v5437_v48, %v5436_v27  ;;  %v8168_v48 = vld [vmem:[#allocation2 + $0x278] sm:$0xff] }
0x295f   : > { %5446 = vmatpush.bf16.msrb.mxu3 %v5438_v8  ;;  %v8169_v8 = vld [vmem:[#allocation2 + $0x270] sm:$0xff] }
0x2962   : > { %7608 = vmatmul.msk.bf16.vlgmr.msrb.gmra.mxu3 %vm525_vm2, %v8149_v24 }
0x2963   : > { %5572 = vmatpush.bf16.msra.mxu3 %v5564_v59 }
0x2967   : > { %7616 = vmatpush.bf16.msk.msra.mxu3 %vm8576_vm6, %v7615_v3  ;;  %v8171_v3 = vld [vmem:[#allocation2 + $0x260] sm:$0xff] }
0x296b   : > { %5769 = vmatpush.bf16.msrb.mxu3 %v8150_v50 }
0x296f   : > { %5770 = vmatpush.bf16.msrb.mxu3 %v8151_v6  ;;  %v8172_v6 = vld [vmem:[#allocation2 + $0x258] sm:$0xff] }
0x2972   : > { %7617 = vmatmul.msk.bf16.vlgmr.msra.gmra.mxu3 %vm237_vm7, %v8154_v53 }
0x2973   : > { %5771 = vmatpush.bf16.msrb.mxu3 %v8152_v31 }
0x2977   : > { %5772 = vmatpush.bf16.msrb.mxu3 %v8153_v17 }
0x297b   : > { %5773 = vmatpush.bf16.msrb.mxu3 %v8155_v14  ;;  %v8173_v14 = vld [vmem:[#allocation2 + $0x250] sm:$0xff] }
0x297f   : > { %5774 = vmatpush.bf16.msrb.mxu3 %v8156_v54 }
0x2983   : > { %5775 = vmatpush.bf16.msrb.mxu3 %v8157_v19 }
0x2987   : > { %5776 = vmatpush.bf16.msrb.mxu3 %v8158_v42  ;;  %v8174_v42 = vld [vmem:[#allocation2 + $0x248] sm:$0xff] }
0x29e5   : > { %v5448_v51 = vpop.f32.mrf.mxu3 }
0x29e6   : > { %v5449_v18 = vadd.f32 %v5448_v51, %v9083_v21  ;;  %v8175_v51 = vld [vmem:[#allocation2 + $0x240] sm:$0xff] }
0x29e8   : > { %v5453_v22 = vmax.f32 %v5449_v18, 0.0 }
0x29ed   : > { %v5450_v30 = vpop.f32.mrf.mxu3 }
0x29ee   : > { %v5451_v15 = vadd.f32 %v5450_v30, %v9085_v36  ;;  %v10270_v30 = vld [vmem:[#allocation7_spill] sm:$0xff] }
0x29f0   : > { %v5454_v12 = vmax.f32 %v5451_v15, 0.0 }
0x29f2   : > { %v5455_v61 = vpack.c.bf16 %v5454_v12, %v5453_v22 }
0x29f4   : > { %5463 = vmatpush.bf16.msrb.mxu1 %v5455_v61  ;;  %v10271_v61 = vld [vmem:[#allocation8_spill] sm:$0xff] }
0x29f5   : > { %v9601_v23 = vpop.f32.mrf.mxu3 }
0x29f7   : > { %7609 = vmatmul.msk.bf16.vlgmr.msrb.gmra.mxu1 %vm525_vm2, %v8159_v47 }
0x29f8   : > { %5591 = vmatpush.bf16.msra.mxu1 %v9599_v20 }
0x29fd   : > { %v5577_v49 = vpop.f32.mrf.mxu3 }
0x2a07   : > { %7618 = vmatmul.msk.bf16.vlgmr.msra.gmra.mxu1 %vm413_vm1, %v8160_v56  ;;  %v10272_v56 = vld [vmem:[#allocation9_spill] sm:$0xff] }
0x2a17   : > { %7619 = vmatmul.msk.bf16.gmra.mxu1 %vm413_vm1, %v8161_v39 }
0x2a27   : > { %7620 = vmatmul.msk.bf16.gmra.mxu1 %vm413_vm1, %v8162_v41 }
0x2a37   : > { %7621 = vmatmul.msk.bf16.gmra.mxu1 %vm413_vm1, %v8163_v45 }
0x2a47   : > { %7622 = vmatmul.msk.bf16.gmra.mxu1 %vm413_vm1, %v8164_v44 }
0x2a57   : > { %7623 = vmatmul.msk.bf16.gmra.mxu1 %vm413_vm1, %v8165_v55  ;;  %v10273_v55 = vld [vmem:[#allocation10_spill] sm:$0xff] }
0x2a67   : > { %7624 = vmatmul.msk.bf16.gmra.mxu1 %vm413_vm1, %v8166_v38 }
0x2a74   : > { %v5465_v35 = vpop.f32.mrf.mxu1 }
0x2a75   : > { %v5466_v16 = vadd.f32 %v5465_v35, %v9087_v0 }
0x2a77   : > { %v5469_v33 = vmax.f32 %v5466_v16, 0.0  ;;  %7625 = vmatmul.msk.bf16.gmra.mxu1 %vm413_vm1, %v8167_v9  ;;  %v10274_v16 = vld [vmem:[#allocation11_spill] sm:$0xff] }
0x2a79   : > { %v5470_v60 = vpack.c.bf16 %v5469_v33, %v5469_v33 }
0x2a7b   : > { %7610 = vmatmul.msk.bf16.vlgmr.msra.gmra.mxu2 %vm525_vm2, %v5470_v60 }
0x2a7c   : > { %v5467_v27 = vpop.f32.mrf.mxu1  ;;  %6006 = vmatpush.bf16.msra.mxu2 %v8168_v48 }
0x2a80   : > { %6007 = vmatpush.bf16.msra.mxu2 %v8169_v8  ;;  %v10275_v8 = vld [vmem:[#allocation12_spill] sm:$0xff] }
0x2a84   : > { %v5593_v59 = vpop.f32.mrf.mxu1  ;;  %6008 = vmatpush.bf16.msra.mxu2 %v8170_v32 }
0x2a85   : > { %v5594_v24 = vadd.f32 %v5593_v59, %v8504_v29 }
0x2a87   : > { %v5633_v17 = vmax.f32 %v5594_v24, 0.0 }
0x2a88   : > { %6009 = vmatpush.bf16.msra.mxu2 %v8171_v3  ;;  %v10276_v3 = vld [vmem:[#allocation13_spill] sm:$0xff] }
0x2a8c   : > { %v5595_v50 = vpop.f32.mrf.mxu1  ;;  %6010 = vmatpush.bf16.msra.mxu2 %v8172_v6 }
0x2a8d   : > { %v5596_v31 = vadd.f32 %v5595_v50, %v10208_v62 }
0x2a8f   : > { %v5634_v53 = vmax.f32 %v5596_v31, 0.0 }
0x2a90   : > { %6011 = vmatpush.bf16.msra.mxu2 %v8173_v14 }
0x2a91   : > { %v5649_v54 = vpack.c.bf16 %v5634_v53, %v5633_v17  ;;  %v10277_v53 = vld [vmem:[#allocation14_spill] sm:$0xff] }
0x2a93   : > { %7626 = vmatmul.msk.bf16.vlgmr.msrb.gmra.mxu2 %vm525_vm2, %v5649_v54 }
0x2a94   : > { %v5598_v19 = vpop.f32.mrf.mxu1  ;;  %6012 = vmatpush.bf16.msra.mxu2 %v8174_v42 }
0x2a95   : > { %v5599_v18 = vadd.f32 %v5598_v19, %v10209_v7  ;;  %v10278_v19 = vld [vmem:[#allocation15_spill] sm:$0xff] }
0x2a97   : > { %v5635_v15 = vmax.f32 %v5599_v18, 0.0 }
0x2a98   : > { %6013 = vmatpush.bf16.msra.mxu2 %v8175_v51 }
0x2a9c   : > { %v5600_v29 = vpop.f32.mrf.mxu1 }
0x2a9d   : > { %v5601_v57 = vadd.f32 %v5600_v29, %v10270_v30 }
0x2a9f   : > { %v5636_v22 = vmax.f32 %v5601_v57, 0.0  ;;  %v10279_v57 = vld [vmem:[#allocation16_spill] sm:$0xff] }
0x2aa1   : > { %v5650_v62 = vpack.c.bf16 %v5636_v22, %v5635_v15 }
0x2aa3   : > { %7627 = vmatmul.msk.bf16.gmra.mxu2 %vm525_vm2, %v5650_v62  ;;  %v10280_v62 = vld [vmem:[#allocation17_spill] sm:$0xff] }
0x2aa4   : > { %v5603_v12 = vpop.f32.mrf.mxu1 }
0x2aa5   : > { %v5604_v47 = vadd.f32 %v5603_v12, %v10271_v61 }
0x2aa7   : > { %v5637_v41 = vmax.f32 %v5604_v47, 0.0 }
0x2aac   : > { %v5605_v49 = vpop.f32.mrf.mxu1 }
0x2aad   : > { %v5606_v39 = vadd.f32 %v5605_v49, %v10272_v56 }
0x2aaf   : > { %v5638_v45 = vmax.f32 %v5606_v39, 0.0  ;;  %v10281_v39 = vld [vmem:[#allocation18_spill] sm:$0xff] }
0x2ab1   : > { %v5651_v44 = vpack.c.bf16 %v5638_v45, %v5637_v41 }
0x2ab3   : > { %7628 = vmatmul.msk.bf16.gmra.mxu2 %vm525_vm2, %v5651_v44  ;;  %v10282_v44 = vld [vmem:[#allocation19_spill] sm:$0xff] }
0x2ab4   : > { %v5608_v7 = vpop.f32.mrf.mxu1 }
0x2ab5   : > { %v5609_v38 = vadd.f32 %v5608_v7, %v10273_v55 }
0x2ab7   : > { %v5639_v9 = vmax.f32 %v5609_v38, 0.0 }
0x2abc   : > { %v5610_v35 = vpop.f32.mrf.mxu1 }
0x2abd   : > { %v5611_v33 = vadd.f32 %v5610_v35, %v10274_v16  ;;  %v8176_v16 = vld [vmem:[%s9951_s3 + $0x8] ss:$0 sm:$0xff] }
0x2abf   : > { %v5640_v60 = vmax.f32 %v5611_v33, 0.0 }
0x2ac1   : > { %v5652_v27 = vpack.c.bf16 %v5640_v60, %v5639_v9 }
0x2ac3   : > { %7629 = vmatmul.msk.bf16.gmra.mxu2 %vm525_vm2, %v5652_v27 }
0x2ac4   : > { %v5613_v48 = vpop.f32.mrf.mxu1 }
0x2ac5   : > { %v5614_v59 = vadd.f32 %v5613_v48, %v10275_v8 }
0x2ac7   : > { %v5641_v50 = vmax.f32 %v5614_v59, 0.0 }
0x2acc   : > { %v5615_v32 = vpop.f32.mrf.mxu1 }
0x2acd   : > { %v5616_v24 = vadd.f32 %v5615_v32, %v10276_v3 }
0x2acf   : > { %v5642_v6 = vmax.f32 %v5616_v24, 0.0 }
0x2ad1   : > { %v5653_v31 = vpack.c.bf16 %v5642_v6, %v5641_v50 }
0x2ad3   : > { %7630 = vmatmul.msk.bf16.gmra.mxu2 %vm525_vm2, %v5653_v31 }
0x2ad4   : > { %v5618_v17 = vpop.f32.mrf.mxu1 }
0x2ad5   : > { %v5619_v14 = vadd.f32 %v5618_v17, %v10277_v53 }
0x2ad7   : > { %v5643_v51 = vmax.f32 %v5619_v14, 0.0 }
0x2adc   : > { %v5620_v54 = vpop.f32.mrf.mxu1 }
0x2add   : > { %v5621_v42 = vadd.f32 %v5620_v54, %v10278_v19 }
0x2adf   : > { %v5644_v18 = vmax.f32 %v5621_v42, 0.0 }
0x2ae1   : > { %v5654_v29 = vpack.c.bf16 %v5644_v18, %v5643_v51 }
0x2ae3   : > { %7631 = vmatmul.msk.bf16.gmra.mxu2 %vm525_vm2, %v5654_v29 }
0x2ae4   : > { %v5623_v30 = vpop.f32.mrf.mxu1 }
0x2ae5   : > { %v5624_v15 = vadd.f32 %v5623_v30, %v10279_v57  ;;  %v8177_v30 = vld [vmem:[%s9951_s3] ss:$0 sm:$0xff] }
0x2ae7   : > { %v5645_v61 = vmax.f32 %v5624_v15, 0.0 }
0x2aec   : > { %v5625_v22 = vpop.f32.mrf.mxu1 }
0x2aed   : > { %v5626_v12 = vadd.f32 %v5625_v22, %v10280_v62 }
0x2aef   : > { %v5646_v47 = vmax.f32 %v5626_v12, 0.0 }
0x2af1   : > { %v5655_v49 = vpack.c.bf16 %v5646_v47, %v5645_v61 }
0x2af3   : > { %7632 = vmatmul.msk.bf16.gmra.mxu2 %vm525_vm2, %v5655_v49 }
0x2af4   : > { %v5628_v56 = vpop.f32.mrf.mxu1 }
0x2af5   : > { %v5629_v41 = vadd.f32 %v5628_v56, %v10281_v39 }
0x2af7   : > { %v5647_v38 = vmax.f32 %v5629_v41, 0.0 }
0x2afc   : > { %v5630_v45 = vpop.f32.mrf.mxu1 }
0x2afd   : > { %v5631_v7 = vadd.f32 %v5630_v45, %v10282_v44 }
0x2afe   : > { %v5483_v55 = vpop.f32.mrf.mxu2 }
0x2aff   : > { %v5648_v35 = vmax.f32 %v5631_v7, 0.0  ;;  %v5484_v33 = vadd.f32 %v8176_v16, %v5483_v55 }
0x2b01   : > { %v5656_v9 = vpack.c.bf16 %v5648_v35, %v5647_v38  ;;  %v5487_v60 = vmax.f32 %v5484_v33, 0.0 }
0x2b03   : > { %v5488_v27 = vpack.c.bf16 %v5487_v60, %v5487_v60  ;;  %7633 = vmatmul.msk.bf16.gmra.mxu2 %vm525_vm2, %v5656_v9 }
0x2b05   : > { %7611 = vmatmul.msk.bf16.vlgmr.msra.gmra.mxu0 %vm525_vm2, %v5488_v27 }
0x2b06   : > { %v5485_v48 = vpop.f32.mrf.mxu2 }
0x2b16   : > { %v5690_v8 = vpop.f32.mrf.mxu2 }
0x2b1e   : > { %v5692_v59 = vpop.f32.mrf.mxu2 }
0x2b26   : > { %v5695_v32 = vpop.f32.mrf.mxu2 }
0x2b2e   : > { %v5697_v3 = vpop.f32.mrf.mxu2 }
0x2b36   : > { %v5700_v24 = vpop.f32.mrf.mxu2 }
0x2b3e   : > { %v5702_v50 = vpop.f32.mrf.mxu2 }
0x2b3f   : > { %v5703_v48 = vadd.f32 %v8177_v30, %v5702_v50 }
0x2b46   : > { %v5705_v6 = vpop.f32.mrf.mxu2 }
0x2b47   : > { %v5706_v60 = vadd.f32 %v8177_v30, %v5705_v6 }
0x2b4e   : > { %v5707_v31 = vpop.f32.mrf.mxu2 }
0x2b4f   : > { %v5708_v16 = vadd.f32 %v8177_v30, %v5707_v31 }
0x2b56   : > { %v5710_v17 = vpop.f32.mrf.mxu2 }
0x2b57   : > { %v5711_v38 = vadd.f32 %v8177_v30, %v5710_v17  ;;  %v5693_v17 = vadd.f32 %v8177_v30, %v5692_v59 }
0x2b59   : > { %v5738_v27 = vmax.f32 %v5711_v38, 0.0  ;;  %v5731_v6 = vmax.f32 %v5693_v17, 0.0 }
0x2b5e   : > { %v5712_v53 = vpop.f32.mrf.mxu2 }
0x2b5f   : > { %v5713_v44 = vadd.f32 %v8177_v30, %v5712_v53 }
0x2b61   : > { %v5739_v33 = vmax.f32 %v5713_v44, 0.0 }
0x2b66   : > { %v5715_v14 = vpop.f32.mrf.mxu2 }
0x2b67   : > { %v5716_v41 = vadd.f32 %v8177_v30, %v5715_v14  ;;  %v5698_v14 = vadd.f32 %v8177_v30, %v5697_v3 }
0x2b69   : > { %v5740_v35 = vmax.f32 %v5716_v41, 0.0 }
0x2b6e   : > { %v5717_v54 = vpop.f32.mrf.mxu2 }
0x2b6f   : > { %v5718_v49 = vadd.f32 %v8177_v30, %v5717_v54  ;;  %v5750_v54 = vpack.c.bf16 %v5739_v33, %v5738_v27  ;;  %v8181_v33 = vld [vmem:[#allocation2 + $0x180] sm:$0xff]  ;;  %v7880_v27 = vld [vmem:[%s9951_s3 + $0x9] ss:$0 sm:$0xff] }
0x2b71   : > { %v5741_v7 = vmax.f32 %v5718_v49, 0.0 }
0x2b73   : > { %v5751_v9 = vpack.c.bf16 %v5741_v7, %v5740_v35 }
0x2b76   : > { %v5720_v19 = vpop.f32.mrf.mxu2 }
0x2b77   : > { %v5721_v12 = vadd.f32 %v8177_v30, %v5720_v19  ;;  %v5737_v19 = vmax.f32 %v5708_v16, 0.0  ;;  %v8180_v16 = vld [vmem:[#allocation2 + $0x300] sm:$0xff] }
0x2b79   : > { %v5742_v45 = vmax.f32 %v5721_v12, 0.0 }
0x2b7e   : > { %v5722_v42 = vpop.f32.mrf.mxu2 }
0x2b7f   : > { %v5723_v22 = vadd.f32 %v8177_v30, %v5722_v42  ;;  %v5701_v42 = vadd.f32 %v8177_v30, %v5700_v24  ;;  %v8178_v24 = vld [vmem:[#allocation2 + $0xc0] sm:$0xf] }
0x2b81   : > { %v5743_v56 = vmax.f32 %v5723_v22, 0.0  ;;  %v5733_v22 = vmax.f32 %v5698_v14, 0.0 }
0x2b82   : > { %v9643_v51 = vpop.f32.mrf.mxu0 }
0x2b83   : > { %v5752_v55 = vpack.c.bf16 %v5743_v56, %v5742_v45  ;;  %v8179_v45 = vld [vmem:[%s9951_s3 + $0x1] ss:$0 sm:$0xff] }
0x2b86   : > { %v5725_v18 = vpop.f32.mrf.mxu2 }
0x2b87   : > { %v5726_v57 = vadd.f32 %v8177_v30, %v5725_v18  ;;  %v5736_v18 = vmax.f32 %v5706_v60, 0.0  ;;  %v8183_v60 = vld [vmem:[#allocation2 + $0x188] sm:$0xff] }
0x2b89   : > { %v5744_v61 = vmax.f32 %v5726_v57, 0.0  ;;  %v5749_v53 = vpack.c.bf16 %v5737_v19, %v5736_v18  ;;  %v5696_v57 = vadd.f32 %v8177_v30, %v5695_v32  ;;  %v8184_v19 = vld [vmem:[#allocation2 + $0x190] sm:$0xff] }
0x2b8a   : > { %v5503_v29 = vpop.f32.mrf.mxu0 }
0x2b8b   : > { %v5735_v29 = vmax.f32 %v5703_v48, 0.0  ;;  %v5732_v12 = vmax.f32 %v5696_v57, 0.0  ;;  %v5502_v48 = vadd.f32 %v7880_v27, %v9643_v51  ;;  %v8186_v57 = vld [vmem:[#allocation2 + $0x1a0] sm:$0xff]  ;;  %v8187_v51 = vld [vmem:[#allocation2 + $0x1a8] sm:$0xff] }
0x2b8e   : > { %v5727_v15 = vpop.f32.mrf.mxu2 }
0x2b8f   : > { %v5728_v62 = vadd.f32 %v8177_v30, %v5727_v15  ;;  %v5734_v15 = vmax.f32 %v5701_v42, 0.0  ;;  %v5505_v42 = vmax.f32 %v5502_v48, 0.0 }
0x2b91   : > { %v5745_v47 = vmax.f32 %v5728_v62, 0.0  ;;  %v5748_v31 = vpack.c.bf16 %v5735_v29, %v5734_v15  ;;  %v5691_v62 = vadd.f32 %v8177_v30, %v5690_v8  ;;  %v5576_v8 = vadd.f32 %v9601_v23, %v8596_v34  ;;  %v8188_v15 = vld [vmem:[#allocation2 + $0x1b0] sm:$0xff] }
0x2b93   : > { %v5753_v39 = vpack.c.bf16 %v5745_v47, %v5744_v61  ;;  %v5747_v61 = vpack.c.bf16 %v5733_v22, %v5732_v12  ;;  %v5730_v50 = vmax.f32 %v5691_v62, 0.0  ;;  %v5579_v30 = vmax.f32 %v5576_v8, 0.0  ;;  %v9688_v62 = vld [vmem:[%s9951_s3 + $0x3] ss:$0 sm:$0xff] }
0x2b95   : > { %5754 = vmatpush.bf16.msrb.mxu0 %v5753_v39  ;;  %v5746_v47 = vpack.c.bf16 %v5731_v6, %v5730_v50  ;;  %v8337_v39 = vmov 3   ;;  %v5783_v7 = vadd.f32 %v9573_v43, %v5579_v30  ;;  %v8182_v43 = vld [vmem:[%s9950_s2] sm:$0xff]  ;;  %v4702_v6 = vadd.f32 %v9688_v62, %v9466_v25 }
0x2b96   : > { %7869 = vset.pattern.permute.xlu0 %v8337_v39 }
0x2b99   : > { %5755 = vmatpush.bf16.msrb.mxu0 %v5752_v55 }
0x2b9d   : > { %5756 = vmatpush.bf16.msrb.mxu0 %v5751_v9  ;;  %v10283_v9 = vmov 11  }
0x2ba1   : > { %5757 = vmatpush.bf16.msrb.mxu0 %v5750_v54  ;;  %v2874_v54 = vld [vmem:[#allocation2 + $0x580] sm:$0x3] }
0x2ba2   : > { %v9673_v18 = vunpack.c.l.bf16 %v2874_v54 }
0x2ba4   : > { %v5506_v14 = vmul.f32 %v5505_v42, %v9673_v18 }
0x2ba5   : > { %5758 = vmatpush.bf16.msrb.mxu0 %v5749_v53  ;;  %v8185_v53 = vld [vmem:[#allocation2 + $0x198] sm:$0xff] }
0x2ba6   : > { %v5507_v29 = vsel %vm2877_vm13, %v5506_v14, 0.0 }
0x2ba9   : > { %5759 = vmatpush.bf16.msrb.mxu0 %v5748_v31  ;;  %v8189_v31 = vld [vmem:[#allocation2 + $0x1b8] sm:$0xff] }
0x2bad   : > { %5760 = vmatpush.bf16.msrb.mxu0 %v5747_v61 }
0x2bb1   : > { %5761 = vmatpush.bf16.msrb.mxu0 %v5746_v47  ;;  %v4705_v47 = vmax.f32 %v4702_v6, 0.0 }
0x2bb4   : > { %5762 = vmatmul.bf16.vlgmr.msrb.gmra.mxu0 %v8178_v24 }
0x2c31   : > { %v5763_v3 = vpop.f32.mrf.mxu0 }
0x2c32   : > { %v5764_v49 = vadd.f32 %v5763_v3, %v8593_v52 }
0x2c34   : > { %v5767_v32 = vmax.f32 %v5764_v49, 0.0 }
0x2c36   : > { %v5768_v56 = vpack.c.bf16 %v5767_v32, %v5767_v32  ;;  %v10284_v32 = vld [vmem:[#allocation5_spill] sm:$0xff] }
0x2c38   : > { %5777 = vmatmul.bf16.vlgmr.msrb.gmra.mxu3 %v5768_v56  ;;  %v4188_v56 = vadd.f32 %v7880_v27, %v10284_v32 }
0x2c39   : > { %v5765_v59 = vpop.f32.mrf.mxu0 }
0x2c3a   : > { %v10285_v59 = vld [vmem:[#allocation73_spill] sm:$0xff]  ;;  %v4191_v8 = vmax.f32 %v4188_v56, 0.0  ;;  %v8196_v56 = vld [vmem:[#allocation2 + $0x358] sm:$0xff] }
0x2c3b   : > { %v2869_v39 = vadd.f32 %v7880_v27, %v10285_v59  ;;  %v8197_v59 = vld [vmem:[#allocation2 + $0x350] sm:$0xff] }
0x2c3c   : > { %v4192_v25 = vmul.f32 %v4191_v8, %v9673_v18 }
0x2c3d   : > { %v2872_v30 = vmax.f32 %v2869_v39, 0.0  ;;  %v10292_v39 = vld [vmem:[#allocation25_spill] sm:$0xff] }
0x2cbb   : > { %v5778_v41 = vpop.f32.mrf.mxu3 }
0x2cbc   : > { %v5779_v44 = vadd.f32 %v8179_v45, %v5778_v41  ;;  %v2876_v41 = vmul.f32 %v9673_v18, %v2872_v30  ;;  %v10286_v45 = vld [vmem:[#allocation38_spill] sm:$0xff]  ;;  %v10293_v30 = vld [vmem:[#allocation24_spill] sm:$0xff] }
0x2cbe   : > { %v5782_v55 = vmax.f32 %v5779_v44, 0.0 }
0x2cc0   : > { %v5784_v52 = vadd.f32 %v5783_v7, %v5782_v55  ;;  %v10287_v55 = vld [vmem:[#allocation49_spill] sm:$0xff] }
0x2cc2   : > { %v9655_v38 = vmax.f32 %v5784_v52, 0.0  ;;  %v1197_v52 = vadd.f32 %v9688_v62, %v10287_v55 }
0x2cc3   : > { %v5780_v35 = vpop.f32.mrf.mxu3 }
0x2cc4   : > { %5787 = vrot.lane.b32.xlu0 %v9655_v38, %s8327_s21  ;;  %v5817_v34 = vpack.c.bf16 %v9655_v38, %v9655_v38  ;;  %v10288_v35 = vld [vmem:[#allocation20_spill] sm:$0xff] }
0x2cc6   : > { %v5819_v23 = vsel %vm241_vm0, %v5817_v34, 0 }
0x2cc7   : > { %5828 = vmatpush.bf16.msra.mxu3 %v5819_v23  ;;  %v1200_v23 = vmax.f32 %v1197_v52, 0.0 }
0x2cca   : > { %7639 = vmatmul.msk.bf16.vlgmr.msra.gmra.mxu3 %vm413_vm1, %v8181_v33 }
0x2ccb   : > { %6213 = vmatpush.bf16.msrb.mxu3 %v8180_v16 }
0x2ccc   : > { %746 = vperm.xlu0 %7869, %v8182_v43  }
0x2cd4   : > { %7870 = vset.pattern.permute.xlu0 %v10283_v9 }
0x2cda   : > { %7640 = vmatmul.msk.bf16.gmra.mxu3 %vm413_vm1, %v8183_v60 }
0x2cea   : > { %7641 = vmatmul.msk.bf16.gmra.mxu3 %vm413_vm1, %v8184_v19 }
0x2cf6   : > { %5508 = vadd.xlane.f32.xlu0 %v5507_v29 }
0x2cfa   : > { %7642 = vmatmul.msk.bf16.gmra.mxu3 %vm413_vm1, %v8185_v53  ;;  %v8190_v53 = vld [vmem:[#allocation2 + $0x1c0] sm:$0xff] }
0x2d0a   : > { %7643 = vmatmul.msk.bf16.gmra.mxu3 %vm413_vm1, %v8186_v57  ;;  %v8191_v57 = vld [vmem:[#allocation2 + $0x140] sm:$0xf] }
0x2d1a   : > { %7644 = vmatmul.msk.bf16.gmra.mxu3 %vm413_vm1, %v8187_v51  ;;  %v8192_v51 = vld [vmem:[#allocation2 + $0x378] sm:$0xff] }
0x2d2a   : > { %7645 = vmatmul.msk.bf16.gmra.mxu3 %vm413_vm1, %v8188_v15 }
0x2d36   : > { %v5788_v17 = vpop.permute.xlu0 %5787 }
0x2d37   : > { %v5790_v22 = vsel %vm732_vm8, 0.0, %v5788_v17 }
0x2d38   : > { %5792 = vrot.lane.b32.xlu2 %v5790_v22, %s8323_s14  ;;  %5795 = vrot.lane.b32.xlu1 %v5790_v22, %s8329_s22  ;;  %s8338_s14 = smov 125   ;;  %v8193_v22 = vld [vmem:[#allocation2 + $0x370] sm:$0xff] }
0x2d3a   : > { %7646 = vmatmul.msk.bf16.gmra.mxu3 %vm413_vm1, %v8189_v31  ;;  %v10290_v31 = vld [vmem:[#allocation23_spill] sm:$0xff] }
0x2d3e   : > { %v9690_v12 = vpop.permute.xlu0 %746 }
0x2d3f   : > { %v4499_v61 = vadd.f32 %v9451_v37, %v9690_v12  ;;  %v4193_v37 = vsel %vm2877_vm13, %v4192_v25, 0.0  ;;  %v765_v44 = vadd.f32 %v10286_v45, %v9690_v12 }
0x2d41   : > { %v4502_v50 = vmax.f32 %v4499_v61, 0.0  ;;  %v768_v7 = vmax.f32 %v765_v44, 0.0  ;;  %v10291_v61 = vld [vmem:[#allocation22_spill] sm:$0xff]  ;;  %v8199_v44 = vld [vmem:[#allocation2 + $0x340] sm:$0xff] }
0x2d43   : > { %v4706_v24 = vadd.f32 %v4502_v50, %v9405_v2  ;;  %v2878_v2 = vsel %vm2877_vm13, %v2876_v41, 0.0  ;;  %v1201_v34 = vadd.f32 %v768_v7, %v10288_v35 }
0x2d45   : > { %v4707_v3 = vadd.f32 %v4706_v24, %v4705_v47  ;;  %v1202_v16 = vadd.f32 %v1201_v34, %v1200_v23  ;;  %v8194_v47 = vld [vmem:[#allocation2 + $0x368] sm:$0xff] }
0x2d47   : > { %v4708_v49 = vmax.f32 %v4707_v3, 0.0  ;;  %v1203_v33 = vmax.f32 %v1202_v16, 0.0  ;;  %v8195_v3 = vld [vmem:[#allocation2 + $0x360] sm:$0xff] }
0x2d49   : > { %4710 = vrot.lane.b32.xlu0 %v4708_v49, %s8338_s14 }
0x2d4d   : > { %v5830_v43 = vpop.f32.mrf.mxu3 }
0x2d4e   : > { %v5831_v50 = vadd.f32 %v5830_v43, %v10291_v61 }
0x2d50   : > { %v5870_v24 = vmax.f32 %v5831_v50, 0.0 }
0x2d55   : > { %v5832_v9 = vpop.f32.mrf.mxu3 }
0x2d56   : > { %v5833_v6 = vadd.f32 %v5832_v9, %v10290_v31 }
0x2d5d   : > { %v5835_v60 = vpop.f32.mrf.mxu3 }
0x2d5e   : > { %v5836_v25 = vadd.f32 %v5835_v60, %v10293_v30  ;;  %v10295_v60 = vld [vmem:[#allocation27_spill] sm:$0xff] }
0x2d60   : > { %v5872_v45 = vmax.f32 %v5836_v25, 0.0 }
0x2d61   : > { %4194 = vadd.xlane.f32.xlu2 %v4193_v37  ;;  %v8198_v37 = vld [vmem:[#allocation2 + $0x348] sm:$0xff] }
0x2d62   : > { %2879 = vadd.xlane.f32.xlu1 %v2878_v2 }
0x2d65   : > { %v5837_v42 = vpop.f32.mrf.mxu3 }
0x2d66   : > { %v5838_v8 = vadd.f32 %v5837_v42, %v10292_v39 }
0x2d68   : > { %v5873_v2 = vmax.f32 %v5838_v8, 0.0 }
0x2d6a   : > { %v5887_v7 = vpack.c.bf16 %v5873_v2, %v5872_v45 }
0x2d6d   : > { %v5840_v15 = vpop.f32.mrf.mxu3 }
0x2d75   : > { %v5842_v32 = vpop.f32.mrf.mxu3 }
0x2d7b   : > { %1205 = vrot.lane.b32.xlu1 %v1203_v33, %s8338_s14  ;;  %v10294_v33 = vld [vmem:[#allocation26_spill] sm:$0xff] }
0x2d7c   : > { %v5843_v43 = vadd.f32 %v5842_v32, %v10294_v33  ;;  %v10299_v32 = vld [vmem:[#allocation31_spill] sm:$0xff] }
0x2d7d   : > { %v5845_v41 = vpop.f32.mrf.mxu3 }
0x2d85   : > { %v5847_v34 = vpop.f32.mrf.mxu3 }
0x2d8d   : > { %v5850_v29 = vpop.f32.mrf.mxu3 }
0x2d92   : > { %v5793_v19 = vpop.permute.xlu2 %5792 }
0x2d93   : > { %v7636_v14 = vpack.c.bf16 %v5793_v19, %v5788_v17  ;;  %v5871_v17 = vmax.f32 %v5833_v6, 0.0  ;;  %v5875_v19 = vmax.f32 %v5843_v43, 0.0  ;;  %v10297_v6 = vld [vmem:[#allocation28_spill] sm:$0xff] }
0x2d94   : > { %v5846_v61 = vadd.f32 %v5845_v41, %v10297_v6  ;;  %v10301_v41 = vld [vmem:[#allocation32_spill] sm:$0xff] }
0x2d95   : > { %v5886_v49 = vpack.c.bf16 %v5871_v17, %v5870_v24  ;;  %v5852_v31 = vpop.f32.mrf.mxu3 }
0x2d9d   : > { %v5855_v24 = vpop.f32.mrf.mxu3 }
0x2d9e   : > { %v5856_v45 = vadd.f32 %v5855_v24, %v10301_v41 }
0x2da5   : > { %v5857_v39 = vpop.f32.mrf.mxu3 }
0x2daa   : > { %v5796_v27 = vpop.permute.xlu1 %5795 }
0x2dab   : > { %v5799_v48 = vpack.c.bf16 %v5796_v27, %v5796_v27  ;;  %v5841_v27 = vadd.f32 %v5840_v15, %v10295_v60  ;;  %v10296_v15 = vld [vmem:[#allocation29_spill] sm:$0xff] }
0x2dad   : > { %v5801_v54 = vsel %vm241_vm0, %v5799_v48, 0  ;;  %v5874_v42 = vmax.f32 %v5841_v27, 0.0  ;;  %v5860_v25 = vpop.f32.mrf.mxu3 }
0x2dae   : > { %5809 = vmatpush.bf16.msra.mxu0 %v5801_v54 }
0x2db2   : > { %7637 = vmatpush.bf16.msk.msra.mxu0 %vm8640_vm10, %v7636_v14  ;;  %v9726_v14 = vld [vmem:[%s9951_s3 + $0xa] sm:$0x1] }
0x2db5   : > { %7638 = vmatmul.msk.bf16.vlgmr.msra.gmra.mxu0 %vm237_vm7, %v8191_v57  ;;  %v5888_v57 = vpack.c.bf16 %v5875_v19, %v5874_v42 }
0x2db6   : > { %5925 = vmatpush.bf16.msrb.mxu0 %v8190_v53 }
0x2dba   : > { %6279 = vmatpush.bf16.msra.mxu0 %v8192_v51 }
0x2dbe   : > { %6280 = vmatpush.bf16.msra.mxu0 %v8193_v22  ;;  %v5848_v22 = vadd.f32 %v5847_v34, %v10296_v15 }
0x2dc0   : > { %v5877_v50 = vmax.f32 %v5848_v22, 0.0 }
0x2dc2   : > { %6281 = vmatpush.bf16.msra.mxu0 %v8194_v47  ;;  %v5876_v47 = vmax.f32 %v5846_v61, 0.0 }
0x2dc4   : > { %v5889_v17 = vpack.c.bf16 %v5877_v50, %v5876_v47 }
0x2dc5   : > { %7647 = vmatmul.msk.bf16.vlgmr.msrb.gmra.mxu0 %vm525_vm2, %v5886_v49 }
0x2dc6   : > { %6282 = vmatpush.bf16.msra.mxu0 %v8195_v3  ;;  %v10298_v3 = vld [vmem:[#allocation30_spill] sm:$0xff] }
0x2dc7   : > { %v5853_v49 = vadd.f32 %v5852_v31, %v10298_v3 }
0x2dca   : > { %6283 = vmatpush.bf16.msra.mxu0 %v8196_v56  ;;  %v5851_v56 = vadd.f32 %v5850_v29, %v10299_v32 }
0x2dcc   : > { %v5878_v8 = vmax.f32 %v5851_v56, 0.0 }
0x2dce   : > { %6284 = vmatpush.bf16.msra.mxu0 %v8197_v59  ;;  %v5879_v59 = vmax.f32 %v5853_v49, 0.0 }
0x2dd0   : > { %v5890_v30 = vpack.c.bf16 %v5879_v59, %v5878_v8 }
0x2dd2   : > { %6285 = vmatpush.bf16.msra.mxu0 %v8198_v37  ;;  %v10300_v37 = vld [vmem:[#allocation33_spill] sm:$0xff] }
0x2dd3   : > { %v5858_v2 = vadd.f32 %v5857_v39, %v10300_v37 }
0x2dd4   : > { %v4195_v55 = vpop.xlane.xlu2 %4194 }
0x2dd5   : > { %v4196_v52 = vsel %vm241_vm0, %v4195_v55, 0.0  ;;  %7648 = vmatmul.msk.bf16.gmra.mxu0 %vm525_vm2, %v5887_v7  ;;  %v5880_v7 = vmax.f32 %v5856_v45, 0.0 }
0x2dd6   : > { %6286 = vmatpush.bf16.msra.mxu0 %v8199_v44  ;;  %v4197_v35 = vrot.slane %v4196_v52, 4  ;;  %v5881_v44 = vmax.f32 %v5858_v2, 0.0 }
0x2dd8   : > { %v4198_v23 = vadd.f32 %v4197_v35, %v4196_v52  ;;  %v5891_v55 = vpack.c.bf16 %v5881_v44, %v5880_v7  ;;  %v5862_v52 = vpop.f32.mrf.mxu3  ;;  %v10302_v35 = vld [vmem:[#allocation35_spill] sm:$0xff] }
0x2dd9   : > { %v5863_v34 = vadd.f32 %v5862_v52, %v10302_v35 }
0x2dda   : > { %v4199_v16 = vrot.slane %v4198_v23, 2 }
0x2ddb   : > { %v5883_v43 = vmax.f32 %v5863_v34, 0.0 }
0x2ddc   : > { %v4200_v9 = vadd.f32 %v4199_v16, %v4198_v23  ;;  %v10303_v23 = vld [vmem:[#allocation34_spill] sm:$0xff] }
0x2ddd   : > { %v5861_v16 = vadd.f32 %v5860_v25, %v10303_v23 }
0x2dde   : > { %v4201_v48 = vrot.slane %v4200_v9, 1 }
0x2de0   : > { %v4202_v54 = vadd.f32 %v4201_v48, %v4200_v9  ;;  %v5865_v33 = vpop.f32.mrf.mxu3  ;;  %v5882_v9 = vmax.f32 %v5861_v16, 0.0  ;;  %v10304_v48 = vld [vmem:[#allocation36_spill] sm:$0xff] }
0x2de2   : > { %v4203_v53 = vadd.f32 %v4202_v54, %v9726_v14  ;;  %v5892_v60 = vpack.c.bf16 %v5883_v43, %v5882_v9  ;;  %v10305_v54 = vld [vmem:[#allocation37_spill] sm:$0xff] }
0x2de3   : > { %v5866_v42 = vadd.f32 %v5865_v33, %v10305_v54 }
0x2de4   : > { %v4204_v51 = vmax.f32 %v4203_v53, 0.0 }
0x2de5   : > { %7649 = vmatmul.msk.bf16.gmra.mxu0 %vm525_vm2, %v5888_v57  ;;  %v5884_v53 = vmax.f32 %v5866_v42, 0.0 }
0x2de6   : > { %4206 = vrot.lane.b32.xlu0 %v4204_v51, %s8339_s9 }
0x2de8   : > { %v5867_v27 = vpop.f32.mrf.mxu3 }
0x2de9   : > { %v5868_v19 = vadd.f32 %v5867_v27, %v10304_v48 }
0x2deb   : > { %v5885_v29 = vmax.f32 %v5868_v19, 0.0 }
0x2ded   : > { %v5893_v51 = vpack.c.bf16 %v5885_v29, %v5884_v53 }
0x2df5   : > { %7650 = vmatmul.msk.bf16.gmra.mxu0 %vm525_vm2, %v5889_v17 }
0x2e05   : > { %7651 = vmatmul.msk.bf16.gmra.mxu0 %vm525_vm2, %v5890_v30  ;;  %v8200_v30 = vld [vmem:[%s9951_s3 + $0x2] ss:$0 sm:$0xff] }
0x2e15   : > { %7652 = vmatmul.msk.bf16.gmra.mxu0 %vm525_vm2, %v5891_v55 }
0x2e25   : > { %7653 = vmatmul.msk.bf16.gmra.mxu0 %vm525_vm2, %v5892_v60 }
0x2e32   : > { %v9745_v57 = vpop.f32.mrf.mxu0 }
0x2e35   : > { %7654 = vmatmul.msk.bf16.gmra.mxu0 %vm525_vm2, %v5893_v51 }
0x2e3a   : > { %v5814_v15 = vpop.f32.mrf.mxu0 }
0x2e42   : > { %v5927_v22 = vpop.f32.mrf.mxu0 }
0x2e4a   : > { %v5929_v31 = vpop.f32.mrf.mxu0 }
0x2e52   : > { %v5932_v6 = vpop.f32.mrf.mxu0 }
0x2e5a   : > { %v5934_v61 = vpop.f32.mrf.mxu0 }
0x2e62   : > { %v5937_v50 = vpop.f32.mrf.mxu0 }
0x2e63   : > { %v5938_v15 = vadd.f32 %v8200_v30, %v5937_v50  ;;  %v8202_v50 = vld [vmem:[#allocation2 + $0x5f8] sm:$0xff] }
0x2e6a   : > { %v5939_v47 = vpop.f32.mrf.mxu0 }
0x2e6b   : > { %v5940_v29 = vadd.f32 %v8200_v30, %v5939_v47 }
0x2e72   : > { %v5942_v17 = vpop.f32.mrf.mxu0 }
0x2e73   : > { %v5943_v54 = vadd.f32 %v8200_v30, %v5942_v17 }
0x2e7a   : > { %v5944_v24 = vpop.f32.mrf.mxu0 }
0x2e7b   : > { %v5945_v27 = vadd.f32 %v8200_v30, %v5944_v24 }
0x2e7d   : > { %v5974_v53 = vmax.f32 %v5945_v27, 0.0  ;;  %v8220_v27 = vld [vmem:[#allocation2 + $0x2b0] sm:$0xff] }
0x2e82   : > { %v5947_v3 = vpop.f32.mrf.mxu0 }
0x2e83   : > { %v5948_v9 = vadd.f32 %v8200_v30, %v5947_v3  ;;  %v5930_v3 = vadd.f32 %v8200_v30, %v5929_v31  ;;  %v8204_v31 = vld [vmem:[#allocation2 + $0x5e8] sm:$0xff] }
0x2e85   : > { %v5975_v42 = vmax.f32 %v5948_v9, 0.0  ;;  %v5968_v17 = vmax.f32 %v5930_v3, 0.0  ;;  %v8218_v9 = vld [vmem:[#allocation2 + $0x2a0] sm:$0xff] }
0x2e8a   : > { %v5949_v49 = vpop.f32.mrf.mxu0 }
0x2e8b   : > { %v5950_v16 = vadd.f32 %v8200_v30, %v5949_v49 }
0x2e8d   : > { %v5976_v48 = vmax.f32 %v5950_v16, 0.0  ;;  %v8215_v16 = vld [vmem:[#allocation2 + $0x400] sm:$0xff] }
0x2e8f   : > { %v5987_v51 = vpack.c.bf16 %v5976_v48, %v5975_v42 }
0x2e92   : > { %v5952_v32 = vpop.f32.mrf.mxu0 }
0x2e93   : > { %v5953_v34 = vadd.f32 %v8200_v30, %v5952_v32  ;;  %v5935_v32 = vadd.f32 %v8200_v30, %v5934_v61  ;;  %v8201_v61 = vld [vmem:[#allocation2 + $0x200] sm:$0xf] }
0x2e95   : > { %v5977_v60 = vmax.f32 %v5953_v34, 0.0  ;;  %v8213_v34 = vld [vmem:[#allocation2 + $0x410] sm:$0xff] }
0x2e9a   : > { %v5954_v56 = vpop.f32.mrf.mxu0 }
0x2e9b   : > { %v5955_v55 = vadd.f32 %v8200_v30, %v5954_v56  ;;  %v5973_v56 = vmax.f32 %v5943_v54, 0.0 }
0x2e9d   : > { %v5978_v33 = vmax.f32 %v5955_v55, 0.0  ;;  %v5986_v49 = vpack.c.bf16 %v5974_v53, %v5973_v56  ;;  %v8209_v55 = vld [vmem:[#allocation2 + $0x5c8] sm:$0xff] }
0x2e9f   : > { %v5988_v19 = vpack.c.bf16 %v5978_v33, %v5977_v60  ;;  %v8216_v33 = vld [vmem:[#allocation2 + $0x290] sm:$0xff]  ;;  %v8219_v60 = vld [vmem:[#allocation2 + $0x2a8] sm:$0xff] }
0x2ea2   : > { %v5957_v59 = vpop.f32.mrf.mxu0 }
0x2ea3   : > { %v5958_v45 = vadd.f32 %v8200_v30, %v5957_v59  ;;  %v5972_v59 = vmax.f32 %v5940_v29, 0.0  ;;  %v8221_v29 = vld [vmem:[#allocation2 + $0x2b8] sm:$0xff] }
0x2ea5   : > { %v5979_v23 = vmax.f32 %v5958_v45, 0.0 }
0x2eaa   : > { %v5959_v39 = vpop.f32.mrf.mxu0 }
0x2eab   : > { %v5960_v2 = vadd.f32 %v8200_v30, %v5959_v39  ;;  %v5933_v39 = vadd.f32 %v8200_v30, %v5932_v6  ;;  %v8203_v6 = vld [vmem:[#allocation2 + $0x5f0] sm:$0xff] }
0x2ead   : > { %v5980_v52 = vmax.f32 %v5960_v2, 0.0  ;;  %v5969_v2 = vmax.f32 %v5933_v39, 0.0 }
0x2eaf   : > { %v5989_v43 = vpack.c.bf16 %v5980_v52, %v5979_v23  ;;  %v8211_v52 = vld [vmem:[#allocation2 + $0x418] sm:$0xff]  ;;  %v8214_v23 = vld [vmem:[#allocation2 + $0x408] sm:$0xff] }
0x2eb2   : > { %v5962_v8 = vpop.f32.mrf.mxu0 }
0x2eb3   : > { %v5963_v25 = vadd.f32 %v8200_v30, %v5962_v8  ;;  %v5971_v8 = vmax.f32 %v5938_v15, 0.0 }
0x2eb5   : > { %v5981_v44 = vmax.f32 %v5963_v25, 0.0  ;;  %v5970_v25 = vmax.f32 %v5935_v32, 0.0  ;;  %v5985_v24 = vpack.c.bf16 %v5972_v59, %v5971_v8 }
0x2eba   : > { %v5964_v37 = vpop.f32.mrf.mxu0 }
0x2ebb   : > { %v5965_v41 = vadd.f32 %v8200_v30, %v5964_v37  ;;  %v5928_v37 = vadd.f32 %v8200_v30, %v5927_v22  ;;  %v8206_v22 = vld [vmem:[#allocation2 + $0x280] sm:$0xff]  ;;  %v8207_v30 = vld [vmem:[#allocation2 + $0x5d8] sm:$0xff] }
0x2ebd   : > { %v5982_v7 = vmax.f32 %v5965_v41, 0.0  ;;  %v5984_v41 = vpack.c.bf16 %v5970_v25, %v5969_v2  ;;  %v5967_v47 = vmax.f32 %v5928_v37, 0.0 }
0x2ebf   : > { %v5990_v35 = vpack.c.bf16 %v5982_v7, %v5981_v44  ;;  %v5983_v45 = vpack.c.bf16 %v5968_v17, %v5967_v47  ;;  %v8205_v44 = vld [vmem:[#allocation2 + $0x5e0] sm:$0xff]  ;;  %v8208_v7 = vld [vmem:[#allocation2 + $0x5d0] sm:$0xff] }
0x2ec1   : > { %5991 = vmatpush.bf16.msrb.mxu1 %v5990_v35  ;;  %v8212_v35 = vld [vmem:[#allocation2 + $0x288] sm:$0xff] }
0x2ec5   : > { %5992 = vmatpush.bf16.msrb.mxu1 %v5989_v43  ;;  %v8217_v43 = vld [vmem:[#allocation2 + $0x298] sm:$0xff] }
0x2ec9   : > { %5993 = vmatpush.bf16.msrb.mxu1 %v5988_v19  ;;  %v10306_v19 = vld [vmem:[#allocation42_spill] sm:$0xff] }
0x2ecd   : > { %5994 = vmatpush.bf16.msrb.mxu1 %v5987_v51 }
0x2ed1   : > { %5995 = vmatpush.bf16.msrb.mxu1 %v5986_v49 }
0x2ed5   : > { %5996 = vmatpush.bf16.msrb.mxu1 %v5985_v24 }
0x2ed9   : > { %5997 = vmatpush.bf16.msrb.mxu1 %v5984_v41  ;;  %v2880_v41 = vpop.xlane.xlu1 %2879 }
0x2edd   : > { %5998 = vmatpush.bf16.msrb.mxu1 %v5983_v45  ;;  %v2881_v45 = vsel %vm241_vm0, %v2880_v41, 0.0 }
0x2ee0   : > { %5999 = vmatmul.bf16.vlgmr.msrb.gmra.mxu1 %v8201_v61  ;;  %v2882_v61 = vrot.slane %v2881_v45, 4 }
0x2ee1   : > { %6043 = vmatpush.bf16.msra.mxu1 %v9599_v20  ;;  %v8210_v20 = vld [vmem:[#allocation2 + $0x5c0] sm:$0xff] }
0x2ee5   : > { %6352 = vmatpush.bf16.msrb.mxu1 %v8202_v50  ;;  %v2883_v50 = vadd.f32 %v2882_v61, %v2881_v45 }
0x2ee9   : > { %6353 = vmatpush.bf16.msrb.mxu1 %v8203_v6 }
0x2eed   : > { %6354 = vmatpush.bf16.msrb.mxu1 %v8204_v31  ;;  %v2884_v31 = vrot.slane %v2883_v50, 2 }
0x2ef0   : > { %7655 = vmatmul.msk.bf16.vlgmr.msra.gmra.mxu1 %vm413_vm1, %v8206_v22  ;;  %v10307_v22 = vld [vmem:[#allocation39_spill] sm:$0xff] }
0x2ef1   : > { %6355 = vmatpush.bf16.msrb.mxu1 %v8205_v44  ;;  %v5813_v44 = vadd.f32 %v9745_v57, %v9690_v12  ;;  %v10311_v57 = vld [vmem:[#allocation41_spill] sm:$0xff] }
0x2ef5   : > { %6356 = vmatpush.bf16.msrb.mxu1 %v8207_v30 }
0x2ef9   : > { %6357 = vmatpush.bf16.msrb.mxu1 %v8208_v7  ;;  %v2885_v7 = vadd.f32 %v2884_v31, %v2883_v50  ;;  %v10313_v50 = vld [vmem:[#allocation46_spill] sm:$0xff] }
0x2efd   : > { %6358 = vmatpush.bf16.msrb.mxu1 %v8209_v55  ;;  %v5816_v55 = vmax.f32 %v5813_v44, 0.0 }
0x2f00   : > { %7656 = vmatmul.msk.bf16.gmra.mxu1 %vm413_vm1, %v8212_v35 }
0x2f01   : > { %6359 = vmatpush.bf16.msrb.mxu1 %v8210_v20 }
0x2f05   : > { %6620 = vmatpush.bf16.msra.mxu1 %v8211_v52  ;;  %v10308_v52 = vld [vmem:[#allocation40_spill] sm:$0xff] }
0x2f09   : > { %6621 = vmatpush.bf16.msra.mxu1 %v8213_v34  ;;  %v10309_v34 = vld [vmem:[#allocation45_spill] sm:$0xff] }
0x2f0d   : > { %6622 = vmatpush.bf16.msra.mxu1 %v8214_v23 }
0x2f10   : > { %7657 = vmatmul.msk.bf16.gmra.mxu1 %vm413_vm1, %v8216_v33  ;;  %v10310_v33 = vld [vmem:[#allocation43_spill] sm:$0xff] }
0x2f11   : > { %6623 = vmatpush.bf16.msra.mxu1 %v8215_v16 }
0x2f20   : > { %7658 = vmatmul.msk.bf16.gmra.mxu1 %vm413_vm1, %v8217_v43 }
0x2f30   : > { %7659 = vmatmul.msk.bf16.gmra.mxu1 %vm413_vm1, %v8218_v9 }
0x2f40   : > { %7660 = vmatmul.msk.bf16.gmra.mxu1 %vm413_vm1, %v8219_v60 }
0x2f50   : > { %7661 = vmatmul.msk.bf16.gmra.mxu1 %vm413_vm1, %v8220_v27 }
0x2f5d   : > { %v6000_v48 = vpop.f32.mrf.mxu1 }
0x2f5e   : > { %v6001_v54 = vadd.f32 %v6000_v48, %v10306_v19  ;;  %v2886_v48 = vrot.slane %v2885_v7, 1  ;;  %v6020_v19 = vadd.f32 %v5816_v55, %v9655_v38 }
0x2f60   : > { %v6004_v42 = vmax.f32 %v6001_v54, 0.0  ;;  %7662 = vmatmul.msk.bf16.gmra.mxu1 %vm413_vm1, %v8221_v29  ;;  %v2887_v61 = vadd.f32 %v2886_v48, %v2885_v7 }
0x2f62   : > { %v6005_v53 = vpack.c.bf16 %v6004_v42, %v6004_v42 }
0x2f64   : > { %6014 = vmatmul.bf16.vlgmr.msra.gmra.mxu2 %v6005_v53 }
0x2f65   : > { %v6002_v51 = vpop.f32.mrf.mxu1 }
0x2f66   : > { %v10312_v51 = vld [vmem:[#allocation44_spill] sm:$0xff] }
0x2f6d   : > { %v9761_v15 = vpop.f32.mrf.mxu1 }
0x2f75   : > { %v9763_v56 = vpop.f32.mrf.mxu1 }
0x2f7d   : > { %v9765_v32 = vpop.f32.mrf.mxu1 }
0x2f85   : > { %v9767_v59 = vpop.f32.mrf.mxu1 }
0x2f8d   : > { %v6055_v49 = vpop.f32.mrf.mxu1 }
0x2f95   : > { %v6057_v39 = vpop.f32.mrf.mxu1 }
0x2f9d   : > { %v6060_v8 = vpop.f32.mrf.mxu1 }
0x2fa5   : > { %v6062_v3 = vpop.f32.mrf.mxu1 }
0x2fad   : > { %v6065_v25 = vpop.f32.mrf.mxu1 }
0x2fb5   : > { %v6067_v24 = vpop.f32.mrf.mxu1 }
0x2fbd   : > { %v6070_v37 = vpop.f32.mrf.mxu1 }
0x2fbe   : > { %v6071_v41 = vadd.f32 %v6070_v37, %v10312_v51 }
0x2fc0   : > { %v6095_v38 = vmax.f32 %v6071_v41, 0.0 }
0x2fc5   : > { %v6072_v2 = vpop.f32.mrf.mxu1 }
0x2fc6   : > { %v6073_v54 = vadd.f32 %v6072_v2, %v10311_v57  ;;  %v10315_v2 = vld [vmem:[#allocation48_spill] sm:$0xff] }
0x2fc7   : > { %v6063_v55 = vadd.f32 %v6062_v3, %v10315_v2  ;;  %v10319_v3 = vld [vmem:[#allocation54_spill] sm:$0xff]  ;;  %v8235_v2 = vld [vmem:[#allocation2 + $0x2d8] sm:$0xff] }
0x2fcd   : > { %v6075_v17 = vpop.f32.mrf.mxu1 }
0x2fce   : > { %v6076_v43 = vadd.f32 %v6075_v17, %v10310_v33  ;;  %v6068_v17 = vadd.f32 %v6067_v24, %v10313_v50  ;;  %v10317_v24 = vld [vmem:[#allocation53_spill] sm:$0xff]  ;;  %v8224_v50 = vld [vmem:[#allocation2 + $0x630] sm:$0xff] }
0x2fd5   : > { %v6077_v47 = vpop.f32.mrf.mxu1 }
0x2fd6   : > { %v6078_v35 = vadd.f32 %v6077_v47, %v10308_v52  ;;  %v6097_v47 = vmax.f32 %v6076_v43, 0.0  ;;  %v2889_v52 = vadd.f32 %v9726_v14, %v2887_v61  ;;  %v8222_v61 = vld [vmem:[#allocation2 + $0x638] sm:$0xff] }
0x2fd8   : > { %v6098_v42 = vmax.f32 %v6078_v35, 0.0  ;;  %v10316_v35 = vld [vmem:[#allocation50_spill] sm:$0xff]  ;;  %v2890_v43 = vmax.f32 %v2889_v52, 0.0  ;;  %v8239_v52 = vld [vmem:[#allocation2 + $0x2f8] sm:$0xff] }
0x2fd9   : > { %v6061_v7 = vadd.f32 %v6060_v8, %v10316_v35 }
0x2fda   : > { %v6107_v44 = vpack.c.bf16 %v6098_v42, %v6097_v47 }
0x2fdd   : > { %v6080_v6 = vpop.f32.mrf.mxu1 }
0x2fde   : > { %v6081_v30 = vadd.f32 %v6080_v6, %v10307_v22  ;;  %v6096_v6 = vmax.f32 %v6073_v54, 0.0  ;;  %v10314_v22 = vld [vmem:[#allocation47_spill] sm:$0xff] }
0x2fe0   : > { %v6099_v9 = vmax.f32 %v6081_v30, 0.0  ;;  %v6066_v30 = vadd.f32 %v6065_v25, %v10314_v22  ;;  %v6106_v37 = vpack.c.bf16 %v6096_v6, %v6095_v38  ;;  %v10318_v25 = vld [vmem:[#allocation51_spill] sm:$0xff]  ;;  %v8227_v6 = vld [vmem:[#allocation2 + $0x618] sm:$0xff]  ;;  %v8232_v22 = vld [vmem:[#allocation2 + $0x6c8] sm:$0xff] }
0x2fe1   : > { %v8234_v38 = vld [vmem:[#allocation2 + $0x2d0] sm:$0xff] }
0x2fe5   : > { %v6082_v20 = vpop.f32.mrf.mxu1 }
0x2fe6   : > { %v6083_v23 = vadd.f32 %v6082_v20, %v10309_v34  ;;  %v6094_v20 = vmax.f32 %v6068_v17, 0.0  ;;  %v6093_v34 = vmax.f32 %v6066_v30, 0.0  ;;  %v8226_v17 = vld [vmem:[#allocation2 + $0x620] sm:$0xff] }
0x2fe7   : > { %v6015_v16 = vpop.f32.mrf.mxu2  ;;  %v8233_v30 = vld [vmem:[#allocation2 + $0x6c0] sm:$0xff] }
0x2fe8   : > { %v6100_v60 = vmax.f32 %v6083_v23, 0.0  ;;  %v6016_v27 = vadd.f32 %v9688_v62, %v6015_v16  ;;  %v6058_v23 = vadd.f32 %v6057_v39, %v10317_v24  ;;  %v6092_v16 = vmax.f32 %v6063_v55, 0.0  ;;  %v10321_v39 = vld [vmem:[#allocation55_spill] sm:$0xff]  ;;  %v8236_v55 = vld [vmem:[#allocation2 + $0x2e0] sm:$0xff] }
0x2fe9   : > { %v6105_v33 = vpack.c.bf16 %v6094_v20, %v6093_v34  ;;  %v6048_v54 = vadd.f32 %v9763_v56, %v10321_v39  ;;  %v8225_v56 = vld [vmem:[#allocation2 + $0x628] sm:$0xff] }
0x2fea   : > { %v6108_v29 = vpack.c.bf16 %v6100_v60, %v6099_v9  ;;  %v6019_v53 = vmax.f32 %v6016_v27, 0.0  ;;  %v6056_v9 = vadd.f32 %v6055_v49, %v10318_v25  ;;  %v6091_v60 = vmax.f32 %v6061_v7, 0.0  ;;  %v10322_v49 = vld [vmem:[#allocation56_spill] sm:$0xff]  ;;  %v8237_v20 = vld [vmem:[#allocation2 + $0x2e8] sm:$0xff]  ;;  %v10323_v7 = vld [vmem:[#allocation57_spill] sm:$0xff] }
0x2feb   : > { %v6053_v27 = vadd.f32 %v9767_v59, %v10319_v3  ;;  %v6090_v48 = vmax.f32 %v6058_v23, 0.0  ;;  %v6086_v41 = vmax.f32 %v6048_v54, 0.0  ;;  %v10324_v23 = vld [vmem:[#allocation58_spill] sm:$0xff]  ;;  %v10327_v54 = vld [vmem:[#allocation61_spill] sm:$0xff] }
0x2fec   : > { %v6021_v45 = vadd.f32 %v6020_v19, %v6019_v53  ;;  %6109 = vmatpush.bf16.msrb.mxu2 %v6108_v29  ;;  %v6104_v14 = vpack.c.bf16 %v6092_v16, %v6091_v60  ;;  %v10320_v19 = vld [vmem:[#allocation52_spill] sm:$0xff]  ;;  %v6089_v57 = vmax.f32 %v6056_v9, 0.0  ;;  %v6046_v53 = vadd.f32 %v9761_v15, %v10322_v49  ;;  %v8228_v15 = vld [vmem:[#allocation2 + $0x2c8] sm:$0xff]  ;;  %v10325_v60 = vld [vmem:[#allocation59_spill] sm:$0xff] }
0x2fed   : > { %v6051_v8 = vadd.f32 %v9765_v32, %v10320_v19  ;;  %v6088_v42 = vmax.f32 %v6053_v27, 0.0  ;;  %v8223_v32 = vld [vmem:[#allocation2 + $0x2c0] sm:$0xff]  ;;  %v10328_v49 = vld [vmem:[#allocation62_spill] sm:$0xff] }
0x2fee   : > { %v6022_v31 = vmax.f32 %v6021_v45, 0.0  ;;  %v6103_v29 = vpack.c.bf16 %v6090_v48, %v6089_v57  ;;  %v6085_v59 = vmax.f32 %v6046_v53, 0.0  ;;  %v10326_v48 = vld [vmem:[#allocation60_spill] sm:$0xff] }
0x2fef   : > { %v6017_v62 = vpop.f32.mrf.mxu2  ;;  %v6087_v51 = vmax.f32 %v6051_v8, 0.0 }
0x2ff0   : > { %6110 = vmatpush.bf16.msrb.mxu2 %v6107_v44  ;;  %6024 = vrot.lane.b32.xlu1 %v6022_v31, %s8338_s14  ;;  %v6101_v45 = vpack.c.bf16 %v6086_v41, %v6085_v59  ;;  %v8229_v31 = vld [vmem:[#allocation2 + $0x610] sm:$0xff]  ;;  %v8230_v44 = vld [vmem:[#allocation2 + $0x608] sm:$0xff]  ;;  %v8231_v62 = vld [vmem:[#allocation2 + $0x600] sm:$0xff] }
0x2ff1   : > { %v6102_v47 = vpack.c.bf16 %v6088_v42, %v6087_v51 }
0x2ff4   : > { %6111 = vmatpush.bf16.msrb.mxu2 %v6106_v37  ;;  %v8238_v37 = vld [vmem:[#allocation2 + $0x2f0] sm:$0xff] }
0x2ff8   : > { %6112 = vmatpush.bf16.msrb.mxu2 %v6105_v33  ;;  %2892 = vrot.lane.b32.xlu1 %v2890_v43, %s8339_s9 }
0x2ffc   : > { %6113 = vmatpush.bf16.msrb.mxu2 %v6104_v14 }
0x3000   : > { %6114 = vmatpush.bf16.msrb.mxu2 %v6103_v29 }
0x3004   : > { %6115 = vmatpush.bf16.msrb.mxu2 %v6102_v47 }
0x3008   : > { %6116 = vmatpush.bf16.msrb.mxu2 %v6101_v45  ;;  %v10329_v45 = vld [vmem:[#allocation63_spill] sm:$0xff] }
0x300b   : > { %6117 = vmatmul.bf16.vlgmr.msrb.gmra.mxu2 %v8223_v32 }
0x300c   : > { %6401 = vmatpush.bf16.msra.mxu2 %v8222_v61 }
0x3010   : > { %6402 = vmatpush.bf16.msra.mxu2 %v8224_v50  ;;  %v10330_v50 = vld [vmem:[#allocation64_spill] sm:$0xff] }
0x3014   : > { %6403 = vmatpush.bf16.msra.mxu2 %v8225_v56 }
0x3018   : > { %6404 = vmatpush.bf16.msra.mxu2 %v8226_v17 }
0x301b   : > { %6122 = vmatmul.bf16.gmra.mxu2 %v8228_v15 }
0x301c   : > { %6405 = vmatpush.bf16.msra.mxu2 %v8227_v6 }
0x3020   : > { %6406 = vmatpush.bf16.msra.mxu2 %v8229_v31 }
0x3024   : > { %6407 = vmatpush.bf16.msra.mxu2 %v8230_v44  ;;  %v10331_v44 = vld [vmem:[#allocation65_spill] sm:$0xff] }
0x3028   : > { %6408 = vmatpush.bf16.msra.mxu2 %v8231_v62 }
0x302b   : > { %6127 = vmatmul.bf16.gmra.mxu2 %v8234_v38 }
0x302c   : > { %6684 = vmatpush.bf16.msrb.mxu2 %v8232_v22 }
0x3030   : > { %6685 = vmatpush.bf16.msrb.mxu2 %v8233_v30  ;;  %v10332_v30 = vld [vmem:[#allocation66_spill] sm:$0xff] }
0x303b   : > { %6132 = vmatmul.bf16.gmra.mxu2 %v8235_v2 }
0x304b   : > { %6137 = vmatmul.bf16.gmra.mxu2 %v8236_v55 }
0x305b   : > { %6142 = vmatmul.bf16.gmra.mxu2 %v8237_v20 }
0x306b   : > { %6147 = vmatmul.bf16.gmra.mxu2 %v8238_v37 }
0x307b   : > { %6152 = vmatmul.bf16.gmra.mxu2 %v8239_v52  ;;  %v10333_v52 = vld [vmem:[#allocation67_spill] sm:$0xff] }
0x308e   : > { %v6118_v35 = vpop.f32.mrf.mxu2 }
0x308f   : > { %v6119_v34 = vadd.f32 %v6118_v35, %v10323_v7 }
0x3091   : > { %v6158_v33 = vmax.f32 %v6119_v34, 0.0  ;;  %v10334_v34 = vld [vmem:[#allocation68_spill] sm:$0xff] }
0x3096   : > { %v6120_v24 = vpop.f32.mrf.mxu2 }
0x3097   : > { %v6121_v16 = vadd.f32 %v6120_v24, %v10324_v23 }
0x3099   : > { %v6159_v43 = vmax.f32 %v6121_v16, 0.0 }
0x309b   : > { %v6174_v25 = vpack.c.bf16 %v6159_v43, %v6158_v33 }
0x309d   : > { %7663 = vmatmul.msk.bf16.vlgmr.msrb.gmra.mxu3 %vm525_vm2, %v6174_v25  ;;  %v10335_v25 = vld [vmem:[#allocation69_spill] sm:$0xff] }
0x309e   : > { %v6123_v9 = vpop.f32.mrf.mxu2 }
0x309f   : > { %v6124_v3 = vadd.f32 %v6123_v9, %v10325_v60 }
0x30a1   : > { %v6160_v19 = vmax.f32 %v6124_v3, 0.0  ;;  %v10336_v3 = vld [vmem:[#allocation70_spill] sm:$0xff] }
0x30a6   : > { %v6125_v27 = vpop.f32.mrf.mxu2 }
0x30a7   : > { %v6126_v14 = vadd.f32 %v6125_v27, %v10326_v48 }
0x30a9   : > { %v6161_v8 = vmax.f32 %v6126_v14, 0.0 }
0x30ab   : > { %v6175_v57 = vpack.c.bf16 %v6161_v8, %v6160_v19 }
0x30ad   : > { %7664 = vmatmul.msk.bf16.gmra.mxu3 %vm525_vm2, %v6175_v57  ;;  %v10337_v57 = vld [vmem:[#allocation71_spill] sm:$0xff] }
0x30ae   : > { %v6128_v39 = vpop.f32.mrf.mxu2 }
0x30af   : > { %v6129_v42 = vadd.f32 %v6128_v39, %v10327_v54 }
0x30b1   : > { %v6162_v51 = vmax.f32 %v6129_v42, 0.0  ;;  %v10338_v42 = vld [vmem:[#allocation72_spill] sm:$0xff] }
0x30b6   : > { %v6130_v29 = vpop.f32.mrf.mxu2 }
0x30b7   : > { %v6131_v53 = vadd.f32 %v6130_v29, %v10328_v49 }
0x30b9   : > { %v6163_v41 = vmax.f32 %v6131_v53, 0.0 }
0x30bb   : > { %v6176_v47 = vpack.c.bf16 %v6163_v41, %v6162_v51 }
0x30bd   : > { %7665 = vmatmul.msk.bf16.gmra.mxu3 %vm525_vm2, %v6176_v47  ;;  %v8240_v47 = vld [vmem:[%s9951_s3 + $0x4] ss:$0 sm:$0xff] }
0x30be   : > { %v6133_v59 = vpop.f32.mrf.mxu2 }
0x30bf   : > { %v6134_v61 = vadd.f32 %v6133_v59, %v10329_v45 }
0x30c1   : > { %v6164_v17 = vmax.f32 %v6134_v61, 0.0 }
0x30c6   : > { %v6135_v32 = vpop.f32.mrf.mxu2 }
0x30c7   : > { %v6136_v56 = vadd.f32 %v6135_v32, %v10330_v50 }
0x30c9   : > { %v6165_v6 = vmax.f32 %v6136_v56, 0.0 }
0x30cb   : > { %v6177_v15 = vpack.c.bf16 %v6165_v6, %v6164_v17 }
0x30cd   : > { %7666 = vmatmul.msk.bf16.gmra.mxu3 %vm525_vm2, %v6177_v15 }
0x30ce   : > { %v6138_v31 = vpop.f32.mrf.mxu2 }
0x30cf   : > { %v6139_v62 = vadd.f32 %v6138_v31, %v10331_v44 }
0x30d1   : > { %v6166_v2 = vmax.f32 %v6139_v62, 0.0 }
0x30d6   : > { %v6140_v22 = vpop.f32.mrf.mxu2 }
0x30d7   : > { %v6141_v38 = vadd.f32 %v6140_v22, %v10332_v30 }
0x30d9   : > { %v6167_v55 = vmax.f32 %v6141_v38, 0.0 }
0x30db   : > { %v6178_v20 = vpack.c.bf16 %v6167_v55, %v6166_v2 }
0x30dd   : > { %7667 = vmatmul.msk.bf16.gmra.mxu3 %vm525_vm2, %v6178_v20 }
0x30de   : > { %v6143_v37 = vpop.f32.mrf.mxu2 }
0x30df   : > { %v6144_v35 = vadd.f32 %v6143_v37, %v10333_v52 }
0x30e1   : > { %v6168_v23 = vmax.f32 %v6144_v35, 0.0 }
0x30e6   : > { %v6145_v7 = vpop.f32.mrf.mxu2 }
0x30e7   : > { %v6146_v24 = vadd.f32 %v6145_v7, %v10334_v34 }
0x30e9   : > { %v6169_v16 = vmax.f32 %v6146_v24, 0.0 }
0x30eb   : > { %v6179_v33 = vpack.c.bf16 %v6169_v16, %v6168_v23 }
0x30ed   : > { %7668 = vmatmul.msk.bf16.gmra.mxu3 %vm525_vm2, %v6179_v33 }
0x30ee   : > { %v6148_v43 = vpop.f32.mrf.mxu2 }
0x30ef   : > { %v6149_v9 = vadd.f32 %v6148_v43, %v10335_v25 }
0x30f1   : > { %v6170_v48 = vmax.f32 %v6149_v9, 0.0 }
0x30f6   : > { %v6150_v60 = vpop.f32.mrf.mxu2 }
0x30f7   : > { %v6151_v27 = vadd.f32 %v6150_v60, %v10336_v3 }
0x30f9   : > { %v6171_v14 = vmax.f32 %v6151_v27, 0.0 }
0x30fb   : > { %v6180_v19 = vpack.c.bf16 %v6171_v14, %v6170_v48 }
0x30fd   : > { %7669 = vmatmul.msk.bf16.gmra.mxu3 %vm525_vm2, %v6180_v19 }
0x30fe   : > { %v6153_v8 = vpop.f32.mrf.mxu2 }
0x30ff   : > { %v6154_v39 = vadd.f32 %v6153_v8, %v10337_v57 }
0x3101   : > { %v6172_v49 = vmax.f32 %v6154_v39, 0.0 }
0x3106   : > { %v6155_v54 = vpop.f32.mrf.mxu2 }
0x3107   : > { %v6156_v29 = vadd.f32 %v6155_v54, %v10338_v42 }
0x3109   : > { %v6173_v53 = vmax.f32 %v6156_v29, 0.0 }
0x310b   : > { %v6181_v51 = vpack.c.bf16 %v6173_v53, %v6172_v49 }
0x310d   : > { %7670 = vmatmul.msk.bf16.gmra.mxu3 %vm525_vm2, %v6181_v51 }
0x3120   : > { %v6215_v41 = vpop.f32.mrf.mxu3 }
0x3121   : > { %v6216_v59 = vadd.f32 %v8240_v47, %v6215_v41 }
0x3123   : > { %v6255_v32 = vmax.f32 %v6216_v59, 0.0 }
0x3128   : > { %v6217_v45 = vpop.f32.mrf.mxu3 }
0x3129   : > { %v6218_v61 = vadd.f32 %v8240_v47, %v6217_v45 }
0x312b   : > { %v6256_v50 = vmax.f32 %v6218_v61, 0.0 }
0x312d   : > { %v6271_v56 = vpack.c.bf16 %v6256_v50, %v6255_v32 }
0x312f   : > { %6287 = vmatmul.bf16.vlgmr.msra.gmra.mxu0 %v6271_v56 }
0x3130   : > { %v6220_v17 = vpop.f32.mrf.mxu3 }
0x3131   : > { %v6221_v6 = vadd.f32 %v8240_v47, %v6220_v17 }
0x3133   : > { %v6257_v44 = vmax.f32 %v6221_v6, 0.0 }
0x3138   : > { %v6222_v15 = vpop.f32.mrf.mxu3 }
0x3139   : > { %v6223_v31 = vadd.f32 %v8240_v47, %v6222_v15 }
0x313b   : > { %v6258_v62 = vmax.f32 %v6223_v31, 0.0 }
0x313d   : > { %v6272_v22 = vpack.c.bf16 %v6258_v62, %v6257_v44  ;;  %v9827_v44 = vld [vmem:[%s9951_s3 + $0x5] ss:$0 sm:$0xff] }
0x313f   : > { %6292 = vmatmul.bf16.gmra.mxu0 %v6272_v22 }
0x3140   : > { %v6225_v30 = vpop.f32.mrf.mxu3 }
0x3141   : > { %v6226_v38 = vadd.f32 %v8240_v47, %v6225_v30 }
0x3143   : > { %v6259_v20 = vmax.f32 %v6226_v38, 0.0 }
0x3148   : > { %v6227_v2 = vpop.f32.mrf.mxu3 }
0x3149   : > { %v6228_v55 = vadd.f32 %v8240_v47, %v6227_v2 }
0x314b   : > { %v6260_v37 = vmax.f32 %v6228_v55, 0.0 }
0x314d   : > { %v6273_v52 = vpack.c.bf16 %v6260_v37, %v6259_v20 }
0x314f   : > { %6297 = vmatmul.bf16.gmra.mxu0 %v6273_v52 }
0x3150   : > { %v6230_v35 = vpop.f32.mrf.mxu3 }
0x3151   : > { %v6231_v7 = vadd.f32 %v8240_v47, %v6230_v35 }
0x3153   : > { %v6261_v23 = vmax.f32 %v6231_v7, 0.0 }
0x3158   : > { %v6232_v34 = vpop.f32.mrf.mxu3 }
0x3159   : > { %v6233_v24 = vadd.f32 %v8240_v47, %v6232_v34 }
0x315b   : > { %v6262_v16 = vmax.f32 %v6233_v24, 0.0 }
0x315d   : > { %v6274_v33 = vpack.c.bf16 %v6262_v16, %v6261_v23 }
0x315f   : > { %6302 = vmatmul.bf16.gmra.mxu0 %v6274_v33 }
0x3160   : > { %v6235_v43 = vpop.f32.mrf.mxu3 }
0x3161   : > { %v6236_v25 = vadd.f32 %v8240_v47, %v6235_v43 }
0x3163   : > { %v6263_v3 = vmax.f32 %v6236_v25, 0.0 }
0x3168   : > { %v6237_v9 = vpop.f32.mrf.mxu3 }
0x3169   : > { %v6238_v60 = vadd.f32 %v8240_v47, %v6237_v9 }
0x316b   : > { %v6264_v27 = vmax.f32 %v6238_v60, 0.0 }
0x316d   : > { %v6275_v48 = vpack.c.bf16 %v6264_v27, %v6263_v3 }
0x316f   : > { %6307 = vmatmul.bf16.gmra.mxu0 %v6275_v48 }
0x3170   : > { %v6240_v14 = vpop.f32.mrf.mxu3 }
0x3171   : > { %v6241_v19 = vadd.f32 %v8240_v47, %v6240_v14 }
0x3173   : > { %v6265_v39 = vmax.f32 %v6241_v19, 0.0 }
0x3178   : > { %v6242_v8 = vpop.f32.mrf.mxu3 }
0x3179   : > { %v6243_v57 = vadd.f32 %v8240_v47, %v6242_v8 }
0x317b   : > { %v6266_v54 = vmax.f32 %v6243_v57, 0.0 }
0x317d   : > { %v6276_v42 = vpack.c.bf16 %v6266_v54, %v6265_v39 }
0x317f   : > { %6312 = vmatmul.bf16.gmra.mxu0 %v6276_v42 }
0x3180   : > { %v6245_v29 = vpop.f32.mrf.mxu3 }
0x3181   : > { %v6246_v49 = vadd.f32 %v8240_v47, %v6245_v29 }
0x3183   : > { %v6267_v41 = vmax.f32 %v6246_v49, 0.0 }
0x3188   : > { %v6247_v53 = vpop.f32.mrf.mxu3 }
0x3189   : > { %v6248_v51 = vadd.f32 %v8240_v47, %v6247_v53 }
0x318b   : > { %v6268_v59 = vmax.f32 %v6248_v51, 0.0 }
0x318d   : > { %v6277_v45 = vpack.c.bf16 %v6268_v59, %v6267_v41 }
0x318f   : > { %6317 = vmatmul.bf16.gmra.mxu0 %v6277_v45 }
0x3190   : > { %v6250_v61 = vpop.f32.mrf.mxu3 }
0x3191   : > { %v6251_v32 = vadd.f32 %v8240_v47, %v6250_v61 }
0x3193   : > { %v6269_v17 = vmax.f32 %v6251_v32, 0.0 }
0x3198   : > { %v6252_v50 = vpop.f32.mrf.mxu3 }
0x3199   : > { %v6253_v56 = vadd.f32 %v8240_v47, %v6252_v50 }
0x319b   : > { %v6270_v6 = vmax.f32 %v6253_v56, 0.0 }
0x319d   : > { %v6278_v15 = vpack.c.bf16 %v6270_v6, %v6269_v17 }
0x319f   : > { %6322 = vmatmul.bf16.gmra.mxu0 %v6278_v15 }
0x31ac   : > { %v6288_v31 = vpop.f32.mrf.mxu0 }
0x31ad   : > { %v6289_v62 = vadd.f32 %v9827_v44, %v6288_v31 }
0x31af   : > { %v6328_v38 = vmax.f32 %v6289_v62, 0.0 }
0x31b4   : > { %v6290_v22 = vpop.f32.mrf.mxu0 }
0x31b5   : > { %v6291_v30 = vadd.f32 %v9827_v44, %v6290_v22 }
0x31b7   : > { %v6329_v2 = vmax.f32 %v6291_v30, 0.0 }
0x31b9   : > { %v6344_v55 = vpack.c.bf16 %v6329_v2, %v6328_v38 }
0x31bb   : > { %6360 = vmatmul.bf16.vlgmr.msrb.gmra.mxu1 %v6344_v55  ;;  %6409 = vmatmul.bf16.vlgmr.msra.gmra.mxu2 %v6344_v55 }
0x31bc   : > { %v6293_v47 = vpop.f32.mrf.mxu0 }
0x31bd   : > { %v6294_v20 = vadd.f32 %v9827_v44, %v6293_v47 }
0x31bf   : > { %v6330_v35 = vmax.f32 %v6294_v20, 0.0 }
0x31c4   : > { %v6295_v37 = vpop.f32.mrf.mxu0 }
0x31c5   : > { %v6296_v52 = vadd.f32 %v9827_v44, %v6295_v37 }
0x31c7   : > { %v6331_v7 = vmax.f32 %v6296_v52, 0.0 }
0x31c9   : > { %v6345_v34 = vpack.c.bf16 %v6331_v7, %v6330_v35 }
0x31cb   : > { %6365 = vmatmul.bf16.gmra.mxu1 %v6345_v34  ;;  %6414 = vmatmul.bf16.gmra.mxu2 %v6345_v34 }
0x31cc   : > { %v6298_v24 = vpop.f32.mrf.mxu0 }
0x31cd   : > { %v6299_v23 = vadd.f32 %v9827_v44, %v6298_v24 }
0x31cf   : > { %v6332_v43 = vmax.f32 %v6299_v23, 0.0 }
0x31d4   : > { %v6300_v16 = vpop.f32.mrf.mxu0 }
0x31d5   : > { %v6301_v33 = vadd.f32 %v9827_v44, %v6300_v16 }
0x31d7   : > { %v6333_v25 = vmax.f32 %v6301_v33, 0.0 }
0x31d9   : > { %v6346_v9 = vpack.c.bf16 %v6333_v25, %v6332_v43 }
0x31db   : > { %6370 = vmatmul.bf16.gmra.mxu1 %v6346_v9  ;;  %6419 = vmatmul.bf16.gmra.mxu2 %v6346_v9 }
0x31dc   : > { %v6303_v60 = vpop.f32.mrf.mxu0 }
0x31dd   : > { %v6304_v3 = vadd.f32 %v9827_v44, %v6303_v60 }
0x31df   : > { %v6334_v14 = vmax.f32 %v6304_v3, 0.0 }
0x31e4   : > { %v6305_v27 = vpop.f32.mrf.mxu0 }
0x31e5   : > { %v6306_v48 = vadd.f32 %v9827_v44, %v6305_v27 }
0x31e7   : > { %v6335_v19 = vmax.f32 %v6306_v48, 0.0 }
0x31e9   : > { %v6347_v8 = vpack.c.bf16 %v6335_v19, %v6334_v14 }
0x31eb   : > { %6375 = vmatmul.bf16.gmra.mxu1 %v6347_v8  ;;  %6424 = vmatmul.bf16.gmra.mxu2 %v6347_v8 }
0x31ec   : > { %v6308_v57 = vpop.f32.mrf.mxu0 }
0x31ed   : > { %v6309_v39 = vadd.f32 %v9827_v44, %v6308_v57 }
0x31ef   : > { %v6336_v29 = vmax.f32 %v6309_v39, 0.0 }
0x31f4   : > { %v6310_v54 = vpop.f32.mrf.mxu0 }
0x31f5   : > { %v6311_v42 = vadd.f32 %v9827_v44, %v6310_v54 }
0x31f7   : > { %v6337_v49 = vmax.f32 %v6311_v42, 0.0 }
0x31f9   : > { %v6348_v53 = vpack.c.bf16 %v6337_v49, %v6336_v29 }
0x31fb   : > { %6380 = vmatmul.bf16.gmra.mxu1 %v6348_v53  ;;  %6429 = vmatmul.bf16.gmra.mxu2 %v6348_v53 }
0x31fc   : > { %v6313_v51 = vpop.f32.mrf.mxu0 }
0x31fd   : > { %v6314_v41 = vadd.f32 %v9827_v44, %v6313_v51 }
0x31ff   : > { %v6338_v61 = vmax.f32 %v6314_v41, 0.0 }
0x3204   : > { %v6315_v59 = vpop.f32.mrf.mxu0 }
0x3205   : > { %v6316_v45 = vadd.f32 %v9827_v44, %v6315_v59 }
0x3207   : > { %v6339_v32 = vmax.f32 %v6316_v45, 0.0 }
0x3209   : > { %v6349_v50 = vpack.c.bf16 %v6339_v32, %v6338_v61 }
0x320b   : > { %6385 = vmatmul.bf16.gmra.mxu1 %v6349_v50  ;;  %6434 = vmatmul.bf16.gmra.mxu2 %v6349_v50 }
0x320c   : > { %v6318_v56 = vpop.f32.mrf.mxu0 }
0x320d   : > { %v6319_v17 = vadd.f32 %v9827_v44, %v6318_v56 }
0x320f   : > { %v6340_v31 = vmax.f32 %v6319_v17, 0.0 }
0x3214   : > { %v6320_v6 = vpop.f32.mrf.mxu0 }
0x3215   : > { %v6321_v15 = vadd.f32 %v9827_v44, %v6320_v6 }
0x3217   : > { %v6341_v62 = vmax.f32 %v6321_v15, 0.0 }
0x3219   : > { %v6350_v22 = vpack.c.bf16 %v6341_v62, %v6340_v31 }
0x321b   : > { %6390 = vmatmul.bf16.gmra.mxu1 %v6350_v22  ;;  %6439 = vmatmul.bf16.gmra.mxu2 %v6350_v22 }
0x321c   : > { %v6323_v30 = vpop.f32.mrf.mxu0 }
0x321d   : > { %v6324_v38 = vadd.f32 %v9827_v44, %v6323_v30 }
0x321f   : > { %v6342_v47 = vmax.f32 %v6324_v38, 0.0 }
0x3224   : > { %v6325_v2 = vpop.f32.mrf.mxu0 }
0x3225   : > { %v6326_v55 = vadd.f32 %v9827_v44, %v6325_v2 }
0x3227   : > { %v6343_v20 = vmax.f32 %v6326_v55, 0.0 }
0x3229   : > { %v6351_v37 = vpack.c.bf16 %v6343_v20, %v6342_v47 }
0x322b   : > { %6395 = vmatmul.bf16.gmra.mxu1 %v6351_v37  ;;  %6444 = vmatmul.bf16.gmra.mxu2 %v6351_v37 }
0x3238   : > { %v6361_v52 = vpop.f32.mrf.mxu1 }
0x323e   : > { %v6410_v35 = vpop.f32.mrf.mxu2 }
0x323f   : > { %v6450_v7 = vmax.f32 %v6361_v52, %v6410_v35 }
0x3240   : > { %v6363_v34 = vpop.f32.mrf.mxu1 }
0x3246   : > { %v6412_v24 = vpop.f32.mrf.mxu2 }
0x3247   : > { %v6451_v23 = vmax.f32 %v6363_v34, %v6412_v24 }
0x3248   : > { %v6366_v16 = vpop.f32.mrf.mxu1 }
0x3249   : > { %v9845_v33 = vpack.c.bf16 %v6451_v23, %v6450_v7 }
0x324e   : > { %v6415_v43 = vpop.f32.mrf.mxu2 }
0x324f   : > { %v6452_v25 = vmax.f32 %v6366_v16, %v6415_v43 }
0x3250   : > { %v6368_v9 = vpop.f32.mrf.mxu1 }
0x3256   : > { %v6417_v60 = vpop.f32.mrf.mxu2 }
0x3257   : > { %v6453_v3 = vmax.f32 %v6368_v9, %v6417_v60  ;;  %v8242_v9 = vld [vmem:[#allocation2 + $0x640] sm:$0xff] }
0x3258   : > { %v6371_v44 = vpop.f32.mrf.mxu1  ;;  %v8243_v60 = vld [vmem:[#allocation2 + $0x680] sm:$0xff] }
0x3259   : > { %v6467_v27 = vpack.c.bf16 %v6453_v3, %v6452_v25  ;;  %v8244_v3 = vld [vmem:[#allocation2 + $0x648] sm:$0xff] }
0x325e   : > { %v6420_v48 = vpop.f32.mrf.mxu2 }
0x325f   : > { %v6454_v14 = vmax.f32 %v6371_v44, %v6420_v48  ;;  %v8245_v44 = vld [vmem:[#allocation2 + $0x688] sm:$0xff]  ;;  %v8246_v48 = vld [vmem:[#allocation2 + $0x650] sm:$0xff] }
0x3260   : > { %v6373_v19 = vpop.f32.mrf.mxu1 }
0x3266   : > { %v6422_v8 = vpop.f32.mrf.mxu2 }
0x3267   : > { %v6455_v57 = vmax.f32 %v6373_v19, %v6422_v8  ;;  %v8248_v19 = vld [vmem:[#allocation2 + $0x658] sm:$0xff] }
0x3268   : > { %v6376_v39 = vpop.f32.mrf.mxu1  ;;  %v8249_v8 = vld [vmem:[#allocation2 + $0x698] sm:$0xff] }
0x3269   : > { %v6468_v54 = vpack.c.bf16 %v6455_v57, %v6454_v14  ;;  %v8247_v14 = vld [vmem:[#allocation2 + $0x690] sm:$0xff] }
0x326e   : > { %v6425_v42 = vpop.f32.mrf.mxu2 }
0x326f   : > { %v6456_v29 = vmax.f32 %v6376_v39, %v6425_v42 }
0x3270   : > { %v6378_v49 = vpop.f32.mrf.mxu1 }
0x3276   : > { %v6427_v53 = vpop.f32.mrf.mxu2 }
0x3277   : > { %v6457_v51 = vmax.f32 %v6378_v49, %v6427_v53 }
0x3278   : > { %v6381_v41 = vpop.f32.mrf.mxu1 }
0x3279   : > { %v6469_v59 = vpack.c.bf16 %v6457_v51, %v6456_v29 }
0x327e   : > { %v6430_v45 = vpop.f32.mrf.mxu2 }
0x327f   : > { %v6458_v61 = vmax.f32 %v6381_v41, %v6430_v45 }
0x3280   : > { %v6383_v32 = vpop.f32.mrf.mxu1 }
0x3286   : > { %v6432_v50 = vpop.f32.mrf.mxu2 }
0x3287   : > { %v6459_v16 = vmax.f32 %v6383_v32, %v6432_v50 }
0x3288   : > { %v6386_v56 = vpop.f32.mrf.mxu1 }
0x3289   : > { %v6470_v25 = vpack.c.bf16 %v6459_v16, %v6458_v61 }
0x328e   : > { %v6435_v17 = vpop.f32.mrf.mxu2 }
0x328f   : > { %v6460_v23 = vmax.f32 %v6386_v56, %v6435_v17 }
0x3290   : > { %v6388_v6 = vpop.f32.mrf.mxu1 }
0x3296   : > { %v6437_v15 = vpop.f32.mrf.mxu2 }
0x3297   : > { %v6461_v34 = vmax.f32 %v6388_v6, %v6437_v15 }
0x3298   : > { %v6391_v31 = vpop.f32.mrf.mxu1 }
0x3299   : > { %v6471_v43 = vpack.c.bf16 %v6461_v34, %v6460_v23  ;;  %v8255_v34 = vld [vmem:[#allocation2 + $0x390] sm:$0xff] }
0x329e   : > { %v6440_v62 = vpop.f32.mrf.mxu2 }
0x329f   : > { %v6462_v7 = vmax.f32 %v6391_v31, %v6440_v62 }
0x32a0   : > { %v6393_v22 = vpop.f32.mrf.mxu1 }
0x32a6   : > { %v6442_v30 = vpop.f32.mrf.mxu2 }
0x32a7   : > { %v6463_v52 = vmax.f32 %v6393_v22, %v6442_v30 }
0x32a8   : > { %v6396_v38 = vpop.f32.mrf.mxu1 }
0x32a9   : > { %v6472_v24 = vpack.c.bf16 %v6463_v52, %v6462_v7  ;;  %v8252_v52 = vld [vmem:[#allocation2 + $0x700] sm:$0xff]  ;;  %v8254_v7 = vld [vmem:[#allocation2 + $0x388] sm:$0xff] }
0x32ae   : > { %v6445_v2 = vpop.f32.mrf.mxu2 }
0x32af   : > { %v6464_v20 = vmax.f32 %v6396_v38, %v6445_v2 }
0x32b0   : > { %v6398_v55 = vpop.f32.mrf.mxu1 }
0x32b6   : > { %v6447_v47 = vpop.f32.mrf.mxu2 }
0x32b7   : > { %v6465_v37 = vmax.f32 %v6398_v55, %v6447_v47 }
0x32b9   : > { %v6473_v35 = vpack.c.bf16 %v6465_v37, %v6464_v20  ;;  %v8250_v20 = vld [vmem:[#allocation2 + $0x708] sm:$0xff]  ;;  %v8251_v37 = vld [vmem:[#allocation2 + $0x380] sm:$0xff] }
0x32bb   : > { %6474 = vmatpush.bf16.msra.mxu3 %v6473_v35  ;;  %6503 = vmatpush.bf16.msrb.mxu0 %v6473_v35  ;;  %v8253_v35 = vld [vmem:[#allocation2 + $0x540] sm:$0xff] }
0x32bf   : > { %6475 = vmatpush.bf16.msra.mxu3 %v6472_v24  ;;  %6504 = vmatpush.bf16.msrb.mxu0 %v6472_v24  ;;  %v8256_v24 = vld [vmem:[#allocation2 + $0x398] sm:$0xff] }
0x32c3   : > { %6476 = vmatpush.bf16.msra.mxu3 %v6471_v43  ;;  %6505 = vmatpush.bf16.msrb.mxu0 %v6471_v43 }
0x32c7   : > { %6477 = vmatpush.bf16.msra.mxu3 %v6470_v25  ;;  %6506 = vmatpush.bf16.msrb.mxu0 %v6470_v25 }
0x32cb   : > { %6478 = vmatpush.bf16.msra.mxu3 %v6469_v59  ;;  %6507 = vmatpush.bf16.msrb.mxu0 %v6469_v59 }
0x32cf   : > { %6479 = vmatpush.bf16.msra.mxu3 %v6468_v54  ;;  %6508 = vmatpush.bf16.msrb.mxu0 %v6468_v54 }
0x32d3   : > { %6480 = vmatpush.bf16.msra.mxu3 %v6467_v27  ;;  %6509 = vmatpush.bf16.msrb.mxu0 %v6467_v27 }
0x32d7   : > { %6481 = vmatpush.bf16.msra.mxu3 %v9845_v33  ;;  %6510 = vmatpush.bf16.msrb.mxu0 %v9845_v33 }
0x32da   : > { %6482 = vmatmul.bf16.vlgmr.msra.gmra.mxu3 %v8242_v9  ;;  %6511 = vmatmul.bf16.vlgmr.msrb.gmra.mxu0 %v8243_v60 }
0x32ea   : > { %6487 = vmatmul.bf16.gmra.mxu3 %v8244_v3  ;;  %6516 = vmatmul.bf16.gmra.mxu0 %v8245_v44 }
0x32fa   : > { %6492 = vmatmul.bf16.gmra.mxu3 %v8246_v48  ;;  %6521 = vmatmul.bf16.gmra.mxu0 %v8247_v14 }
0x330a   : > { %6497 = vmatmul.bf16.gmra.mxu3 %v8248_v19  ;;  %6526 = vmatmul.bf16.gmra.mxu0 %v8249_v8 }
0x3357   : > { %v6512_v27 = vpop.f32.mrf.mxu0 }
0x335d   : > { %v6483_v57 = vpop.f32.mrf.mxu3 }
0x335e   : > { %v6532_v39 = vmax.f32 %v6483_v57, %v6512_v27 }
0x335f   : > { %v6514_v33 = vpop.f32.mrf.mxu0 }
0x3365   : > { %v6485_v54 = vpop.f32.mrf.mxu3 }
0x3366   : > { %v6533_v2 = vmax.f32 %v6485_v54, %v6514_v33 }
0x3367   : > { %v6517_v42 = vpop.f32.mrf.mxu0 }
0x3368   : > { %v6540_v47 = vpack.c.bf16 %v6533_v2, %v6532_v39 }
0x336d   : > { %v6488_v29 = vpop.f32.mrf.mxu3 }
0x336e   : > { %v6534_v38 = vmax.f32 %v6488_v29, %v6517_v42 }
0x336f   : > { %v6519_v49 = vpop.f32.mrf.mxu0 }
0x3375   : > { %v6490_v53 = vpop.f32.mrf.mxu3 }
0x3376   : > { %v6535_v22 = vmax.f32 %v6490_v53, %v6519_v49 }
0x3377   : > { %v6522_v51 = vpop.f32.mrf.mxu0 }
0x3378   : > { %v6541_v55 = vpack.c.bf16 %v6535_v22, %v6534_v38 }
0x337d   : > { %v6493_v41 = vpop.f32.mrf.mxu3 }
0x337e   : > { %v6536_v62 = vmax.f32 %v6493_v41, %v6522_v51 }
0x337f   : > { %v6524_v59 = vpop.f32.mrf.mxu0 }
0x3385   : > { %v6495_v45 = vpop.f32.mrf.mxu3 }
0x3386   : > { %v6537_v15 = vmax.f32 %v6495_v45, %v6524_v59  ;;  %v8258_v45 = vld [vmem:[#allocation2 + $0x3c0] sm:$0xff] }
0x3387   : > { %v6527_v61 = vpop.f32.mrf.mxu0 }
0x3388   : > { %v6542_v30 = vpack.c.bf16 %v6537_v15, %v6536_v62 }
0x338d   : > { %v6498_v32 = vpop.f32.mrf.mxu3 }
0x338e   : > { %v6538_v17 = vmax.f32 %v6498_v32, %v6527_v61  ;;  %v8261_v61 = vld [vmem:[#allocation2 + $0x440] sm:$0xff] }
0x338f   : > { %v6529_v56 = vpop.f32.mrf.mxu0 }
0x3395   : > { %v6500_v50 = vpop.f32.mrf.mxu3 }
0x3396   : > { %v6539_v6 = vmax.f32 %v6500_v50, %v6529_v56 }
0x3398   : > { %v6543_v31 = vpack.c.bf16 %v6539_v6, %v6538_v17 }
0x339a   : > { %6548 = vmatpush.bf16.msrb.mxu3 %v6543_v31 }
0x339e   : > { %6549 = vmatpush.bf16.msrb.mxu3 %v6542_v30 }
0x33a2   : > { %6550 = vmatpush.bf16.msrb.mxu3 %v6541_v55 }
0x33a6   : > { %6551 = vmatpush.bf16.msrb.mxu3 %v6540_v47 }
0x33a9   : > { %7671 = vmatmul.msk.bf16.vlgmr.msrb.gmra.mxu3 %vm2356_vm11, %v8251_v37 }
0x33aa   : > { %6703 = vmatpush.bf16.msra.mxu3 %v8250_v20 }
0x33ae   : > { %6704 = vmatpush.bf16.msra.mxu3 %v8252_v52 }
0x33b2   : > { %6813 = vmatpush.bf16.msrb.mxu3 %v8253_v35 }
0x33b9   : > { %7672 = vmatmul.msk.bf16.gmra.mxu3 %vm2356_vm11, %v8254_v7 }
0x33c9   : > { %7673 = vmatmul.msk.bf16.gmra.mxu3 %vm2356_vm11, %v8255_v34 }
0x33d9   : > { %7674 = vmatmul.msk.bf16.gmra.mxu3 %vm2356_vm11, %v8256_v24 }
0x342c   : > { %v6553_v23 = vpop.f32.mrf.mxu3 }
0x3434   : > { %v6555_v16 = vpop.f32.mrf.mxu3 }
0x3435   : > { %v6556_v49 = vadd.f32 %v6555_v16, %v9032_v28  ;;  %v8260_v28 = vld [vmem:[#allocation2 + $0x448] sm:$0xff] }
0x343c   : > { %v6558_v43 = vpop.f32.mrf.mxu3 }
0x343d   : > { %v6559_v42 = vadd.f32 %v6558_v43, %v9023_v10  ;;  %v8259_v10 = vld [vmem:[#allocation2 + $0x450] sm:$0xff] }
0x343f   : > { %v6575_v51 = vmax.f32 %v6559_v42, 0.0 }
0x3444   : > { %v6560_v25 = vpop.f32.mrf.mxu3 }
0x3445   : > { %v6561_v39 = vadd.f32 %v6560_v25, %v9028_v58  ;;  %v8257_v58 = vld [vmem:[#allocation2 + $0x458] sm:$0xff] }
0x344c   : > { %v6563_v9 = vpop.f32.mrf.mxu3 }
0x344d   : > { %v6564_v8 = vadd.f32 %v6563_v9, %v9021_v46 }
0x344f   : > { %v6577_v29 = vmax.f32 %v6564_v8, 0.0 }
0x3454   : > { %v6565_v60 = vpop.f32.mrf.mxu3 }
0x3455   : > { %v6566_v14 = vadd.f32 %v6565_v60, %v9017_v1  ;;  %v6554_v1 = vadd.f32 %v6553_v23, %v9035_v13  ;;  %v8262_v13 = vld [vmem:[#allocation2 + $0x3c8] sm:$0xff]  ;;  %v8264_v60 = vld [vmem:[%s9951_s3 + $0x7] ss:$0 sm:$0xff] }
0x3457   : > { %v6578_v33 = vmax.f32 %v6566_v14, 0.0  ;;  %v6573_v41 = vmax.f32 %v6554_v1, 0.0 }
0x3459   : > { %v6583_v53 = vpack.c.bf16 %v6578_v33, %v6577_v29 }
0x345c   : > { %v6568_v3 = vpop.f32.mrf.mxu3 }
0x345d   : > { %v6569_v44 = vadd.f32 %v6568_v3, %v9013_v63  ;;  %v6576_v63 = vmax.f32 %v6561_v39, 0.0 }
0x345f   : > { %v6579_v27 = vmax.f32 %v6569_v44, 0.0  ;;  %v6582_v46 = vpack.c.bf16 %v6576_v63, %v6575_v51 }
0x3464   : > { %v6570_v48 = vpop.f32.mrf.mxu3 }
0x3465   : > { %v6571_v19 = vadd.f32 %v6570_v48, %v9015_v11  ;;  %v6574_v11 = vmax.f32 %v6556_v49, 0.0 }
0x3467   : > { %v6580_v57 = vmax.f32 %v6571_v19, 0.0  ;;  %v6581_v59 = vpack.c.bf16 %v6574_v11, %v6573_v41 }
0x3469   : > { %v6584_v54 = vpack.c.bf16 %v6580_v57, %v6579_v27 }
0x346b   : > { %6589 = vmatpush.bf16.msra.mxu0 %v6584_v54 }
0x346f   : > { %6590 = vmatpush.bf16.msra.mxu0 %v6583_v53 }
0x3473   : > { %6591 = vmatpush.bf16.msra.mxu0 %v6582_v46 }
0x3477   : > { %6592 = vmatpush.bf16.msra.mxu0 %v6581_v59 }
0x347a   : > { %7675 = vmatmul.msk.bf16.vlgmr.msra.gmra.mxu0 %vm2356_vm11, %v8258_v45 }
0x347b   : > { %6651 = vmatpush.bf16.msrb.mxu0 %v8257_v58 }
0x347f   : > { %6652 = vmatpush.bf16.msrb.mxu0 %v8259_v10 }
0x3483   : > { %6653 = vmatpush.bf16.msrb.mxu0 %v8260_v28 }
0x3487   : > { %6654 = vmatpush.bf16.msrb.mxu0 %v8261_v61 }
0x348a   : > { %7676 = vmatmul.msk.bf16.gmra.mxu0 %vm2356_vm11, %v8262_v13  ;;  %v8265_v13 = vld [vmem:[#allocation2 + $0x500] sm:$0xff] }
0x34f7   : > { %v6594_v32 = vpop.f32.mrf.mxu0 }
0x34f8   : > { %v6595_v50 = vadd.f32 %v6594_v32, %v9041_v4  ;;  %v8266_v32 = vld [vmem:[#allocation2 + $0x740] sm:$0xff] }
0x34fa   : > { %v6604_v6 = vmax.f32 %v6595_v50, 0.0  ;;  %v8267_v50 = vld [vmem:[#allocation2 + $0x780] sm:$0xff] }
0x34ff   : > { %v6596_v56 = vpop.f32.mrf.mxu0 }
0x3500   : > { %v6597_v17 = vadd.f32 %v6596_v56, %v9043_v26  ;;  %v8263_v26 = vld [vmem:[%s9951_s3 + $0x6] ss:$0 sm:$0xff] }
0x3502   : > { %v6605_v15 = vmax.f32 %v6597_v17, 0.0 }
0x3504   : > { %v6608_v31 = vpack.c.bf16 %v6605_v15, %v6604_v6 }
0x3506   : > { %7677 = vmatmul.msk.bf16.vlgmr.msra.gmra.mxu1 %vm2356_vm11, %v6608_v31 }
0x3507   : > { %v6599_v62 = vpop.f32.mrf.mxu0 }
0x3508   : > { %v6600_v22 = vadd.f32 %v6599_v62, %v9048_v40 }
0x350a   : > { %v6606_v2 = vmax.f32 %v6600_v22, 0.0 }
0x350f   : > { %v6601_v30 = vpop.f32.mrf.mxu0 }
0x3510   : > { %v6602_v38 = vadd.f32 %v6601_v30, %v9051_v5  ;;  %v8268_v30 = vld [vmem:[#allocation2 + $0x480] sm:$0xff] }
0x3512   : > { %v6607_v55 = vmax.f32 %v6602_v38, 0.0 }
0x3514   : > { %v6609_v47 = vpack.c.bf16 %v6607_v55, %v6606_v2 }
0x3516   : > { %7678 = vmatmul.msk.bf16.gmra.mxu1 %vm2356_vm11, %v6609_v47 }
0x3583   : > { %v6625_v4 = vpop.f32.mrf.mxu1 }
0x3584   : > { %v6626_v20 = vadd.f32 %v8263_v26, %v6625_v4 }
0x3586   : > { %v6635_v35 = vmax.f32 %v6626_v20, 0.0 }
0x358b   : > { %v6627_v37 = vpop.f32.mrf.mxu1 }
0x358c   : > { %v6628_v52 = vadd.f32 %v8263_v26, %v6627_v37  ;;  %v8269_v37 = vld [vmem:[#allocation2 + $0x4c0] sm:$0x3] }
0x358e   : > { %v6636_v7 = vmax.f32 %v6628_v52, 0.0 }
0x3590   : > { %v6639_v34 = vpack.c.bf16 %v6636_v7, %v6635_v35 }
0x3592   : > { %7679 = vmatmul.msk.bf16.vlgmr.msrb.gmra.mxu0 %vm2356_vm11, %v6639_v34 }
0x3593   : > { %v6630_v40 = vpop.f32.mrf.mxu1 }
0x3594   : > { %v6631_v5 = vadd.f32 %v8263_v26, %v6630_v40 }
0x3596   : > { %v6637_v16 = vmax.f32 %v6631_v5, 0.0 }
0x359b   : > { %v6632_v24 = vpop.f32.mrf.mxu1 }
0x359c   : > { %v6633_v23 = vadd.f32 %v8263_v26, %v6632_v24 }
0x359e   : > { %v6638_v43 = vmax.f32 %v6633_v23, 0.0 }
0x35a0   : > { %v6640_v25 = vpack.c.bf16 %v6638_v43, %v6637_v16 }
0x35a2   : > { %7680 = vmatmul.msk.bf16.gmra.mxu0 %vm2356_vm11, %v6640_v25 }
0x360f   : > { %v6656_v9 = vpop.f32.mrf.mxu0 }
0x3610   : > { %v6657_v3 = vadd.f32 %v8264_v60, %v6656_v9 }
0x3612   : > { %v6666_v14 = vmax.f32 %v6657_v3, 0.0 }
0x3617   : > { %v6658_v44 = vpop.f32.mrf.mxu0 }
0x3618   : > { %v6659_v48 = vadd.f32 %v8264_v60, %v6658_v44 }
0x361a   : > { %v6667_v19 = vmax.f32 %v6659_v48, 0.0  ;;  %v5509_v48 = vpop.xlane.xlu0 %5508 }
0x361c   : > { %v6670_v8 = vpack.c.bf16 %v6667_v19, %v6666_v14  ;;  %v10339_v14 = vld [vmem:[#allocation75_spill] sm:$0xff] }
0x361d   : > { %v3185_v19 = vadd.f32 %v10339_v14, %v9690_v12 }
0x361e   : > { %7681 = vmatmul.msk.bf16.vlgmr.msrb.gmra.mxu2 %vm2629_vm12, %v6670_v8  ;;  %7683 = vmatmul.msk.bf16.vlgmr.msra.gmra.mxu3 %vm2629_vm12, %v6670_v8  ;;  %v5510_v8 = vsel %vm241_vm0, %v5509_v48, 0.0 }
0x361f   : > { %v6661_v27 = vpop.f32.mrf.mxu0 }
0x3620   : > { %v6662_v57 = vadd.f32 %v8264_v60, %v6661_v27  ;;  %v3188_v27 = vmax.f32 %v3185_v19, 0.0 }
0x3622   : > { %v6668_v54 = vmax.f32 %v6662_v57, 0.0  ;;  %v5511_v57 = vrot.slane %v5510_v8, 4 }
0x3627   : > { %v6663_v39 = vpop.f32.mrf.mxu0 }
0x3628   : > { %v6664_v33 = vadd.f32 %v8264_v60, %v6663_v39  ;;  %v8272_v39 = vld [vmem:[%s9951_s3 + $0x3] ss:$0 sm:$0xff] }
0x362a   : > { %v6669_v42 = vmax.f32 %v6664_v33, 0.0  ;;  %v10340_v33 = vld [vmem:[#allocation76_spill] sm:$0xff] }
0x362c   : > { %v6671_v29 = vpack.c.bf16 %v6669_v42, %v6668_v54  ;;  %v3388_v54 = vadd.f32 %v8272_v39, %v10340_v33  ;;  %v5512_v42 = vadd.f32 %v5511_v57, %v5510_v8 }
0x362e   : > { %7682 = vmatmul.msk.bf16.gmra.mxu2 %vm2629_vm12, %v6671_v29  ;;  %7684 = vmatmul.msk.bf16.gmra.mxu3 %vm2629_vm12, %v6671_v29 }
0x36a1   : > { %v6687_v49 = vpop.f32.mrf.mxu2  ;;  %v6706_v63 = vpop.f32.mrf.mxu3 }
0x36a2   : > { %v6716_v28 = vmax.f32 %v6687_v49, %v6706_v63  ;;  %v3391_v49 = vmax.f32 %v3388_v54, 0.0  ;;  %v5513_v63 = vrot.slane %v5512_v42, 2 }
0x36a9   : > { %v6689_v53 = vpop.f32.mrf.mxu2  ;;  %v6708_v1 = vpop.f32.mrf.mxu3 }
0x36aa   : > { %v6717_v45 = vmax.f32 %v6689_v53, %v6708_v1  ;;  %v5514_v1 = vadd.f32 %v5513_v63, %v5512_v42 }
0x36ac   : > { %v6720_v61 = vpack.c.bf16 %v6717_v45, %v6716_v28  ;;  %v5515_v12 = vrot.slane %v5514_v1, 1  ;;  %v1206_v45 = vpop.permute.xlu1 %1205  ;;  %v8274_v28 = vld [vmem:[%s9950_s2] sm:$0xff] }
0x36b1   : > { %v6692_v51 = vpop.f32.mrf.mxu2  ;;  %v6711_v11 = vpop.f32.mrf.mxu3 }
0x36b2   : > { %v6718_v59 = vmax.f32 %v6692_v51, %v6711_v11  ;;  %v1217_v11 = vld [vmem:[%s9951_s3 + $0xb] sm:$0x1] }
0x36b9   : > { %v6694_v46 = vpop.f32.mrf.mxu2  ;;  %v6713_v41 = vpop.f32.mrf.mxu3 }
0x36ba   : > { %v6719_v58 = vmax.f32 %v6694_v46, %v6713_v41  ;;  %v5516_v46 = vadd.f32 %v5515_v12, %v5514_v1  ;;  %v8273_v41 = vld [vmem:[%s9951_s3 + $0xa] sm:$0x1] }
0x36bc   : > { %v6721_v10 = vpack.c.bf16 %v6719_v58, %v6718_v59  ;;  %v5517_v59 = vadd.f32 %v8273_v41, %v5516_v46 }
0x36be   : > { %6728 = vmatpush.bf16.msrb.mxu1 %v6721_v10  ;;  %6742 = vmatpush.bf16.msra.mxu0 %v6721_v10  ;;  %v5518_v58 = vmax.f32 %v5517_v59, 0.0  ;;  %v6025_v10 = vpop.permute.xlu1 %6024 }
0x36c2   : > { %6729 = vmatpush.bf16.msrb.mxu1 %v6720_v61  ;;  %6743 = vmatpush.bf16.msra.mxu0 %v6720_v61  ;;  %v1208_v61 = vmul.f32 %v8274_v28, %v1206_v45 }
0x36c5   : > { %7685 = vmatmul.msk.bf16.vlgmr.msrb.gmra.mxu1 %vm2629_vm12, %v8266_v32  ;;  %7686 = vmatmul.msk.bf16.vlgmr.msra.gmra.mxu0 %vm2629_vm12, %v8267_v50  ;;  %v4711_v32 = vpop.permute.xlu0 %4710  ;;  %v1210_v50 = vsel %vm1209_vm14, %v1208_v61, 0.0 }
0x36c6   : > { %6795 = vmatpush.bf16.msrb.mxu0 %v8265_v13  ;;  %v6027_v13 = vmul.f32 %v8274_v28, %v6025_v10  ;;  %v2893_v57 = vpop.permute.xlu1 %2892 }
0x3742   : > { %v6731_v56 = vpop.f32.mrf.mxu1  ;;  %v6745_v17 = vpop.f32.mrf.mxu0 }
0x3743   : > { %v6750_v31 = vmax.f32 %v6731_v56, %v6745_v17  ;;  %v6028_v56 = vsel %vm1209_vm14, %v6027_v13, 0.0  ;;  %v4713_v17 = vmul.f32 %v8274_v28, %v4711_v32 }
0x374a   : > { %v6733_v6 = vpop.f32.mrf.mxu1  ;;  %v6747_v15 = vpop.f32.mrf.mxu0 }
0x374b   : > { %v6751_v62 = vmax.f32 %v6733_v6, %v6747_v15  ;;  %v1211_v6 = vrot.slane %v1210_v50, 4  ;;  %v6029_v15 = vrot.slane %v6028_v56, 4 }
0x374d   : > { %v6752_v22 = vpack.c.bf16 %v6751_v62, %v6750_v31  ;;  %v4714_v31 = vsel %vm1209_vm14, %v4713_v17, 0.0  ;;  %v1212_v62 = vadd.f32 %v1211_v6, %v1210_v50 }
0x374f   : > { %6760 = vmatpush.bf16.msra.mxu1 %v6752_v22  ;;  %v6030_v22 = vadd.f32 %v6029_v15, %v6028_v56 }
0x3752   : > { %7687 = vmatmul.msk.bf16.vlgmr.msra.gmra.mxu1 %vm525_vm2, %v8268_v30 }
0x37cf   : > { %v6762_v38 = vpop.f32.mrf.mxu1 }
0x37d0   : > { %v6763_v2 = vadd.f32 %v6762_v38, %v9083_v21  ;;  %v8270_v21 = vld [vmem:[%s9951_s3 + $0x8] ss:$0 sm:$0xff]  ;;  %v4715_v38 = vrot.slane %v4714_v31, 4 }
0x37d2   : > { %v6767_v4 = vmax.f32 %v6763_v2, 0.0 }
0x37d7   : > { %v6764_v55 = vpop.f32.mrf.mxu1 }
0x37d8   : > { %v6765_v47 = vadd.f32 %v6764_v55, %v9085_v36 }
0x37da   : > { %v6768_v26 = vmax.f32 %v6765_v47, 0.0  ;;  %v1213_v47 = vrot.slane %v1212_v62, 2 }
0x37dc   : > { %v6769_v20 = vpack.c.bf16 %v6768_v26, %v6767_v4  ;;  %v6031_v4 = vrot.slane %v6030_v22, 2 }
0x37de   : > { %6777 = vmatpush.bf16.msra.mxu2 %v6769_v20  ;;  %v4716_v20 = vadd.f32 %v4715_v38, %v4714_v31 }
0x37e1   : > { %7688 = vmatmul.msk.bf16.vlgmr.msra.gmra.mxu2 %vm525_vm2, %v8269_v37 }
0x3864   : > { %v6779_v52 = vpop.f32.mrf.mxu2 }
0x3865   : > { %v6780_v35 = vadd.f32 %v6779_v52, %v9087_v0  ;;  %v8271_v0 = vld [vmem:[%s9951_s3 + $0x9] ss:$0 sm:$0xff]  ;;  %v1214_v52 = vadd.f32 %v1213_v47, %v1212_v62 }
0x3867   : > { %v6783_v7 = vmax.f32 %v6780_v35, 0.0  ;;  %v6032_v35 = vadd.f32 %v6031_v4, %v6030_v22 }
0x3869   : > { %v6784_v34 = vpack.c.bf16 %v6783_v7, %v6783_v7 }
0x386b   : > { %7689 = vmatmul.msk.bf16.vlgmr.msrb.gmra.mxu0 %vm525_vm2, %v6784_v34 }
0x386c   : > { %v6781_v40 = vpop.f32.mrf.mxu2 }
0x386d   : > { %v4717_v40 = vrot.slane %v4716_v20, 2 }
0x38e8   : > { %v6797_v5 = vpop.f32.mrf.mxu0 }
0x38e9   : > { %v6798_v36 = vadd.f32 %v8270_v21, %v6797_v5 }
0x38eb   : > { %v6801_v24 = vmax.f32 %v6798_v36, 0.0  ;;  %v1215_v36 = vrot.slane %v1214_v52, 1 }
0x38ed   : > { %v6802_v23 = vpack.c.bf16 %v6801_v24, %v6801_v24 }
0x38ef   : > { %7690 = vmatmul.msk.bf16.vlgmr.msrb.gmra.mxu3 %vm525_vm2, %v6802_v23  ;;  %v6033_v23 = vrot.slane %v6032_v35, 1 }
0x38f0   : > { %v6799_v16 = vpop.f32.mrf.mxu0 }
0x3972   : > { %v6815_v43 = vpop.f32.mrf.mxu3 }
0x3973   : > { %v6816_v25 = vadd.f32 %v8271_v0, %v6815_v43  ;;  %v4718_v0 = vadd.f32 %v4717_v40, %v4716_v20 }
0x3975   : > { %v6819_v9 = vmax.f32 %v6816_v25, 0.0  ;;  %v4719_v8 = vrot.slane %v4718_v0, 1 }
0x3977   : > { %v6820_v60 = vmul.f32 %v6819_v9, %v9673_v18  ;;  %v10341_v18 = vld [vmem:[#allocation74_spill] sm:$0xff]  ;;  %v4720_v42 = vadd.f32 %v4719_v8, %v4718_v0 }
0x3978   : > { %v3392_v29 = vadd.f32 %v3188_v27, %v10341_v18 }
0x3979   : > { %v6821_v3 = vsel %vm2877_vm13, %v6820_v60, 0.0  ;;  %v1216_v60 = vadd.f32 %v1215_v36, %v1214_v52 }
0x397a   : > { %v6817_v44 = vpop.f32.mrf.mxu3  ;;  %6822 = vadd.xlane.f32.xlu2 %v6821_v3  ;;  %v3393_v53 = vadd.f32 %v3392_v29, %v3391_v49  ;;  %v6034_v3 = vadd.f32 %v6033_v23, %v6032_v35 }
0x397c   : > { %v3394_v51 = vmax.f32 %v3393_v53, 0.0 }
0x3992   : > { %3396 = vrot.lane.b32.xlu2 %v3394_v51, %s8338_s14  ;;  %v4207_v51 = vpop.permute.xlu0 %4206 }
0x399a   : > { %1219 = vrot.lane.b32.xlu2 %v1217_v11, %s8339_s9 }
0x39a2   : > { %5520 = vrot.lane.b32.xlu2 %v5518_v58, %s8339_s9 }
0x39ed   : > { %v6823_v30 = vpop.xlane.xlu2 %6822 }
0x39ee   : > { %v6824_v2 = vsel %vm241_vm0, %v6823_v30, 0.0 }
0x39ef   : > { %v6825_v55 = vrot.slane %v6824_v2, 4 }
0x39f1   : > { %v6826_v26 = vadd.f32 %v6825_v55, %v6824_v2 }
0x39f3   : > { %v6827_v37 = vrot.slane %v6826_v26, 2 }
0x39f5   : > { %v6828_v7 = vadd.f32 %v6827_v37, %v6826_v26  ;;  %v3397_v34 = vpop.permute.xlu2 %3396 }
0x39f6   : > { %v3399_v5 = vmul.f32 %v8274_v28, %v3397_v34 }
0x39f7   : > { %v6829_v21 = vrot.slane %v6828_v7, 1 }
0x39f8   : > { %v3400_v24 = vsel %vm1209_vm14, %v3399_v5, 0.0 }
0x39f9   : > { %v6830_v16 = vadd.f32 %v6829_v21, %v6828_v7  ;;  %v3401_v43 = vrot.slane %v3400_v24, 4 }
0x39fb   : > { %v3402_v25 = vadd.f32 %v3401_v43, %v3400_v24  ;;  %v6831_v9 = vadd.f32 %v8273_v41, %v6830_v16 }
0x39fd   : > { %v3403_v44 = vrot.slane %v3402_v25, 2  ;;  %v1220_v48 = vpop.permute.xlu2 %1219  ;;  %v6832_v14 = vmax.f32 %v6831_v9, 0.0 }
0x39fe   : > { %v1222_v19 = vadd.f32 %v1220_v48, %v1216_v60  ;;  %v9923_v27 = vadd.f32 %v6034_v3, %v1220_v48  ;;  %v4721_v49 = vadd.f32 %v4720_v42, %v1220_v48 }
0x39ff   : > { %v3404_v39 = vadd.f32 %v3403_v44, %v3402_v25  ;;  %6834 = vrot.lane.b32.xlu1 %v6832_v14, %s8339_s9  ;;  %s8341_s9 = smov 118  }
0x3a00   : > { %v9926_v33 = vadd.f32 %v2893_v57, %v1222_v19 }
0x3a01   : > { %v3405_v54 = vrot.slane %v3404_v39, 1 }
0x3a02   : > { %v2896_v18 = vand.u32 2147483647, %v9926_v33  ;;  %vm2900_vm5 = vcmp.ge.f32.partialorder %v9926_v33, 0.0 }
0x3a03   : > { %v3406_v29 = vadd.f32 %v3405_v54, %v3404_v39 }
0x3a04   : > { %v2897_v63 = vsub.f32 0.0, %v2896_v18 }
0x3a05   : > { %v3407_v53 = vadd.f32 %v3406_v29, %v1220_v48  ;;  %v5521_v1 = vpop.permute.xlu2 %5520 }
0x3a06   : > { %v9929_v12 = vadd.f32 %v5521_v1, %v4721_v49  ;;  %v2898_v11 = vmul.f32 1.442695, %v2897_v63 }
0x3a07   : > { %v9931_v46 = vadd.f32 %v4207_v51, %v3407_v53 }
0x3a08   : > { %v5524_v41 = vand.u32 2147483647, %v9929_v12  ;;  %7881 = vpow2.f32 %v2898_v11  ;;  %vm5528_vm13 = vcmp.ge.f32.partialorder %v9929_v12, 0.0 }
0x3a09   : > { %v4210_v59 = vand.u32 2147483647, %v9931_v46  ;;  %vm4214_vm14 = vcmp.ge.f32.partialorder %v9931_v46, 0.0 }
0x3a0a   : > { %v5525_v58 = vsub.f32 0.0, %v5524_v41 }
0x3a0b   : > { %v4211_v45 = vsub.f32 0.0, %v4210_v59 }
0x3a0c   : > { %v5526_v10 = vmul.f32 1.442695, %v5525_v58 }
0x3a0d   : > { %v4212_v28 = vmul.f32 1.442695, %v4211_v45 }
0x3a0e   : > { %v7882_v61 = vpop.eup %7881  ;;  %7883 = vpow2.f32 %v5526_v10 }
0x3a0f   : > { %v2901_v13 = vadd.f32 1.0, %v7882_v61  ;;  %7885 = vpow2.f32 %v4212_v28 }
0x3a11   : > { %7887 = vrcp.f32 %v2901_v13  ;;  %v2913_v62 = vand.u32 2147483648, %v2901_v13  ;;  %v2911_v30 = vand.u32 2147483647, %v2901_v13  ;;  %vm2907_vm0 = vweird.f32 %v2901_v13 }
0x3a13   : > { %v2914_v4 = vor.u32 1.1754944e-38, %v2913_v62  ;;  %vm2912_vm2 = vcmp.eq.f32.partialorder %v2911_v30, 8.507059e+37 }
0x3a14   : > { %v7884_v32 = vpop.eup %7883 }
0x3a15   : > { %v7886_v50 = vpop.eup %7885  ;;  %v5529_v56 = vadd.f32 1.0, %v7884_v32 }
0x3a16   : > { %v4215_v17 = vadd.f32 1.0, %v7886_v50 }
0x3a17   : > { %v7888_v6 = vpop.eup %7887  ;;  %7889 = vrcp.f32 %v5529_v56  ;;  %v5539_v35 = vand.u32 2147483647, %v5529_v56  ;;  %v5541_v7 = vand.u32 2147483648, %v5529_v56  ;;  %vm5535_vm7 = vweird.f32 %v5529_v56 }
0x3a18   : > { %v2903_v15 = vmul.f32 %v7888_v6, %v2901_v13  ;;  %7891 = vrcp.f32 %v4215_v17  ;;  %vm2908_vm15 = vweird.f32 %v7888_v6  ;;  %v4227_v21 = vand.u32 2147483648, %v4215_v17 }
0x3a19   : > { %vm2909_vm1 = vmor %vm2907_vm0, %vm2908_vm15  ;;  %v4225_v24 = vand.u32 2147483647, %v4215_v17  ;;  %v5542_v43 = vor.u32 1.1754944e-38, %v5541_v7  ;;  %vm4221_vm9 = vweird.f32 %v4215_v17  ;;  %vm5540_vm10 = vcmp.eq.f32.partialorder %v5539_v35, 8.507059e+37 }
0x3a1a   : > { %v2904_v31 = vsub.f32 1.0, %v2903_v15  ;;  %v4228_v9 = vor.u32 1.1754944e-38, %v4227_v21 }
0x3a1b   : > { %vm4226_vm12 = vcmp.eq.f32.partialorder %v4225_v24, 8.507059e+37 }
0x3a1c   : > { %v2905_v22 = vmul.f32 %v7888_v6, %v2904_v31 }
0x3a1d   : > { %v7890_v38 = vpop.eup %7889 }
0x3a1e   : > { %v7892_v2 = vpop.eup %7891  ;;  %v2906_v55 = vadd.f32 %v7888_v6, %v2905_v22  ;;  %v5531_v47 = vmul.f32 %v7890_v38, %v5529_v56  ;;  %vm5536_vm4 = vweird.f32 %v7890_v38 }
0x3a1f   : > { %v4217_v26 = vmul.f32 %v7892_v2, %v4215_v17  ;;  %vm4222_vm6 = vweird.f32 %v7892_v2  ;;  %vm5537_vm8 = vmor %vm5535_vm7, %vm5536_vm4  ;;  %vm6882_vm7 = vcmask 24576  }
0x3a20   : > { %v2910_v20 = vsel %vm2909_vm1, %v7888_v6, %v2906_v55  ;;  %v5532_v37 = vsub.f32 1.0, %v5531_v47  ;;  %vm4223_vm11 = vmor %vm4221_vm9, %vm4222_vm6  ;;  %vm6880_vm6 = vcmask 23552  }
0x3a21   : > { %v2915_v52 = vsel %vm2912_vm2, %v2914_v4, %v2910_v20  ;;  %v4218_v34 = vsub.f32 1.0, %v4217_v26 }
0x3a22   : > { %v2917_v40 = vmul.f32 %v7882_v61, %v2915_v52  ;;  %v5533_v5 = vmul.f32 %v7890_v38, %v5532_v37 }
0x3a23   : > { %v4219_v36 = vmul.f32 %v7892_v2, %v4218_v34 }
0x3a24   : > { %v2918_v23 = vsel %vm2900_vm5, %v2915_v52, %v2917_v40  ;;  %v5534_v16 = vadd.f32 %v7890_v38, %v5533_v5  ;;  %vm6877_vm5 = vcmask 7168  }
0x3a25   : > { %6862 = vrot.lane.b32.xlu0 %v2918_v23, %s8340_s8  ;;  %v4220_v0 = vadd.f32 %v7892_v2, %v4219_v36 }
0x3a26   : > { %v5538_v25 = vsel %vm5537_vm8, %v7890_v38, %v5534_v16 }
0x3a27   : > { %v5543_v60 = vsel %vm5540_vm10, %v5542_v43, %v5538_v25  ;;  %v4224_v3 = vsel %vm4223_vm11, %v7892_v2, %v4220_v0 }
0x3a28   : > { %v5545_v44 = vmul.f32 %v7884_v32, %v5543_v60  ;;  %v4229_v48 = vsel %vm4226_vm12, %v4228_v9, %v4224_v3 }
0x3a29   : > { %v4231_v14 = vmul.f32 %v7886_v50, %v4229_v48 }
0x3a2a   : > { %v5546_v19 = vsel %vm5528_vm13, %v5543_v60, %v5545_v44 }
0x3a2b   : > { %6870 = vrot.lane.b32.xlu1 %v5546_v19, %s8341_s9  ;;  %v4232_v8 = vsel %vm4214_vm14, %v4229_v48, %v4231_v14 }
0x3a2c   : > { %6866 = vrot.lane.b32.xlu2 %v4232_v8, %s8342_s10 }
0x3a71   : > { %v6835_v57 = vpop.permute.xlu1 %6834 }
0x3a72   : > { %v6837_v39 = vadd.f32 %v6835_v57, %v9923_v27 }
0x3a74   : > { %v6838_v33 = vand.u32 2147483647, %v6837_v39  ;;  %vm6842_vm4 = vcmp.ge.f32.partialorder %v6837_v39, 0.0 }
0x3a76   : > { %v6839_v54 = vsub.f32 0.0, %v6838_v33 }
0x3a78   : > { %v6840_v42 = vmul.f32 1.442695, %v6839_v54 }
0x3a7a   : > { %7893 = vpow2.f32 %v6840_v42 }
0x3a80   : > { %v7894_v18 = vpop.eup %7893 }
0x3a81   : > { %v6843_v29 = vadd.f32 1.0, %v7894_v18 }
0x3a83   : > { %7895 = vrcp.f32 %v6843_v29  ;;  %v6855_v1 = vand.u32 2147483648, %v6843_v29  ;;  %v6853_v12 = vand.u32 2147483647, %v6843_v29  ;;  %vm6849_vm0 = vweird.f32 %v6843_v29 }
0x3a85   : > { %v6856_v27 = vor.u32 1.1754944e-38, %v6855_v1  ;;  %vm6854_vm2 = vcmp.eq.f32.partialorder %v6853_v12, 8.507059e+37 }
0x3a86   : > { %v6867_v28 = vpop.permute.xlu2 %6866 }
0x3a89   : > { %v7896_v49 = vpop.eup %7895 }
0x3a8a   : > { %v6845_v63 = vmul.f32 %v7896_v49, %v6843_v29  ;;  %vm6850_vm15 = vweird.f32 %v7896_v49 }
0x3a8b   : > { %vm6851_vm1 = vmor %vm6849_vm0, %vm6850_vm15 }
0x3a8c   : > { %v6846_v53 = vsub.f32 1.0, %v6845_v63 }
0x3a8e   : > { %v6847_v51 = vmul.f32 %v7896_v49, %v6846_v53 }
0x3a90   : > { %v6848_v11 = vadd.f32 %v7896_v49, %v6847_v51 }
0x3a92   : > { %v6852_v46 = vsel %vm6851_vm1, %v7896_v49, %v6848_v11 }
0x3a93   : > { %v6857_v41 = vsel %vm6854_vm2, %v6856_v27, %v6852_v46 }
0x3a94   : > { %v6859_v59 = vmul.f32 %v7894_v18, %v6857_v41 }
0x3a96   : > { %v6860_v58 = vsel %vm6842_vm4, %v6857_v41, %v6859_v59 }
0x3a97   : > { %6874 = vrot.lane.b32.xlu0 %v6860_v58, %s8343_s11  ;;  %v6863_v45 = vpop.permute.xlu0 %6862 }
0x3a98   : > { %v6878_v61 = vsel %vm6877_vm5, %v6863_v45, %v6867_v28 }
0x3a9d   : > { %v6871_v10 = vpop.permute.xlu1 %6870 }
0x3a9e   : > { %v6879_v13 = vsel %vm219_vm3, %v6878_v61, %v6871_v10 }
0x3b09   : > { %v6875_v32 = vpop.permute.xlu0 %6874 }
0x3b0a   : > { %v6881_v50 = vsel %vm6880_vm6, %v6879_v13, %v6875_v32 }
0x3b0b   : > { %6883 = vst.msk [vmem:[%s212_s18] sm:$0x1] %vm6882_vm7, %v6881_v50 }
0x3b0c PF: > { %s15_s15 = sadd.s32 1, %s8315_s15  }
0x3b0d   : > { %p12_p8 = scmp.ge.s32.totalorder %s15_s15, 4  }
0x3b0f   :  { %14 = sbr.rel (!%p12_p8) target bundleno = 1 (0x1), region = 104 }
0x3b14   :  { %6901 = vsyncpa [#allocation3], 1 }
0x3b15   :  { %6903 = vsyncpa [#allocation3 + $0x1], 1 }

</bundles_post_ra>
